<compile_context>
chip_gen: v5e
topology: v5e:2x2
jax: 0.10.0
libtpu: 0.0.40
codegen_flags: <defaults>
</compile_context>

<pallas_src>
import jax
import jax.numpy as jnp
from jax.experimental import pallas as pl
from jax.experimental.pallas import tpu as pltpu

# Synthetic MAG240M-like schema (sorted rel names, as the module sorts hg.etypes):
# (rel_name, src_ntype, dst_ntype)
REL_SCHEMA = (
    ("affiliated_with", "author", "institution"),
    ("cites", "paper", "paper"),
    ("rev_affiliated_with", "institution", "author"),
    ("rev_writes", "paper", "author"),
    ("writes", "author", "paper"),
)
NTYPES = ("author", "institution", "paper")
# relations grouped by destination node type (local relation index j refers to
# the position in this tuple)
RELS_BY_DST = {nt: tuple(r for r in REL_SCHEMA if r[2] == nt) for nt in NTYPES}

LANE = 128      # feature dims padded to a multiple of this (lane-dense outputs)
TILE_M = 256    # destination-row tile; dst node counts padded to a multiple
CHUNK_K = 512   # source-node chunk; src node counts padded per source type


def _round_up(x, m):
    return (x + m - 1) // m * m


def _pad2d(x, rows, cols):
    r, c = x.shape
    if r == rows and c == cols:
        return x
    return jnp.pad(x, ((0, rows - r), (0, cols - c)))


# ----------------------------------------------------------------------------
# Fused Pallas kernel (per destination node type):
#   out[i-tile] = sum_k scale_{rel(k)} * (A01[i, k-chunk] @ (X[k-chunk] @ W_{rel(k)}))
#                 + bias   (+ ReLU)
# ----------------------------------------------------------------------------
def _make_kernel(apply_relu, compute_dtype):
    def kernel(rel_idx_ref, a_ref, x_ref, w_ref, scale_ref, bias_ref,
               out_ref, acc_ref):
        del rel_idx_ref  # consumed by the index_maps only
        k = pl.program_id(1)

        @pl.when(k == 0)
        def _():
            acc_ref[...] = jnp.zeros_like(acc_ref)

        # int8 {0,1} adjacency chunk -> compute dtype for the MXU (exact values).
        a = a_ref[...].astype(compute_dtype)
        # partial Z for this source chunk (W_r selected via scalar-prefetched map).
        z = jnp.dot(x_ref[...], w_ref[...],
                    preferred_element_type=jnp.float32).astype(compute_dtype)
        part = jnp.dot(a, z, preferred_element_type=jnp.float32)
        # per-relation, per-dst-row right-normalization (1/deg) in f32.
        acc_ref[...] += scale_ref[...] * part

        @pl.when(k == pl.num_programs(1) - 1)
        def _():
            h = acc_ref[...] + bias_ref[...]
            if apply_relu:
                h = jnp.maximum(h, 0.0)
            out_ref[...] = h.astype(out_ref.dtype)

    return kernel


def _vmem_limit_bytes(per_step_bytes):
    """Per-generation VMEM budget: physical capacity minus headroom.

    Falls back to a conservative 64 MiB (v7x per-core) if the query is unavailable.
    """
    try:
        capacity = int(pltpu.get_tpu_info().vmem_capacity_bytes)
    except Exception:  # noqa: BLE001  (off-TPU / older API)
        capacity = 64 << 20
    cap = max(capacity - (16 << 20), 32 << 20)
    want = max(per_step_bytes + (8 << 20), 32 << 20)
    return int(min(want, cap))


def rel_graph_conv_dst(rel_idx, a_cat, x_cat, w_stack, scale_col, bias,
                       *, apply_relu, out_dtype, compute_dtype,
                       tile_m=TILE_M, chunk=CHUNK_K):
    """out[Nd, Fo] = sum_r (1/deg_r) * (A01_r @ (X_r @ W_r)) + bias (+ ReLU).

    rel_idx:   int32[num_k]          chunk -> local relation index (scalar prefetch)
    a_cat:     int8 [Nd, S]          binary adjacencies concatenated along sources
    x_cat:     cd   [S, Fi]          per-relation source features concatenated
    w_stack:   cd   [R_t, Fi, Fo]    per-relation weights for this dst type
    scale_col: f32  [R_t * Nd, 1]    per-relation 1/deg columns stacked along rows
    bias:      f32  [1, Fo]
    """
    nd, s_total = a_cat.shape
    fi = x_cat.shape[1]
    r_t, fi_w, fo = w_stack.shape
    assert fi_w == fi and nd % tile_m == 0 and s_total % chunk == 0
    assert fi % LANE == 0 and fo % LANE == 0
    num_i, num_k = nd // tile_m, s_total // chunk
    assert rel_idx.shape == (num_k,) and scale_col.shape == (r_t * nd, 1)

    in_specs = [
        # A chunk: the dominant HBM stream (int8, 1 byte/elem).
        pl.BlockSpec((tile_m, chunk), lambda i, k, ridx: (i, k)),
        # X chunk (re-fetched per dst-row tile; Z never round-trips to HBM).
        pl.BlockSpec((chunk, fi), lambda i, k, ridx: (k, 0)),
        # per-chunk relation weight via the scalar-prefetched chunk->rel map.
        pl.BlockSpec((None, fi, fo), lambda i, k, ridx: (ridx[k], 0, 0)),
        # per-relation 1/deg column for this dst-row tile.
        pl.BlockSpec((tile_m, 1),
                     lambda i, k, ridx, _ni=num_i: (ridx[k] * _ni + i, 0)),
        # bias (constant block).
        pl.BlockSpec((1, fo), lambda i, k, ridx: (0, 0)),
    ]
    out_specs = pl.BlockSpec((tile_m, fo), lambda i, k, ridx: (i, 0))

    csize = jnp.dtype(compute_dtype).itemsize
    osize = jnp.dtype(out_dtype).itemsize
    per_step = 2 * (tile_m * chunk                 # int8 A tile
                    + chunk * fi * csize           # X tile
                    + fi * fo * csize              # W block
                    + tile_m * LANE * 4            # scale column (lane-padded)
                    + 8 * fo * 4                   # bias (sublane-padded)
                    + tile_m * fo * osize)         # out tile
    per_step += tile_m * fo * 4                    # f32 accumulator scratch

    flops = (num_i * 2 * s_total * fi * fo         # Z recomputed per dst-row tile
             + 2 * nd * s_total * fo               # A @ Z
             + num_k * nd * fo)                    # scale multiply
    bytes_accessed = (a_cat.size
                      + num_i * x_cat.size * csize
                      + num_i * r_t * fi * fo * csize
                      + nd * fo * osize + scale_col.size * 4 + fo * 4)

    return pl.pallas_call(
        _make_kernel(apply_relu, compute_dtype),
        grid_spec=pltpu.PrefetchScalarGridSpec(
            num_scalar_prefetch=1,
            grid=(num_i, num_k),
            in_specs=in_specs,
            out_specs=out_specs,
            scratch_shapes=[pltpu.VMEM((tile_m, fo), jnp.float32)]),
        out_shape=jax.ShapeDtypeStruct((nd, fo), out_dtype),
        compiler_params=pltpu.CompilerParams(
            # dst-row tiles are independent (each resets its accumulator at k==0)
            # -> "parallel" lets v7x split them across both TensorCores; the
            # source-chunk axis is the reduction -> "arbitrary", last in the grid.
            dimension_semantics=("parallel", "arbitrary"),
            vmem_limit_bytes=_vmem_limit_bytes(per_step)),
        cost_estimate=pl.CostEstimate(flops=int(flops), transcendentals=0,
                                      bytes_accessed=int(bytes_accessed)),
    )(rel_idx, a_cat, x_cat, w_stack, scale_col, bias)


# ----------------------------------------------------------------------------
# EntityClassify (JAX glue around the fused Pallas kernel)
# ----------------------------------------------------------------------------
class EntityClassifyPallas:
    def __init__(self, key, in_feats, hidden_feats, out_feats, num_bases,
                 num_layers, activation="relu", compute_dtype=jnp.bfloat16,
                 tile_m=TILE_M, chunk=CHUNK_K):
        self.rel_names = [r[0] for r in REL_SCHEMA]
        self.num_rels = len(self.rel_names)
        self.num_layers = num_layers
        self.activation = activation
        self.out_feats = out_feats
        self.compute_dtype = compute_dtype
        self.tile_m = tile_m
        self.chunk = chunk
        if num_bases < 0 or num_bases > self.num_rels:
            num_bases = self.num_rels
        self.num_bases = num_bases

        if num_layers == 1:
            dims = [(in_feats, out_feats)]
        else:
            dims = ([(in_feats, hidden_feats)]
                    + [(hidden_feats, hidden_feats)] * (num_layers - 2)
                    + [(hidden_feats, out_feats)])

        gain = float(jnp.sqrt(2.0))  # calculate_gain('relu')
        self.layers = []
        for (fi, fo) in dims:
            key, k1, k2 = jax.random.split(key, 3)
            limit = gain * float(jnp.sqrt(6.0 / (fi + fo)))
            params = {}
            if self.num_bases < self.num_rels:
                # WeightBasis decomposition: W_r = sum_b w_comp[r,b] * bases[b]
                params["bases"] = jax.random.uniform(
                    k1, (self.num_bases, fi, fo), jnp.float32, -limit, limit)
                climit = float(jnp.sqrt(6.0 / (self.num_rels + self.num_bases)))
                params["w_comp"] = jax.random.uniform(
                    k2, (self.num_rels, self.num_bases), jnp.float32, -climit, climit)
            else:
                params["weight"] = jax.random.uniform(
                    k1, (self.num_rels, fi, fo), jnp.float32, -limit, limit)
            params["bias"] = jnp.zeros((fo,), jnp.float32)
            self.layers.append(params)

        # Hoist the basis einsum, padding, per-dst-type weight stacking and dtype
        # casts out of the forward pass.
        rel_index = {r[0]: i for i, r in enumerate(REL_SCHEMA)}
        self._packed = []
        for params in self.layers:
            w = self.layer_weight(params)                    # (R, fi, fo) f32
            fi, fo = w.shape[1], w.shape[2]
            fi_p, fo_p = _round_up(fi, LANE), _round_up(fo, LANE)
            w_p = jnp.pad(w, ((0, 0), (0, fi_p - fi), (0, fo_p - fo))
                          ).astype(compute_dtype)
            w_by_dst = {nt: jnp.stack([w_p[rel_index[rel]]
                                       for rel, _src, _dst in RELS_BY_DST[nt]])
                        for nt in NTYPES}
            b_p = jnp.pad(params["bias"], (0, fo_p - fo)
                          ).reshape(1, fo_p).astype(jnp.float32)
            self._packed.append({"w_by_dst": w_by_dst, "bias": b_p,
                                 "fi_pad": fi_p, "fo_pad": fo_p})

    def layer_weight(self, params):
        if "w_comp" in params:
            return jnp.einsum("rb,bio->rio", params["w_comp"], params["bases"])
        return params["weight"]

    def _prepare_graph(self, adj, num_nodes):
        """Layer-invariant operands: int8 binary adjacency concatenated per dst
        type, f32 1/deg scale columns, and the chunk->relation index maps."""
        nd_pad = {nt: _round_up(max(n, 1), self.tile_m) for nt, n in num_nodes.items()}
        ns_pad = {nt: _round_up(max(n, 1), self.chunk) for nt, n in num_nodes.items()}
        a_cat, scale_col, rel_idx = {}, {}, {}
        for nt in NTYPES:
            a_blocks, scales, ridx = [], [], []
            for j, (rel, src, dst) in enumerate(RELS_BY_DST[nt]):
                a01 = adj[rel]                                    # [n_dst, n_src] in {0,1}
                deg = jnp.maximum(jnp.sum(a01, axis=1), 1.0)      # clamp like GraphConv
                scales.append(jnp.pad(1.0 / deg,
                                      (0, nd_pad[dst] - num_nodes[dst])))
                a_blocks.append(_pad2d(a01, nd_pad[dst], ns_pad[src]
                                       ).astype(jnp.int8))
                ridx += [j] * (ns_pad[src] // self.chunk)
            a_cat[nt] = jnp.concatenate(a_blocks, axis=1)
            scale_col[nt] = jnp.concatenate(scales, axis=0).reshape(-1, 1)
            rel_idx[nt] = jnp.asarray(ridx, dtype=jnp.int32)
        return nd_pad, ns_pad, a_cat, scale_col, rel_idx

    def __call__(self, adj, x_author, x_institution, x_paper):
        num_nodes = {"author": x_author.shape[0],
                     "institution": x_institution.shape[0],
                     "paper": x_paper.shape[0]}
        cd = self.compute_dtype
        _nd_pad, ns_pad, a_cat, scale_col, rel_idx = self._prepare_graph(adj, num_nodes)

        feats = {"author": x_author, "institution": x_institution, "paper": x_paper}
        for li, packed in enumerate(self._packed):
            is_last = li == self.num_layers - 1
            apply_relu = (self.activation == "relu") and not is_last
            out_dtype = jnp.float32 if is_last else cd
            fi_p = packed["fi_pad"]
            # Padded rows / cols are zero; junk rows carried over from a previous
            # layer's padding align with zero adjacency columns (contribute 0).
            src_pad = {nt: _pad2d(feats[nt], ns_pad[nt], fi_p).astype(cd)
                       for nt in NTYPES}
            new_feats = {}
            for nt in NTYPES:
                x_cat = jnp.concatenate(
                    [src_pad[src] for _rel, src, _dst in RELS_BY_DST[nt]], axis=0)
                new_feats[nt] = rel_graph_conv_dst(
                    rel_idx[nt], a_cat[nt], x_cat, packed["w_by_dst"][nt],
                    scale_col[nt], packed["bias"],
                    apply_relu=apply_relu, out_dtype=out_dtype, compute_dtype=cd,
                    tile_m=self.tile_m, chunk=self.chunk)
            feats = new_feats
            # dropout (p=0 / eval) and layer_norm (disabled) are identities here.

        return tuple(feats[nt][: num_nodes[nt], : self.out_feats] for nt in NTYPES)


# ----------------------------------------------------------------------------
# pure-JAX reference (mirrors the kernel's cast sequence: binary A in compute
# dtype, f32 accumulation, f32 1/deg epilogue scaling)
# ----------------------------------------------------------------------------
def reference_forward(model, adj, x_author, x_institution, x_paper):
    cd = model.compute_dtype
    feats = {"author": x_author, "institution": x_institution, "paper": x_paper}
    inv_deg = {rel: 1.0 / jnp.maximum(jnp.sum(adj[rel], axis=1), 1.0)
               for rel, _src, _dst in REL_SCHEMA}
    for li, params in enumerate(model.layers):
        is_last = li == model.num_layers - 1
        weight = model.layer_weight(params).astype(cd)
        fo = weight.shape[-1]
        new = {nt: jnp.zeros((feats[nt].shape[0], fo), jnp.float32) for nt in NTYPES}
        for r, (rel, src, dst) in enumerate(REL_SCHEMA):
            z = jnp.dot(feats[src].astype(cd), weight[r],
                        preferred_element_type=jnp.float32).astype(cd)
            agg = jnp.dot(adj[rel].astype(cd), z, preferred_element_type=jnp.float32)
            new[dst] = new[dst] + inv_deg[rel][:, None] * agg
        out_dtype = jnp.float32 if is_last else cd
        for nt in NTYPES:
            h = new[nt] + params["bias"]
            if model.activation == "relu" and not is_last:
                h = jnp.maximum(h, 0.0)
            new[nt] = h.astype(out_dtype)
        feats = new
    return feats["author"], feats["institution"], feats["paper"]


def make_graph(key, num_nodes, p=0.3):
    """Random BINARY adjacency per relation; the model applies the right-norm
    (1/in-degree, clamped) itself, exactly like dgl GraphConv(norm='right')."""
    adj = {}
    for rel, src, dst in REL_SCHEMA:
        key, k = jax.random.split(key)
        adj[rel] = jax.random.bernoulli(
            k, p, (num_nodes[dst], num_nodes[src])).astype(jnp.float32)
    return adj


if __name__ == "__main__":
    key = jax.random.PRNGKey(0)
    kg, kx, kp = jax.random.split(key, 3)

    num_nodes = {"author": 64, "institution": 16, "paper": 96}
    in_feats, hidden_feats, out_feats = 32, 64, 16
    num_layers, num_bases = 2, 2  # num_bases < num_rels => basis decomposition path

    adj = make_graph(kg, num_nodes)

    kxa, kxi, kxp = jax.random.split(kx, 3)
    x_author = jax.random.normal(kxa, (num_nodes["author"], in_feats), jnp.float32)
    x_institution = jax.random.normal(kxi, (num_nodes["institution"], in_feats), jnp.float32)
    x_paper = jax.random.normal(kxp, (num_nodes["paper"], in_feats), jnp.float32)

    # --- f32 MXU operands: tight correctness check against the pure-JAX reference.
    #     (On v7x this path is correctness-only; bf16 below is the perf config.)
    model_f32 = EntityClassifyPallas(kp, in_feats, hidden_feats, out_feats,
                                     num_bases, num_layers, activation="relu",
                                     compute_dtype=jnp.float32)
    fwd_f32 = jax.jit(lambda a, xa, xi, xp_: model_f32(a, xa, xi, xp_))
    out = jax.block_until_ready(fwd_f32(adj, x_author, x_institution, x_paper))
    ref = reference_forward(model_f32, adj, x_author, x_institution, x_paper)
    for o, r in zip(out, ref):
        assert o.shape == r.shape and o.dtype == jnp.float32
        assert jnp.allclose(o, r, rtol=1e-4, atol=1e-4), "f32 mismatch vs reference"

    # --- bf16 MXU operands, f32 accumulation (v5e/v6e/v7x perf config): loose
    #     check against a reference that applies the same bf16 casts.
    model_bf16 = EntityClassifyPallas(kp, in_feats, hidden_feats, out_feats,
                                      num_bases, num_layers, activation="relu",
                                      compute_dtype=jnp.bfloat16)
    fwd_bf16 = jax.jit(lambda a, xa, xi, xp_: model_bf16(a, xa, xi, xp_))
    out16 = jax.block_until_ready(fwd_bf16(adj, x_author, x_institution, x_paper))
    ref16 = reference_forward(model_bf16, adj, x_author, x_institution, x_paper)
    for o, r in zip(out16, ref16):
        assert o.shape == r.shape and o.dtype == jnp.float32
        assert jnp.allclose(o, r, rtol=2e-2, atol=2e-2), "bf16 mismatch vs reference"

    print("KERNEL_OK")
</pallas_src>

<mosaic_0001>
module attributes {stable_mosaic.version = 11 : i64} {
  func.func @kernel(%arg0: i32, %arg1: i32, %arg2: memref<1xi32, #tpu.memory_space<smem>>, %arg3: memref<256x512xi8, #tpu.memory_space<vmem>>, %arg4: memref<512x128xf32, #tpu.memory_space<vmem>>, %arg5: memref<1x128x128xf32, #tpu.memory_space<vmem>>, %arg6: memref<256x1xf32, #tpu.memory_space<vmem>>, %arg7: memref<1x128xf32, #tpu.memory_space<vmem>>, %arg8: memref<256x128xf32, #tpu.memory_space<vmem>>, %arg9: memref<256x128xf32, #tpu.memory_space<vmem>>) attributes {dimension_semantics = [#tpu.dimension_semantics<parallel>, #tpu.dimension_semantics<arbitrary>], iteration_bounds = array<i64: 1, 1>, scalar_prefetch = 1 : i64, scratch_operands = 1 : i64, tpu.core_type = #tpu.core_type<tc>, window_params = [{transform_indices = @transform_0, window_bounds = array<i64: 256, 512>}, {transform_indices = @transform_1, window_bounds = array<i64: 512, 128>}, {transform_indices = @transform_2, window_bounds = array<i64: 1, 128, 128>}, {transform_indices = @transform_3, window_bounds = array<i64: 256, 1>}, {pipeline_mode = #tpu.pipeline_mode<synchronous>, transform_indices = @transform_4, window_bounds = array<i64: 1, 128>}, {transform_indices = @transform_5, window_bounds = array<i64: 256, 128>}]} {
    %c0_i32 = arith.constant 0 : i32
    %0 = arith.cmpi eq, %arg1, %c0_i32 : i32
    %1 = arith.extui %0 : i1 to i32
    %c0_i32_0 = arith.constant 0 : i32
    %2 = arith.cmpi ne, %1, %c0_i32_0 : i32
    scf.if %2 {
      %cst_16 = arith.constant 0.000000e+00 : f32
      %19 = vector.broadcast %cst_16 : f32 to vector<256x128xf32>
      %c0_17 = arith.constant 0 : index
      %c0_18 = arith.constant 0 : index
      %20 = vector.load %arg9[%c0_17, %c0_18] : memref<256x128xf32, #tpu.memory_space<vmem>>, vector<256x128xf32>
      tpu.vector_store %arg9[%c0_17, %c0_18], %19 {strides = array<i32>} : memref<256x128xf32, #tpu.memory_space<vmem>>, vector<256x128xf32>,
    } else {
    }
    %c0 = arith.constant 0 : index
    %c0_1 = arith.constant 0 : index
    %3 = vector.load %arg3[%c0, %c0_1] : memref<256x512xi8, #tpu.memory_space<vmem>>, vector<256x512xi8>
    %4 = arith.sitofp %3 : vector<256x512xi8> to vector<256x512xf32>
    %c0_2 = arith.constant 0 : index
    %c0_3 = arith.constant 0 : index
    %5 = vector.load %arg4[%c0_2, %c0_3] : memref<512x128xf32, #tpu.memory_space<vmem>>, vector<512x128xf32>
    %c0_4 = arith.constant 0 : index
    %c0_5 = arith.constant 0 : index
    %c0_6 = arith.constant 0 : index
    %6 = vector.load %arg5[%c0_4, %c0_5, %c0_6] : memref<1x128x128xf32, #tpu.memory_space<vmem>>, vector<1x128x128xf32>
    %7 = vector.shape_cast %6 : vector<1x128x128xf32> to vector<128x128xf32>
    %cst = arith.constant dense<0.000000e+00> : vector<512x128xf32>
    %8 = tpu.matmul %5, %7, %cst {dimension_numbers = #tpu.dot_dimension_numbers<[1], [0], [0], [1], [0, 0, 1, 1], [], []>} : vector<512x128xf32>, vector<128x128xf32>, vector<512x128xf32> -> vector<512x128xf32>
    %cst_7 = arith.constant dense<0.000000e+00> : vector<256x128xf32>
    %9 = tpu.matmul %4, %8, %cst_7 {dimension_numbers = #tpu.dot_dimension_numbers<[1], [0], [0], [1], [0, 0, 1, 1], [], []>} : vector<256x512xf32>, vector<512x128xf32>, vector<256x128xf32> -> vector<256x128xf32>
    %c0_8 = arith.constant 0 : index
    %c0_9 = arith.constant 0 : index
    %10 = vector.load %arg9[%c0_8, %c0_9] : memref<256x128xf32, #tpu.memory_space<vmem>>, vector<256x128xf32>
    %c0_10 = arith.constant 0 : index
    %c0_11 = arith.constant 0 : index
    %11 = vector.load %arg6[%c0_10, %c0_11] : memref<256x1xf32, #tpu.memory_space<vmem>>, vector<256x1xf32>
    %12 = vector.broadcast %11 : vector<256x1xf32> to vector<256x128xf32>
    %13 = arith.mulf %12, %9 : vector<256x128xf32>
    %14 = arith.addf %10, %13 : vector<256x128xf32>
    %c0_12 = arith.constant 0 : index
    %c0_13 = arith.constant 0 : index
    %15 = vector.load %arg9[%c0_12, %c0_13] : memref<256x128xf32, #tpu.memory_space<vmem>>, vector<256x128xf32>
    tpu.vector_store %arg9[%c0_12, %c0_13], %14 {strides = array<i32>} : memref<256x128xf32, #tpu.memory_space<vmem>>, vector<256x128xf32>,
    %c0_i32_14 = arith.constant 0 : i32
    %16 = arith.cmpi eq, %arg1, %c0_i32_14 : i32
    %17 = arith.extui %16 : i1 to i32
    %c0_i32_15 = arith.constant 0 : i32
    %18 = arith.cmpi ne, %17, %c0_i32_15 : i32
    scf.if %18 {
      %c0_16 = arith.constant 0 : index
      %c0_17 = arith.constant 0 : index
      %19 = vector.load %arg9[%c0_16, %c0_17] : memref<256x128xf32, #tpu.memory_space<vmem>>, vector<256x128xf32>
      %c0_18 = arith.constant 0 : index
      %c0_19 = arith.constant 0 : index
      %20 = vector.load %arg7[%c0_18, %c0_19] : memref<1x128xf32, #tpu.memory_space<vmem>>, vector<1x128xf32>
      %21 = vector.broadcast %20 : vector<1x128xf32> to vector<256x128xf32>
      %22 = arith.addf %19, %21 : vector<256x128xf32>
      %cst_20 = arith.constant 0.000000e+00 : f32
      %23 = vector.broadcast %cst_20 : f32 to vector<256x128xf32>
      %24 = arith.maximumf %22, %23 : vector<256x128xf32>
      %c0_21 = arith.constant 0 : index
      %c0_22 = arith.constant 0 : index
      %25 = vector.load %arg8[%c0_21, %c0_22] : memref<256x128xf32, #tpu.memory_space<vmem>>, vector<256x128xf32>
      tpu.vector_store %arg8[%c0_21, %c0_22], %24 {strides = array<i32>} : memref<256x128xf32, #tpu.memory_space<vmem>>, vector<256x128xf32>,
    } else {
    }
    return
  }
  func.func @transform_0(%arg0: i32, %arg1: i32, %arg2: memref<1xi32, #tpu.memory_space<smem>>) -> (i32, i32) {
    %c0_i32 = arith.constant 0 : i32
    return %arg0, %arg1 : i32, i32
  }
  func.func @transform_1(%arg0: i32, %arg1: i32, %arg2: memref<1xi32, #tpu.memory_space<smem>>) -> (i32, i32) {
    %c0_i32 = arith.constant 0 : i32
    %c0_i32_0 = arith.constant 0 : i32
    return %arg1, %c0_i32 : i32, i32
  }
  func.func @transform_2(%arg0: i32, %arg1: i32, %arg2: memref<1xi32, #tpu.memory_space<smem>>) -> (i32, i32, i32) {
    %0 = arith.index_cast %arg1 : i32 to index
    %1 = memref.load %arg2[%0] : memref<1xi32, #tpu.memory_space<smem>>
    %c0_i32 = arith.constant 0 : i32
    %c0_i32_0 = arith.constant 0 : i32
    %c0_i32_1 = arith.constant 0 : i32
    return %1, %c0_i32, %c0_i32_0 : i32, i32, i32
  }
  func.func @transform_3(%arg0: i32, %arg1: i32, %arg2: memref<1xi32, #tpu.memory_space<smem>>) -> (i32, i32) {
    %0 = arith.index_cast %arg1 : i32 to index
    %1 = memref.load %arg2[%0] : memref<1xi32, #tpu.memory_space<smem>>
    %c1_i32 = arith.constant 1 : i32
    %2 = arith.muli %1, %c1_i32 : i32
    %3 = arith.addi %2, %arg0 : i32
    %c0_i32 = arith.constant 0 : i32
    %c0_i32_0 = arith.constant 0 : i32
    return %3, %c0_i32 : i32, i32
  }
  func.func @transform_4(%arg0: i32, %arg1: i32, %arg2: memref<1xi32, #tpu.memory_space<smem>>) -> (i32, i32) {
    %c0_i32 = arith.constant 0 : i32
    %c0_i32_0 = arith.constant 0 : i32
    %c0_i32_1 = arith.constant 0 : i32
    return %c0_i32, %c0_i32_0 : i32, i32
  }
  func.func @transform_5(%arg0: i32, %arg1: i32, %arg2: memref<1xi32, #tpu.memory_space<smem>>) -> (i32, i32) {
    %c0_i32 = arith.constant 0 : i32
    %c0_i32_0 = arith.constant 0 : i32
    return %arg0, %c0_i32 : i32, i32
  }
}

module attributes {stable_mosaic.version = 11 : i64} {
  func.func @kernel(%arg0: i32, %arg1: i32, %arg2: memref<2xi32, #tpu.memory_space<smem>>, %arg3: memref<256x512xi8, #tpu.memory_space<vmem>>, %arg4: memref<512x128xf32, #tpu.memory_space<vmem>>, %arg5: memref<1x128x128xf32, #tpu.memory_space<vmem>>, %arg6: memref<256x1xf32, #tpu.memory_space<vmem>>, %arg7: memref<1x128xf32, #tpu.memory_space<vmem>>, %arg8: memref<256x128xf32, #tpu.memory_space<vmem>>, %arg9: memref<256x128xf32, #tpu.memory_space<vmem>>) attributes {dimension_semantics = [#tpu.dimension_semantics<parallel>, #tpu.dimension_semantics<arbitrary>], iteration_bounds = array<i64: 1, 2>, scalar_prefetch = 1 : i64, scratch_operands = 1 : i64, tpu.core_type = #tpu.core_type<tc>, window_params = [{transform_indices = @transform_0, window_bounds = array<i64: 256, 512>}, {transform_indices = @transform_1, window_bounds = array<i64: 512, 128>}, {transform_indices = @transform_2, window_bounds = array<i64: 1, 128, 128>}, {transform_indices = @transform_3, window_bounds = array<i64: 256, 1>}, {pipeline_mode = #tpu.pipeline_mode<synchronous>, transform_indices = @transform_4, window_bounds = array<i64: 1, 128>}, {transform_indices = @transform_5, window_bounds = array<i64: 256, 128>}]} {
    %c0_i32 = arith.constant 0 : i32
    %0 = arith.cmpi eq, %arg1, %c0_i32 : i32
    %1 = arith.extui %0 : i1 to i32
    %c0_i32_0 = arith.constant 0 : i32
    %2 = arith.cmpi ne, %1, %c0_i32_0 : i32
    scf.if %2 {
      %cst_15 = arith.constant 0.000000e+00 : f32
      %19 = vector.broadcast %cst_15 : f32 to vector<256x128xf32>
      %c0_16 = arith.constant 0 : index
      %c0_17 = arith.constant 0 : index
      %20 = vector.load %arg9[%c0_16, %c0_17] : memref<256x128xf32, #tpu.memory_space<vmem>>, vector<256x128xf32>
      tpu.vector_store %arg9[%c0_16, %c0_17], %19 {strides = array<i32>} : memref<256x128xf32, #tpu.memory_space<vmem>>, vector<256x128xf32>,
    } else {
    }
    %c0 = arith.constant 0 : index
    %c0_1 = arith.constant 0 : index
    %3 = vector.load %arg3[%c0, %c0_1] : memref<256x512xi8, #tpu.memory_space<vmem>>, vector<256x512xi8>
    %4 = arith.sitofp %3 : vector<256x512xi8> to vector<256x512xf32>
    %c0_2 = arith.constant 0 : index
    %c0_3 = arith.constant 0 : index
    %5 = vector.load %arg4[%c0_2, %c0_3] : memref<512x128xf32, #tpu.memory_space<vmem>>, vector<512x128xf32>
    %c0_4 = arith.constant 0 : index
    %c0_5 = arith.constant 0 : index
    %c0_6 = arith.constant 0 : index
    %6 = vector.load %arg5[%c0_4, %c0_5, %c0_6] : memref<1x128x128xf32, #tpu.memory_space<vmem>>, vector<1x128x128xf32>
    %7 = vector.shape_cast %6 : vector<1x128x128xf32> to vector<128x128xf32>
    %cst = arith.constant dense<0.000000e+00> : vector<512x128xf32>
    %8 = tpu.matmul %5, %7, %cst {dimension_numbers = #tpu.dot_dimension_numbers<[1], [0], [0], [1], [0, 0, 1, 1], [], []>} : vector<512x128xf32>, vector<128x128xf32>, vector<512x128xf32> -> vector<512x128xf32>
    %cst_7 = arith.constant dense<0.000000e+00> : vector<256x128xf32>
    %9 = tpu.matmul %4, %8, %cst_7 {dimension_numbers = #tpu.dot_dimension_numbers<[1], [0], [0], [1], [0, 0, 1, 1], [], []>} : vector<256x512xf32>, vector<512x128xf32>, vector<256x128xf32> -> vector<256x128xf32>
    %c0_8 = arith.constant 0 : index
    %c0_9 = arith.constant 0 : index
    %10 = vector.load %arg9[%c0_8, %c0_9] : memref<256x128xf32, #tpu.memory_space<vmem>>, vector<256x128xf32>
    %c0_10 = arith.constant 0 : index
    %c0_11 = arith.constant 0 : index
    %11 = vector.load %arg6[%c0_10, %c0_11] : memref<256x1xf32, #tpu.memory_space<vmem>>, vector<256x1xf32>
    %12 = vector.broadcast %11 : vector<256x1xf32> to vector<256x128xf32>
    %13 = arith.mulf %12, %9 : vector<256x128xf32>
    %14 = arith.addf %10, %13 : vector<256x128xf32>
    %c0_12 = arith.constant 0 : index
    %c0_13 = arith.constant 0 : index
    %15 = vector.load %arg9[%c0_12, %c0_13] : memref<256x128xf32, #tpu.memory_space<vmem>>, vector<256x128xf32>
    tpu.vector_store %arg9[%c0_12, %c0_13], %14 {strides = array<i32>} : memref<256x128xf32, #tpu.memory_space<vmem>>, vector<256x128xf32>,
    %c1_i32 = arith.constant 1 : i32
    %16 = arith.cmpi eq, %arg1, %c1_i32 : i32
    %17 = arith.extui %16 : i1 to i32
    %c0_i32_14 = arith.constant 0 : i32
    %18 = arith.cmpi ne, %17, %c0_i32_14 : i32
    scf.if %18 {
      %c0_15 = arith.constant 0 : index
      %c0_16 = arith.constant 0 : index
      %19 = vector.load %arg9[%c0_15, %c0_16] : memref<256x128xf32, #tpu.memory_space<vmem>>, vector<256x128xf32>
      %c0_17 = arith.constant 0 : index
      %c0_18 = arith.constant 0 : index
      %20 = vector.load %arg7[%c0_17, %c0_18] : memref<1x128xf32, #tpu.memory_space<vmem>>, vector<1x128xf32>
      %21 = vector.broadcast %20 : vector<1x128xf32> to vector<256x128xf32>
      %22 = arith.addf %19, %21 : vector<256x128xf32>
      %cst_19 = arith.constant 0.000000e+00 : f32
      %23 = vector.broadcast %cst_19 : f32 to vector<256x128xf32>
      %24 = arith.maximumf %22, %23 : vector<256x128xf32>
      %c0_20 = arith.constant 0 : index
      %c0_21 = arith.constant 0 : index
      %25 = vector.load %arg8[%c0_20, %c0_21] : memref<256x128xf32, #tpu.memory_space<vmem>>, vector<256x128xf32>
      tpu.vector_store %arg8[%c0_20, %c0_21], %24 {strides = array<i32>} : memref<256x128xf32, #tpu.memory_space<vmem>>, vector<256x128xf32>,
    } else {
    }
    return
  }
  func.func @transform_0(%arg0: i32, %arg1: i32, %arg2: memref<2xi32, #tpu.memory_space<smem>>) -> (i32, i32) {
    %c0_i32 = arith.constant 0 : i32
    return %arg0, %arg1 : i32, i32
  }
  func.func @transform_1(%arg0: i32, %arg1: i32, %arg2: memref<2xi32, #tpu.memory_space<smem>>) -> (i32, i32) {
    %c0_i32 = arith.constant 0 : i32
    %c0_i32_0 = arith.constant 0 : i32
    return %arg1, %c0_i32 : i32, i32
  }
  func.func @transform_2(%arg0: i32, %arg1: i32, %arg2: memref<2xi32, #tpu.memory_space<smem>>) -> (i32, i32, i32) {
    %0 = arith.index_cast %arg1 : i32 to index
    %1 = memref.load %arg2[%0] : memref<2xi32, #tpu.memory_space<smem>>
    %c0_i32 = arith.constant 0 : i32
    %c0_i32_0 = arith.constant 0 : i32
    %c0_i32_1 = arith.constant 0 : i32
    return %1, %c0_i32, %c0_i32_0 : i32, i32, i32
  }
  func.func @transform_3(%arg0: i32, %arg1: i32, %arg2: memref<2xi32, #tpu.memory_space<smem>>) -> (i32, i32) {
    %0 = arith.index_cast %arg1 : i32 to index
    %1 = memref.load %arg2[%0] : memref<2xi32, #tpu.memory_space<smem>>
    %c1_i32 = arith.constant 1 : i32
    %2 = arith.muli %1, %c1_i32 : i32
    %3 = arith.addi %2, %arg0 : i32
    %c0_i32 = arith.constant 0 : i32
    %c0_i32_0 = arith.constant 0 : i32
    return %3, %c0_i32 : i32, i32
  }
  func.func @transform_4(%arg0: i32, %arg1: i32, %arg2: memref<2xi32, #tpu.memory_space<smem>>) -> (i32, i32) {
    %c0_i32 = arith.constant 0 : i32
    %c0_i32_0 = arith.constant 0 : i32
    %c0_i32_1 = arith.constant 0 : i32
    return %c0_i32, %c0_i32_0 : i32, i32
  }
  func.func @transform_5(%arg0: i32, %arg1: i32, %arg2: memref<2xi32, #tpu.memory_space<smem>>) -> (i32, i32) {
    %c0_i32 = arith.constant 0 : i32
    %c0_i32_0 = arith.constant 0 : i32
    return %arg0, %c0_i32 : i32, i32
  }
}

module attributes {stable_mosaic.version = 11 : i64} {
  func.func @kernel(%arg0: i32, %arg1: i32, %arg2: memref<1xi32, #tpu.memory_space<smem>>, %arg3: memref<256x512xi8, #tpu.memory_space<vmem>>, %arg4: memref<512x128xf32, #tpu.memory_space<vmem>>, %arg5: memref<1x128x128xf32, #tpu.memory_space<vmem>>, %arg6: memref<256x1xf32, #tpu.memory_space<vmem>>, %arg7: memref<1x128xf32, #tpu.memory_space<vmem>>, %arg8: memref<256x128xf32, #tpu.memory_space<vmem>>, %arg9: memref<256x128xf32, #tpu.memory_space<vmem>>) attributes {dimension_semantics = [#tpu.dimension_semantics<parallel>, #tpu.dimension_semantics<arbitrary>], iteration_bounds = array<i64: 1, 1>, scalar_prefetch = 1 : i64, scratch_operands = 1 : i64, tpu.core_type = #tpu.core_type<tc>, window_params = [{transform_indices = @transform_0, window_bounds = array<i64: 256, 512>}, {transform_indices = @transform_1, window_bounds = array<i64: 512, 128>}, {transform_indices = @transform_2, window_bounds = array<i64: 1, 128, 128>}, {transform_indices = @transform_3, window_bounds = array<i64: 256, 1>}, {pipeline_mode = #tpu.pipeline_mode<synchronous>, transform_indices = @transform_4, window_bounds = array<i64: 1, 128>}, {transform_indices = @transform_5, window_bounds = array<i64: 256, 128>}]} {
    %c0_i32 = arith.constant 0 : i32
    %0 = arith.cmpi eq, %arg1, %c0_i32 : i32
    %1 = arith.extui %0 : i1 to i32
    %c0_i32_0 = arith.constant 0 : i32
    %2 = arith.cmpi ne, %1, %c0_i32_0 : i32
    scf.if %2 {
      %cst_16 = arith.constant 0.000000e+00 : f32
      %19 = vector.broadcast %cst_16 : f32 to vector<256x128xf32>
      %c0_17 = arith.constant 0 : index
      %c0_18 = arith.constant 0 : index
      %20 = vector.load %arg9[%c0_17, %c0_18] : memref<256x128xf32, #tpu.memory_space<vmem>>, vector<256x128xf32>
      tpu.vector_store %arg9[%c0_17, %c0_18], %19 {strides = array<i32>} : memref<256x128xf32, #tpu.memory_space<vmem>>, vector<256x128xf32>,
    } else {
    }
    %c0 = arith.constant 0 : index
    %c0_1 = arith.constant 0 : index
    %3 = vector.load %arg3[%c0, %c0_1] : memref<256x512xi8, #tpu.memory_space<vmem>>, vector<256x512xi8>
    %4 = arith.sitofp %3 : vector<256x512xi8> to vector<256x512xf32>
    %c0_2 = arith.constant 0 : index
    %c0_3 = arith.constant 0 : index
    %5 = vector.load %arg4[%c0_2, %c0_3] : memref<512x128xf32, #tpu.memory_space<vmem>>, vector<512x128xf32>
    %c0_4 = arith.constant 0 : index
    %c0_5 = arith.constant 0 : index
    %c0_6 = arith.constant 0 : index
    %6 = vector.load %arg5[%c0_4, %c0_5, %c0_6] : memref<1x128x128xf32, #tpu.memory_space<vmem>>, vector<1x128x128xf32>
    %7 = vector.shape_cast %6 : vector<1x128x128xf32> to vector<128x128xf32>
    %cst = arith.constant dense<0.000000e+00> : vector<512x128xf32>
    %8 = tpu.matmul %5, %7, %cst {dimension_numbers = #tpu.dot_dimension_numbers<[1], [0], [0], [1], [0, 0, 1, 1], [], []>} : vector<512x128xf32>, vector<128x128xf32>, vector<512x128xf32> -> vector<512x128xf32>
    %cst_7 = arith.constant dense<0.000000e+00> : vector<256x128xf32>
    %9 = tpu.matmul %4, %8, %cst_7 {dimension_numbers = #tpu.dot_dimension_numbers<[1], [0], [0], [1], [0, 0, 1, 1], [], []>} : vector<256x512xf32>, vector<512x128xf32>, vector<256x128xf32> -> vector<256x128xf32>
    %c0_8 = arith.constant 0 : index
    %c0_9 = arith.constant 0 : index
    %10 = vector.load %arg9[%c0_8, %c0_9] : memref<256x128xf32, #tpu.memory_space<vmem>>, vector<256x128xf32>
    %c0_10 = arith.constant 0 : index
    %c0_11 = arith.constant 0 : index
    %11 = vector.load %arg6[%c0_10, %c0_11] : memref<256x1xf32, #tpu.memory_space<vmem>>, vector<256x1xf32>
    %12 = vector.broadcast %11 : vector<256x1xf32> to vector<256x128xf32>
    %13 = arith.mulf %12, %9 : vector<256x128xf32>
    %14 = arith.addf %10, %13 : vector<256x128xf32>
    %c0_12 = arith.constant 0 : index
    %c0_13 = arith.constant 0 : index
    %15 = vector.load %arg9[%c0_12, %c0_13] : memref<256x128xf32, #tpu.memory_space<vmem>>, vector<256x128xf32>
    tpu.vector_store %arg9[%c0_12, %c0_13], %14 {strides = array<i32>} : memref<256x128xf32, #tpu.memory_space<vmem>>, vector<256x128xf32>,
    %c0_i32_14 = arith.constant 0 : i32
    %16 = arith.cmpi eq, %arg1, %c0_i32_14 : i32
    %17 = arith.extui %16 : i1 to i32
    %c0_i32_15 = arith.constant 0 : i32
    %18 = arith.cmpi ne, %17, %c0_i32_15 : i32
    scf.if %18 {
      %c0_16 = arith.constant 0 : index
      %c0_17 = arith.constant 0 : index
      %19 = vector.load %arg9[%c0_16, %c0_17] : memref<256x128xf32, #tpu.memory_space<vmem>>, vector<256x128xf32>
      %c0_18 = arith.constant 0 : index
      %c0_19 = arith.constant 0 : index
      %20 = vector.load %arg7[%c0_18, %c0_19] : memref<1x128xf32, #tpu.memory_space<vmem>>, vector<1x128xf32>
      %21 = vector.broadcast %20 : vector<1x128xf32> to vector<256x128xf32>
      %22 = arith.addf %19, %21 : vector<256x128xf32>
      %c0_20 = arith.constant 0 : index
      %c0_21 = arith.constant 0 : index
      %23 = vector.load %arg8[%c0_20, %c0_21] : memref<256x128xf32, #tpu.memory_space<vmem>>, vector<256x128xf32>
      tpu.vector_store %arg8[%c0_20, %c0_21], %22 {strides = array<i32>} : memref<256x128xf32, #tpu.memory_space<vmem>>, vector<256x128xf32>,
    } else {
    }
    return
  }
  func.func @transform_0(%arg0: i32, %arg1: i32, %arg2: memref<1xi32, #tpu.memory_space<smem>>) -> (i32, i32) {
    %c0_i32 = arith.constant 0 : i32
    return %arg0, %arg1 : i32, i32
  }
  func.func @transform_1(%arg0: i32, %arg1: i32, %arg2: memref<1xi32, #tpu.memory_space<smem>>) -> (i32, i32) {
    %c0_i32 = arith.constant 0 : i32
    %c0_i32_0 = arith.constant 0 : i32
    return %arg1, %c0_i32 : i32, i32
  }
  func.func @transform_2(%arg0: i32, %arg1: i32, %arg2: memref<1xi32, #tpu.memory_space<smem>>) -> (i32, i32, i32) {
    %0 = arith.index_cast %arg1 : i32 to index
    %1 = memref.load %arg2[%0] : memref<1xi32, #tpu.memory_space<smem>>
    %c0_i32 = arith.constant 0 : i32
    %c0_i32_0 = arith.constant 0 : i32
    %c0_i32_1 = arith.constant 0 : i32
    return %1, %c0_i32, %c0_i32_0 : i32, i32, i32
  }
  func.func @transform_3(%arg0: i32, %arg1: i32, %arg2: memref<1xi32, #tpu.memory_space<smem>>) -> (i32, i32) {
    %0 = arith.index_cast %arg1 : i32 to index
    %1 = memref.load %arg2[%0] : memref<1xi32, #tpu.memory_space<smem>>
    %c1_i32 = arith.constant 1 : i32
    %2 = arith.muli %1, %c1_i32 : i32
    %3 = arith.addi %2, %arg0 : i32
    %c0_i32 = arith.constant 0 : i32
    %c0_i32_0 = arith.constant 0 : i32
    return %3, %c0_i32 : i32, i32
  }
  func.func @transform_4(%arg0: i32, %arg1: i32, %arg2: memref<1xi32, #tpu.memory_space<smem>>) -> (i32, i32) {
    %c0_i32 = arith.constant 0 : i32
    %c0_i32_0 = arith.constant 0 : i32
    %c0_i32_1 = arith.constant 0 : i32
    return %c0_i32, %c0_i32_0 : i32, i32
  }
  func.func @transform_5(%arg0: i32, %arg1: i32, %arg2: memref<1xi32, #tpu.memory_space<smem>>) -> (i32, i32) {
    %c0_i32 = arith.constant 0 : i32
    %c0_i32_0 = arith.constant 0 : i32
    return %arg0, %c0_i32 : i32, i32
  }
}

module attributes {stable_mosaic.version = 11 : i64} {
  func.func @kernel(%arg0: i32, %arg1: i32, %arg2: memref<2xi32, #tpu.memory_space<smem>>, %arg3: memref<256x512xi8, #tpu.memory_space<vmem>>, %arg4: memref<512x128xf32, #tpu.memory_space<vmem>>, %arg5: memref<1x128x128xf32, #tpu.memory_space<vmem>>, %arg6: memref<256x1xf32, #tpu.memory_space<vmem>>, %arg7: memref<1x128xf32, #tpu.memory_space<vmem>>, %arg8: memref<256x128xf32, #tpu.memory_space<vmem>>, %arg9: memref<256x128xf32, #tpu.memory_space<vmem>>) attributes {dimension_semantics = [#tpu.dimension_semantics<parallel>, #tpu.dimension_semantics<arbitrary>], iteration_bounds = array<i64: 1, 2>, scalar_prefetch = 1 : i64, scratch_operands = 1 : i64, tpu.core_type = #tpu.core_type<tc>, window_params = [{transform_indices = @transform_0, window_bounds = array<i64: 256, 512>}, {transform_indices = @transform_1, window_bounds = array<i64: 512, 128>}, {transform_indices = @transform_2, window_bounds = array<i64: 1, 128, 128>}, {transform_indices = @transform_3, window_bounds = array<i64: 256, 1>}, {pipeline_mode = #tpu.pipeline_mode<synchronous>, transform_indices = @transform_4, window_bounds = array<i64: 1, 128>}, {transform_indices = @transform_5, window_bounds = array<i64: 256, 128>}]} {
    %c0_i32 = arith.constant 0 : i32
    %0 = arith.cmpi eq, %arg1, %c0_i32 : i32
    %1 = arith.extui %0 : i1 to i32
    %c0_i32_0 = arith.constant 0 : i32
    %2 = arith.cmpi ne, %1, %c0_i32_0 : i32
    scf.if %2 {
      %cst_15 = arith.constant 0.000000e+00 : f32
      %19 = vector.broadcast %cst_15 : f32 to vector<256x128xf32>
      %c0_16 = arith.constant 0 : index
      %c0_17 = arith.constant 0 : index
      %20 = vector.load %arg9[%c0_16, %c0_17] : memref<256x128xf32, #tpu.memory_space<vmem>>, vector<256x128xf32>
      tpu.vector_store %arg9[%c0_16, %c0_17], %19 {strides = array<i32>} : memref<256x128xf32, #tpu.memory_space<vmem>>, vector<256x128xf32>,
    } else {
    }
    %c0 = arith.constant 0 : index
    %c0_1 = arith.constant 0 : index
    %3 = vector.load %arg3[%c0, %c0_1] : memref<256x512xi8, #tpu.memory_space<vmem>>, vector<256x512xi8>
    %4 = arith.sitofp %3 : vector<256x512xi8> to vector<256x512xf32>
    %c0_2 = arith.constant 0 : index
    %c0_3 = arith.constant 0 : index
    %5 = vector.load %arg4[%c0_2, %c0_3] : memref<512x128xf32, #tpu.memory_space<vmem>>, vector<512x128xf32>
    %c0_4 = arith.constant 0 : index
    %c0_5 = arith.constant 0 : index
    %c0_6 = arith.constant 0 : index
    %6 = vector.load %arg5[%c0_4, %c0_5, %c0_6] : memref<1x128x128xf32, #tpu.memory_space<vmem>>, vector<1x128x128xf32>
    %7 = vector.shape_cast %6 : vector<1x128x128xf32> to vector<128x128xf32>
    %cst = arith.constant dense<0.000000e+00> : vector<512x128xf32>
    %8 = tpu.matmul %5, %7, %cst {dimension_numbers = #tpu.dot_dimension_numbers<[1], [0], [0], [1], [0, 0, 1, 1], [], []>} : vector<512x128xf32>, vector<128x128xf32>, vector<512x128xf32> -> vector<512x128xf32>
    %cst_7 = arith.constant dense<0.000000e+00> : vector<256x128xf32>
    %9 = tpu.matmul %4, %8, %cst_7 {dimension_numbers = #tpu.dot_dimension_numbers<[1], [0], [0], [1], [0, 0, 1, 1], [], []>} : vector<256x512xf32>, vector<512x128xf32>, vector<256x128xf32> -> vector<256x128xf32>
    %c0_8 = arith.constant 0 : index
    %c0_9 = arith.constant 0 : index
    %10 = vector.load %arg9[%c0_8, %c0_9] : memref<256x128xf32, #tpu.memory_space<vmem>>, vector<256x128xf32>
    %c0_10 = arith.constant 0 : index
    %c0_11 = arith.constant 0 : index
    %11 = vector.load %arg6[%c0_10, %c0_11] : memref<256x1xf32, #tpu.memory_space<vmem>>, vector<256x1xf32>
    %12 = vector.broadcast %11 : vector<256x1xf32> to vector<256x128xf32>
    %13 = arith.mulf %12, %9 : vector<256x128xf32>
    %14 = arith.addf %10, %13 : vector<256x128xf32>
    %c0_12 = arith.constant 0 : index
    %c0_13 = arith.constant 0 : index
    %15 = vector.load %arg9[%c0_12, %c0_13] : memref<256x128xf32, #tpu.memory_space<vmem>>, vector<256x128xf32>
    tpu.vector_store %arg9[%c0_12, %c0_13], %14 {strides = array<i32>} : memref<256x128xf32, #tpu.memory_space<vmem>>, vector<256x128xf32>,
    %c1_i32 = arith.constant 1 : i32
    %16 = arith.cmpi eq, %arg1, %c1_i32 : i32
    %17 = arith.extui %16 : i1 to i32
    %c0_i32_14 = arith.constant 0 : i32
    %18 = arith.cmpi ne, %17, %c0_i32_14 : i32
    scf.if %18 {
      %c0_15 = arith.constant 0 : index
      %c0_16 = arith.constant 0 : index
      %19 = vector.load %arg9[%c0_15, %c0_16] : memref<256x128xf32, #tpu.memory_space<vmem>>, vector<256x128xf32>
      %c0_17 = arith.constant 0 : index
      %c0_18 = arith.constant 0 : index
      %20 = vector.load %arg7[%c0_17, %c0_18] : memref<1x128xf32, #tpu.memory_space<vmem>>, vector<1x128xf32>
      %21 = vector.broadcast %20 : vector<1x128xf32> to vector<256x128xf32>
      %22 = arith.addf %19, %21 : vector<256x128xf32>
      %c0_19 = arith.constant 0 : index
      %c0_20 = arith.constant 0 : index
      %23 = vector.load %arg8[%c0_19, %c0_20] : memref<256x128xf32, #tpu.memory_space<vmem>>, vector<256x128xf32>
      tpu.vector_store %arg8[%c0_19, %c0_20], %22 {strides = array<i32>} : memref<256x128xf32, #tpu.memory_space<vmem>>, vector<256x128xf32>,
    } else {
    }
    return
  }
  func.func @transform_0(%arg0: i32, %arg1: i32, %arg2: memref<2xi32, #tpu.memory_space<smem>>) -> (i32, i32) {
    %c0_i32 = arith.constant 0 : i32
    return %arg0, %arg1 : i32, i32
  }
  func.func @transform_1(%arg0: i32, %arg1: i32, %arg2: memref<2xi32, #tpu.memory_space<smem>>) -> (i32, i32) {
    %c0_i32 = arith.constant 0 : i32
    %c0_i32_0 = arith.constant 0 : i32
    return %arg1, %c0_i32 : i32, i32
  }
  func.func @transform_2(%arg0: i32, %arg1: i32, %arg2: memref<2xi32, #tpu.memory_space<smem>>) -> (i32, i32, i32) {
    %0 = arith.index_cast %arg1 : i32 to index
    %1 = memref.load %arg2[%0] : memref<2xi32, #tpu.memory_space<smem>>
    %c0_i32 = arith.constant 0 : i32
    %c0_i32_0 = arith.constant 0 : i32
    %c0_i32_1 = arith.constant 0 : i32
    return %1, %c0_i32, %c0_i32_0 : i32, i32, i32
  }
  func.func @transform_3(%arg0: i32, %arg1: i32, %arg2: memref<2xi32, #tpu.memory_space<smem>>) -> (i32, i32) {
    %0 = arith.index_cast %arg1 : i32 to index
    %1 = memref.load %arg2[%0] : memref<2xi32, #tpu.memory_space<smem>>
    %c1_i32 = arith.constant 1 : i32
    %2 = arith.muli %1, %c1_i32 : i32
    %3 = arith.addi %2, %arg0 : i32
    %c0_i32 = arith.constant 0 : i32
    %c0_i32_0 = arith.constant 0 : i32
    return %3, %c0_i32 : i32, i32
  }
  func.func @transform_4(%arg0: i32, %arg1: i32, %arg2: memref<2xi32, #tpu.memory_space<smem>>) -> (i32, i32) {
    %c0_i32 = arith.constant 0 : i32
    %c0_i32_0 = arith.constant 0 : i32
    %c0_i32_1 = arith.constant 0 : i32
    return %c0_i32, %c0_i32_0 : i32, i32
  }
  func.func @transform_5(%arg0: i32, %arg1: i32, %arg2: memref<2xi32, #tpu.memory_space<smem>>) -> (i32, i32) {
    %c0_i32 = arith.constant 0 : i32
    %c0_i32_0 = arith.constant 0 : i32
    return %arg0, %c0_i32 : i32, i32
  }
}

</mosaic_0001>

<bundles_post_ra>
// kernel: _lambda_.7
= control target key start
LH: loop header
LB: loop body
LE: loop exit
PB: predicated region body
PF: predicated region fallthrough
CT: control target
= control target key end

     0   :  { %s2478_s0 = inlined_call_operand.<no memory space> [shape: s32[1], index: 0, kind: input, shape index: {}]   ;;  %s2479_s3 = inlined_call_operand.vmem [shape: f32[1,128,128], index: 3, kind: input, shape index: {}]   ;;  %s2480_s2 = inlined_call_operand.vmem [shape: f32[512,128], index: 2, kind: input, shape index: {}]   ;;  %s2481_s1 = inlined_call_operand.vmem [shape: s8[256,512], index: 1, kind: input, shape index: {}]   ;;  %s2482_s4 = inlined_call_operand.vmem [shape: f32[256,1], index: 4, kind: input, shape index: {}]   ;;  %s2483_s5 = inlined_call_operand.vmem [shape: f32[1,128], index: 5, kind: input, shape index: {}]   ;;  %s2484_s6 = inlined_call_operand.vmem [shape: f32[256,128], index: 6, kind: output, shape index: {}]  }
   0x1   :  { %p53_p0 = scmp.lt.s32.totalorder %s2478_s0, 0  ;;  %v393_v16 = vld [vmem:[%s2480_s2] sm:$0xff]  ;;  %v394_v17 = vld [vmem:[%s2480_s2 + $0x8] sm:$0xff]  ;;  %v395_v18 = vld [vmem:[%s2480_s2 + $0x10] sm:$0xff]  ;;  %s1607_s8 = sshll.u32 %s2478_s0, 5 }
   0x2   :  { %v396_v19 = vld [vmem:[%s2480_s2 + $0x18] sm:$0xff]  ;;  %v397_v20 = vld [vmem:[%s2480_s2 + $0x20] sm:$0xff]  ;;  %v398_v21 = vld [vmem:[%s2480_s2 + $0x28] sm:$0xff]  ;;  %p62_p1 = scmp.lt.s32.totalorder %s1607_s8, 31 }
   0x3   :  { %s54_s25 = scalar_select %p53_p0, %s2478_s0, 0  ;;  %v399_v22 = vld [vmem:[%s2480_s2 + $0x30] sm:$0xff]  ;;  %v400_v23 = vld [vmem:[%s2480_s2 + $0x38] sm:$0xff]  ;;  %v401_v24 = vld [vmem:[%s2480_s2 + $0x40] sm:$0xff] }
   0x4   :  { %v402_v25 = vld [vmem:[%s2480_s2 + $0x48] sm:$0xff]  ;;  %v441_v26 = vld [vmem:[%s2480_s2 + $0x180] sm:$0xff]  ;;  %v403_v27 = vld [vmem:[%s2480_s2 + $0x50] sm:$0xff]  ;;  %s2486_s8 = smov (!%p62_p1, %s1607_s8), 31 }
   0x5   :  { %s1609_s26 = sshll.u32 %s54_s25, 7  ;;  %v442_v28 = vld [vmem:[%s2480_s2 + $0x188] sm:$0xff]  ;;  %v404_v29 = vld [vmem:[%s2480_s2 + $0x58] sm:$0xff]  ;;  %v443_v30 = vld [vmem:[%s2480_s2 + $0x190] sm:$0xff]  ;;  %s1608_s0 = sshll.u32 %s2486_s8, 3 }
   0x6   :  { %s1692_s29 = scalar_lea.vmem %s2479_s3, %s1609_s26  ;;  %v405_v31 = vld [vmem:[%s2480_s2 + $0x60] sm:$0xff]  ;;  %v444_v32 = vld [vmem:[%s2480_s2 + $0x198] sm:$0xff]  ;;  %v406_v33 = vld [vmem:[%s2480_s2 + $0x68] sm:$0xff]  ;;  %s2054_s12 = scalar_lea.vmem %s2482_s4, %s1608_s0 }
   0x7   :  { %v472_v0 = vld [vmem:[%s1692_s29 + $0x78] sm:$0xff]  ;;  %v471_v1 = vld [vmem:[%s1692_s29 + $0x70] sm:$0xff]  ;;  %v470_v2 = vld [vmem:[%s1692_s29 + $0x68] sm:$0xff] }
   0x8   :  { %473 = vmatpush.msra.mxu0 %v472_v0  ;;  %1610 = vmatpush.msra.mxu2 %v472_v0  ;;  %v469_v3 = vld [vmem:[%s1692_s29 + $0x60] sm:$0xff]  ;;  %v468_v4 = vld [vmem:[%s1692_s29 + $0x58] sm:$0xff]  ;;  %v467_v5 = vld [vmem:[%s1692_s29 + $0x50] sm:$0xff] }
   0x9   :  { %v466_v6 = vld [vmem:[%s1692_s29 + $0x48] sm:$0xff]  ;;  %v465_v7 = vld [vmem:[%s1692_s29 + $0x40] sm:$0xff]  ;;  %v464_v8 = vld [vmem:[%s1692_s29 + $0x38] sm:$0xff] }
   0xa   :  { %474 = vmatpush.msra.mxu0 %v471_v1  ;;  %1611 = vmatpush.msra.mxu2 %v471_v1  ;;  %v463_v9 = vld [vmem:[%s1692_s29 + $0x30] sm:$0xff]  ;;  %v462_v10 = vld [vmem:[%s1692_s29 + $0x28] sm:$0xff]  ;;  %v461_v11 = vld [vmem:[%s1692_s29 + $0x20] sm:$0xff] }
   0xb   :  { %v460_v12 = vld [vmem:[%s1692_s29 + $0x18] sm:$0xff]  ;;  %v459_v13 = vld [vmem:[%s1692_s29 + $0x10] sm:$0xff]  ;;  %v458_v14 = vld [vmem:[%s1692_s29 + $0x8] sm:$0xff] }
   0xc   :  { %475 = vmatpush.msra.mxu0 %v470_v2  ;;  %1612 = vmatpush.msra.mxu2 %v470_v2  ;;  %v457_v15 = vld [vmem:[%s1692_s29] sm:$0xff]  ;;  %v407_v35 = vld [vmem:[%s2480_s2 + $0x70] sm:$0xff]  ;;  %v446_v36 = vld [vmem:[%s2480_s2 + $0x1a8] sm:$0xff] }
   0xd   :  { %v445_v34 = vld [vmem:[%s2480_s2 + $0x1a0] sm:$0xff]  ;;  %v408_v37 = vld [vmem:[%s2480_s2 + $0x78] sm:$0xff]  ;;  %v447_v38 = vld [vmem:[%s2480_s2 + $0x1b0] sm:$0xff] }
   0xe   :  { %476 = vmatpush.msra.mxu0 %v469_v3  ;;  %1613 = vmatpush.msra.mxu2 %v469_v3  ;;  %v409_v40 = vld [vmem:[%s2480_s2 + $0x80] sm:$0xff]  ;;  %v448_v41 = vld [vmem:[%s2480_s2 + $0x1b8] sm:$0xff]  ;;  %v410_v43 = vld [vmem:[%s2480_s2 + $0x88] sm:$0xff] }
   0xf   :  { %v449_v44 = vld [vmem:[%s2480_s2 + $0x1c0] sm:$0xff]  ;;  %v411_v46 = vld [vmem:[%s2480_s2 + $0x90] sm:$0xff]  ;;  %v450_v47 = vld [vmem:[%s2480_s2 + $0x1c8] sm:$0xff] }
  0x10   :  { %477 = vmatpush.msra.mxu0 %v468_v4  ;;  %1614 = vmatpush.msra.mxu2 %v468_v4  ;;  %v412_v49 = vld [vmem:[%s2480_s2 + $0x98] sm:$0xff]  ;;  %v451_v50 = vld [vmem:[%s2480_s2 + $0x1d0] sm:$0xff]  ;;  %v413_v52 = vld [vmem:[%s2480_s2 + $0xa0] sm:$0xff] }
  0x11   :  { %v452_v53 = vld [vmem:[%s2480_s2 + $0x1d8] sm:$0xff]  ;;  %v414_v55 = vld [vmem:[%s2480_s2 + $0xa8] sm:$0xff]  ;;  %v453_v56 = vld [vmem:[%s2480_s2 + $0x1e0] sm:$0xff] }
  0x12   :  { %478 = vmatpush.msra.mxu0 %v467_v5  ;;  %1615 = vmatpush.msra.mxu2 %v467_v5  ;;  %v415_v58 = vld [vmem:[%s2480_s2 + $0xb0] sm:$0xff]  ;;  %v454_v59 = vld [vmem:[%s2480_s2 + $0x1e8] sm:$0xff]  ;;  %v416_v61 = vld [vmem:[%s2480_s2 + $0xb8] sm:$0xff] }
  0x13   :  { %v455_v62 = vld [vmem:[%s2480_s2 + $0x1f0] sm:$0xff]  ;;  %v417_v0 = vld [vmem:[%s2480_s2 + $0xc0] sm:$0xff]  ;;  %v456_v1 = vld [vmem:[%s2480_s2 + $0x1f8] sm:$0xff] }
  0x14   :  { %479 = vmatpush.msra.mxu0 %v466_v6  ;;  %1616 = vmatpush.msra.mxu2 %v466_v6  ;;  %v418_v3 = vld [vmem:[%s2480_s2 + $0xc8] sm:$0xff]  ;;  %v419_v5 = vld [vmem:[%s2480_s2 + $0xd0] sm:$0xff] }
  0x16   :  { %480 = vmatpush.msra.mxu0 %v465_v7  ;;  %1617 = vmatpush.msra.mxu2 %v465_v7 }
  0x18   :  { %481 = vmatpush.msra.mxu0 %v464_v8  ;;  %1618 = vmatpush.msra.mxu2 %v464_v8  ;;  %v420_v8 = vld [vmem:[%s2480_s2 + $0xd8] sm:$0xff] }
  0x1a   :  { %482 = vmatpush.msra.mxu0 %v463_v9  ;;  %1619 = vmatpush.msra.mxu2 %v463_v9 }
  0x1c   :  { %483 = vmatpush.msra.mxu0 %v462_v10  ;;  %1620 = vmatpush.msra.mxu2 %v462_v10 }
  0x1e   :  { %484 = vmatpush.msra.mxu0 %v461_v11  ;;  %1621 = vmatpush.msra.mxu2 %v461_v11  ;;  %v421_v11 = vld [vmem:[%s2480_s2 + $0xe0] sm:$0xff] }
  0x20   :  { %485 = vmatpush.msra.mxu0 %v460_v12  ;;  %1622 = vmatpush.msra.mxu2 %v460_v12 }
  0x22   :  { %486 = vmatpush.msra.mxu0 %v459_v13  ;;  %1623 = vmatpush.msra.mxu2 %v459_v13 }
  0x24   :  { %487 = vmatpush.msra.mxu0 %v458_v14  ;;  %1624 = vmatpush.msra.mxu2 %v458_v14  ;;  %v422_v14 = vld [vmem:[%s2480_s2 + $0xe8] sm:$0xff] }
  0x26   :  { %488 = vmatpush.msra.mxu0 %v457_v15  ;;  %1625 = vmatpush.msra.mxu2 %v457_v15 }
  0x27   :  { %489 = vmatmul.f32.vlgmr.msra.gmra.mxu0 %v393_v16  ;;  %633 = vmatmul.f32.vlgmr.msra.gmra.mxu2 %v441_v26  ;;  %v426_v26 = vld [vmem:[%s2480_s2 + $0x108] sm:$0xff] }
  0x2f   :  { %492 = vmatmul.f32.gmra.mxu0 %v394_v17  ;;  %636 = vmatmul.f32.gmra.mxu2 %v442_v28  ;;  %v423_v17 = vld [vmem:[%s2480_s2 + $0xf0] sm:$0xff] }
  0x37   :  { %495 = vmatmul.f32.gmra.mxu0 %v395_v18  ;;  %639 = vmatmul.f32.gmra.mxu2 %v443_v30 }
  0x3f   :  { %498 = vmatmul.f32.gmra.mxu0 %v396_v19  ;;  %642 = vmatmul.f32.gmra.mxu2 %v444_v32  ;;  %v428_v32 = vld [vmem:[%s2480_s2 + $0x118] sm:$0xff] }
  0x47   :  { %501 = vmatmul.f32.gmra.mxu0 %v397_v20  ;;  %645 = vmatmul.f32.gmra.mxu2 %v445_v34  ;;  %v424_v20 = vld [vmem:[%s2480_s2 + $0xf8] sm:$0xff] }
  0x4f   :  { %504 = vmatmul.f32.gmra.mxu0 %v398_v21  ;;  %648 = vmatmul.f32.gmra.mxu2 %v446_v36 }
  0x57   :  { %507 = vmatmul.f32.gmra.mxu0 %v399_v22  ;;  %651 = vmatmul.f32.gmra.mxu2 %v447_v38  ;;  %v430_v38 = vld [vmem:[%s2480_s2 + $0x128] sm:$0xff] }
  0x5f   :  { %510 = vmatmul.f32.gmra.mxu0 %v400_v23  ;;  %654 = vmatmul.f32.gmra.mxu2 %v448_v41  ;;  %v425_v23 = vld [vmem:[%s2480_s2 + $0x100] sm:$0xff]  ;;  %v431_v41 = vld [vmem:[%s2480_s2 + $0x130] sm:$0xff] }
  0x67   :  { %513 = vmatmul.f32.gmra.mxu0 %v401_v24  ;;  %657 = vmatmul.f32.gmra.mxu2 %v449_v44  ;;  %v432_v44 = vld [vmem:[%s2480_s2 + $0x138] sm:$0xff] }
  0x6f   :  { %516 = vmatmul.f32.gmra.mxu0 %v402_v25  ;;  %660 = vmatmul.f32.gmra.mxu2 %v450_v47  ;;  %v433_v47 = vld [vmem:[%s2480_s2 + $0x140] sm:$0xff] }
  0x77   :  { %519 = vmatmul.f32.gmra.mxu0 %v403_v27  ;;  %663 = vmatmul.f32.gmra.mxu2 %v451_v50  ;;  %v434_v50 = vld [vmem:[%s2480_s2 + $0x148] sm:$0xff] }
  0x7f   :  { %522 = vmatmul.f32.gmra.mxu0 %v404_v29  ;;  %666 = vmatmul.f32.gmra.mxu2 %v452_v53  ;;  %v427_v29 = vld [vmem:[%s2480_s2 + $0x110] sm:$0xff] }
  0x80   :  { %v435_v53 = vld [vmem:[%s2480_s2 + $0x150] sm:$0xff] }
  0x87   :  { %525 = vmatmul.f32.gmra.mxu0 %v405_v31  ;;  %669 = vmatmul.f32.gmra.mxu2 %v453_v56 }
  0x8f   :  { %528 = vmatmul.f32.gmra.mxu0 %v406_v33  ;;  %672 = vmatmul.f32.gmra.mxu2 %v454_v59  ;;  %v438_v59 = vld [vmem:[%s2480_s2 + $0x168] sm:$0xff] }
  0x97   :  { %531 = vmatmul.f32.gmra.mxu0 %v407_v35  ;;  %675 = vmatmul.f32.gmra.mxu2 %v455_v62  ;;  %v429_v35 = vld [vmem:[%s2480_s2 + $0x120] sm:$0xff] }
  0x98   :  { %v121_v62 = vld [vmem:[%s2481_s1 + $0x80] sm:$0xff] }
  0x9f   :  { %534 = vmatmul.f32.gmra.mxu0 %v408_v37  ;;  %678 = vmatmul.f32.gmra.mxu2 %v456_v1 }
  0xa4   :  { %v1779_v39 = vpop.f32.mrf.mxu0 }
  0xa7   :  { %537 = vmatmul.f32.gmra.mxu0 %v409_v40 }
  0xaa   :  { %v1853_v6 = vpop.f32.mrf.mxu2 }
  0xac   :  { %v1787_v42 = vpop.f32.mrf.mxu0 }
  0xaf   :  { %540 = vmatmul.f32.gmra.mxu0 %v410_v43 }
  0xb2   :  { %v1858_v9 = vpop.f32.mrf.mxu2 }
  0xb4   :  { %v1795_v45 = vpop.f32.mrf.mxu0 }
  0xb7   :  { %543 = vmatmul.f32.gmra.mxu0 %v411_v46 }
  0xba   :  { %v1863_v12 = vpop.f32.mrf.mxu2 }
  0xbc   :  { %v1803_v48 = vpop.f32.mrf.mxu0 }
  0xbf   :  { %546 = vmatmul.f32.gmra.mxu0 %v412_v49 }
  0xc2   :  { %v1868_v15 = vpop.f32.mrf.mxu2 }
  0xc4   :  { %v1811_v51 = vpop.f32.mrf.mxu0 }
  0xc7   :  { %549 = vmatmul.f32.gmra.mxu0 %v413_v52 }
  0xca   :  { %v1873_v18 = vpop.f32.mrf.mxu2 }
  0xcc   :  { %v1819_v54 = vpop.f32.mrf.mxu0 }
  0xcf   :  { %552 = vmatmul.f32.gmra.mxu0 %v414_v55  ;;  %v436_v55 = vld [vmem:[%s2480_s2 + $0x158] sm:$0xff] }
  0xd2   :  { %v1878_v21 = vpop.f32.mrf.mxu2 }
  0xd4   :  { %v1827_v57 = vpop.f32.mrf.mxu0 }
  0xd7   :  { %555 = vmatmul.f32.gmra.mxu0 %v415_v58 }
  0xda   :  { %v1885_v24 = vpop.f32.mrf.mxu2 }
  0xdc   :  { %v511_v60 = vpop.f32.mrf.mxu0 }
  0xdf   :  { %558 = vmatmul.f32.gmra.mxu0 %v416_v61  ;;  %v439_v61 = vld [vmem:[%s2480_s2 + $0x170] sm:$0xff] }
  0xe2   :  { %v655_v27 = vpop.f32.mrf.mxu2 }
  0xe4   :  { %v514_v63 = vpop.f32.mrf.mxu0 }
  0xe7   :  { %561 = vmatmul.f32.gmra.mxu0 %v417_v0 }
  0xea   :  { %v658_v30 = vpop.f32.mrf.mxu2 }
  0xec   :  { %v517_v2 = vpop.f32.mrf.mxu0 }
  0xef   :  { %564 = vmatmul.f32.gmra.mxu0 %v418_v3  ;;  %v105_v3 = vld [vmem:[%s2481_s1] sm:$0xff] }
  0xf2   :  { %v661_v33 = vpop.f32.mrf.mxu2 }
  0xf4   :  { %v520_v4 = vpop.f32.mrf.mxu0 }
  0xf7   :  { %567 = vmatmul.f32.gmra.mxu0 %v419_v5  ;;  %v205_v5 = vunpack.c.1.s8 %v121_v62 }
  0xfa   :  { %v664_v36 = vpop.f32.mrf.mxu2 }
  0xfc   :  { %v523_v7 = vpop.f32.mrf.mxu0 }
  0xff   :  { %570 = vmatmul.f32.gmra.mxu0 %v420_v8 }
 0x104   :  { %v526_v10 = vpop.f32.mrf.mxu0 }
 0x107   :  { %573 = vmatmul.f32.gmra.mxu0 %v421_v11 }
 0x10c   :  { %v529_v13 = vpop.f32.mrf.mxu0 }
 0x10f   :  { %576 = vmatmul.f32.gmra.mxu0 %v422_v14  ;;  %v106_v14 = vld [vmem:[%s2481_s1 + $0x8] sm:$0xff] }
 0x114   :  { %v532_v16 = vpop.f32.mrf.mxu0 }
 0x117   :  { %579 = vmatmul.f32.gmra.mxu0 %v423_v17 }
 0x11c   :  { %v535_v19 = vpop.f32.mrf.mxu0 }
 0x11d   :  { %682 = vmatpush.msra.mxu1 %v535_v19  ;;  %1626 = vmatpush.msra.mxu3 %v535_v19 }
 0x11f   :  { %582 = vmatmul.f32.gmra.mxu0 %v424_v20  ;;  %683 = vmatpush.msra.mxu1 %v532_v16  ;;  %v138_v20 = vunpack.c.0.s8 %v106_v14 }
 0x120   :  { %1627 = vmatpush.msra.mxu3 %v532_v16  ;;  %v213_v16 = vunpack.c.3.s8 %v121_v62 }
 0x121   :  { %684 = vmatpush.msra.mxu1 %v529_v13 }
 0x122   :  { %1628 = vmatpush.msra.mxu3 %v529_v13 }
 0x123   :  { %685 = vmatpush.msra.mxu1 %v526_v10 }
 0x124   :  { %1629 = vmatpush.msra.mxu3 %v526_v10  ;;  %v1880_v22 = vpop.f32.mrf.mxu0  ;;  %v209_v10 = vunpack.c.2.s8 %v121_v62 }
 0x125   :  { %686 = vmatpush.msra.mxu1 %v523_v7 }
 0x126   :  { %1630 = vmatpush.msra.mxu3 %v523_v7  ;;  %v333_v7 = vcvt.s32.f32 %v205_v5 }
 0x127   :  { %585 = vmatmul.f32.gmra.mxu0 %v425_v23  ;;  %687 = vmatpush.msra.mxu1 %v520_v4  ;;  %v125_v23 = vld [vmem:[%s2481_s1 + $0xa0] sm:$0xff] }
 0x128   :  { %1631 = vmatpush.msra.mxu3 %v520_v4  ;;  %v137_v4 = vunpack.c.0.s8 %v105_v3 }
 0x129   :  { %688 = vmatpush.msra.mxu1 %v517_v2 }
 0x12a   :  { %1632 = vmatpush.msra.mxu3 %v517_v2  ;;  %v440_v2 = vld [vmem:[%s2480_s2 + $0x178] sm:$0xff] }
 0x12b   :  { %689 = vmatpush.msra.mxu1 %v514_v63 }
 0x12c   :  { %1633 = vmatpush.msra.mxu3 %v514_v63  ;;  %v1887_v25 = vpop.f32.mrf.mxu0  ;;  %v201_v63 = vunpack.c.0.s8 %v121_v62 }
 0x12d   :  { %690 = vmatpush.msra.mxu1 %v511_v60 }
 0x12e   :  { %1634 = vmatpush.msra.mxu3 %v511_v60  ;;  %v329_v0 = vcvt.s32.f32 %v201_v63 }
 0x12f   :  { %588 = vmatmul.f32.gmra.mxu0 %v426_v26  ;;  %691 = vmatpush.msra.mxu1 %v1827_v57  ;;  %v217_v26 = vunpack.c.0.s8 %v125_v23 }
 0x130   :  { %1635 = vmatpush.msra.mxu3 %v1827_v57  ;;  %v437_v57 = vld [vmem:[%s2480_s2 + $0x160] sm:$0xff] }
 0x131   :  { %692 = vmatpush.msra.mxu1 %v1819_v54 }
 0x132   :  { %1636 = vmatpush.msra.mxu3 %v1819_v54 }
 0x133   :  { %693 = vmatpush.msra.mxu1 %v1811_v51 }
 0x134   :  { %1637 = vmatpush.msra.mxu3 %v1811_v51  ;;  %v1898_v28 = vpop.f32.mrf.mxu0 }
 0x135   :  { %694 = vmatpush.msra.mxu1 %v1803_v48 }
 0x136   :  { %1638 = vmatpush.msra.mxu3 %v1803_v48 }
 0x137   :  { %591 = vmatmul.f32.gmra.mxu0 %v427_v29  ;;  %695 = vmatpush.msra.mxu1 %v1795_v45  ;;  %v345_v29 = vcvt.s32.f32 %v217_v26 }
 0x138   :  { %1639 = vmatpush.msra.mxu3 %v1795_v45 }
 0x139   :  { %696 = vmatpush.msra.mxu1 %v1787_v42 }
 0x13a   :  { %1640 = vmatpush.msra.mxu3 %v1787_v42 }
 0x13b   :  { %697 = vmatpush.msra.mxu1 %v1779_v39 }
 0x13c   :  { %1641 = vmatpush.msra.mxu3 %v1779_v39  ;;  %v1911_v31 = vpop.f32.mrf.mxu0  ;;  %v667_v39 = vpop.f32.mrf.mxu2 }
 0x13d   :  { %746 = vmatmul.f32.vlgmr.msra.gmra.mxu3 %v329_v0 }
 0x13f   :  { %594 = vmatmul.f32.gmra.mxu0 %v428_v32  ;;  %v109_v32 = vld [vmem:[%s2481_s1 + $0x20] sm:$0xff] }
 0x144   :  { %v1916_v34 = vpop.f32.mrf.mxu0  ;;  %v670_v42 = vpop.f32.mrf.mxu2 }
 0x145   :  { %749 = vmatmul.f32.gmra.mxu3 %v333_v7 }
 0x147   :  { %597 = vmatmul.f32.gmra.mxu0 %v429_v35 }
 0x14c   :  { %v1921_v37 = vpop.f32.mrf.mxu0  ;;  %v673_v45 = vpop.f32.mrf.mxu2 }
 0x14f   :  { %600 = vmatmul.f32.gmra.mxu0 %v430_v38  ;;  %v157_v38 = vunpack.c.1.s8 %v109_v32 }
 0x154   :  { %v1926_v40 = vpop.f32.mrf.mxu0  ;;  %v676_v48 = vpop.f32.mrf.mxu2 }
 0x157   :  { %603 = vmatmul.f32.gmra.mxu0 %v431_v41 }
 0x15c   :  { %v1931_v43 = vpop.f32.mrf.mxu0  ;;  %v679_v51 = vpop.f32.mrf.mxu2 }
 0x15d   :  { %1021 = vmatpush.msrb.mxu1 %v679_v51 }
 0x15f   :  { %606 = vmatmul.f32.gmra.mxu0 %v432_v44  ;;  %1022 = vmatpush.msrb.mxu1 %v676_v48 }
 0x161   :  { %1023 = vmatpush.msrb.mxu1 %v673_v45  ;;  %v110_v45 = vld [vmem:[%s2481_s1 + $0x28] sm:$0xff] }
 0x162   :  { %v154_v51 = vunpack.c.0.s8 %v110_v45 }
 0x163   :  { %1024 = vmatpush.msrb.mxu1 %v670_v42 }
 0x164   :  { %v1936_v46 = vpop.f32.mrf.mxu0 }
 0x165   :  { %1025 = vmatpush.msrb.mxu1 %v667_v39  ;;  %v225_v39 = vunpack.c.2.s8 %v125_v23 }
 0x167   :  { %609 = vmatmul.f32.gmra.mxu0 %v433_v47  ;;  %1026 = vmatpush.msrb.mxu1 %v664_v36  ;;  %v353_v41 = vcvt.s32.f32 %v225_v39  ;;  %v229_v47 = vunpack.c.3.s8 %v125_v23 }
 0x169   :  { %1027 = vmatpush.msrb.mxu1 %v661_v33  ;;  %v153_v33 = vunpack.c.0.s8 %v109_v32 }
 0x16b   :  { %1028 = vmatpush.msrb.mxu1 %v658_v30 }
 0x16c   :  { %v565_v49 = vpop.f32.mrf.mxu0 }
 0x16d   :  { %1029 = vmatpush.msrb.mxu1 %v655_v27 }
 0x16f   :  { %612 = vmatmul.f32.gmra.mxu0 %v434_v50  ;;  %1030 = vmatpush.msrb.mxu1 %v1885_v24  ;;  %v149_v24 = vunpack.c.3.s8 %v105_v3 }
 0x171   :  { %1031 = vmatpush.msrb.mxu1 %v1878_v21  ;;  %v266_v21 = vcvt.s32.f32 %v138_v20  ;;  %v277_v27 = vcvt.s32.f32 %v149_v24  ;;  %v133_v24 = vld [vmem:[%s2481_s1 + $0xe0] sm:$0xff] }
 0x173   :  { %1032 = vmatpush.msrb.mxu1 %v1873_v18  ;;  %v341_v18 = vcvt.s32.f32 %v213_v16 }
 0x174   :  { %v568_v52 = vpop.f32.mrf.mxu0 }
 0x175   :  { %1033 = vmatpush.msrb.mxu1 %v1868_v15  ;;  %v145_v15 = vunpack.c.2.s8 %v105_v3 }
 0x177   :  { %615 = vmatmul.f32.gmra.mxu0 %v435_v53  ;;  %1034 = vmatpush.msrb.mxu1 %v1863_v12  ;;  %v337_v12 = vcvt.s32.f32 %v209_v10  ;;  %v273_v17 = vcvt.s32.f32 %v145_v15  ;;  %v129_v53 = vld [vmem:[%s2481_s1 + $0xc0] sm:$0xff] }
 0x178   :  { %v237_v63 = vunpack.c.1.s8 %v129_v53  ;;  %v245_v16 = vunpack.c.3.s8 %v129_v53 }
 0x179   :  { %1035 = vmatpush.msrb.mxu1 %v1858_v9  ;;  %v141_v9 = vunpack.c.1.s8 %v105_v3  ;;  %752 = vmatmul.f32.gmra.mxu3 %v337_v12  ;;  %v162_v3 = vunpack.c.2.s8 %v110_v45 }
 0x17b   :  { %1036 = vmatpush.msrb.mxu1 %v1853_v6  ;;  %v265_v6 = vcvt.s32.f32 %v137_v4  ;;  %v269_v11 = vcvt.s32.f32 %v141_v9  ;;  %v290_v4 = vcvt.s32.f32 %v162_v3 }
 0x17c   :  { %v571_v54 = vpop.f32.mrf.mxu0 }
 0x17d   :  { %698 = vmatmul.f32.vlgmr.msra.gmra.mxu1 %v265_v6  ;;  %v241_v6 = vunpack.c.2.s8 %v129_v53 }
 0x17f   :  { %618 = vmatmul.f32.gmra.mxu0 %v436_v55  ;;  %v233_v55 = vunpack.c.0.s8 %v129_v53  ;;  %v369_v9 = vcvt.s32.f32 %v241_v6 }
 0x181   :  { %755 = vmatmul.f32.gmra.mxu3 %v341_v18  ;;  %v373_v18 = vcvt.s32.f32 %v245_v16 }
 0x184   :  { %v574_v56 = vpop.f32.mrf.mxu0 }
 0x185   :  { %701 = vmatmul.f32.gmra.mxu1 %v269_v11  ;;  %v166_v11 = vunpack.c.3.s8 %v110_v45 }
 0x187   :  { %621 = vmatmul.f32.gmra.mxu0 %v437_v57  ;;  %v361_v57 = vcvt.s32.f32 %v233_v55  ;;  %v294_v12 = vcvt.s32.f32 %v166_v11 }
 0x189   :  { %758 = vmatmul.f32.gmra.mxu3 %v345_v29 }
 0x18c   :  { %v577_v58 = vpop.f32.mrf.mxu0 }
 0x18d   :  { %704 = vmatmul.f32.gmra.mxu1 %v273_v17 }
 0x18f   :  { %624 = vmatmul.f32.gmra.mxu0 %v438_v59  ;;  %v158_v59 = vunpack.c.1.s8 %v110_v45 }
 0x194   :  { %v580_v60 = vpop.f32.mrf.mxu0 }
 0x195   :  { %707 = vmatmul.f32.gmra.mxu1 %v277_v27  ;;  %v249_v27 = vunpack.c.0.s8 %v133_v24 }
 0x197   :  { %627 = vmatmul.f32.gmra.mxu0 %v439_v61  ;;  %v113_v61 = vld [vmem:[%s2481_s1 + $0x40] sm:$0xff] }
 0x198   :  { %v169_v62 = vunpack.c.0.s8 %v113_v61  ;;  %v173_v5 = vunpack.c.1.s8 %v113_v61  ;;  %v177_v15 = vunpack.c.2.s8 %v113_v61  ;;  %v181_v26 = vunpack.c.3.s8 %v113_v61 }
 0x19a   :  { %v297_v0 = vcvt.s32.f32 %v169_v62  ;;  %v301_v7 = vcvt.s32.f32 %v173_v5  ;;  %v305_v17 = vcvt.s32.f32 %v177_v15  ;;  %v309_v29 = vcvt.s32.f32 %v181_v26 }
 0x19c   :  { %v583_v1 = vpop.f32.mrf.mxu0 }
 0x19d   :  { %795 = vmatpush.msrb.mxu2 %v583_v1  ;;  %v365_v1 = vcvt.s32.f32 %v237_v63 }
 0x19f   :  { %630 = vmatmul.f32.gmra.mxu0 %v440_v2  ;;  %796 = vmatpush.msrb.mxu2 %v580_v60  ;;  %v286_v60 = vcvt.s32.f32 %v158_v59 }
 0x1a1   :  { %797 = vmatpush.msrb.mxu2 %v577_v58 }
 0x1a3   :  { %798 = vmatpush.msrb.mxu2 %v574_v56 }
 0x1a4   :  { %v1975_v8 = vpop.f32.mrf.mxu0 }
 0x1a5   :  { %799 = vmatpush.msrb.mxu2 %v571_v54  ;;  %v165_v54 = vunpack.c.3.s8 %v109_v32 }
 0x1a7   :  { %800 = vmatpush.msrb.mxu2 %v568_v52  ;;  %v282_v52 = vcvt.s32.f32 %v154_v51  ;;  %v293_v56 = vcvt.s32.f32 %v165_v54 }
 0x1a9   :  { %801 = vmatpush.msrb.mxu2 %v565_v49  ;;  %v357_v49 = vcvt.s32.f32 %v229_v47 }
 0x1ab   :  { %802 = vmatpush.msrb.mxu2 %v1936_v46  ;;  %v161_v46 = vunpack.c.2.s8 %v109_v32 }
 0x1ac   :  { %v1978_v13 = vpop.f32.mrf.mxu0 }
 0x1ad   :  { %803 = vmatpush.msrb.mxu2 %v1931_v43  ;;  %v150_v43 = vunpack.c.3.s8 %v106_v14  ;;  %v289_v48 = vcvt.s32.f32 %v161_v46 }
 0x1af   :  { %804 = vmatpush.msrb.mxu2 %v1926_v40  ;;  %v285_v40 = vcvt.s32.f32 %v157_v38  ;;  %v278_v44 = vcvt.s32.f32 %v150_v43  ;;  %v257_v43 = vunpack.c.2.s8 %v133_v24 }
 0x1b1   :  { %805 = vmatpush.msrb.mxu2 %v1921_v37  ;;  %v385_v45 = vcvt.s32.f32 %v257_v43  ;;  %v1169_v43 = vld [vmem:[%s2054_s12 + $0x18] sm:$0xff] }
 0x1b3   :  { %806 = vmatpush.msrb.mxu2 %v1916_v34  ;;  %v221_v34 = vunpack.c.1.s8 %v125_v23 }
 0x1b4   :  { %v1987_v19 = vpop.f32.mrf.mxu0 }
 0x1b5   :  { %807 = vmatpush.msrb.mxu2 %v1911_v31  ;;  %v142_v31 = vunpack.c.1.s8 %v106_v14  ;;  %v349_v35 = vcvt.s32.f32 %v221_v34  ;;  %v117_v34 = vld [vmem:[%s2481_s1 + $0x60] sm:$0xff] }
 0x1b6   :  { %v193_v51 = vunpack.c.2.s8 %v117_v34  ;;  %v197_v59 = vunpack.c.3.s8 %v117_v34 }
 0x1b7   :  { %808 = vmatpush.msrb.mxu2 %v1898_v28  ;;  %v270_v28 = vcvt.s32.f32 %v142_v31  ;;  %761 = vmatmul.f32.gmra.mxu3 %v349_v35  ;;  %v377_v31 = vcvt.s32.f32 %v249_v27  ;;  %v253_v35 = vunpack.c.1.s8 %v133_v24 }
 0x1b8   :  { %v321_v53 = vcvt.s32.f32 %v193_v51 }
 0x1b9   :  { %809 = vmatpush.msrb.mxu2 %v1887_v25  ;;  %v281_v25 = vcvt.s32.f32 %v153_v33 }
 0x1bb   :  { %810 = vmatpush.msrb.mxu2 %v1880_v22  ;;  %v146_v22 = vunpack.c.2.s8 %v106_v14  ;;  %710 = vmatmul.f32.gmra.mxu1 %v281_v25  ;;  %v114_v14 = vld [vmem:[%s2481_s1 + $0x48] sm:$0xff]  ;;  %v185_v25 = vunpack.c.0.s8 %v117_v34 }
 0x1bc   :  { %v1996_v30 = vpop.f32.mrf.mxu0  ;;  %811 = vmatmul.f32.vlgmr.msrb.gmra.mxu2 %v266_v21  ;;  %v170_v21 = vunpack.c.0.s8 %v114_v14  ;;  %v174_v32 = vunpack.c.1.s8 %v114_v14  ;;  %v178_v39 = vunpack.c.2.s8 %v114_v14  ;;  %v182_v47 = vunpack.c.3.s8 %v114_v14 }
 0x1bd   :  { %v274_v37 = vcvt.s32.f32 %v146_v22  ;;  %v313_v22 = vcvt.s32.f32 %v185_v25 }
 0x1be   :  { %v298_v23 = vcvt.s32.f32 %v170_v21  ;;  %v302_v33 = vcvt.s32.f32 %v174_v32 }
 0x1bf   :  { %764 = vmatmul.f32.gmra.mxu3 %v353_v41  ;;  %v189_v41 = vunpack.c.1.s8 %v117_v34 }
 0x1c3   :  { %713 = vmatmul.f32.gmra.mxu1 %v285_v40  ;;  %v306_v40 = vcvt.s32.f32 %v178_v39 }
 0x1c4   :  { %v2001_v36 = vpop.f32.mrf.mxu0  ;;  %814 = vmatmul.f32.gmra.mxu2 %v270_v28 }
 0x1c7   :  { %767 = vmatmul.f32.gmra.mxu3 %v357_v49  ;;  %v118_v49 = vld [vmem:[%s2481_s1 + $0x68] sm:$0xff] }
 0x1c8   :  { %v190_v62 = vunpack.c.1.s8 %v118_v49  ;;  %v194_v6 = vunpack.c.2.s8 %v118_v49  ;;  %v198_v15 = vunpack.c.3.s8 %v118_v49 }
 0x1ca   :  { %v318_v63 = vcvt.s32.f32 %v190_v62  ;;  %v326_v16 = vcvt.s32.f32 %v198_v15 }
 0x1cb   :  { %716 = vmatmul.f32.gmra.mxu1 %v289_v48  ;;  %v310_v48 = vcvt.s32.f32 %v182_v47 }
 0x1cc   :  { %v2003_v42 = vpop.f32.mrf.mxu0  ;;  %817 = vmatmul.f32.gmra.mxu2 %v274_v37  ;;  %v381_v37 = vcvt.s32.f32 %v253_v35 }
 0x1cf   :  { %770 = vmatmul.f32.gmra.mxu3 %v361_v57 }
 0x1d3   :  { %719 = vmatmul.f32.gmra.mxu1 %v293_v56  ;;  %v186_v56 = vunpack.c.0.s8 %v118_v49 }
 0x1d4   :  { %v2008_v50 = vpop.f32.mrf.mxu0  ;;  %820 = vmatmul.f32.gmra.mxu2 %v278_v44  ;;  %v317_v44 = vcvt.s32.f32 %v189_v41 }
 0x1d5   :  { %v314_v57 = vcvt.s32.f32 %v186_v56 }
 0x1d7   :  { %773 = vmatmul.f32.gmra.mxu3 %v365_v1  ;;  %v108_v1 = vld [vmem:[%s2481_s1 + $0x18] sm:$0xff] }
 0x1d8   :  { %v140_v3 = vunpack.c.0.s8 %v108_v1  ;;  %v144_v11 = vunpack.c.1.s8 %v108_v1 }
 0x1da   :  { %v268_v5 = vcvt.s32.f32 %v140_v3  ;;  %v272_v14 = vcvt.s32.f32 %v144_v11 }
 0x1db   :  { %722 = vmatmul.f32.gmra.mxu1 %v297_v0  ;;  %v2039_v0 = vpop.f32.mrf.mxu3 }
 0x1dc   :  { %v2013_v58 = vpop.f32.mrf.mxu0  ;;  %823 = vmatmul.f32.gmra.mxu2 %v282_v52  ;;  %v261_v52 = vunpack.c.3.s8 %v133_v24  ;;  %v1167_v24 = vld [vmem:[%s2054_s12 + $0x8] sm:$0xff] }
 0x1de   :  { %v389_v54 = vcvt.s32.f32 %v261_v52 }
 0x1df   :  { %776 = vmatmul.f32.gmra.mxu3 %v369_v9 }
 0x1e3   :  { %725 = vmatmul.f32.gmra.mxu1 %v301_v7  ;;  %v322_v7 = vcvt.s32.f32 %v194_v6  ;;  %v2046_v9 = vpop.f32.mrf.mxu3 }
 0x1e4   :  { %v2018_v2 = vpop.f32.mrf.mxu0  ;;  %826 = vmatmul.f32.gmra.mxu2 %v286_v60  ;;  %v325_v60 = vcvt.s32.f32 %v197_v59  ;;  %v111_v59 = vld [vmem:[%s2481_s1 + $0x30] sm:$0xff] }
 0x1e5   :  { %v155_v3 = vunpack.c.0.s8 %v111_v59 }
 0x1e7   :  { %779 = vmatmul.f32.gmra.mxu3 %v373_v18 }
 0x1eb   :  { %728 = vmatmul.f32.gmra.mxu1 %v305_v17  ;;  %v1647_v17 = vmov 0  }
 0x1ec   :  { %v2020_v10 = vpop.f32.mrf.mxu0  ;;  %829 = vmatmul.f32.gmra.mxu2 %v290_v4  ;;  %1643 = vset.pattern.permute.xlu0 %v1647_v17 }
 0x1ed   :  { %1644 = vset.pattern.permute.xlu1 %v1647_v17  ;;  %1645 = vset.pattern.permute.xlu2 %v1647_v17 }
 0x1ef   :  { %782 = vmatmul.f32.gmra.mxu3 %v377_v31 }
 0x1f3   :  { %731 = vmatmul.f32.gmra.mxu1 %v309_v29 }
 0x1f4   :  { %v2025_v20 = vpop.f32.mrf.mxu0  ;;  %832 = vmatmul.f32.gmra.mxu2 %v294_v12 }
 0x1f7   :  { %785 = vmatmul.f32.gmra.mxu3 %v381_v37 }
 0x1fa   :  { %v699_v4 = vpop.f32.mrf.mxu1 }
 0x1fb   :  { %734 = vmatmul.f32.gmra.mxu1 %v313_v22 }
 0x1fc   :  { %v619_v28 = vpop.f32.mrf.mxu0  ;;  %835 = vmatmul.f32.gmra.mxu2 %v298_v23 }
 0x1ff   :  { %788 = vmatmul.f32.gmra.mxu3 %v385_v45 }
 0x202   :  { %v2048_v12 = vpop.f32.mrf.mxu1 }
 0x203   :  { %737 = vmatmul.f32.gmra.mxu1 %v317_v44 }
 0x204   :  { %v622_v38 = vpop.f32.mrf.mxu0  ;;  %838 = vmatmul.f32.gmra.mxu2 %v302_v33  ;;  %v1168_v33 = vld [vmem:[%s2054_s12 + $0x10] sm:$0xff] }
 0x205   :  { %1210 = vperm.xlu1 %1644, %v1168_v33  }
 0x207   :  { %791 = vmatmul.f32.gmra.mxu3 %v389_v54 }
 0x20a   :  { %v705_v18 = vpop.f32.mrf.mxu1 }
 0x20b   :  { %740 = vmatmul.f32.gmra.mxu1 %v321_v53 }
 0x20c   :  { %v625_v46 = vpop.f32.mrf.mxu0  ;;  %841 = vmatmul.f32.gmra.mxu2 %v306_v40 }
 0x20d   :  { %1215 = vperm.xlu1 %1644, %v1169_v43  }
 0x212   :  { %v708_v29 = vpop.f32.mrf.mxu1 }
 0x213   :  { %743 = vmatmul.f32.gmra.mxu1 %v325_v60 }
 0x214   :  { %v628_v55 = vpop.f32.mrf.mxu0  ;;  %844 = vmatmul.f32.gmra.mxu2 %v310_v48 }
 0x21b   :  { %1037 = vmatmul.f32.vlgmr.msrb.gmra.mxu1 %v268_v5 }
 0x21c   :  { %v631_v61 = vpop.f32.mrf.mxu0  ;;  %847 = vmatmul.f32.gmra.mxu2 %v314_v57  ;;  %v126_v57 = vld [vmem:[%s2481_s1 + $0xa8] sm:$0xff] }
 0x21d   :  { %908 = vmatpush.msrb.mxu3 %v631_v61 }
 0x21f   :  { %909 = vmatpush.msrb.mxu3 %v628_v55 }
 0x221   :  { %910 = vmatpush.msrb.mxu3 %v625_v46 }
 0x223   :  { %911 = vmatpush.msrb.mxu3 %v622_v38  ;;  %1040 = vmatmul.f32.gmra.mxu1 %v272_v14 }
 0x224   :  { %850 = vmatmul.f32.gmra.mxu2 %v318_v63 }
 0x225   :  { %912 = vmatpush.msrb.mxu3 %v619_v28 }
 0x227   :  { %913 = vmatpush.msrb.mxu3 %v2025_v20  ;;  %v2071_v20 = vpop.f32.mrf.mxu3 }
 0x229   :  { %914 = vmatpush.msrb.mxu3 %v2020_v10  ;;  %v1166_v10 = vld [vmem:[%s2054_s12] sm:$0xff] }
 0x22a   :  { %1200 = vperm.xlu0 %1643, %v1166_v10   ;;  %v222_v10 = vunpack.c.1.s8 %v126_v57 }
 0x22b   :  { %915 = vmatpush.msrb.mxu3 %v2018_v2  ;;  %v2063_v2 = vld [vmem:[%s2481_s1 + $0x88] sm:$0xff] }
 0x22c   :  { %853 = vmatmul.f32.gmra.mxu2 %v322_v7  ;;  %v202_v21 = vunpack.c.0.s8 %v2063_v2  ;;  %v206_v28 = vunpack.c.1.s8 %v2063_v2  ;;  %v210_v38 = vunpack.c.2.s8 %v2063_v2  ;;  %v214_v51 = vunpack.c.3.s8 %v2063_v2  ;;  %v1172_v2 = vld [vmem:[%s2054_s12 + $0x30] sm:$0xff] }
 0x22d   :  { %916 = vmatpush.msrb.mxu3 %v2013_v58  ;;  %v2068_v58 = vld [vmem:[%s2481_s1 + $0x10] sm:$0xff]  ;;  %v283_v7 = vcvt.s32.f32 %v155_v3 }
 0x22e   :  { %v139_v23 = vunpack.c.0.s8 %v2068_v58  ;;  %v330_v26 = vcvt.s32.f32 %v202_v21  ;;  %v147_v39 = vunpack.c.2.s8 %v2068_v58  ;;  %v338_v45 = vcvt.s32.f32 %v210_v38 }
 0x22f   :  { %917 = vmatpush.msrb.mxu3 %v2008_v50  ;;  %v148_v50 = vunpack.c.2.s8 %v108_v1  ;;  %v2082_v32 = vpop.f32.mrf.mxu3  ;;  %v151_v52 = vunpack.c.3.s8 %v2068_v58  ;;  %v342_v55 = vcvt.s32.f32 %v214_v51 }
 0x230   :  { %v267_v27 = vcvt.s32.f32 %v139_v23  ;;  %v275_v46 = vcvt.s32.f32 %v147_v39  ;;  %v1171_v39 = vld [vmem:[%s2054_s12 + $0x28] sm:$0xff] }
 0x231   :  { %918 = vmatpush.msrb.mxu3 %v2003_v42  ;;  %v276_v42 = vcvt.s32.f32 %v148_v50  ;;  %v279_v56 = vcvt.s32.f32 %v151_v52  ;;  %v350_v50 = vcvt.s32.f32 %v222_v10 }
 0x232   :  { %1205 = vperm.xlu0 %1643, %v1167_v24  }
 0x233   :  { %919 = vmatpush.msrb.mxu3 %v2001_v36  ;;  %1043 = vmatmul.f32.gmra.mxu1 %v276_v42  ;;  %v152_v36 = vunpack.c.3.s8 %v108_v1  ;;  %v218_v1 = vunpack.c.0.s8 %v126_v57  ;;  %v116_v42 = vld [vmem:[%s2481_s1 + $0x58] sm:$0xff] }
 0x234   :  { %856 = vmatmul.f32.gmra.mxu2 %v326_v16  ;;  %v159_v16 = vunpack.c.1.s8 %v111_v59  ;;  %v172_v21 = vunpack.c.0.s8 %v116_v42 }
 0x235   :  { %920 = vmatpush.msrb.mxu3 %v1996_v30  ;;  %v280_v31 = vcvt.s32.f32 %v152_v36  ;;  %v143_v30 = vunpack.c.1.s8 %v2068_v58  ;;  %v346_v6 = vcvt.s32.f32 %v218_v1 }
 0x236   :  { %v300_v24 = vcvt.s32.f32 %v172_v21 }
 0x237   :  { %921 = vmatpush.msrb.mxu3 %v1987_v19  ;;  %v271_v25 = vcvt.s32.f32 %v143_v30  ;;  %v2092_v41 = vpop.f32.mrf.mxu3 }
 0x238   :  { %v711_v22 = vpop.f32.mrf.mxu1 }
 0x239   :  { %922 = vmatpush.msrb.mxu3 %v1978_v13  ;;  %v334_v13 = vcvt.s32.f32 %v206_v28  ;;  %v1173_v28 = vld [vmem:[%s2054_s12 + $0x38] sm:$0xff] }
 0x23a   :  { %1230 = vperm.xlu0 %1643, %v1172_v2   ;;  %1235 = vperm.xlu1 %1644, %v1173_v28  }
 0x23b   :  { %923 = vmatpush.msrb.mxu3 %v1975_v8  ;;  %1046 = vmatmul.f32.gmra.mxu1 %v280_v31  ;;  %v112_v8 = vld [vmem:[%s2481_s1 + $0x38] sm:$0xff]  ;;  %v1170_v31 = vld [vmem:[%s2054_s12 + $0x20] sm:$0xff] }
 0x23c   :  { %859 = vmatmul.f32.gmra.mxu2 %v330_v26  ;;  %924 = vmatmul.f32.vlgmr.msrb.gmra.mxu3 %v267_v27  ;;  %v156_v35 = vunpack.c.0.s8 %v112_v8  ;;  %v160_v47 = vunpack.c.1.s8 %v112_v8  ;;  %v164_v61 = vunpack.c.2.s8 %v112_v8  ;;  %v168_v11 = vunpack.c.3.s8 %v112_v8 }
 0x23d   :  { %v226_v26 = vunpack.c.2.s8 %v126_v57  ;;  %v163_v27 = vunpack.c.2.s8 %v111_v59  ;;  %1220 = vperm.xlu2 %1645, %v1170_v31  }
 0x23e   :  { %v284_v37 = vcvt.s32.f32 %v156_v35  ;;  %v288_v49 = vcvt.s32.f32 %v160_v47  ;;  %v292_v63 = vcvt.s32.f32 %v164_v61  ;;  %v296_v15 = vcvt.s32.f32 %v168_v11  ;;  %v115_v47 = vld [vmem:[%s2481_s1 + $0x50] sm:$0xff] }
 0x23f   :  { %v812_v19 = vpop.f32.mrf.mxu2  ;;  %v2108_v60 = vpop.f32.mrf.mxu3  ;;  %v291_v33 = vcvt.s32.f32 %v163_v27  ;;  %v230_v35 = vunpack.c.3.s8 %v126_v57  ;;  %v183_v28 = vunpack.c.3.s8 %v115_v47 }
 0x240   :  { %v2085_v34 = vadd.f32 %v812_v19, %v699_v4  ;;  %v714_v48 = vpop.f32.mrf.mxu1  ;;  %v354_v19 = vcvt.s32.f32 %v226_v26 }
 0x241   :  { %v358_v43 = vcvt.s32.f32 %v230_v35  ;;  %v134_v35 = vld [vmem:[%s2481_s1 + $0xe8] sm:$0xff] }
 0x243   :  { %1049 = vmatmul.f32.gmra.mxu1 %v284_v37 }
 0x244   :  { %862 = vmatmul.f32.gmra.mxu2 %v334_v13  ;;  %927 = vmatmul.f32.gmra.mxu3 %v271_v25  ;;  %v176_v13 = vunpack.c.1.s8 %v116_v42 }
 0x245   :  { %1225 = vperm.xlu2 %1645, %v1171_v39  }
 0x246   :  { %v304_v8 = vcvt.s32.f32 %v176_v13 }
 0x247   :  { %v815_v40 = vpop.f32.mrf.mxu2  ;;  %v2112_v14 = vpop.f32.mrf.mxu3 }
 0x248   :  { %v2096_v44 = vadd.f32 %v815_v40, %v2048_v12  ;;  %v717_v62 = vpop.f32.mrf.mxu1 }
 0x24b   :  { %1052 = vmatmul.f32.gmra.mxu1 %v288_v49 }
 0x24c   :  { %865 = vmatmul.f32.gmra.mxu2 %v338_v45  ;;  %930 = vmatmul.f32.gmra.mxu3 %v275_v46  ;;  %v130_v46 = vld [vmem:[%s2481_s1 + $0xc8] sm:$0xff] }
 0x24d   :  { %v234_v52 = vunpack.c.0.s8 %v130_v46  ;;  %v246_v31 = vunpack.c.3.s8 %v130_v46 }
 0x24f   :  { %v818_v53 = vpop.f32.mrf.mxu2  ;;  %v2122_v36 = vpop.f32.mrf.mxu3  ;;  %v374_v13 = vcvt.s32.f32 %v246_v31  ;;  %v262_v31 = vunpack.c.3.s8 %v134_v35 }
 0x250   :  { %v2100_v54 = vadd.f32 %v818_v53, %v705_v18  ;;  %v720_v12 = vpop.f32.mrf.mxu1  ;;  %v287_v18 = vcvt.s32.f32 %v159_v16  ;;  %v171_v53 = vunpack.c.0.s8 %v115_v47 }
 0x252   :  { %v299_v61 = vcvt.s32.f32 %v171_v53 }
 0x253   :  { %1055 = vmatmul.f32.gmra.mxu1 %v292_v63  ;;  %v184_v63 = vunpack.c.3.s8 %v116_v42 }
 0x254   :  { %868 = vmatmul.f32.gmra.mxu2 %v342_v55  ;;  %933 = vmatmul.f32.gmra.mxu3 %v279_v56  ;;  %v1175_v56 = vld [vmem:[%s2054_s12 + $0x48] sm:$0xff] }
 0x255   :  { %1245 = vperm.xlu0 %1643, %v1175_v56   ;;  %v312_v3 = vcvt.s32.f32 %v184_v63 }
 0x257   :  { %v821_v4 = vpop.f32.mrf.mxu2  ;;  %v2130_v38 = vpop.f32.mrf.mxu3 }
 0x258   :  { %v2110_v5 = vadd.f32 %v821_v4, %v708_v29  ;;  %v2120_v23 = vpop.f32.mrf.mxu1  ;;  %v238_v4 = vunpack.c.1.s8 %v130_v46 }
 0x25a   :  { %v366_v11 = vcvt.s32.f32 %v238_v4  ;;  %v1177_v4 = vld [vmem:[%s2054_s12 + $0x58] sm:$0xff] }
 0x25b   :  { %1058 = vmatmul.f32.gmra.mxu1 %v296_v15 }
 0x25c   :  { %871 = vmatmul.f32.gmra.mxu2 %v346_v6  ;;  %936 = vmatmul.f32.gmra.mxu3 %v283_v7  ;;  %v175_v6 = vunpack.c.1.s8 %v115_v47  ;;  %v1176_v7 = vld [vmem:[%s2054_s12 + $0x50] sm:$0xff] }
 0x25d   :  { %1250 = vperm.xlu1 %1644, %v1176_v7  }
 0x25e   :  { %v303_v15 = vcvt.s32.f32 %v175_v6  ;;  %v124_v6 = vld [vmem:[%s2481_s1 + $0x98] sm:$0xff] }
 0x25f   :  { %v824_v17 = vpop.f32.mrf.mxu2 }
 0x260   :  { %v2115_v58 = vadd.f32 %v824_v17, %v711_v22  ;;  %v2128_v25 = vpop.f32.mrf.mxu1  ;;  %v167_v22 = vunpack.c.3.s8 %v111_v59  ;;  %v362_v59 = vcvt.s32.f32 %v234_v52 }
 0x262   :  { %v295_v45 = vcvt.s32.f32 %v167_v22  ;;  %v119_v22 = vld [vmem:[%s2481_s1 + $0x70] sm:$0xff] }
 0x263   :  { %1061 = vmatmul.f32.gmra.mxu1 %v300_v24 }
 0x264   :  { %874 = vmatmul.f32.gmra.mxu2 %v350_v50  ;;  %939 = vmatmul.f32.gmra.mxu3 %v287_v18  ;;  %v242_v50 = vunpack.c.2.s8 %v130_v46  ;;  %v179_v18 = vunpack.c.2.s8 %v115_v47  ;;  %v187_v46 = vunpack.c.0.s8 %v119_v22 }
 0x266   :  { %v370_v21 = vcvt.s32.f32 %v242_v50  ;;  %v307_v24 = vcvt.s32.f32 %v179_v18  ;;  %v315_v52 = vcvt.s32.f32 %v187_v46 }
 0x267   :  { %v827_v29 = vpop.f32.mrf.mxu2 }
 0x268   :  { %v2126_v30 = vadd.f32 %v827_v29, %v714_v48  ;;  %v180_v48 = vunpack.c.2.s8 %v116_v42  ;;  %v2141_v49 = vpop.f32.mrf.mxu1  ;;  %v1174_v42 = vld [vmem:[%s2054_s12 + $0x40] sm:$0xff] }
 0x269   :  { %1240 = vperm.xlu2 %1645, %v1174_v42   ;;  %v1181_v42 = vld [vmem:[%s2054_s12 + $0x78] sm:$0xff] }
 0x26a   :  { %v308_v51 = vcvt.s32.f32 %v180_v48  ;;  %v1179_v48 = vld [vmem:[%s2054_s12 + $0x68] sm:$0xff] }
 0x26b   :  { %1064 = vmatmul.f32.gmra.mxu1 %v304_v8  ;;  %v311_v8 = vcvt.s32.f32 %v183_v28  ;;  %1265 = vperm.xlu1 %1644, %v1179_v48   ;;  %v199_v28 = vunpack.c.3.s8 %v119_v22 }
 0x26c   :  { %877 = vmatmul.f32.gmra.mxu2 %v354_v19  ;;  %942 = vmatmul.f32.gmra.mxu3 %v291_v33  ;;  %v1178_v33 = vld [vmem:[%s2054_s12 + $0x60] sm:$0xff] }
 0x26d   :  { %1260 = vperm.xlu0 %1643, %v1178_v33   ;;  %v390_v33 = vcvt.s32.f32 %v262_v31 }
 0x26f   :  { %v830_v37 = vpop.f32.mrf.mxu2 }
 0x270   :  { %v2133_v40 = vadd.f32 %v830_v37, %v717_v62  ;;  %v2146_v62 = vpop.f32.mrf.mxu3  ;;  %v2148_v1 = vpop.f32.mrf.mxu1 }
 0x271   :  { %1255 = vperm.xlu2 %1645, %v1177_v4  }
 0x273   :  { %1067 = vmatmul.f32.gmra.mxu1 %v308_v51 }
 0x274   :  { %880 = vmatmul.f32.gmra.mxu2 %v358_v43  ;;  %945 = vmatmul.f32.gmra.mxu3 %v295_v45  ;;  %v250_v45 = vunpack.c.0.s8 %v134_v35 }
 0x275   :  { %1275 = vperm.xlu0 %1643, %v1181_v42   ;;  %v2217_v42 = vld [vmem:[%s2483_s5] ss:$0 sm:$0xff] }
 0x276   :  { %v378_v51 = vcvt.s32.f32 %v250_v45 }
 0x277   :  { %v833_v55 = vpop.f32.mrf.mxu2 }
 0x278   :  { %v2144_v57 = vadd.f32 %v833_v55, %v720_v12  ;;  %v120_v12 = vld [vmem:[%s2481_s1 + $0x78] sm:$0xff]  ;;  %v2154_v16 = vpop.f32.mrf.mxu1  ;;  %v2156_v17 = vpop.f32.mrf.mxu3 }
 0x279   :  { %v188_v10 = vunpack.c.0.s8 %v120_v12  ;;  %v192_v26 = vunpack.c.1.s8 %v120_v12  ;;  %v196_v37 = vunpack.c.2.s8 %v120_v12  ;;  %v200_v53 = vunpack.c.3.s8 %v120_v12 }
 0x27b   :  { %1070 = vmatmul.f32.gmra.mxu1 %v312_v3  ;;  %v316_v2 = vcvt.s32.f32 %v188_v10  ;;  %v320_v29 = vcvt.s32.f32 %v192_v26  ;;  %v324_v43 = vcvt.s32.f32 %v196_v37  ;;  %v328_v56 = vcvt.s32.f32 %v200_v53  ;;  %v1182_v37 = vld [vmem:[%s2054_s12 + $0x80] sm:$0xff]  ;;  %v1184_v53 = vld [vmem:[%s2054_s12 + $0x90] sm:$0xff] }
 0x27c   :  { %883 = vmatmul.f32.gmra.mxu2 %v362_v59  ;;  %948 = vmatmul.f32.gmra.mxu3 %v299_v61  ;;  %v254_v59 = vunpack.c.1.s8 %v134_v35  ;;  %v191_v61 = vunpack.c.1.s8 %v119_v22  ;;  %v258_v10 = vunpack.c.2.s8 %v134_v35 }
 0x27d   :  { %1280 = vperm.xlu1 %1644, %v1182_v37   ;;  %1290 = vperm.xlu0 %1643, %v1184_v53  }
 0x27e   :  { %v382_v63 = vcvt.s32.f32 %v254_v59  ;;  %v319_v3 = vcvt.s32.f32 %v191_v61  ;;  %v386_v50 = vcvt.s32.f32 %v258_v10 }
 0x280   :  { %v2159_v27 = vpop.f32.mrf.mxu1  ;;  %v2161_v19 = vpop.f32.mrf.mxu3 }
 0x283   :  { %1073 = vmatmul.f32.gmra.mxu1 %v316_v2  ;;  %v195_v2 = vunpack.c.2.s8 %v119_v22 }
 0x284   :  { %886 = vmatmul.f32.gmra.mxu2 %v366_v11  ;;  %951 = vmatmul.f32.gmra.mxu3 %v303_v15  ;;  %v204_v11 = vunpack.c.0.s8 %v124_v6 }
 0x285   :  { %v323_v18 = vcvt.s32.f32 %v195_v2  ;;  %v1187_v2 = vld [vmem:[%s2054_s12 + $0xa8] sm:$0xff] }
 0x286   :  { %v332_v12 = vcvt.s32.f32 %v204_v11  ;;  %1305 = vperm.xlu0 %1643, %v1187_v2   ;;  %v1183_v2 = vld [vmem:[%s2054_s12 + $0x88] sm:$0xff] }
 0x288   :  { %v2170_v39 = vpop.f32.mrf.mxu1  ;;  %v2172_v47 = vpop.f32.mrf.mxu3 }
 0x28b   :  { %1076 = vmatmul.f32.gmra.mxu1 %v320_v29 }
 0x28c   :  { %889 = vmatmul.f32.gmra.mxu2 %v370_v21  ;;  %954 = vmatmul.f32.gmra.mxu3 %v307_v24  ;;  %v208_v21 = vunpack.c.1.s8 %v124_v6 }
 0x28e   :  { %v336_v29 = vcvt.s32.f32 %v208_v21 }
 0x290   :  { %v2175_v55 = vpop.f32.mrf.mxu1  ;;  %v2181_v7 = vpop.f32.mrf.mxu3 }
 0x293   :  { %1079 = vmatmul.f32.gmra.mxu1 %v324_v43  ;;  %v212_v43 = vunpack.c.2.s8 %v124_v6 }
 0x294   :  { %892 = vmatmul.f32.gmra.mxu2 %v374_v13  ;;  %957 = vmatmul.f32.gmra.mxu3 %v311_v8  ;;  %v327_v13 = vcvt.s32.f32 %v199_v28  ;;  %v2191_v8 = vld [vmem:[%s2481_s1 + $0x90] sm:$0xff] }
 0x295   :  { %v340_v46 = vcvt.s32.f32 %v212_v43  ;;  %v203_v35 = vunpack.c.0.s8 %v2191_v8  ;;  %v211_v31 = vunpack.c.2.s8 %v2191_v8 }
 0x297   :  { %v331_v48 = vcvt.s32.f32 %v203_v35  ;;  %v339_v37 = vcvt.s32.f32 %v211_v31  ;;  %v1190_v35 = vld [vmem:[%s2054_s12 + $0xc0] sm:$0xff] }
 0x298   :  { %v1038_v15 = vpop.f32.mrf.mxu1  ;;  %v2186_v26 = vpop.f32.mrf.mxu3  ;;  %1320 = vperm.xlu0 %1643, %v1190_v35  }
 0x29b   :  { %1082 = vmatmul.f32.gmra.mxu1 %v328_v56  ;;  %v1185_v56 = vld [vmem:[%s2054_s12 + $0x98] sm:$0xff] }
 0x29c   :  { %895 = vmatmul.f32.gmra.mxu2 %v378_v51  ;;  %960 = vmatmul.f32.gmra.mxu3 %v315_v52  ;;  %v1180_v51 = vld [vmem:[%s2054_s12 + $0x70] sm:$0xff]  ;;  %v216_v52 = vunpack.c.3.s8 %v124_v6  ;;  %v1201_v4 = vpop.permute.xlu0 %1200  ;;  %v2209_v6 = vld [vmem:[%s2481_s1 + $0xb8] sm:$0xff] }
 0x29d   :  { %1270 = vperm.xlu2 %1645, %v1180_v51   ;;  %1295 = vperm.xlu1 %1644, %v1185_v56   ;;  %v220_v10 = vunpack.c.0.s8 %v2209_v6  ;;  %v215_v56 = vunpack.c.3.s8 %v2191_v8  ;;  %v232_v35 = vunpack.c.3.s8 %v2209_v6 }
 0x29e   :  { %v344_v61 = vcvt.s32.f32 %v216_v52 }
 0x2a0   :  { %v2184_v24 = vpop.f32.mrf.mxu1  ;;  %v2197_v22 = vpop.f32.mrf.mxu3 }
 0x2a3   :  { %1085 = vmatmul.f32.gmra.mxu1 %v332_v12 }
 0x2a4   :  { %898 = vmatmul.f32.gmra.mxu2 %v382_v63  ;;  %963 = vmatmul.f32.gmra.mxu3 %v319_v3  ;;  %v207_v63 = vunpack.c.1.s8 %v2191_v8  ;;  %v1206_v43 = vpop.permute.xlu0 %1205  ;;  %v1193_v8 = vld [vmem:[%s2054_s12 + $0xd8] sm:$0xff] }
 0x2a5   :  { %1285 = vperm.xlu2 %1645, %v1183_v2   ;;  %1335 = vperm.xlu0 %1643, %v1193_v8   ;;  %v1186_v8 = vld [vmem:[%s2054_s12 + $0xa0] sm:$0xff] }
 0x2a6   :  { %v335_v12 = vcvt.s32.f32 %v207_v63 }
 0x2ab   :  { %1088 = vmatmul.f32.gmra.mxu1 %v336_v29 }
 0x2ac   :  { %901 = vmatmul.f32.gmra.mxu2 %v386_v50  ;;  %966 = vmatmul.f32.gmra.mxu3 %v323_v18  ;;  %v1188_v50 = vld [vmem:[%s2054_s12 + $0xb0] sm:$0xff] }
 0x2ad   :  { %1310 = vperm.xlu1 %1644, %v1188_v50   ;;  %v228_v50 = vunpack.c.2.s8 %v2209_v6  ;;  %1300 = vperm.xlu2 %1645, %v1186_v8  }
 0x2b0   :  { %v2194_v45 = vpop.f32.mrf.mxu1 }
 0x2b3   :  { %1091 = vmatmul.f32.gmra.mxu1 %v340_v46  ;;  %v224_v46 = vunpack.c.1.s8 %v2209_v6 }
 0x2b4   :  { %904 = vmatmul.f32.gmra.mxu2 %v390_v33  ;;  %969 = vmatmul.f32.gmra.mxu3 %v327_v13 }
 0x2b5   :  { %v352_v53 = vcvt.s32.f32 %v224_v46 }
 0x2b8   :  { %v2202_v59 = vpop.f32.mrf.mxu1 }
 0x2bb   :  { %1094 = vmatmul.f32.gmra.mxu1 %v344_v61  ;;  %v2234_v61 = vpop.f32.mrf.mxu2 }
 0x2bc   :  { %972 = vmatmul.f32.gmra.mxu3 %v331_v48  ;;  %v1191_v48 = vld [vmem:[%s2054_s12 + $0xc8] sm:$0xff] }
 0x2bd   :  { %1325 = vperm.xlu1 %1644, %v1191_v48   ;;  %v1196_v48 = vld [vmem:[%s2054_s12 + $0xf0] sm:$0xff] }
 0x2be   :  { %1350 = vperm.xlu0 %1643, %v1196_v48  }
 0x2bf   :  { %v925_v3 = vpop.f32.mrf.mxu3 }
 0x2c0   :  { %v926_v11 = vadd.f32 %v925_v3, %v2085_v34  ;;  %v2219_v21 = vpop.f32.mrf.mxu1  ;;  %v348_v34 = vcvt.s32.f32 %v220_v10  ;;  %v2241_v10 = vld [vmem:[%s2481_s1 + $0xb0] sm:$0xff] }
 0x2c2   :  { %v1039_v18 = vadd.f32 %v1038_v15, %v926_v11 }
 0x2c3   :  { %1097 = vmatmul.f32.gmra.mxu1 %v348_v34 }
 0x2c4   :  { %v1358_v29 = vmul.f32 %v1201_v4, %v1039_v18  ;;  %975 = vmatmul.f32.gmra.mxu3 %v335_v12  ;;  %v1211_v4 = vpop.permute.xlu1 %1210  ;;  %v343_v12 = vcvt.s32.f32 %v215_v56  ;;  %v1194_v18 = vld [vmem:[%s2054_s12 + $0xe0] sm:$0xff]  ;;  %v360_v56 = vcvt.s32.f32 %v232_v35  ;;  %v1189_v35 = vld [vmem:[%s2054_s12 + $0xb8] sm:$0xff] }
 0x2c5   :  { %1340 = vperm.xlu1 %1644, %v1194_v18   ;;  %1315 = vperm.xlu2 %1645, %v1189_v35  }
 0x2c6   :  { %v1493_v28 = vadd.f32 %v2217_v42, %v1358_v29 }
 0x2c7   :  { %v928_v15 = vpop.f32.mrf.mxu3 }
 0x2c8   :  { %v1525_v33 = vmax.f32 %v1493_v28, 0.0  ;;  %v929_v13 = vadd.f32 %v928_v15, %v2096_v44  ;;  %v2231_v52 = vpop.f32.mrf.mxu1  ;;  %v219_v28 = vunpack.c.0.s8 %v2241_v10 }
 0x2ca   :  { %1557 = vst [vmem:[%s2484_s6] sm:$0xff] %v1525_v33  ;;  %v1042_v51 = vadd.f32 %v2184_v24, %v929_v13  ;;  %v2255_v33 = vpop.f32.mrf.mxu2 }
 0x2cb   :  { %1100 = vmatmul.f32.gmra.mxu1 %v352_v53 }
 0x2cc   :  { %v1359_v44 = vmul.f32 %v1206_v43, %v1042_v51  ;;  %978 = vmatmul.f32.gmra.mxu3 %v339_v37  ;;  %v347_v43 = vcvt.s32.f32 %v219_v28  ;;  %v1216_v46 = vpop.permute.xlu1 %1215  ;;  %v1197_v51 = vld [vmem:[%s2054_s12 + $0xf8] sm:$0xff] }
 0x2cd   :  { %1355 = vperm.xlu1 %1644, %v1197_v51  }
 0x2ce   :  { %v1494_v63 = vadd.f32 %v2217_v42, %v1359_v44 }
 0x2cf   :  { %v931_v3 = vpop.f32.mrf.mxu3 }
 0x2d0   :  { %v1526_v24 = vmax.f32 %v1494_v63, 0.0  ;;  %v932_v11 = vadd.f32 %v931_v3, %v2100_v54  ;;  %v2251_v29 = vpop.f32.mrf.mxu1  ;;  %v356_v54 = vcvt.s32.f32 %v228_v50 }
 0x2d2   :  { %1558 = vst [vmem:[%s2484_s6 + $0x8] sm:$0xff] %v1526_v24  ;;  %v1045_v34 = vadd.f32 %v2194_v45, %v932_v11  ;;  %v2273_v2 = vpop.f32.mrf.mxu2 }
 0x2d3   :  { %1103 = vmatmul.f32.gmra.mxu1 %v356_v54 }
 0x2d4   :  { %v1360_v31 = vmul.f32 %v1211_v4, %v1045_v34  ;;  %981 = vmatmul.f32.gmra.mxu3 %v343_v12  ;;  %v1221_v4 = vpop.permute.xlu2 %1220 }
 0x2d6   :  { %v1495_v15 = vadd.f32 %v2217_v42, %v1360_v31  ;;  %v227_v31 = vunpack.c.2.s8 %v2241_v10 }
 0x2d7   :  { %v934_v13 = vpop.f32.mrf.mxu3 }
 0x2d8   :  { %v1527_v37 = vmax.f32 %v1495_v15, 0.0  ;;  %v935_v45 = vadd.f32 %v934_v13, %v2110_v5  ;;  %v2265_v44 = vpop.f32.mrf.mxu1  ;;  %v223_v5 = vunpack.c.1.s8 %v2241_v10 }
 0x2da   :  { %1559 = vst [vmem:[%s2484_s6 + $0x10] sm:$0xff] %v1527_v37  ;;  %v1048_v53 = vadd.f32 %v2202_v59, %v935_v45  ;;  %v351_v12 = vcvt.s32.f32 %v223_v5  ;;  %v132_v59 = vld [vmem:[%s2481_s1 + $0xd8] sm:$0xff]  ;;  %v355_v45 = vcvt.s32.f32 %v227_v31  ;;  %v2292_v51 = vpop.f32.mrf.mxu2 }
 0x2db   :  { %1106 = vmatmul.f32.gmra.mxu1 %v360_v56  ;;  %v236_v50 = vunpack.c.0.s8 %v132_v59 }
 0x2dc   :  { %v1361_v63 = vmul.f32 %v1216_v46, %v1048_v53  ;;  %984 = vmatmul.f32.gmra.mxu3 %v347_v43  ;;  %v1226_v43 = vpop.permute.xlu2 %1225  ;;  %v240_v46 = vunpack.c.1.s8 %v132_v59 }
 0x2de   :  { %v1496_v6 = vadd.f32 %v2217_v42, %v1361_v63  ;;  %v368_v53 = vcvt.s32.f32 %v240_v46 }
 0x2df   :  { %v937_v3 = vpop.f32.mrf.mxu3 }
 0x2e0   :  { %v1528_v24 = vmax.f32 %v1496_v6, 0.0  ;;  %v938_v11 = vadd.f32 %v937_v3, %v2115_v58  ;;  %v2280_v34 = vpop.f32.mrf.mxu1  ;;  %v364_v58 = vcvt.s32.f32 %v236_v50 }
 0x2e2   :  { %1560 = vst [vmem:[%s2484_s6 + $0x18] sm:$0xff] %v1528_v24  ;;  %v1051_v18 = vadd.f32 %v2219_v21, %v938_v11  ;;  %v2300_v24 = vld [vmem:[%s2481_s1 + $0xd0] sm:$0xff]  ;;  %v244_v11 = vunpack.c.2.s8 %v132_v59 }
 0x2e3   :  { %1109 = vmatmul.f32.gmra.mxu1 %v364_v58  ;;  %v2310_v58 = vpop.f32.mrf.mxu2 }
 0x2e4   :  { %v1362_v54 = vmul.f32 %v1221_v4, %v1051_v18  ;;  %987 = vmatmul.f32.gmra.mxu3 %v351_v12  ;;  %v1192_v12 = vld [vmem:[%s2054_s12 + $0xd0] sm:$0xff]  ;;  %v235_v18 = vunpack.c.0.s8 %v2300_v24 }
 0x2e5   :  { %1330 = vperm.xlu2 %1645, %v1192_v12   ;;  %v243_v12 = vunpack.c.2.s8 %v2300_v24 }
 0x2e6   :  { %v1497_v28 = vadd.f32 %v2217_v42, %v1362_v54 }
 0x2e7   :  { %v940_v15 = vpop.f32.mrf.mxu3 }
 0x2e8   :  { %v1529_v13 = vmax.f32 %v1497_v28, 0.0  ;;  %v941_v37 = vadd.f32 %v940_v15, %v2126_v30  ;;  %v2290_v48 = vpop.f32.mrf.mxu1  ;;  %v231_v30 = vunpack.c.3.s8 %v2241_v10 }
 0x2ea   :  { %1561 = vst [vmem:[%s2484_s6 + $0x20] sm:$0xff] %v1529_v13  ;;  %v1054_v21 = vadd.f32 %v2231_v52, %v941_v37  ;;  %v359_v4 = vcvt.s32.f32 %v231_v30  ;;  %v1231_v52 = vpop.permute.xlu0 %1230  ;;  %v363_v13 = vcvt.s32.f32 %v235_v18  ;;  %v248_v37 = vunpack.c.3.s8 %v132_v59 }
 0x2eb   :  { %1112 = vmatmul.f32.gmra.mxu1 %v368_v53  ;;  %v239_v53 = vunpack.c.1.s8 %v2300_v24 }
 0x2ec   :  { %v1363_v56 = vmul.f32 %v1226_v43, %v1054_v21  ;;  %990 = vmatmul.f32.gmra.mxu3 %v355_v45  ;;  %v1195_v45 = vld [vmem:[%s2054_s12 + $0xe8] sm:$0xff]  ;;  %v376_v35 = vcvt.s32.f32 %v248_v37 }
 0x2ed   :  { %1345 = vperm.xlu2 %1645, %v1195_v45   ;;  %v843_v45 = vadd.f32 %v2273_v2, %v2141_v49 }
 0x2ee   :  { %v1498_v63 = vadd.f32 %v2217_v42, %v1363_v56  ;;  %v2325_v56 = vpop.f32.mrf.mxu2 }
 0x2ef   :  { %v943_v5 = vpop.f32.mrf.mxu3 }
 0x2f0   :  { %v1530_v6 = vmax.f32 %v1498_v63, 0.0  ;;  %v944_v3 = vadd.f32 %v943_v5, %v2133_v40  ;;  %v2307_v50 = vpop.f32.mrf.mxu1  ;;  %v372_v40 = vcvt.s32.f32 %v244_v11 }
 0x2f2   :  { %1562 = vst [vmem:[%s2484_s6 + $0x28] sm:$0xff] %v1530_v6  ;;  %v1057_v10 = vadd.f32 %v2251_v29, %v944_v3  ;;  %v1236_v29 = vpop.permute.xlu1 %1235  ;;  %v136_v6 = vld [vmem:[%s2481_s1 + $0xf8] sm:$0xff]  ;;  %v1241_v3 = vpop.permute.xlu2 %1240 }
 0x2f3   :  { %1115 = vmatmul.f32.gmra.mxu1 %v372_v40 }
 0x2f4   :  { %v1364_v8 = vmul.f32 %v1231_v52, %v1057_v10  ;;  %993 = vmatmul.f32.gmra.mxu3 %v359_v4  ;;  %v252_v4 = vunpack.c.0.s8 %v136_v6  ;;  %v840_v10 = vadd.f32 %v2255_v33, %v2128_v25  ;;  %v247_v33 = vunpack.c.3.s8 %v2300_v24 }
 0x2f6   :  { %v1499_v54 = vadd.f32 %v2217_v42, %v1364_v8  ;;  %v380_v52 = vcvt.s32.f32 %v252_v4 }
 0x2f7   :  { %v946_v31 = vpop.f32.mrf.mxu3 }
 0x2f8   :  { %v1531_v28 = vmax.f32 %v1499_v54, 0.0  ;;  %v947_v15 = vadd.f32 %v946_v31, %v2144_v57  ;;  %v2319_v46 = vpop.f32.mrf.mxu1  ;;  %v837_v57 = vadd.f32 %v2234_v61, %v2120_v23  ;;  %v371_v31 = vcvt.s32.f32 %v243_v12 }
 0x2fa   :  { %1563 = vst [vmem:[%s2484_s6 + $0x30] sm:$0xff] %v1531_v28  ;;  %v1060_v43 = vadd.f32 %v2265_v44, %v947_v15  ;;  %v367_v44 = vcvt.s32.f32 %v239_v53  ;;  %v2340_v28 = vpop.f32.mrf.mxu2  ;;  %v256_v15 = vunpack.c.1.s8 %v136_v6 }
 0x2fb   :  { %1118 = vmatmul.f32.gmra.mxu1 %v376_v35 }
 0x2fc   :  { %v1365_v21 = vmul.f32 %v1236_v29, %v1060_v43  ;;  %996 = vmatmul.f32.gmra.mxu3 %v363_v13  ;;  %v384_v37 = vcvt.s32.f32 %v256_v15 }
 0x2fe   :  { %v1500_v59 = vadd.f32 %v2217_v42, %v1365_v21 }
 0x2ff   :  { %v949_v30 = vpop.f32.mrf.mxu3 }
 0x300   :  { %v1532_v63 = vmax.f32 %v1500_v59, 0.0  ;;  %v950_v5 = vadd.f32 %v949_v30, %v837_v57  ;;  %v2334_v61 = vpop.f32.mrf.mxu1  ;;  %v375_v57 = vcvt.s32.f32 %v247_v33  ;;  %v1251_v59 = vpop.permute.xlu1 %1250  ;;  %v260_v30 = vunpack.c.2.s8 %v136_v6 }
 0x302   :  { %1564 = vst [vmem:[%s2484_s6 + $0x38] sm:$0xff] %v1532_v63  ;;  %v1063_v23 = vadd.f32 %v2280_v34, %v950_v5  ;;  %v1246_v34 = vpop.permute.xlu0 %1245  ;;  %v2359_v49 = vpop.f32.mrf.mxu2  ;;  %v388_v2 = vcvt.s32.f32 %v260_v30 }
 0x303   :  { %1121 = vmatmul.f32.gmra.mxu1 %v380_v52 }
 0x304   :  { %v1366_v11 = vmul.f32 %v1241_v3, %v1063_v23  ;;  %999 = vmatmul.f32.gmra.mxu3 %v367_v44  ;;  %v846_v3 = vadd.f32 %v2292_v51, %v2148_v1  ;;  %v849_v51 = vadd.f32 %v2310_v58, %v2154_v16  ;;  %v852_v16 = vadd.f32 %v2325_v56, %v2159_v27 }
 0x305   :  { %v855_v27 = vadd.f32 %v2340_v28, %v2170_v39 }
 0x306   :  { %v1501_v40 = vadd.f32 %v2217_v42, %v1366_v11 }
 0x307   :  { %v952_v8 = vpop.f32.mrf.mxu3 }
 0x308   :  { %v1533_v18 = vmax.f32 %v1501_v40, 0.0  ;;  %v953_v54 = vadd.f32 %v952_v8, %v840_v10  ;;  %v2346_v29 = vpop.f32.mrf.mxu1  ;;  %v1256_v10 = vpop.permute.xlu2 %1255  ;;  %v264_v40 = vunpack.c.3.s8 %v136_v6 }
 0x309   :  { %v1266_v30 = vpop.permute.xlu1 %1265 }
 0x30a   :  { %1565 = vst [vmem:[%s2484_s6 + $0x40] sm:$0xff] %v1533_v18  ;;  %v1066_v13 = vadd.f32 %v2290_v48, %v953_v54  ;;  %v135_v48 = vld [vmem:[%s2481_s1 + $0xf0] sm:$0xff]  ;;  %v392_v18 = vcvt.s32.f32 %v264_v40  ;;  %v860_v1 = vpop.f32.mrf.mxu2 }
 0x30b   :  { %1124 = vmatmul.f32.gmra.mxu1 %v384_v37  ;;  %v251_v44 = vunpack.c.0.s8 %v135_v48 }
 0x30c   :  { %v1367_v25 = vmul.f32 %v1246_v34, %v1066_v13  ;;  %1002 = vmatmul.f32.gmra.mxu3 %v371_v31  ;;  %v255_v31 = vunpack.c.1.s8 %v135_v48 }
 0x30d   :  { %v379_v12 = vcvt.s32.f32 %v251_v44 }
 0x30e   :  { %v1502_v43 = vadd.f32 %v2217_v42, %v1367_v25  ;;  %v383_v37 = vcvt.s32.f32 %v255_v31  ;;  %v1261_v25 = vpop.permute.xlu0 %1260 }
 0x30f   :  { %v955_v35 = vpop.f32.mrf.mxu3 }
 0x310   :  { %v1534_v21 = vmax.f32 %v1502_v43, 0.0  ;;  %v956_v53 = vadd.f32 %v955_v35, %v843_v45  ;;  %v1080_v63 = vpop.f32.mrf.mxu1  ;;  %v259_v43 = vunpack.c.2.s8 %v135_v48 }
 0x312   :  { %1566 = vst [vmem:[%s2484_s6 + $0x48] sm:$0xff] %v1534_v21  ;;  %v1069_v24 = vadd.f32 %v2307_v50, %v956_v53  ;;  %v863_v35 = vpop.f32.mrf.mxu2 }
 0x313   :  { %1127 = vmatmul.f32.gmra.mxu1 %v388_v2 }
 0x314   :  { %v1368_v5 = vmul.f32 %v1251_v59, %v1069_v24  ;;  %1005 = vmatmul.f32.gmra.mxu3 %v375_v57  ;;  %v387_v59 = vcvt.s32.f32 %v259_v43 }
 0x316   :  { %v1503_v4 = vadd.f32 %v2217_v42, %v1368_v5  ;;  %v263_v5 = vunpack.c.3.s8 %v135_v48  ;;  %v858_v48 = vadd.f32 %v2359_v49, %v2175_v55 }
 0x317   :  { %v958_v23 = vpop.f32.mrf.mxu3 }
 0x318   :  { %v1535_v52 = vmax.f32 %v1503_v4, 0.0  ;;  %v959_v11 = vadd.f32 %v958_v23, %v846_v3  ;;  %v1083_v8 = vpop.f32.mrf.mxu1  ;;  %v391_v23 = vcvt.s32.f32 %v263_v5 }
 0x31a   :  { %1567 = vst [vmem:[%s2484_s6 + $0x50] sm:$0xff] %v1535_v52  ;;  %v1072_v50 = vadd.f32 %v2319_v46, %v959_v11  ;;  %v866_v52 = vpop.f32.mrf.mxu2  ;;  %v1271_v11 = vpop.permute.xlu2 %1270 }
 0x31b   :  { %1130 = vmatmul.f32.gmra.mxu1 %v392_v18  ;;  %v1276_v18 = vpop.permute.xlu0 %1275 }
 0x31c   :  { %v1369_v54 = vmul.f32 %v1256_v10, %v1072_v50  ;;  %1008 = vmatmul.f32.gmra.mxu3 %v379_v12 }
 0x31e   :  { %v1504_v34 = vadd.f32 %v2217_v42, %v1369_v54 }
 0x31f   :  { %v961_v15 = vpop.f32.mrf.mxu3 }
 0x320   :  { %v1536_v6 = vmax.f32 %v1504_v34, 0.0  ;;  %v962_v13 = vadd.f32 %v961_v15, %v849_v51  ;;  %v1086_v33 = vpop.f32.mrf.mxu1 }
 0x322   :  { %1568 = vst [vmem:[%s2484_s6 + $0x58] sm:$0xff] %v1536_v6  ;;  %v1075_v46 = vadd.f32 %v2334_v61, %v962_v13  ;;  %v869_v31 = vpop.f32.mrf.mxu2  ;;  %v1281_v13 = vpop.permute.xlu1 %1280 }
 0x324   :  { %v1370_v45 = vmul.f32 %v1261_v25, %v1075_v46  ;;  %1011 = vmatmul.f32.gmra.mxu3 %v383_v37 }
 0x326   :  { %v1505_v58 = vadd.f32 %v2217_v42, %v1370_v45 }
 0x327   :  { %v964_v21 = vpop.f32.mrf.mxu3 }
 0x328   :  { %v1537_v53 = vmax.f32 %v1505_v58, 0.0  ;;  %v965_v57 = vadd.f32 %v964_v21, %v852_v16  ;;  %v1089_v24 = vpop.f32.mrf.mxu1  ;;  %v1286_v16 = vpop.permute.xlu2 %1285 }
 0x32a   :  { %1569 = vst [vmem:[%s2484_s6 + $0x60] sm:$0xff] %v1537_v53  ;;  %v1078_v61 = vadd.f32 %v2346_v29, %v965_v57  ;;  %v872_v46 = vpop.f32.mrf.mxu2  ;;  %v867_v57 = vadd.f32 %v866_v52, %v2071_v20  ;;  %v1296_v52 = vpop.permute.xlu1 %1295 }
 0x32c   :  { %v1371_v2 = vmul.f32 %v1266_v30, %v1078_v61  ;;  %1014 = vmatmul.f32.gmra.mxu3 %v387_v59 }
 0x32e   :  { %v1506_v56 = vadd.f32 %v2217_v42, %v1371_v2  ;;  %v1291_v2 = vpop.permute.xlu0 %1290 }
 0x32f   :  { %v967_v44 = vpop.f32.mrf.mxu3 }
 0x330   :  { %v1538_v3 = vmax.f32 %v1506_v56, 0.0  ;;  %v968_v4 = vadd.f32 %v967_v44, %v855_v27  ;;  %v1092_v10 = vpop.f32.mrf.mxu1  ;;  %v870_v56 = vadd.f32 %v869_v31, %v2082_v32 }
 0x332   :  { %1570 = vst [vmem:[%s2484_s6 + $0x68] sm:$0xff] %v1538_v3  ;;  %v1081_v29 = vadd.f32 %v1080_v63, %v968_v4  ;;  %v861_v63 = vadd.f32 %v860_v1, %v2039_v0  ;;  %v875_v59 = vpop.f32.mrf.mxu2 }
 0x334   :  { %v1372_v12 = vmul.f32 %v1271_v11, %v1081_v29  ;;  %1017 = vmatmul.f32.gmra.mxu3 %v391_v23 }
 0x336   :  { %v1507_v39 = vadd.f32 %v2217_v42, %v1372_v12  ;;  %v873_v12 = vadd.f32 %v872_v46, %v2092_v41 }
 0x337   :  { %v970_v28 = vpop.f32.mrf.mxu3 }
 0x338   :  { %v1539_v40 = vmax.f32 %v1507_v39, 0.0  ;;  %v971_v50 = vadd.f32 %v970_v28, %v858_v48  ;;  %v1095_v6 = vpop.f32.mrf.mxu1 }
 0x33a   :  { %1571 = vst [vmem:[%s2484_s6 + $0x70] sm:$0xff] %v1539_v40  ;;  %v1084_v54 = vadd.f32 %v1083_v8, %v971_v50  ;;  %v864_v8 = vadd.f32 %v863_v35, %v2046_v9  ;;  %v878_v4 = vpop.f32.mrf.mxu2  ;;  %v1301_v50 = vpop.permute.xlu2 %1300 }
 0x33c   :  { %v1373_v51 = vmul.f32 %v1276_v18, %v1084_v54  ;;  %v876_v54 = vadd.f32 %v875_v59, %v2108_v60 }
 0x33e   :  { %v1508_v34 = vadd.f32 %v2217_v42, %v1373_v51 }
 0x33f   :  { %v973_v15 = vpop.f32.mrf.mxu3 }
 0x340   :  { %v1540_v55 = vmax.f32 %v1508_v34, 0.0  ;;  %v974_v49 = vadd.f32 %v973_v15, %v861_v63  ;;  %v1098_v58 = vpop.f32.mrf.mxu1 }
 0x342   :  { %1572 = vst [vmem:[%s2484_s6 + $0x78] sm:$0xff] %v1540_v55  ;;  %v1087_v37 = vadd.f32 %v1086_v33, %v974_v49  ;;  %v881_v40 = vpop.f32.mrf.mxu2 }
 0x344   :  { %v1374_v25 = vmul.f32 %v1281_v13, %v1087_v37  ;;  %v879_v13 = vadd.f32 %v878_v4, %v2112_v14 }
 0x346   :  { %v1509_v45 = vadd.f32 %v2217_v42, %v1374_v25 }
 0x347   :  { %v976_v43 = vpop.f32.mrf.mxu3 }
 0x348   :  { %v1541_v0 = vmax.f32 %v1509_v45, 0.0  ;;  %v977_v1 = vadd.f32 %v976_v43, %v864_v8  ;;  %v1101_v5 = vpop.f32.mrf.mxu1  ;;  %v1311_v43 = vpop.permute.xlu1 %1310 }
 0x34a   :  { %1573 = vst [vmem:[%s2484_s6 + $0x80] sm:$0xff] %v1541_v0  ;;  %v1090_v21 = vadd.f32 %v1089_v24, %v977_v1  ;;  %v884_v49 = vpop.f32.mrf.mxu2  ;;  %v882_v1 = vadd.f32 %v881_v40, %v2122_v36 }
 0x34c   :  { %v1375_v53 = vmul.f32 %v1286_v16, %v1090_v21 }
 0x34e   :  { %v1510_v33 = vadd.f32 %v2217_v42, %v1375_v53 }
 0x34f   :  { %v979_v30 = vpop.f32.mrf.mxu3 }
 0x350   :  { %v1542_v9 = vmax.f32 %v1510_v33, 0.0  ;;  %v980_v35 = vadd.f32 %v979_v30, %v867_v57  ;;  %v1104_v29 = vpop.f32.mrf.mxu1  ;;  %v1316_v33 = vpop.permute.xlu2 %1315 }
 0x352   :  { %1574 = vst [vmem:[%s2484_s6 + $0x88] sm:$0xff] %v1542_v9  ;;  %v1093_v61 = vadd.f32 %v1092_v10, %v980_v35  ;;  %v885_v9 = vadd.f32 %v884_v49, %v2130_v38 }
 0x354   :  { %v1376_v27 = vmul.f32 %v1291_v2, %v1093_v61 }
 0x356   :  { %v1511_v24 = vadd.f32 %v2217_v42, %v1376_v27 }
 0x357   :  { %v982_v44 = vpop.f32.mrf.mxu3 }
 0x358   :  { %v1543_v20 = vmax.f32 %v1511_v24, 0.0  ;;  %v983_v3 = vadd.f32 %v982_v44, %v870_v56  ;;  %v1107_v63 = vpop.f32.mrf.mxu1 }
 0x35a   :  { %1575 = vst [vmem:[%s2484_s6 + $0x90] sm:$0xff] %v1543_v20  ;;  %v1096_v23 = vadd.f32 %v1095_v6, %v983_v3  ;;  %v1306_v6 = vpop.permute.xlu0 %1305 }
 0x35c   :  { %v1377_v11 = vmul.f32 %v1296_v52, %v1096_v23 }
 0x35e   :  { %v1512_v10 = vadd.f32 %v2217_v42, %v1377_v11 }
 0x35f   :  { %v985_v48 = vpop.f32.mrf.mxu3 }
 0x360   :  { %v1544_v32 = vmax.f32 %v1512_v10, 0.0  ;;  %v986_v39 = vadd.f32 %v985_v48, %v873_v12  ;;  %v1110_v8 = vpop.f32.mrf.mxu1 }
 0x362   :  { %1576 = vst [vmem:[%s2484_s6 + $0x98] sm:$0xff] %v1544_v32  ;;  %v1099_v28 = vadd.f32 %v1098_v58, %v986_v39  ;;  %v887_v58 = vpop.f32.mrf.mxu2  ;;  %v1321_v56 = vpop.permute.xlu0 %1320 }
 0x363   :  { %v888_v20 = vadd.f32 %v887_v58, %v2146_v62 }
 0x364   :  { %v1378_v18 = vmul.f32 %v1301_v50, %v1099_v28  ;;  %v1331_v50 = vpop.permute.xlu2 %1330 }
 0x366   :  { %v1513_v31 = vadd.f32 %v2217_v42, %v1378_v18 }
 0x367   :  { %v988_v51 = vpop.f32.mrf.mxu3 }
 0x368   :  { %v1545_v41 = vmax.f32 %v1513_v31, 0.0  ;;  %v989_v34 = vadd.f32 %v988_v51, %v876_v54  ;;  %v1113_v59 = vpop.f32.mrf.mxu1 }
 0x36a   :  { %1577 = vst [vmem:[%s2484_s6 + $0xa0] sm:$0xff] %v1545_v41  ;;  %v1102_v15 = vadd.f32 %v1101_v5, %v989_v34  ;;  %v890_v5 = vpop.f32.mrf.mxu2 }
 0x36b   :  { %v891_v10 = vadd.f32 %v890_v5, %v2156_v17 }
 0x36c   :  { %v1379_v55 = vmul.f32 %v1306_v6, %v1102_v15  ;;  %v1336_v6 = vpop.permute.xlu0 %1335 }
 0x36e   :  { %v1514_v37 = vadd.f32 %v2217_v42, %v1379_v55 }
 0x36f   :  { %v991_v25 = vpop.f32.mrf.mxu3 }
 0x370   :  { %v1546_v60 = vmax.f32 %v1514_v37, 0.0  ;;  %v992_v46 = vadd.f32 %v991_v25, %v879_v13  ;;  %v1116_v44 = vpop.f32.mrf.mxu1 }
 0x372   :  { %1578 = vst [vmem:[%s2484_s6 + $0xa8] sm:$0xff] %v1546_v60  ;;  %v1105_v45 = vadd.f32 %v1104_v29, %v992_v46  ;;  %v893_v11 = vpop.f32.mrf.mxu2  ;;  %v1326_v29 = vpop.permute.xlu1 %1325 }
 0x373   :  { %v894_v31 = vadd.f32 %v893_v11, %v2161_v19 }
 0x374   :  { %v1380_v0 = vmul.f32 %v1311_v43, %v1105_v45 }
 0x376   :  { %v1515_v16 = vadd.f32 %v2217_v42, %v1380_v0 }
 0x377   :  { %v994_v21 = vpop.f32.mrf.mxu3 }
 0x378   :  { %v1547_v14 = vmax.f32 %v1515_v16, 0.0  ;;  %v995_v53 = vadd.f32 %v994_v21, %v882_v1  ;;  %v1119_v39 = vpop.f32.mrf.mxu1 }
 0x37a   :  { %1579 = vst [vmem:[%s2484_s6 + $0xb0] sm:$0xff] %v1547_v14  ;;  %v1108_v57 = vadd.f32 %v1107_v63, %v995_v53  ;;  %v896_v54 = vpop.f32.mrf.mxu2  ;;  %v1346_v53 = vpop.permute.xlu2 %1345 }
 0x37b   :  { %v897_v49 = vadd.f32 %v896_v54, %v2172_v47 }
 0x37c   :  { %v1381_v30 = vmul.f32 %v1316_v33, %v1108_v57 }
 0x37e   :  { %v1516_v35 = vadd.f32 %v2217_v42, %v1381_v30 }
 0x37f   :  { %v997_v61 = vpop.f32.mrf.mxu3 }
 0x380   :  { %v1548_v36 = vmax.f32 %v1516_v35, 0.0  ;;  %v998_v2 = vadd.f32 %v997_v61, %v885_v9  ;;  %v1122_v34 = vpop.f32.mrf.mxu1 }
 0x382   :  { %1580 = vst [vmem:[%s2484_s6 + $0xb8] sm:$0xff] %v1548_v36  ;;  %v1111_v27 = vadd.f32 %v1110_v8, %v998_v2  ;;  %v899_v37 = vpop.f32.mrf.mxu2  ;;  %v1341_v8 = vpop.permute.xlu1 %1340 }
 0x383   :  { %v900_v0 = vadd.f32 %v899_v37, %v2181_v7  ;;  %v1351_v2 = vpop.permute.xlu0 %1350 }
 0x384   :  { %v1382_v24 = vmul.f32 %v1321_v56, %v1111_v27 }
 0x386   :  { %v1517_v3 = vadd.f32 %v2217_v42, %v1382_v24 }
 0x387   :  { %v1000_v4 = vpop.f32.mrf.mxu3 }
 0x388   :  { %v1549_v38 = vmax.f32 %v1517_v3, 0.0  ;;  %v1001_v23 = vadd.f32 %v1000_v4, %v888_v20  ;;  %v1125_v45 = vpop.f32.mrf.mxu1 }
 0x38a   :  { %1581 = vst [vmem:[%s2484_s6 + $0xc0] sm:$0xff] %v1549_v38  ;;  %v1114_v52 = vadd.f32 %v1113_v59, %v1001_v23  ;;  %v902_v21 = vpop.f32.mrf.mxu2  ;;  %v1356_v4 = vpop.permute.xlu1 %1355 }
 0x38b   :  { %v903_v59 = vadd.f32 %v902_v21, %v2186_v26 }
 0x38c   :  { %v1383_v12 = vmul.f32 %v1326_v29, %v1114_v52 }
 0x38e   :  { %v1518_v48 = vadd.f32 %v2217_v42, %v1383_v12 }
 0x38f   :  { %v1003_v32 = vpop.f32.mrf.mxu3 }
 0x390   :  { %v1550_v62 = vmax.f32 %v1518_v48, 0.0  ;;  %v1004_v28 = vadd.f32 %v1003_v32, %v891_v10  ;;  %v1128_v33 = vpop.f32.mrf.mxu1 }
 0x392   :  { %1582 = vst [vmem:[%s2484_s6 + $0xc8] sm:$0xff] %v1550_v62  ;;  %v1117_v40 = vadd.f32 %v1116_v44, %v1004_v28  ;;  %v905_v36 = vpop.f32.mrf.mxu2 }
 0x393   :  { %v906_v27 = vadd.f32 %v905_v36, %v2197_v22 }
 0x394   :  { %v1384_v18 = vmul.f32 %v1331_v50, %v1117_v40 }
 0x396   :  { %v1519_v51 = vadd.f32 %v2217_v42, %v1384_v18 }
 0x397   :  { %v1006_v63 = vpop.f32.mrf.mxu3 }
 0x398   :  { %v1551_v17 = vmax.f32 %v1519_v51, 0.0  ;;  %v1007_v41 = vadd.f32 %v1006_v63, %v894_v31  ;;  %v1131_v44 = vpop.f32.mrf.mxu1 }
 0x39a   :  { %1583 = vst [vmem:[%s2484_s6 + $0xd0] sm:$0xff] %v1551_v17  ;;  %v1120_v15 = vadd.f32 %v1119_v39, %v1007_v41 }
 0x39c   :  { %v1385_v55 = vmul.f32 %v1336_v6, %v1120_v15 }
 0x39e   :  { %v1520_v13 = vadd.f32 %v2217_v42, %v1385_v55 }
 0x39f   :  { %v1009_v25 = vpop.f32.mrf.mxu3 }
 0x3a0   :  { %v1552_v19 = vmax.f32 %v1520_v13, 0.0  ;;  %v1010_v60 = vadd.f32 %v1009_v25, %v897_v49 }
 0x3a2   :  { %1584 = vst [vmem:[%s2484_s6 + $0xd8] sm:$0xff] %v1552_v19  ;;  %v1123_v46 = vadd.f32 %v1122_v34, %v1010_v60 }
 0x3a4   :  { %v1386_v43 = vmul.f32 %v1341_v8, %v1123_v46 }
 0x3a6   :  { %v1521_v1 = vadd.f32 %v2217_v42, %v1386_v43 }
 0x3a7   :  { %v1012_v16 = vpop.f32.mrf.mxu3 }
 0x3a8   :  { %v1553_v47 = vmax.f32 %v1521_v1, 0.0  ;;  %v1013_v58 = vadd.f32 %v1012_v16, %v900_v0 }
 0x3aa   :  { %1585 = vst [vmem:[%s2484_s6 + $0xe0] sm:$0xff] %v1553_v47  ;;  %v1126_v14 = vadd.f32 %v1125_v45, %v1013_v58 }
 0x3ac   :  { %v1387_v57 = vmul.f32 %v1346_v53, %v1126_v14 }
 0x3ae   :  { %v1522_v30 = vadd.f32 %v2217_v42, %v1387_v57 }
 0x3af   :  { %v1015_v9 = vpop.f32.mrf.mxu3 }
 0x3b0   :  { %v1554_v7 = vmax.f32 %v1522_v30, 0.0  ;;  %v1016_v35 = vadd.f32 %v1015_v9, %v903_v59 }
 0x3b2   :  { %1586 = vst [vmem:[%s2484_s6 + $0xe8] sm:$0xff] %v1554_v7  ;;  %v1129_v61 = vadd.f32 %v1128_v33, %v1016_v35 }
 0x3b4   :  { %v1388_v5 = vmul.f32 %v1351_v2, %v1129_v61 }
 0x3b6   :  { %v1523_v56 = vadd.f32 %v2217_v42, %v1388_v5 }
 0x3b7   :  { %v1018_v24 = vpop.f32.mrf.mxu3 }
 0x3b8   :  { %v1555_v26 = vmax.f32 %v1523_v56, 0.0  ;;  %v1019_v20 = vadd.f32 %v1018_v24, %v906_v27 }
 0x3ba   :  { %1587 = vst [vmem:[%s2484_s6 + $0xf0] sm:$0xff] %v1555_v26  ;;  %v1132_v3 = vadd.f32 %v1131_v44, %v1019_v20 }
 0x3bc   :  { %v1389_v38 = vmul.f32 %v1356_v4, %v1132_v3 }
 0x3be   :  { %v1524_v23 = vadd.f32 %v2217_v42, %v1389_v38 }
 0x3c0   :  { %v1556_v52 = vmax.f32 %v1524_v23, 0.0 }
 0x3c2   :  { %1588 = vst [vmem:[%s2484_s6 + $0xf8] sm:$0xff] %v1556_v52 }

// kernel: _lambda_.10
= control target key start
LH: loop header
LB: loop body
LE: loop exit
PB: predicated region body
PF: predicated region fallthrough
CT: control target
= control target key end

     0   :  { %s2434_s0 = inlined_call_operand.<no memory space> [shape: s32[1], index: 0, kind: input, shape index: {}]   ;;  %s2435_s3 = inlined_call_operand.vmem [shape: f32[1,128,128], index: 3, kind: input, shape index: {}]   ;;  %s2436_s2 = inlined_call_operand.vmem [shape: f32[512,128], index: 2, kind: input, shape index: {}]   ;;  %s2437_s1 = inlined_call_operand.vmem [shape: s8[256,512], index: 1, kind: input, shape index: {}]   ;;  %s2438_s4 = inlined_call_operand.vmem [shape: f32[256,1], index: 4, kind: input, shape index: {}]   ;;  %s2439_s5 = inlined_call_operand.vmem [shape: f32[1,128], index: 5, kind: input, shape index: {}]   ;;  %s2440_s6 = inlined_call_operand.vmem [shape: f32[256,128], index: 6, kind: output, shape index: {}]  }
   0x1   :  { %p53_p0 = scmp.lt.s32.totalorder %s2434_s0, 0  ;;  %v393_v16 = vld [vmem:[%s2436_s2] sm:$0xff]  ;;  %v394_v17 = vld [vmem:[%s2436_s2 + $0x8] sm:$0xff]  ;;  %v395_v18 = vld [vmem:[%s2436_s2 + $0x10] sm:$0xff]  ;;  %s1575_s8 = sshll.u32 %s2434_s0, 5 }
   0x2   :  { %v396_v19 = vld [vmem:[%s2436_s2 + $0x18] sm:$0xff]  ;;  %v397_v20 = vld [vmem:[%s2436_s2 + $0x20] sm:$0xff]  ;;  %v398_v21 = vld [vmem:[%s2436_s2 + $0x28] sm:$0xff]  ;;  %p62_p1 = scmp.lt.s32.totalorder %s1575_s8, 31 }
   0x3   :  { %s54_s25 = scalar_select %p53_p0, %s2434_s0, 0  ;;  %v399_v22 = vld [vmem:[%s2436_s2 + $0x30] sm:$0xff]  ;;  %v400_v23 = vld [vmem:[%s2436_s2 + $0x38] sm:$0xff]  ;;  %v401_v24 = vld [vmem:[%s2436_s2 + $0x40] sm:$0xff] }
   0x4   :  { %v402_v25 = vld [vmem:[%s2436_s2 + $0x48] sm:$0xff]  ;;  %v441_v26 = vld [vmem:[%s2436_s2 + $0x180] sm:$0xff]  ;;  %v403_v27 = vld [vmem:[%s2436_s2 + $0x50] sm:$0xff]  ;;  %s2442_s8 = smov (!%p62_p1, %s1575_s8), 31 }
   0x5   :  { %s1577_s26 = sshll.u32 %s54_s25, 7  ;;  %v442_v28 = vld [vmem:[%s2436_s2 + $0x188] sm:$0xff]  ;;  %v404_v29 = vld [vmem:[%s2436_s2 + $0x58] sm:$0xff]  ;;  %v443_v30 = vld [vmem:[%s2436_s2 + $0x190] sm:$0xff]  ;;  %s1576_s0 = sshll.u32 %s2442_s8, 3 }
   0x6   :  { %s1660_s29 = scalar_lea.vmem %s2435_s3, %s1577_s26  ;;  %v405_v31 = vld [vmem:[%s2436_s2 + $0x60] sm:$0xff]  ;;  %v444_v32 = vld [vmem:[%s2436_s2 + $0x198] sm:$0xff]  ;;  %v406_v33 = vld [vmem:[%s2436_s2 + $0x68] sm:$0xff]  ;;  %s2022_s12 = scalar_lea.vmem %s2438_s4, %s1576_s0 }
   0x7   :  { %v472_v0 = vld [vmem:[%s1660_s29 + $0x78] sm:$0xff]  ;;  %v471_v1 = vld [vmem:[%s1660_s29 + $0x70] sm:$0xff]  ;;  %v470_v2 = vld [vmem:[%s1660_s29 + $0x68] sm:$0xff] }
   0x8   :  { %473 = vmatpush.msra.mxu0 %v472_v0  ;;  %1578 = vmatpush.msra.mxu2 %v472_v0  ;;  %v469_v3 = vld [vmem:[%s1660_s29 + $0x60] sm:$0xff]  ;;  %v468_v4 = vld [vmem:[%s1660_s29 + $0x58] sm:$0xff]  ;;  %v467_v5 = vld [vmem:[%s1660_s29 + $0x50] sm:$0xff] }
   0x9   :  { %v466_v6 = vld [vmem:[%s1660_s29 + $0x48] sm:$0xff]  ;;  %v465_v7 = vld [vmem:[%s1660_s29 + $0x40] sm:$0xff]  ;;  %v464_v8 = vld [vmem:[%s1660_s29 + $0x38] sm:$0xff] }
   0xa   :  { %474 = vmatpush.msra.mxu0 %v471_v1  ;;  %1579 = vmatpush.msra.mxu2 %v471_v1  ;;  %v463_v9 = vld [vmem:[%s1660_s29 + $0x30] sm:$0xff]  ;;  %v462_v10 = vld [vmem:[%s1660_s29 + $0x28] sm:$0xff]  ;;  %v461_v11 = vld [vmem:[%s1660_s29 + $0x20] sm:$0xff] }
   0xb   :  { %v460_v12 = vld [vmem:[%s1660_s29 + $0x18] sm:$0xff]  ;;  %v459_v13 = vld [vmem:[%s1660_s29 + $0x10] sm:$0xff]  ;;  %v458_v14 = vld [vmem:[%s1660_s29 + $0x8] sm:$0xff] }
   0xc   :  { %475 = vmatpush.msra.mxu0 %v470_v2  ;;  %1580 = vmatpush.msra.mxu2 %v470_v2  ;;  %v457_v15 = vld [vmem:[%s1660_s29] sm:$0xff]  ;;  %v407_v35 = vld [vmem:[%s2436_s2 + $0x70] sm:$0xff]  ;;  %v446_v36 = vld [vmem:[%s2436_s2 + $0x1a8] sm:$0xff] }
   0xd   :  { %v445_v34 = vld [vmem:[%s2436_s2 + $0x1a0] sm:$0xff]  ;;  %v408_v37 = vld [vmem:[%s2436_s2 + $0x78] sm:$0xff]  ;;  %v447_v38 = vld [vmem:[%s2436_s2 + $0x1b0] sm:$0xff] }
   0xe   :  { %476 = vmatpush.msra.mxu0 %v469_v3  ;;  %1581 = vmatpush.msra.mxu2 %v469_v3  ;;  %v409_v40 = vld [vmem:[%s2436_s2 + $0x80] sm:$0xff]  ;;  %v448_v41 = vld [vmem:[%s2436_s2 + $0x1b8] sm:$0xff]  ;;  %v410_v43 = vld [vmem:[%s2436_s2 + $0x88] sm:$0xff] }
   0xf   :  { %v449_v44 = vld [vmem:[%s2436_s2 + $0x1c0] sm:$0xff]  ;;  %v411_v46 = vld [vmem:[%s2436_s2 + $0x90] sm:$0xff]  ;;  %v450_v47 = vld [vmem:[%s2436_s2 + $0x1c8] sm:$0xff] }
  0x10   :  { %477 = vmatpush.msra.mxu0 %v468_v4  ;;  %1582 = vmatpush.msra.mxu2 %v468_v4  ;;  %v412_v49 = vld [vmem:[%s2436_s2 + $0x98] sm:$0xff]  ;;  %v451_v50 = vld [vmem:[%s2436_s2 + $0x1d0] sm:$0xff]  ;;  %v413_v52 = vld [vmem:[%s2436_s2 + $0xa0] sm:$0xff] }
  0x11   :  { %v452_v53 = vld [vmem:[%s2436_s2 + $0x1d8] sm:$0xff]  ;;  %v414_v55 = vld [vmem:[%s2436_s2 + $0xa8] sm:$0xff]  ;;  %v453_v56 = vld [vmem:[%s2436_s2 + $0x1e0] sm:$0xff] }
  0x12   :  { %478 = vmatpush.msra.mxu0 %v467_v5  ;;  %1583 = vmatpush.msra.mxu2 %v467_v5  ;;  %v415_v58 = vld [vmem:[%s2436_s2 + $0xb0] sm:$0xff]  ;;  %v454_v59 = vld [vmem:[%s2436_s2 + $0x1e8] sm:$0xff]  ;;  %v416_v61 = vld [vmem:[%s2436_s2 + $0xb8] sm:$0xff] }
  0x13   :  { %v455_v62 = vld [vmem:[%s2436_s2 + $0x1f0] sm:$0xff]  ;;  %v417_v0 = vld [vmem:[%s2436_s2 + $0xc0] sm:$0xff]  ;;  %v456_v1 = vld [vmem:[%s2436_s2 + $0x1f8] sm:$0xff] }
  0x14   :  { %479 = vmatpush.msra.mxu0 %v466_v6  ;;  %1584 = vmatpush.msra.mxu2 %v466_v6  ;;  %v418_v3 = vld [vmem:[%s2436_s2 + $0xc8] sm:$0xff]  ;;  %v419_v5 = vld [vmem:[%s2436_s2 + $0xd0] sm:$0xff] }
  0x16   :  { %480 = vmatpush.msra.mxu0 %v465_v7  ;;  %1585 = vmatpush.msra.mxu2 %v465_v7 }
  0x18   :  { %481 = vmatpush.msra.mxu0 %v464_v8  ;;  %1586 = vmatpush.msra.mxu2 %v464_v8  ;;  %v420_v8 = vld [vmem:[%s2436_s2 + $0xd8] sm:$0xff] }
  0x1a   :  { %482 = vmatpush.msra.mxu0 %v463_v9  ;;  %1587 = vmatpush.msra.mxu2 %v463_v9 }
  0x1c   :  { %483 = vmatpush.msra.mxu0 %v462_v10  ;;  %1588 = vmatpush.msra.mxu2 %v462_v10 }
  0x1e   :  { %484 = vmatpush.msra.mxu0 %v461_v11  ;;  %1589 = vmatpush.msra.mxu2 %v461_v11  ;;  %v421_v11 = vld [vmem:[%s2436_s2 + $0xe0] sm:$0xff] }
  0x20   :  { %485 = vmatpush.msra.mxu0 %v460_v12  ;;  %1590 = vmatpush.msra.mxu2 %v460_v12 }
  0x22   :  { %486 = vmatpush.msra.mxu0 %v459_v13  ;;  %1591 = vmatpush.msra.mxu2 %v459_v13 }
  0x24   :  { %487 = vmatpush.msra.mxu0 %v458_v14  ;;  %1592 = vmatpush.msra.mxu2 %v458_v14  ;;  %v422_v14 = vld [vmem:[%s2436_s2 + $0xe8] sm:$0xff] }
  0x26   :  { %488 = vmatpush.msra.mxu0 %v457_v15  ;;  %1593 = vmatpush.msra.mxu2 %v457_v15 }
  0x27   :  { %489 = vmatmul.f32.vlgmr.msra.gmra.mxu0 %v393_v16  ;;  %633 = vmatmul.f32.vlgmr.msra.gmra.mxu2 %v441_v26  ;;  %v426_v26 = vld [vmem:[%s2436_s2 + $0x108] sm:$0xff] }
  0x2f   :  { %492 = vmatmul.f32.gmra.mxu0 %v394_v17  ;;  %636 = vmatmul.f32.gmra.mxu2 %v442_v28  ;;  %v423_v17 = vld [vmem:[%s2436_s2 + $0xf0] sm:$0xff] }
  0x37   :  { %495 = vmatmul.f32.gmra.mxu0 %v395_v18  ;;  %639 = vmatmul.f32.gmra.mxu2 %v443_v30 }
  0x3f   :  { %498 = vmatmul.f32.gmra.mxu0 %v396_v19  ;;  %642 = vmatmul.f32.gmra.mxu2 %v444_v32  ;;  %v428_v32 = vld [vmem:[%s2436_s2 + $0x118] sm:$0xff] }
  0x47   :  { %501 = vmatmul.f32.gmra.mxu0 %v397_v20  ;;  %645 = vmatmul.f32.gmra.mxu2 %v445_v34  ;;  %v424_v20 = vld [vmem:[%s2436_s2 + $0xf8] sm:$0xff] }
  0x4f   :  { %504 = vmatmul.f32.gmra.mxu0 %v398_v21  ;;  %648 = vmatmul.f32.gmra.mxu2 %v446_v36 }
  0x57   :  { %507 = vmatmul.f32.gmra.mxu0 %v399_v22  ;;  %651 = vmatmul.f32.gmra.mxu2 %v447_v38  ;;  %v430_v38 = vld [vmem:[%s2436_s2 + $0x128] sm:$0xff] }
  0x5f   :  { %510 = vmatmul.f32.gmra.mxu0 %v400_v23  ;;  %654 = vmatmul.f32.gmra.mxu2 %v448_v41  ;;  %v425_v23 = vld [vmem:[%s2436_s2 + $0x100] sm:$0xff]  ;;  %v431_v41 = vld [vmem:[%s2436_s2 + $0x130] sm:$0xff] }
  0x67   :  { %513 = vmatmul.f32.gmra.mxu0 %v401_v24  ;;  %657 = vmatmul.f32.gmra.mxu2 %v449_v44  ;;  %v432_v44 = vld [vmem:[%s2436_s2 + $0x138] sm:$0xff] }
  0x6f   :  { %516 = vmatmul.f32.gmra.mxu0 %v402_v25  ;;  %660 = vmatmul.f32.gmra.mxu2 %v450_v47  ;;  %v433_v47 = vld [vmem:[%s2436_s2 + $0x140] sm:$0xff] }
  0x77   :  { %519 = vmatmul.f32.gmra.mxu0 %v403_v27  ;;  %663 = vmatmul.f32.gmra.mxu2 %v451_v50  ;;  %v434_v50 = vld [vmem:[%s2436_s2 + $0x148] sm:$0xff] }
  0x7f   :  { %522 = vmatmul.f32.gmra.mxu0 %v404_v29  ;;  %666 = vmatmul.f32.gmra.mxu2 %v452_v53  ;;  %v427_v29 = vld [vmem:[%s2436_s2 + $0x110] sm:$0xff] }
  0x80   :  { %v435_v53 = vld [vmem:[%s2436_s2 + $0x150] sm:$0xff] }
  0x87   :  { %525 = vmatmul.f32.gmra.mxu0 %v405_v31  ;;  %669 = vmatmul.f32.gmra.mxu2 %v453_v56 }
  0x8f   :  { %528 = vmatmul.f32.gmra.mxu0 %v406_v33  ;;  %672 = vmatmul.f32.gmra.mxu2 %v454_v59  ;;  %v438_v59 = vld [vmem:[%s2436_s2 + $0x168] sm:$0xff] }
  0x97   :  { %531 = vmatmul.f32.gmra.mxu0 %v407_v35  ;;  %675 = vmatmul.f32.gmra.mxu2 %v455_v62  ;;  %v429_v35 = vld [vmem:[%s2436_s2 + $0x120] sm:$0xff] }
  0x98   :  { %v121_v62 = vld [vmem:[%s2437_s1 + $0x80] sm:$0xff] }
  0x9f   :  { %534 = vmatmul.f32.gmra.mxu0 %v408_v37  ;;  %678 = vmatmul.f32.gmra.mxu2 %v456_v1 }
  0xa4   :  { %v1747_v39 = vpop.f32.mrf.mxu0 }
  0xa7   :  { %537 = vmatmul.f32.gmra.mxu0 %v409_v40 }
  0xaa   :  { %v1821_v6 = vpop.f32.mrf.mxu2 }
  0xac   :  { %v1755_v42 = vpop.f32.mrf.mxu0 }
  0xaf   :  { %540 = vmatmul.f32.gmra.mxu0 %v410_v43 }
  0xb2   :  { %v1826_v9 = vpop.f32.mrf.mxu2 }
  0xb4   :  { %v1763_v45 = vpop.f32.mrf.mxu0 }
  0xb7   :  { %543 = vmatmul.f32.gmra.mxu0 %v411_v46 }
  0xba   :  { %v1831_v12 = vpop.f32.mrf.mxu2 }
  0xbc   :  { %v1771_v48 = vpop.f32.mrf.mxu0 }
  0xbf   :  { %546 = vmatmul.f32.gmra.mxu0 %v412_v49 }
  0xc2   :  { %v1836_v15 = vpop.f32.mrf.mxu2 }
  0xc4   :  { %v1779_v51 = vpop.f32.mrf.mxu0 }
  0xc7   :  { %549 = vmatmul.f32.gmra.mxu0 %v413_v52 }
  0xca   :  { %v1841_v18 = vpop.f32.mrf.mxu2 }
  0xcc   :  { %v1787_v54 = vpop.f32.mrf.mxu0 }
  0xcf   :  { %552 = vmatmul.f32.gmra.mxu0 %v414_v55  ;;  %v436_v55 = vld [vmem:[%s2436_s2 + $0x158] sm:$0xff] }
  0xd2   :  { %v1846_v21 = vpop.f32.mrf.mxu2 }
  0xd4   :  { %v1795_v57 = vpop.f32.mrf.mxu0 }
  0xd7   :  { %555 = vmatmul.f32.gmra.mxu0 %v415_v58 }
  0xda   :  { %v1853_v24 = vpop.f32.mrf.mxu2 }
  0xdc   :  { %v511_v60 = vpop.f32.mrf.mxu0 }
  0xdf   :  { %558 = vmatmul.f32.gmra.mxu0 %v416_v61  ;;  %v439_v61 = vld [vmem:[%s2436_s2 + $0x170] sm:$0xff] }
  0xe2   :  { %v655_v27 = vpop.f32.mrf.mxu2 }
  0xe4   :  { %v514_v63 = vpop.f32.mrf.mxu0 }
  0xe7   :  { %561 = vmatmul.f32.gmra.mxu0 %v417_v0 }
  0xea   :  { %v658_v30 = vpop.f32.mrf.mxu2 }
  0xec   :  { %v517_v2 = vpop.f32.mrf.mxu0 }
  0xef   :  { %564 = vmatmul.f32.gmra.mxu0 %v418_v3  ;;  %v105_v3 = vld [vmem:[%s2437_s1] sm:$0xff] }
  0xf2   :  { %v661_v33 = vpop.f32.mrf.mxu2 }
  0xf4   :  { %v520_v4 = vpop.f32.mrf.mxu0 }
  0xf7   :  { %567 = vmatmul.f32.gmra.mxu0 %v419_v5  ;;  %v205_v5 = vunpack.c.1.s8 %v121_v62 }
  0xfa   :  { %v664_v36 = vpop.f32.mrf.mxu2 }
  0xfc   :  { %v523_v7 = vpop.f32.mrf.mxu0 }
  0xff   :  { %570 = vmatmul.f32.gmra.mxu0 %v420_v8 }
 0x104   :  { %v526_v10 = vpop.f32.mrf.mxu0 }
 0x107   :  { %573 = vmatmul.f32.gmra.mxu0 %v421_v11 }
 0x10c   :  { %v529_v13 = vpop.f32.mrf.mxu0 }
 0x10f   :  { %576 = vmatmul.f32.gmra.mxu0 %v422_v14  ;;  %v106_v14 = vld [vmem:[%s2437_s1 + $0x8] sm:$0xff] }
 0x114   :  { %v532_v16 = vpop.f32.mrf.mxu0 }
 0x117   :  { %579 = vmatmul.f32.gmra.mxu0 %v423_v17 }
 0x11c   :  { %v535_v19 = vpop.f32.mrf.mxu0 }
 0x11d   :  { %682 = vmatpush.msra.mxu1 %v535_v19  ;;  %1594 = vmatpush.msra.mxu3 %v535_v19 }
 0x11f   :  { %582 = vmatmul.f32.gmra.mxu0 %v424_v20  ;;  %683 = vmatpush.msra.mxu1 %v532_v16  ;;  %v138_v20 = vunpack.c.0.s8 %v106_v14 }
 0x120   :  { %1595 = vmatpush.msra.mxu3 %v532_v16  ;;  %v213_v16 = vunpack.c.3.s8 %v121_v62 }
 0x121   :  { %684 = vmatpush.msra.mxu1 %v529_v13 }
 0x122   :  { %1596 = vmatpush.msra.mxu3 %v529_v13 }
 0x123   :  { %685 = vmatpush.msra.mxu1 %v526_v10 }
 0x124   :  { %1597 = vmatpush.msra.mxu3 %v526_v10  ;;  %v1848_v22 = vpop.f32.mrf.mxu0  ;;  %v209_v10 = vunpack.c.2.s8 %v121_v62 }
 0x125   :  { %686 = vmatpush.msra.mxu1 %v523_v7 }
 0x126   :  { %1598 = vmatpush.msra.mxu3 %v523_v7  ;;  %v333_v7 = vcvt.s32.f32 %v205_v5 }
 0x127   :  { %585 = vmatmul.f32.gmra.mxu0 %v425_v23  ;;  %687 = vmatpush.msra.mxu1 %v520_v4  ;;  %v125_v23 = vld [vmem:[%s2437_s1 + $0xa0] sm:$0xff] }
 0x128   :  { %1599 = vmatpush.msra.mxu3 %v520_v4  ;;  %v137_v4 = vunpack.c.0.s8 %v105_v3 }
 0x129   :  { %688 = vmatpush.msra.mxu1 %v517_v2 }
 0x12a   :  { %1600 = vmatpush.msra.mxu3 %v517_v2  ;;  %v440_v2 = vld [vmem:[%s2436_s2 + $0x178] sm:$0xff] }
 0x12b   :  { %689 = vmatpush.msra.mxu1 %v514_v63 }
 0x12c   :  { %1601 = vmatpush.msra.mxu3 %v514_v63  ;;  %v1855_v25 = vpop.f32.mrf.mxu0  ;;  %v201_v63 = vunpack.c.0.s8 %v121_v62 }
 0x12d   :  { %690 = vmatpush.msra.mxu1 %v511_v60 }
 0x12e   :  { %1602 = vmatpush.msra.mxu3 %v511_v60  ;;  %v329_v0 = vcvt.s32.f32 %v201_v63 }
 0x12f   :  { %588 = vmatmul.f32.gmra.mxu0 %v426_v26  ;;  %691 = vmatpush.msra.mxu1 %v1795_v57  ;;  %v217_v26 = vunpack.c.0.s8 %v125_v23 }
 0x130   :  { %1603 = vmatpush.msra.mxu3 %v1795_v57  ;;  %v437_v57 = vld [vmem:[%s2436_s2 + $0x160] sm:$0xff] }
 0x131   :  { %692 = vmatpush.msra.mxu1 %v1787_v54 }
 0x132   :  { %1604 = vmatpush.msra.mxu3 %v1787_v54 }
 0x133   :  { %693 = vmatpush.msra.mxu1 %v1779_v51 }
 0x134   :  { %1605 = vmatpush.msra.mxu3 %v1779_v51  ;;  %v1866_v28 = vpop.f32.mrf.mxu0 }
 0x135   :  { %694 = vmatpush.msra.mxu1 %v1771_v48 }
 0x136   :  { %1606 = vmatpush.msra.mxu3 %v1771_v48 }
 0x137   :  { %591 = vmatmul.f32.gmra.mxu0 %v427_v29  ;;  %695 = vmatpush.msra.mxu1 %v1763_v45  ;;  %v345_v29 = vcvt.s32.f32 %v217_v26 }
 0x138   :  { %1607 = vmatpush.msra.mxu3 %v1763_v45 }
 0x139   :  { %696 = vmatpush.msra.mxu1 %v1755_v42 }
 0x13a   :  { %1608 = vmatpush.msra.mxu3 %v1755_v42 }
 0x13b   :  { %697 = vmatpush.msra.mxu1 %v1747_v39 }
 0x13c   :  { %1609 = vmatpush.msra.mxu3 %v1747_v39  ;;  %v1879_v31 = vpop.f32.mrf.mxu0  ;;  %v667_v39 = vpop.f32.mrf.mxu2 }
 0x13d   :  { %746 = vmatmul.f32.vlgmr.msra.gmra.mxu3 %v329_v0 }
 0x13f   :  { %594 = vmatmul.f32.gmra.mxu0 %v428_v32  ;;  %v109_v32 = vld [vmem:[%s2437_s1 + $0x20] sm:$0xff] }
 0x144   :  { %v1884_v34 = vpop.f32.mrf.mxu0  ;;  %v670_v42 = vpop.f32.mrf.mxu2 }
 0x145   :  { %749 = vmatmul.f32.gmra.mxu3 %v333_v7 }
 0x147   :  { %597 = vmatmul.f32.gmra.mxu0 %v429_v35 }
 0x14c   :  { %v1889_v37 = vpop.f32.mrf.mxu0  ;;  %v673_v45 = vpop.f32.mrf.mxu2 }
 0x14f   :  { %600 = vmatmul.f32.gmra.mxu0 %v430_v38  ;;  %v157_v38 = vunpack.c.1.s8 %v109_v32 }
 0x154   :  { %v1894_v40 = vpop.f32.mrf.mxu0  ;;  %v676_v48 = vpop.f32.mrf.mxu2 }
 0x157   :  { %603 = vmatmul.f32.gmra.mxu0 %v431_v41 }
 0x15c   :  { %v1899_v43 = vpop.f32.mrf.mxu0  ;;  %v679_v51 = vpop.f32.mrf.mxu2 }
 0x15d   :  { %1021 = vmatpush.msrb.mxu1 %v679_v51 }
 0x15f   :  { %606 = vmatmul.f32.gmra.mxu0 %v432_v44  ;;  %1022 = vmatpush.msrb.mxu1 %v676_v48 }
 0x161   :  { %1023 = vmatpush.msrb.mxu1 %v673_v45  ;;  %v110_v45 = vld [vmem:[%s2437_s1 + $0x28] sm:$0xff] }
 0x162   :  { %v154_v51 = vunpack.c.0.s8 %v110_v45 }
 0x163   :  { %1024 = vmatpush.msrb.mxu1 %v670_v42 }
 0x164   :  { %v1904_v46 = vpop.f32.mrf.mxu0 }
 0x165   :  { %1025 = vmatpush.msrb.mxu1 %v667_v39  ;;  %v225_v39 = vunpack.c.2.s8 %v125_v23 }
 0x167   :  { %609 = vmatmul.f32.gmra.mxu0 %v433_v47  ;;  %1026 = vmatpush.msrb.mxu1 %v664_v36  ;;  %v353_v41 = vcvt.s32.f32 %v225_v39  ;;  %v229_v47 = vunpack.c.3.s8 %v125_v23 }
 0x169   :  { %1027 = vmatpush.msrb.mxu1 %v661_v33  ;;  %v153_v33 = vunpack.c.0.s8 %v109_v32 }
 0x16b   :  { %1028 = vmatpush.msrb.mxu1 %v658_v30 }
 0x16c   :  { %v565_v49 = vpop.f32.mrf.mxu0 }
 0x16d   :  { %1029 = vmatpush.msrb.mxu1 %v655_v27 }
 0x16f   :  { %612 = vmatmul.f32.gmra.mxu0 %v434_v50  ;;  %1030 = vmatpush.msrb.mxu1 %v1853_v24  ;;  %v149_v24 = vunpack.c.3.s8 %v105_v3 }
 0x171   :  { %1031 = vmatpush.msrb.mxu1 %v1846_v21  ;;  %v266_v21 = vcvt.s32.f32 %v138_v20  ;;  %v277_v27 = vcvt.s32.f32 %v149_v24  ;;  %v133_v24 = vld [vmem:[%s2437_s1 + $0xe0] sm:$0xff] }
 0x173   :  { %1032 = vmatpush.msrb.mxu1 %v1841_v18  ;;  %v341_v18 = vcvt.s32.f32 %v213_v16 }
 0x174   :  { %v568_v52 = vpop.f32.mrf.mxu0 }
 0x175   :  { %1033 = vmatpush.msrb.mxu1 %v1836_v15  ;;  %v145_v15 = vunpack.c.2.s8 %v105_v3 }
 0x177   :  { %615 = vmatmul.f32.gmra.mxu0 %v435_v53  ;;  %1034 = vmatpush.msrb.mxu1 %v1831_v12  ;;  %v337_v12 = vcvt.s32.f32 %v209_v10  ;;  %v273_v17 = vcvt.s32.f32 %v145_v15  ;;  %v129_v53 = vld [vmem:[%s2437_s1 + $0xc0] sm:$0xff] }
 0x178   :  { %v237_v63 = vunpack.c.1.s8 %v129_v53  ;;  %v245_v16 = vunpack.c.3.s8 %v129_v53 }
 0x179   :  { %1035 = vmatpush.msrb.mxu1 %v1826_v9  ;;  %v141_v9 = vunpack.c.1.s8 %v105_v3  ;;  %752 = vmatmul.f32.gmra.mxu3 %v337_v12  ;;  %v162_v3 = vunpack.c.2.s8 %v110_v45 }
 0x17b   :  { %1036 = vmatpush.msrb.mxu1 %v1821_v6  ;;  %v265_v6 = vcvt.s32.f32 %v137_v4  ;;  %v269_v11 = vcvt.s32.f32 %v141_v9  ;;  %v290_v4 = vcvt.s32.f32 %v162_v3 }
 0x17c   :  { %v571_v54 = vpop.f32.mrf.mxu0 }
 0x17d   :  { %698 = vmatmul.f32.vlgmr.msra.gmra.mxu1 %v265_v6  ;;  %v241_v6 = vunpack.c.2.s8 %v129_v53 }
 0x17f   :  { %618 = vmatmul.f32.gmra.mxu0 %v436_v55  ;;  %v233_v55 = vunpack.c.0.s8 %v129_v53  ;;  %v369_v9 = vcvt.s32.f32 %v241_v6 }
 0x181   :  { %755 = vmatmul.f32.gmra.mxu3 %v341_v18  ;;  %v373_v18 = vcvt.s32.f32 %v245_v16 }
 0x184   :  { %v574_v56 = vpop.f32.mrf.mxu0 }
 0x185   :  { %701 = vmatmul.f32.gmra.mxu1 %v269_v11  ;;  %v166_v11 = vunpack.c.3.s8 %v110_v45 }
 0x187   :  { %621 = vmatmul.f32.gmra.mxu0 %v437_v57  ;;  %v361_v57 = vcvt.s32.f32 %v233_v55  ;;  %v294_v12 = vcvt.s32.f32 %v166_v11 }
 0x189   :  { %758 = vmatmul.f32.gmra.mxu3 %v345_v29 }
 0x18c   :  { %v577_v58 = vpop.f32.mrf.mxu0 }
 0x18d   :  { %704 = vmatmul.f32.gmra.mxu1 %v273_v17 }
 0x18f   :  { %624 = vmatmul.f32.gmra.mxu0 %v438_v59  ;;  %v158_v59 = vunpack.c.1.s8 %v110_v45 }
 0x194   :  { %v580_v60 = vpop.f32.mrf.mxu0 }
 0x195   :  { %707 = vmatmul.f32.gmra.mxu1 %v277_v27  ;;  %v249_v27 = vunpack.c.0.s8 %v133_v24 }
 0x197   :  { %627 = vmatmul.f32.gmra.mxu0 %v439_v61  ;;  %v113_v61 = vld [vmem:[%s2437_s1 + $0x40] sm:$0xff] }
 0x198   :  { %v169_v62 = vunpack.c.0.s8 %v113_v61  ;;  %v173_v5 = vunpack.c.1.s8 %v113_v61  ;;  %v177_v15 = vunpack.c.2.s8 %v113_v61  ;;  %v181_v26 = vunpack.c.3.s8 %v113_v61 }
 0x19a   :  { %v297_v0 = vcvt.s32.f32 %v169_v62  ;;  %v301_v7 = vcvt.s32.f32 %v173_v5  ;;  %v305_v17 = vcvt.s32.f32 %v177_v15  ;;  %v309_v29 = vcvt.s32.f32 %v181_v26 }
 0x19c   :  { %v583_v1 = vpop.f32.mrf.mxu0 }
 0x19d   :  { %795 = vmatpush.msrb.mxu2 %v583_v1  ;;  %v365_v1 = vcvt.s32.f32 %v237_v63 }
 0x19f   :  { %630 = vmatmul.f32.gmra.mxu0 %v440_v2  ;;  %796 = vmatpush.msrb.mxu2 %v580_v60  ;;  %v286_v60 = vcvt.s32.f32 %v158_v59 }
 0x1a1   :  { %797 = vmatpush.msrb.mxu2 %v577_v58 }
 0x1a3   :  { %798 = vmatpush.msrb.mxu2 %v574_v56 }
 0x1a4   :  { %v1943_v8 = vpop.f32.mrf.mxu0 }
 0x1a5   :  { %799 = vmatpush.msrb.mxu2 %v571_v54  ;;  %v165_v54 = vunpack.c.3.s8 %v109_v32 }
 0x1a7   :  { %800 = vmatpush.msrb.mxu2 %v568_v52  ;;  %v282_v52 = vcvt.s32.f32 %v154_v51  ;;  %v293_v56 = vcvt.s32.f32 %v165_v54 }
 0x1a9   :  { %801 = vmatpush.msrb.mxu2 %v565_v49  ;;  %v357_v49 = vcvt.s32.f32 %v229_v47 }
 0x1ab   :  { %802 = vmatpush.msrb.mxu2 %v1904_v46  ;;  %v161_v46 = vunpack.c.2.s8 %v109_v32 }
 0x1ac   :  { %v1946_v13 = vpop.f32.mrf.mxu0 }
 0x1ad   :  { %803 = vmatpush.msrb.mxu2 %v1899_v43  ;;  %v150_v43 = vunpack.c.3.s8 %v106_v14  ;;  %v289_v48 = vcvt.s32.f32 %v161_v46 }
 0x1af   :  { %804 = vmatpush.msrb.mxu2 %v1894_v40  ;;  %v285_v40 = vcvt.s32.f32 %v157_v38  ;;  %v278_v44 = vcvt.s32.f32 %v150_v43  ;;  %v257_v43 = vunpack.c.2.s8 %v133_v24 }
 0x1b1   :  { %805 = vmatpush.msrb.mxu2 %v1889_v37  ;;  %v385_v45 = vcvt.s32.f32 %v257_v43  ;;  %v1169_v43 = vld [vmem:[%s2022_s12 + $0x18] sm:$0xff] }
 0x1b3   :  { %806 = vmatpush.msrb.mxu2 %v1884_v34  ;;  %v221_v34 = vunpack.c.1.s8 %v125_v23 }
 0x1b4   :  { %v1955_v19 = vpop.f32.mrf.mxu0 }
 0x1b5   :  { %807 = vmatpush.msrb.mxu2 %v1879_v31  ;;  %v142_v31 = vunpack.c.1.s8 %v106_v14  ;;  %v349_v35 = vcvt.s32.f32 %v221_v34  ;;  %v117_v34 = vld [vmem:[%s2437_s1 + $0x60] sm:$0xff] }
 0x1b6   :  { %v193_v51 = vunpack.c.2.s8 %v117_v34  ;;  %v197_v59 = vunpack.c.3.s8 %v117_v34 }
 0x1b7   :  { %808 = vmatpush.msrb.mxu2 %v1866_v28  ;;  %v270_v28 = vcvt.s32.f32 %v142_v31  ;;  %761 = vmatmul.f32.gmra.mxu3 %v349_v35  ;;  %v377_v31 = vcvt.s32.f32 %v249_v27  ;;  %v253_v35 = vunpack.c.1.s8 %v133_v24 }
 0x1b8   :  { %v321_v53 = vcvt.s32.f32 %v193_v51 }
 0x1b9   :  { %809 = vmatpush.msrb.mxu2 %v1855_v25  ;;  %v281_v25 = vcvt.s32.f32 %v153_v33 }
 0x1bb   :  { %810 = vmatpush.msrb.mxu2 %v1848_v22  ;;  %v146_v22 = vunpack.c.2.s8 %v106_v14  ;;  %710 = vmatmul.f32.gmra.mxu1 %v281_v25  ;;  %v114_v14 = vld [vmem:[%s2437_s1 + $0x48] sm:$0xff]  ;;  %v185_v25 = vunpack.c.0.s8 %v117_v34 }
 0x1bc   :  { %v1964_v30 = vpop.f32.mrf.mxu0  ;;  %811 = vmatmul.f32.vlgmr.msrb.gmra.mxu2 %v266_v21  ;;  %v170_v21 = vunpack.c.0.s8 %v114_v14  ;;  %v174_v32 = vunpack.c.1.s8 %v114_v14  ;;  %v178_v39 = vunpack.c.2.s8 %v114_v14  ;;  %v182_v47 = vunpack.c.3.s8 %v114_v14 }
 0x1bd   :  { %v274_v37 = vcvt.s32.f32 %v146_v22  ;;  %v313_v22 = vcvt.s32.f32 %v185_v25 }
 0x1be   :  { %v298_v23 = vcvt.s32.f32 %v170_v21  ;;  %v302_v33 = vcvt.s32.f32 %v174_v32 }
 0x1bf   :  { %764 = vmatmul.f32.gmra.mxu3 %v353_v41  ;;  %v189_v41 = vunpack.c.1.s8 %v117_v34 }
 0x1c3   :  { %713 = vmatmul.f32.gmra.mxu1 %v285_v40  ;;  %v306_v40 = vcvt.s32.f32 %v178_v39 }
 0x1c4   :  { %v1969_v36 = vpop.f32.mrf.mxu0  ;;  %814 = vmatmul.f32.gmra.mxu2 %v270_v28 }
 0x1c7   :  { %767 = vmatmul.f32.gmra.mxu3 %v357_v49  ;;  %v118_v49 = vld [vmem:[%s2437_s1 + $0x68] sm:$0xff] }
 0x1c8   :  { %v190_v62 = vunpack.c.1.s8 %v118_v49  ;;  %v194_v6 = vunpack.c.2.s8 %v118_v49  ;;  %v198_v15 = vunpack.c.3.s8 %v118_v49 }
 0x1ca   :  { %v318_v63 = vcvt.s32.f32 %v190_v62  ;;  %v326_v16 = vcvt.s32.f32 %v198_v15 }
 0x1cb   :  { %716 = vmatmul.f32.gmra.mxu1 %v289_v48  ;;  %v310_v48 = vcvt.s32.f32 %v182_v47 }
 0x1cc   :  { %v1971_v42 = vpop.f32.mrf.mxu0  ;;  %817 = vmatmul.f32.gmra.mxu2 %v274_v37  ;;  %v381_v37 = vcvt.s32.f32 %v253_v35 }
 0x1cf   :  { %770 = vmatmul.f32.gmra.mxu3 %v361_v57 }
 0x1d3   :  { %719 = vmatmul.f32.gmra.mxu1 %v293_v56  ;;  %v186_v56 = vunpack.c.0.s8 %v118_v49 }
 0x1d4   :  { %v1976_v50 = vpop.f32.mrf.mxu0  ;;  %820 = vmatmul.f32.gmra.mxu2 %v278_v44  ;;  %v317_v44 = vcvt.s32.f32 %v189_v41 }
 0x1d5   :  { %v314_v57 = vcvt.s32.f32 %v186_v56 }
 0x1d7   :  { %773 = vmatmul.f32.gmra.mxu3 %v365_v1  ;;  %v108_v1 = vld [vmem:[%s2437_s1 + $0x18] sm:$0xff] }
 0x1d8   :  { %v140_v3 = vunpack.c.0.s8 %v108_v1  ;;  %v144_v11 = vunpack.c.1.s8 %v108_v1 }
 0x1da   :  { %v268_v5 = vcvt.s32.f32 %v140_v3  ;;  %v272_v14 = vcvt.s32.f32 %v144_v11 }
 0x1db   :  { %722 = vmatmul.f32.gmra.mxu1 %v297_v0  ;;  %v2007_v0 = vpop.f32.mrf.mxu3 }
 0x1dc   :  { %v1981_v58 = vpop.f32.mrf.mxu0  ;;  %823 = vmatmul.f32.gmra.mxu2 %v282_v52  ;;  %v261_v52 = vunpack.c.3.s8 %v133_v24  ;;  %v1167_v24 = vld [vmem:[%s2022_s12 + $0x8] sm:$0xff] }
 0x1de   :  { %v389_v54 = vcvt.s32.f32 %v261_v52 }
 0x1df   :  { %776 = vmatmul.f32.gmra.mxu3 %v369_v9 }
 0x1e3   :  { %725 = vmatmul.f32.gmra.mxu1 %v301_v7  ;;  %v322_v7 = vcvt.s32.f32 %v194_v6  ;;  %v2014_v9 = vpop.f32.mrf.mxu3 }
 0x1e4   :  { %v1986_v2 = vpop.f32.mrf.mxu0  ;;  %826 = vmatmul.f32.gmra.mxu2 %v286_v60  ;;  %v325_v60 = vcvt.s32.f32 %v197_v59  ;;  %v111_v59 = vld [vmem:[%s2437_s1 + $0x30] sm:$0xff] }
 0x1e5   :  { %v155_v3 = vunpack.c.0.s8 %v111_v59 }
 0x1e7   :  { %779 = vmatmul.f32.gmra.mxu3 %v373_v18 }
 0x1eb   :  { %728 = vmatmul.f32.gmra.mxu1 %v305_v17  ;;  %v1615_v17 = vmov 0  }
 0x1ec   :  { %v1988_v10 = vpop.f32.mrf.mxu0  ;;  %829 = vmatmul.f32.gmra.mxu2 %v290_v4  ;;  %1611 = vset.pattern.permute.xlu0 %v1615_v17 }
 0x1ed   :  { %1612 = vset.pattern.permute.xlu1 %v1615_v17  ;;  %1613 = vset.pattern.permute.xlu2 %v1615_v17 }
 0x1ef   :  { %782 = vmatmul.f32.gmra.mxu3 %v377_v31 }
 0x1f3   :  { %731 = vmatmul.f32.gmra.mxu1 %v309_v29 }
 0x1f4   :  { %v1993_v20 = vpop.f32.mrf.mxu0  ;;  %832 = vmatmul.f32.gmra.mxu2 %v294_v12 }
 0x1f7   :  { %785 = vmatmul.f32.gmra.mxu3 %v381_v37 }
 0x1fa   :  { %v699_v4 = vpop.f32.mrf.mxu1 }
 0x1fb   :  { %734 = vmatmul.f32.gmra.mxu1 %v313_v22 }
 0x1fc   :  { %v619_v28 = vpop.f32.mrf.mxu0  ;;  %835 = vmatmul.f32.gmra.mxu2 %v298_v23 }
 0x1ff   :  { %788 = vmatmul.f32.gmra.mxu3 %v385_v45 }
 0x202   :  { %v2016_v12 = vpop.f32.mrf.mxu1 }
 0x203   :  { %737 = vmatmul.f32.gmra.mxu1 %v317_v44 }
 0x204   :  { %v622_v38 = vpop.f32.mrf.mxu0  ;;  %838 = vmatmul.f32.gmra.mxu2 %v302_v33  ;;  %v1168_v33 = vld [vmem:[%s2022_s12 + $0x10] sm:$0xff] }
 0x205   :  { %1210 = vperm.xlu1 %1612, %v1168_v33  }
 0x207   :  { %791 = vmatmul.f32.gmra.mxu3 %v389_v54 }
 0x20a   :  { %v705_v18 = vpop.f32.mrf.mxu1 }
 0x20b   :  { %740 = vmatmul.f32.gmra.mxu1 %v321_v53 }
 0x20c   :  { %v625_v46 = vpop.f32.mrf.mxu0  ;;  %841 = vmatmul.f32.gmra.mxu2 %v306_v40 }
 0x20d   :  { %1215 = vperm.xlu1 %1612, %v1169_v43  }
 0x212   :  { %v708_v29 = vpop.f32.mrf.mxu1 }
 0x213   :  { %743 = vmatmul.f32.gmra.mxu1 %v325_v60 }
 0x214   :  { %v628_v55 = vpop.f32.mrf.mxu0  ;;  %844 = vmatmul.f32.gmra.mxu2 %v310_v48 }
 0x21b   :  { %1037 = vmatmul.f32.vlgmr.msrb.gmra.mxu1 %v268_v5 }
 0x21c   :  { %v631_v61 = vpop.f32.mrf.mxu0  ;;  %847 = vmatmul.f32.gmra.mxu2 %v314_v57  ;;  %v126_v57 = vld [vmem:[%s2437_s1 + $0xa8] sm:$0xff] }
 0x21d   :  { %908 = vmatpush.msrb.mxu3 %v631_v61 }
 0x21f   :  { %909 = vmatpush.msrb.mxu3 %v628_v55 }
 0x221   :  { %910 = vmatpush.msrb.mxu3 %v625_v46 }
 0x223   :  { %911 = vmatpush.msrb.mxu3 %v622_v38  ;;  %1040 = vmatmul.f32.gmra.mxu1 %v272_v14 }
 0x224   :  { %850 = vmatmul.f32.gmra.mxu2 %v318_v63 }
 0x225   :  { %912 = vmatpush.msrb.mxu3 %v619_v28 }
 0x227   :  { %913 = vmatpush.msrb.mxu3 %v1993_v20  ;;  %v2039_v20 = vpop.f32.mrf.mxu3 }
 0x229   :  { %914 = vmatpush.msrb.mxu3 %v1988_v10  ;;  %v1166_v10 = vld [vmem:[%s2022_s12] sm:$0xff] }
 0x22a   :  { %1200 = vperm.xlu0 %1611, %v1166_v10   ;;  %v222_v10 = vunpack.c.1.s8 %v126_v57 }
 0x22b   :  { %915 = vmatpush.msrb.mxu3 %v1986_v2  ;;  %v2031_v2 = vld [vmem:[%s2437_s1 + $0x88] sm:$0xff] }
 0x22c   :  { %853 = vmatmul.f32.gmra.mxu2 %v322_v7  ;;  %v202_v21 = vunpack.c.0.s8 %v2031_v2  ;;  %v206_v28 = vunpack.c.1.s8 %v2031_v2  ;;  %v210_v38 = vunpack.c.2.s8 %v2031_v2  ;;  %v214_v51 = vunpack.c.3.s8 %v2031_v2  ;;  %v1172_v2 = vld [vmem:[%s2022_s12 + $0x30] sm:$0xff] }
 0x22d   :  { %916 = vmatpush.msrb.mxu3 %v1981_v58  ;;  %v2036_v58 = vld [vmem:[%s2437_s1 + $0x10] sm:$0xff]  ;;  %v283_v7 = vcvt.s32.f32 %v155_v3 }
 0x22e   :  { %v139_v23 = vunpack.c.0.s8 %v2036_v58  ;;  %v330_v26 = vcvt.s32.f32 %v202_v21  ;;  %v147_v39 = vunpack.c.2.s8 %v2036_v58  ;;  %v338_v45 = vcvt.s32.f32 %v210_v38 }
 0x22f   :  { %917 = vmatpush.msrb.mxu3 %v1976_v50  ;;  %v148_v50 = vunpack.c.2.s8 %v108_v1  ;;  %v2050_v32 = vpop.f32.mrf.mxu3  ;;  %v151_v52 = vunpack.c.3.s8 %v2036_v58  ;;  %v342_v55 = vcvt.s32.f32 %v214_v51 }
 0x230   :  { %v267_v27 = vcvt.s32.f32 %v139_v23  ;;  %v275_v46 = vcvt.s32.f32 %v147_v39  ;;  %v1171_v39 = vld [vmem:[%s2022_s12 + $0x28] sm:$0xff] }
 0x231   :  { %918 = vmatpush.msrb.mxu3 %v1971_v42  ;;  %v276_v42 = vcvt.s32.f32 %v148_v50  ;;  %v279_v56 = vcvt.s32.f32 %v151_v52  ;;  %v350_v50 = vcvt.s32.f32 %v222_v10 }
 0x232   :  { %1205 = vperm.xlu0 %1611, %v1167_v24  }
 0x233   :  { %919 = vmatpush.msrb.mxu3 %v1969_v36  ;;  %1043 = vmatmul.f32.gmra.mxu1 %v276_v42  ;;  %v152_v36 = vunpack.c.3.s8 %v108_v1  ;;  %v218_v1 = vunpack.c.0.s8 %v126_v57  ;;  %v116_v42 = vld [vmem:[%s2437_s1 + $0x58] sm:$0xff] }
 0x234   :  { %856 = vmatmul.f32.gmra.mxu2 %v326_v16  ;;  %v159_v16 = vunpack.c.1.s8 %v111_v59  ;;  %v172_v21 = vunpack.c.0.s8 %v116_v42 }
 0x235   :  { %920 = vmatpush.msrb.mxu3 %v1964_v30  ;;  %v280_v31 = vcvt.s32.f32 %v152_v36  ;;  %v143_v30 = vunpack.c.1.s8 %v2036_v58  ;;  %v346_v6 = vcvt.s32.f32 %v218_v1 }
 0x236   :  { %v300_v24 = vcvt.s32.f32 %v172_v21 }
 0x237   :  { %921 = vmatpush.msrb.mxu3 %v1955_v19  ;;  %v271_v25 = vcvt.s32.f32 %v143_v30  ;;  %v2060_v41 = vpop.f32.mrf.mxu3 }
 0x238   :  { %v711_v22 = vpop.f32.mrf.mxu1 }
 0x239   :  { %922 = vmatpush.msrb.mxu3 %v1946_v13  ;;  %v334_v13 = vcvt.s32.f32 %v206_v28  ;;  %v1173_v28 = vld [vmem:[%s2022_s12 + $0x38] sm:$0xff] }
 0x23a   :  { %1230 = vperm.xlu0 %1611, %v1172_v2   ;;  %1235 = vperm.xlu1 %1612, %v1173_v28  }
 0x23b   :  { %923 = vmatpush.msrb.mxu3 %v1943_v8  ;;  %1046 = vmatmul.f32.gmra.mxu1 %v280_v31  ;;  %v112_v8 = vld [vmem:[%s2437_s1 + $0x38] sm:$0xff]  ;;  %v1170_v31 = vld [vmem:[%s2022_s12 + $0x20] sm:$0xff] }
 0x23c   :  { %859 = vmatmul.f32.gmra.mxu2 %v330_v26  ;;  %924 = vmatmul.f32.vlgmr.msrb.gmra.mxu3 %v267_v27  ;;  %v156_v35 = vunpack.c.0.s8 %v112_v8  ;;  %v160_v47 = vunpack.c.1.s8 %v112_v8  ;;  %v164_v61 = vunpack.c.2.s8 %v112_v8  ;;  %v168_v11 = vunpack.c.3.s8 %v112_v8 }
 0x23d   :  { %v226_v26 = vunpack.c.2.s8 %v126_v57  ;;  %v163_v27 = vunpack.c.2.s8 %v111_v59  ;;  %1220 = vperm.xlu2 %1613, %v1170_v31  }
 0x23e   :  { %v284_v37 = vcvt.s32.f32 %v156_v35  ;;  %v288_v49 = vcvt.s32.f32 %v160_v47  ;;  %v292_v63 = vcvt.s32.f32 %v164_v61  ;;  %v296_v15 = vcvt.s32.f32 %v168_v11  ;;  %v115_v47 = vld [vmem:[%s2437_s1 + $0x50] sm:$0xff] }
 0x23f   :  { %v812_v19 = vpop.f32.mrf.mxu2  ;;  %v2076_v60 = vpop.f32.mrf.mxu3  ;;  %v291_v33 = vcvt.s32.f32 %v163_v27  ;;  %v230_v35 = vunpack.c.3.s8 %v126_v57  ;;  %v183_v28 = vunpack.c.3.s8 %v115_v47 }
 0x240   :  { %v2053_v34 = vadd.f32 %v812_v19, %v699_v4  ;;  %v714_v48 = vpop.f32.mrf.mxu1  ;;  %v354_v19 = vcvt.s32.f32 %v226_v26 }
 0x241   :  { %v358_v43 = vcvt.s32.f32 %v230_v35  ;;  %v134_v35 = vld [vmem:[%s2437_s1 + $0xe8] sm:$0xff] }
 0x243   :  { %1049 = vmatmul.f32.gmra.mxu1 %v284_v37 }
 0x244   :  { %862 = vmatmul.f32.gmra.mxu2 %v334_v13  ;;  %927 = vmatmul.f32.gmra.mxu3 %v271_v25  ;;  %v176_v13 = vunpack.c.1.s8 %v116_v42 }
 0x245   :  { %1225 = vperm.xlu2 %1613, %v1171_v39  }
 0x246   :  { %v304_v8 = vcvt.s32.f32 %v176_v13 }
 0x247   :  { %v815_v40 = vpop.f32.mrf.mxu2  ;;  %v2080_v14 = vpop.f32.mrf.mxu3 }
 0x248   :  { %v2064_v44 = vadd.f32 %v815_v40, %v2016_v12  ;;  %v717_v62 = vpop.f32.mrf.mxu1 }
 0x24b   :  { %1052 = vmatmul.f32.gmra.mxu1 %v288_v49 }
 0x24c   :  { %865 = vmatmul.f32.gmra.mxu2 %v338_v45  ;;  %930 = vmatmul.f32.gmra.mxu3 %v275_v46  ;;  %v130_v46 = vld [vmem:[%s2437_s1 + $0xc8] sm:$0xff] }
 0x24d   :  { %v234_v52 = vunpack.c.0.s8 %v130_v46  ;;  %v246_v31 = vunpack.c.3.s8 %v130_v46 }
 0x24f   :  { %v818_v53 = vpop.f32.mrf.mxu2  ;;  %v2090_v36 = vpop.f32.mrf.mxu3  ;;  %v374_v13 = vcvt.s32.f32 %v246_v31  ;;  %v262_v31 = vunpack.c.3.s8 %v134_v35 }
 0x250   :  { %v2068_v54 = vadd.f32 %v818_v53, %v705_v18  ;;  %v720_v12 = vpop.f32.mrf.mxu1  ;;  %v287_v18 = vcvt.s32.f32 %v159_v16  ;;  %v171_v53 = vunpack.c.0.s8 %v115_v47 }
 0x252   :  { %v299_v61 = vcvt.s32.f32 %v171_v53 }
 0x253   :  { %1055 = vmatmul.f32.gmra.mxu1 %v292_v63  ;;  %v184_v63 = vunpack.c.3.s8 %v116_v42 }
 0x254   :  { %868 = vmatmul.f32.gmra.mxu2 %v342_v55  ;;  %933 = vmatmul.f32.gmra.mxu3 %v279_v56  ;;  %v1175_v56 = vld [vmem:[%s2022_s12 + $0x48] sm:$0xff] }
 0x255   :  { %1245 = vperm.xlu0 %1611, %v1175_v56   ;;  %v312_v3 = vcvt.s32.f32 %v184_v63 }
 0x257   :  { %v821_v4 = vpop.f32.mrf.mxu2  ;;  %v2098_v38 = vpop.f32.mrf.mxu3 }
 0x258   :  { %v2078_v5 = vadd.f32 %v821_v4, %v708_v29  ;;  %v2088_v23 = vpop.f32.mrf.mxu1  ;;  %v238_v4 = vunpack.c.1.s8 %v130_v46 }
 0x25a   :  { %v366_v11 = vcvt.s32.f32 %v238_v4  ;;  %v1177_v4 = vld [vmem:[%s2022_s12 + $0x58] sm:$0xff] }
 0x25b   :  { %1058 = vmatmul.f32.gmra.mxu1 %v296_v15 }
 0x25c   :  { %871 = vmatmul.f32.gmra.mxu2 %v346_v6  ;;  %936 = vmatmul.f32.gmra.mxu3 %v283_v7  ;;  %v175_v6 = vunpack.c.1.s8 %v115_v47  ;;  %v1176_v7 = vld [vmem:[%s2022_s12 + $0x50] sm:$0xff] }
 0x25d   :  { %1250 = vperm.xlu1 %1612, %v1176_v7  }
 0x25e   :  { %v303_v15 = vcvt.s32.f32 %v175_v6  ;;  %v124_v6 = vld [vmem:[%s2437_s1 + $0x98] sm:$0xff] }
 0x25f   :  { %v824_v17 = vpop.f32.mrf.mxu2 }
 0x260   :  { %v2083_v58 = vadd.f32 %v824_v17, %v711_v22  ;;  %v2096_v25 = vpop.f32.mrf.mxu1  ;;  %v167_v22 = vunpack.c.3.s8 %v111_v59  ;;  %v362_v59 = vcvt.s32.f32 %v234_v52 }
 0x262   :  { %v295_v45 = vcvt.s32.f32 %v167_v22  ;;  %v119_v22 = vld [vmem:[%s2437_s1 + $0x70] sm:$0xff] }
 0x263   :  { %1061 = vmatmul.f32.gmra.mxu1 %v300_v24 }
 0x264   :  { %874 = vmatmul.f32.gmra.mxu2 %v350_v50  ;;  %939 = vmatmul.f32.gmra.mxu3 %v287_v18  ;;  %v242_v50 = vunpack.c.2.s8 %v130_v46  ;;  %v179_v18 = vunpack.c.2.s8 %v115_v47  ;;  %v187_v46 = vunpack.c.0.s8 %v119_v22 }
 0x266   :  { %v370_v21 = vcvt.s32.f32 %v242_v50  ;;  %v307_v24 = vcvt.s32.f32 %v179_v18  ;;  %v315_v52 = vcvt.s32.f32 %v187_v46 }
 0x267   :  { %v827_v29 = vpop.f32.mrf.mxu2 }
 0x268   :  { %v2094_v30 = vadd.f32 %v827_v29, %v714_v48  ;;  %v180_v48 = vunpack.c.2.s8 %v116_v42  ;;  %v2109_v49 = vpop.f32.mrf.mxu1  ;;  %v1174_v42 = vld [vmem:[%s2022_s12 + $0x40] sm:$0xff] }
 0x269   :  { %1240 = vperm.xlu2 %1613, %v1174_v42   ;;  %v1181_v42 = vld [vmem:[%s2022_s12 + $0x78] sm:$0xff] }
 0x26a   :  { %v308_v51 = vcvt.s32.f32 %v180_v48  ;;  %v1179_v48 = vld [vmem:[%s2022_s12 + $0x68] sm:$0xff] }
 0x26b   :  { %1064 = vmatmul.f32.gmra.mxu1 %v304_v8  ;;  %v311_v8 = vcvt.s32.f32 %v183_v28  ;;  %1265 = vperm.xlu1 %1612, %v1179_v48   ;;  %v199_v28 = vunpack.c.3.s8 %v119_v22 }
 0x26c   :  { %877 = vmatmul.f32.gmra.mxu2 %v354_v19  ;;  %942 = vmatmul.f32.gmra.mxu3 %v291_v33  ;;  %v1178_v33 = vld [vmem:[%s2022_s12 + $0x60] sm:$0xff] }
 0x26d   :  { %1260 = vperm.xlu0 %1611, %v1178_v33   ;;  %v390_v33 = vcvt.s32.f32 %v262_v31 }
 0x26f   :  { %v830_v37 = vpop.f32.mrf.mxu2 }
 0x270   :  { %v2101_v40 = vadd.f32 %v830_v37, %v717_v62  ;;  %v2114_v62 = vpop.f32.mrf.mxu3  ;;  %v2116_v1 = vpop.f32.mrf.mxu1 }
 0x271   :  { %1255 = vperm.xlu2 %1613, %v1177_v4  }
 0x273   :  { %1067 = vmatmul.f32.gmra.mxu1 %v308_v51 }
 0x274   :  { %880 = vmatmul.f32.gmra.mxu2 %v358_v43  ;;  %945 = vmatmul.f32.gmra.mxu3 %v295_v45  ;;  %v250_v45 = vunpack.c.0.s8 %v134_v35 }
 0x275   :  { %1275 = vperm.xlu0 %1611, %v1181_v42   ;;  %v2183_v42 = vld [vmem:[%s2439_s5] ss:$0 sm:$0xff] }
 0x276   :  { %v378_v51 = vcvt.s32.f32 %v250_v45 }
 0x277   :  { %v833_v55 = vpop.f32.mrf.mxu2 }
 0x278   :  { %v2112_v57 = vadd.f32 %v833_v55, %v720_v12  ;;  %v120_v12 = vld [vmem:[%s2437_s1 + $0x78] sm:$0xff]  ;;  %v2122_v16 = vpop.f32.mrf.mxu1  ;;  %v2124_v17 = vpop.f32.mrf.mxu3 }
 0x279   :  { %v188_v10 = vunpack.c.0.s8 %v120_v12  ;;  %v192_v26 = vunpack.c.1.s8 %v120_v12  ;;  %v196_v37 = vunpack.c.2.s8 %v120_v12  ;;  %v200_v53 = vunpack.c.3.s8 %v120_v12 }
 0x27b   :  { %1070 = vmatmul.f32.gmra.mxu1 %v312_v3  ;;  %v316_v2 = vcvt.s32.f32 %v188_v10  ;;  %v320_v29 = vcvt.s32.f32 %v192_v26  ;;  %v324_v43 = vcvt.s32.f32 %v196_v37  ;;  %v328_v56 = vcvt.s32.f32 %v200_v53  ;;  %v2158_v37 = vld [vmem:[%s2437_s1 + $0x90] sm:$0xff] }
 0x27c   :  { %883 = vmatmul.f32.gmra.mxu2 %v362_v59  ;;  %948 = vmatmul.f32.gmra.mxu3 %v299_v61  ;;  %v254_v59 = vunpack.c.1.s8 %v134_v35  ;;  %v191_v61 = vunpack.c.1.s8 %v119_v22  ;;  %v258_v10 = vunpack.c.2.s8 %v134_v35  ;;  %v203_v35 = vunpack.c.0.s8 %v2158_v37  ;;  %v1184_v53 = vld [vmem:[%s2022_s12 + $0x90] sm:$0xff] }
 0x27d   :  { %1290 = vperm.xlu0 %1611, %v1184_v53   ;;  %v211_v31 = vunpack.c.2.s8 %v2158_v37 }
 0x27e   :  { %v382_v63 = vcvt.s32.f32 %v254_v59  ;;  %v319_v3 = vcvt.s32.f32 %v191_v61  ;;  %v386_v50 = vcvt.s32.f32 %v258_v10  ;;  %v331_v48 = vcvt.s32.f32 %v203_v35  ;;  %v1191_v35 = vld [vmem:[%s2022_s12 + $0xc8] sm:$0xff] }
 0x280   :  { %v2127_v27 = vpop.f32.mrf.mxu1  ;;  %v2129_v19 = vpop.f32.mrf.mxu3 }
 0x283   :  { %1073 = vmatmul.f32.gmra.mxu1 %v316_v2  ;;  %v195_v2 = vunpack.c.2.s8 %v119_v22 }
 0x284   :  { %886 = vmatmul.f32.gmra.mxu2 %v366_v11  ;;  %951 = vmatmul.f32.gmra.mxu3 %v303_v15  ;;  %v204_v11 = vunpack.c.0.s8 %v124_v6 }
 0x285   :  { %v323_v18 = vcvt.s32.f32 %v195_v2  ;;  %v1187_v2 = vld [vmem:[%s2022_s12 + $0xa8] sm:$0xff] }
 0x286   :  { %v332_v12 = vcvt.s32.f32 %v204_v11  ;;  %1305 = vperm.xlu0 %1611, %v1187_v2   ;;  %v1194_v2 = vld [vmem:[%s2022_s12 + $0xe0] sm:$0xff] }
 0x288   :  { %v2138_v39 = vpop.f32.mrf.mxu1  ;;  %v2140_v47 = vpop.f32.mrf.mxu3 }
 0x28b   :  { %1076 = vmatmul.f32.gmra.mxu1 %v320_v29 }
 0x28c   :  { %889 = vmatmul.f32.gmra.mxu2 %v370_v21  ;;  %954 = vmatmul.f32.gmra.mxu3 %v307_v24  ;;  %v208_v21 = vunpack.c.1.s8 %v124_v6 }
 0x28e   :  { %v336_v29 = vcvt.s32.f32 %v208_v21 }
 0x290   :  { %v2143_v55 = vpop.f32.mrf.mxu1  ;;  %v2149_v7 = vpop.f32.mrf.mxu3 }
 0x293   :  { %1079 = vmatmul.f32.gmra.mxu1 %v324_v43  ;;  %v212_v43 = vunpack.c.2.s8 %v124_v6 }
 0x294   :  { %892 = vmatmul.f32.gmra.mxu2 %v374_v13  ;;  %957 = vmatmul.f32.gmra.mxu3 %v311_v8  ;;  %v327_v13 = vcvt.s32.f32 %v199_v28  ;;  %v1182_v8 = vld [vmem:[%s2022_s12 + $0x80] sm:$0xff] }
 0x295   :  { %1280 = vperm.xlu1 %1612, %v1182_v8   ;;  %v340_v46 = vcvt.s32.f32 %v212_v43 }
 0x298   :  { %v1038_v15 = vpop.f32.mrf.mxu1  ;;  %v2152_v26 = vpop.f32.mrf.mxu3 }
 0x29b   :  { %1082 = vmatmul.f32.gmra.mxu1 %v328_v56  ;;  %v1185_v56 = vld [vmem:[%s2022_s12 + $0x98] sm:$0xff] }
 0x29c   :  { %895 = vmatmul.f32.gmra.mxu2 %v378_v51  ;;  %960 = vmatmul.f32.gmra.mxu3 %v315_v52  ;;  %v1180_v51 = vld [vmem:[%s2022_s12 + $0x70] sm:$0xff]  ;;  %v216_v52 = vunpack.c.3.s8 %v124_v6  ;;  %v1201_v4 = vpop.permute.xlu0 %1200  ;;  %v2175_v6 = vld [vmem:[%s2437_s1 + $0xb8] sm:$0xff] }
 0x29d   :  { %1270 = vperm.xlu2 %1613, %v1180_v51   ;;  %1295 = vperm.xlu1 %1612, %v1185_v56   ;;  %v220_v10 = vunpack.c.0.s8 %v2175_v6  ;;  %v224_v43 = vunpack.c.1.s8 %v2175_v6  ;;  %v215_v56 = vunpack.c.3.s8 %v2158_v37 }
 0x29e   :  { %v344_v61 = vcvt.s32.f32 %v216_v52 }
 0x29f   :  { %v352_v52 = vcvt.s32.f32 %v224_v43  ;;  %v1196_v43 = vld [vmem:[%s2022_s12 + $0xf0] sm:$0xff] }
 0x2a0   :  { %v1041_v24 = vpop.f32.mrf.mxu1  ;;  %v2163_v22 = vpop.f32.mrf.mxu3 }
 0x2a3   :  { %1085 = vmatmul.f32.gmra.mxu1 %v332_v12 }
 0x2a4   :  { %898 = vmatmul.f32.gmra.mxu2 %v382_v63  ;;  %963 = vmatmul.f32.gmra.mxu3 %v319_v3  ;;  %v207_v63 = vunpack.c.1.s8 %v2158_v37  ;;  %v1206_v8 = vpop.permute.xlu0 %1205  ;;  %v228_v37 = vunpack.c.2.s8 %v2175_v6 }
 0x2a6   :  { %v335_v12 = vcvt.s32.f32 %v207_v63 }
 0x2ab   :  { %1088 = vmatmul.f32.gmra.mxu1 %v336_v29 }
 0x2ac   :  { %901 = vmatmul.f32.gmra.mxu2 %v386_v50  ;;  %966 = vmatmul.f32.gmra.mxu3 %v323_v18  ;;  %v1188_v50 = vld [vmem:[%s2022_s12 + $0xb0] sm:$0xff] }
 0x2ad   :  { %1310 = vperm.xlu1 %1612, %v1188_v50  }
 0x2b0   :  { %v2160_v45 = vpop.f32.mrf.mxu1 }
 0x2b3   :  { %1091 = vmatmul.f32.gmra.mxu1 %v340_v46  ;;  %v1190_v46 = vld [vmem:[%s2022_s12 + $0xc0] sm:$0xff] }
 0x2b4   :  { %904 = vmatmul.f32.gmra.mxu2 %v390_v33  ;;  %969 = vmatmul.f32.gmra.mxu3 %v327_v13  ;;  %v339_v13 = vcvt.s32.f32 %v211_v31 }
 0x2b5   :  { %1320 = vperm.xlu0 %1611, %v1190_v46   ;;  %1325 = vperm.xlu1 %1612, %v1191_v35   ;;  %v1197_v46 = vld [vmem:[%s2022_s12 + $0xf8] sm:$0xff] }
 0x2b8   :  { %v2168_v59 = vpop.f32.mrf.mxu1 }
 0x2bb   :  { %1094 = vmatmul.f32.gmra.mxu1 %v344_v61 }
 0x2bc   :  { %972 = vmatmul.f32.gmra.mxu3 %v331_v48 }
 0x2bd   :  { %1340 = vperm.xlu1 %1612, %v1194_v2  }
 0x2bf   :  { %v925_v3 = vpop.f32.mrf.mxu3 }
 0x2c0   :  { %v926_v11 = vadd.f32 %v925_v3, %v2053_v34  ;;  %v2185_v21 = vpop.f32.mrf.mxu1  ;;  %v348_v34 = vcvt.s32.f32 %v220_v10  ;;  %v1211_v3 = vpop.permute.xlu1 %1210  ;;  %v1193_v10 = vld [vmem:[%s2022_s12 + $0xd8] sm:$0xff] }
 0x2c1   :  { %1335 = vperm.xlu0 %1611, %v1193_v10  }
 0x2c2   :  { %v1039_v18 = vadd.f32 %v1038_v15, %v926_v11  ;;  %v1183_v11 = vld [vmem:[%s2022_s12 + $0x88] sm:$0xff] }
 0x2c3   :  { %1097 = vmatmul.f32.gmra.mxu1 %v348_v34  ;;  %1285 = vperm.xlu2 %1613, %v1183_v11   ;;  %v1186_v11 = vld [vmem:[%s2022_s12 + $0xa0] sm:$0xff] }
 0x2c4   :  { %v1358_v29 = vmul.f32 %v1201_v4, %v1039_v18  ;;  %975 = vmatmul.f32.gmra.mxu3 %v335_v12  ;;  %v343_v4 = vcvt.s32.f32 %v215_v56  ;;  %v2210_v12 = vld [vmem:[%s2437_s1 + $0xb0] sm:$0xff] }
 0x2c5   :  { %1355 = vperm.xlu1 %1612, %v1197_v46   ;;  %v223_v56 = vunpack.c.1.s8 %v2210_v12 }
 0x2c6   :  { %v1493_v28 = vadd.f32 %v2183_v42, %v1358_v29  ;;  %v219_v29 = vunpack.c.0.s8 %v2210_v12 }
 0x2c7   :  { %v928_v15 = vpop.f32.mrf.mxu3 }
 0x2c8   :  { %1525 = vst [vmem:[%s2440_s6] sm:$0xff] %v1493_v28  ;;  %v929_v33 = vadd.f32 %v928_v15, %v2064_v44  ;;  %v2196_v51 = vpop.f32.mrf.mxu1  ;;  %v2199_v44 = vpop.f32.mrf.mxu2 }
 0x2c9   :  { %1350 = vperm.xlu0 %1611, %v1196_v43  }
 0x2ca   :  { %v1042_v48 = vadd.f32 %v1041_v24, %v929_v33  ;;  %v347_v33 = vcvt.s32.f32 %v219_v29 }
 0x2cb   :  { %1100 = vmatmul.f32.gmra.mxu1 %v352_v52  ;;  %1300 = vperm.xlu2 %1613, %v1186_v11  }
 0x2cc   :  { %v1359_v53 = vmul.f32 %v1206_v8, %v1042_v48  ;;  %978 = vmatmul.f32.gmra.mxu3 %v339_v13  ;;  %v1216_v13 = vpop.permute.xlu1 %1215  ;;  %v232_v8 = vunpack.c.3.s8 %v2175_v6  ;;  %v351_v6 = vcvt.s32.f32 %v223_v56  ;;  %v1231_v56 = vpop.permute.xlu0 %1230 }
 0x2ce   :  { %v1494_v61 = vadd.f32 %v2183_v42, %v1359_v53  ;;  %v360_v52 = vcvt.s32.f32 %v232_v8 }
 0x2cf   :  { %v931_v63 = vpop.f32.mrf.mxu3 }
 0x2d0   :  { %1526 = vst [vmem:[%s2440_s6 + $0x8] sm:$0xff] %v1494_v61  ;;  %v932_v24 = vadd.f32 %v931_v63, %v2068_v54  ;;  %v2216_v18 = vpop.f32.mrf.mxu1  ;;  %v356_v54 = vcvt.s32.f32 %v228_v37  ;;  %v2220_v28 = vpop.f32.mrf.mxu2 }
 0x2d1   :  { %v1221_v63 = vpop.permute.xlu2 %1220 }
 0x2d2   :  { %v1045_v50 = vadd.f32 %v2160_v45, %v932_v24 }
 0x2d3   :  { %1103 = vmatmul.f32.gmra.mxu1 %v356_v54 }
 0x2d4   :  { %v1360_v34 = vmul.f32 %v1211_v3, %v1045_v50  ;;  %981 = vmatmul.f32.gmra.mxu3 %v343_v4  ;;  %v132_v3 = vld [vmem:[%s2437_s1 + $0xd8] sm:$0xff] }
 0x2d5   :  { %v236_v4 = vunpack.c.0.s8 %v132_v3 }
 0x2d6   :  { %v1495_v31 = vadd.f32 %v2183_v42, %v1360_v34 }
 0x2d7   :  { %v934_v15 = vpop.f32.mrf.mxu3  ;;  %v364_v2 = vcvt.s32.f32 %v236_v4 }
 0x2d8   :  { %1527 = vst [vmem:[%s2440_s6 + $0x10] sm:$0xff] %v1495_v31  ;;  %v935_v45 = vadd.f32 %v934_v15, %v2078_v5  ;;  %v2230_v48 = vpop.f32.mrf.mxu1  ;;  %v2241_v24 = vpop.f32.mrf.mxu2  ;;  %v240_v15 = vunpack.c.1.s8 %v132_v3 }
 0x2da   :  { %v1048_v35 = vadd.f32 %v2168_v59, %v935_v45  ;;  %v1189_v45 = vld [vmem:[%s2022_s12 + $0xb8] sm:$0xff]  ;;  %v368_v43 = vcvt.s32.f32 %v240_v15 }
 0x2db   :  { %1106 = vmatmul.f32.gmra.mxu1 %v360_v52  ;;  %1315 = vperm.xlu2 %1613, %v1189_v45  }
 0x2dc   :  { %v1361_v53 = vmul.f32 %v1216_v13, %v1048_v35  ;;  %984 = vmatmul.f32.gmra.mxu3 %v347_v33  ;;  %v231_v35 = vunpack.c.3.s8 %v2210_v12 }
 0x2de   :  { %v1496_v5 = vadd.f32 %v2183_v42, %v1361_v53  ;;  %v359_v53 = vcvt.s32.f32 %v231_v35  ;;  %v136_v35 = vld [vmem:[%s2437_s1 + $0xf8] sm:$0xff] }
 0x2df   :  { %v937_v61 = vpop.f32.mrf.mxu3 }
 0x2e0   :  { %1528 = vst [vmem:[%s2440_s6 + $0x18] sm:$0xff] %v1496_v5  ;;  %v938_v59 = vadd.f32 %v937_v61, %v2083_v58  ;;  %v2245_v10 = vpop.f32.mrf.mxu1  ;;  %v227_v58 = vunpack.c.2.s8 %v2210_v12  ;;  %v2257_v8 = vpop.f32.mrf.mxu2  ;;  %v2268_v5 = vld [vmem:[%s2437_s1 + $0xd0] sm:$0xff]  ;;  %v244_v61 = vunpack.c.2.s8 %v132_v3 }
 0x2e1   :  { %v239_v45 = vunpack.c.1.s8 %v2268_v5 }
 0x2e2   :  { %v1051_v37 = vadd.f32 %v2185_v21, %v938_v59  ;;  %v355_v31 = vcvt.s32.f32 %v227_v58  ;;  %v1226_v21 = vpop.permute.xlu2 %1225  ;;  %v1236_v58 = vpop.permute.xlu1 %1235 }
 0x2e3   :  { %1109 = vmatmul.f32.gmra.mxu1 %v364_v2 }
 0x2e4   :  { %v1362_v50 = vmul.f32 %v1221_v63, %v1051_v37  ;;  %987 = vmatmul.f32.gmra.mxu3 %v351_v6  ;;  %v1192_v63 = vld [vmem:[%s2022_s12 + $0xd0] sm:$0xff]  ;;  %v372_v6 = vcvt.s32.f32 %v244_v61  ;;  %v840_v61 = vadd.f32 %v2220_v28, %v2096_v25  ;;  %v247_v25 = vunpack.c.3.s8 %v2268_v5 }
 0x2e5   :  { %1330 = vperm.xlu2 %1613, %v1192_v63   ;;  %v843_v28 = vadd.f32 %v2241_v24, %v2109_v49 }
 0x2e6   :  { %v1497_v54 = vadd.f32 %v2183_v42, %v1362_v50 }
 0x2e7   :  { %v940_v34 = vpop.f32.mrf.mxu3 }
 0x2e8   :  { %1529 = vst [vmem:[%s2440_s6 + $0x20] sm:$0xff] %v1497_v54  ;;  %v941_v29 = vadd.f32 %v940_v34, %v2094_v30  ;;  %v2255_v13 = vpop.f32.mrf.mxu1  ;;  %v2275_v11 = vpop.f32.mrf.mxu2  ;;  %v248_v54 = vunpack.c.3.s8 %v132_v3  ;;  %v1195_v34 = vld [vmem:[%s2022_s12 + $0xe8] sm:$0xff] }
 0x2ea   :  { %v1054_v33 = vadd.f32 %v2196_v51, %v941_v29 }
 0x2eb   :  { %1112 = vmatmul.f32.gmra.mxu1 %v368_v43 }
 0x2ec   :  { %v1363_v46 = vmul.f32 %v1226_v21, %v1054_v33  ;;  %990 = vmatmul.f32.gmra.mxu3 %v355_v31  ;;  %v376_v21 = vcvt.s32.f32 %v248_v54  ;;  %v837_v33 = vadd.f32 %v2199_v44, %v2088_v23 }
 0x2ed   :  { %1345 = vperm.xlu2 %1613, %v1195_v34  }
 0x2ee   :  { %v1498_v30 = vadd.f32 %v2183_v42, %v1363_v46  ;;  %v367_v46 = vcvt.s32.f32 %v239_v45  ;;  %v260_v45 = vunpack.c.2.s8 %v136_v35 }
 0x2ef   :  { %v943_v52 = vpop.f32.mrf.mxu3 }
 0x2f0   :  { %1530 = vst [vmem:[%s2440_s6 + $0x28] sm:$0xff] %v1498_v30  ;;  %v944_v51 = vadd.f32 %v943_v52, %v2101_v40  ;;  %v2272_v59 = vpop.f32.mrf.mxu1  ;;  %v235_v40 = vunpack.c.0.s8 %v2268_v5  ;;  %v2290_v43 = vpop.f32.mrf.mxu2  ;;  %v252_v52 = vunpack.c.0.s8 %v136_v35  ;;  %v388_v49 = vcvt.s32.f32 %v260_v45 }
 0x2f1   :  { %v1241_v30 = vpop.permute.xlu2 %1240 }
 0x2f2   :  { %v1057_v12 = vadd.f32 %v2216_v18, %v944_v51  ;;  %v363_v50 = vcvt.s32.f32 %v235_v40  ;;  %v380_v44 = vcvt.s32.f32 %v252_v52  ;;  %v1246_v40 = vpop.permute.xlu0 %1245 }
 0x2f3   :  { %1115 = vmatmul.f32.gmra.mxu1 %v372_v6 }
 0x2f4   :  { %v1364_v4 = vmul.f32 %v1231_v56, %v1057_v12  ;;  %993 = vmatmul.f32.gmra.mxu3 %v359_v53  ;;  %v243_v56 = vunpack.c.2.s8 %v2268_v5 }
 0x2f6   :  { %v1499_v37 = vadd.f32 %v2183_v42, %v1364_v4  ;;  %v371_v4 = vcvt.s32.f32 %v243_v56 }
 0x2f7   :  { %v946_v2 = vpop.f32.mrf.mxu3 }
 0x2f8   :  { %1531 = vst [vmem:[%s2440_s6 + $0x30] sm:$0xff] %v1499_v37  ;;  %v947_v18 = vadd.f32 %v946_v2, %v2112_v57  ;;  %v2284_v31 = vpop.f32.mrf.mxu1  ;;  %v256_v37 = vunpack.c.1.s8 %v136_v35 }
 0x2fa   :  { %v1060_v29 = vadd.f32 %v2230_v48, %v947_v18 }
 0x2fb   :  { %1118 = vmatmul.f32.gmra.mxu1 %v376_v21  ;;  %v375_v21 = vcvt.s32.f32 %v247_v25  ;;  %v852_v25 = vadd.f32 %v2290_v43, %v2127_v27 }
 0x2fc   :  { %v1365_v15 = vmul.f32 %v1236_v58, %v1060_v29  ;;  %996 = vmatmul.f32.gmra.mxu3 %v363_v50  ;;  %v384_v50 = vcvt.s32.f32 %v256_v37 }
 0x2fe   :  { %v1500_v57 = vadd.f32 %v2183_v42, %v1365_v15  ;;  %v135_v15 = vld [vmem:[%s2437_s1 + $0xf0] sm:$0xff] }
 0x2ff   :  { %v949_v3 = vpop.f32.mrf.mxu3  ;;  %v263_v45 = vunpack.c.3.s8 %v135_v15 }
 0x300   :  { %1532 = vst [vmem:[%s2440_s6 + $0x38] sm:$0xff] %v1500_v57  ;;  %v950_v48 = vadd.f32 %v949_v3, %v837_v33  ;;  %v1074_v23 = vpop.f32.mrf.mxu1  ;;  %v251_v3 = vunpack.c.0.s8 %v135_v15 }
 0x302   :  { %v1063_v51 = vadd.f32 %v2245_v10, %v950_v48  ;;  %v2306_v10 = vpop.f32.mrf.mxu2  ;;  %v846_v48 = vadd.f32 %v2257_v8, %v2116_v1  ;;  %v849_v1 = vadd.f32 %v2275_v11, %v2122_v16 }
 0x303   :  { %1121 = vmatmul.f32.gmra.mxu1 %v380_v44  ;;  %v264_v44 = vunpack.c.3.s8 %v136_v35 }
 0x304   :  { %v1366_v53 = vmul.f32 %v1241_v30, %v1063_v51  ;;  %999 = vmatmul.f32.gmra.mxu3 %v367_v46  ;;  %v379_v51 = vcvt.s32.f32 %v251_v3 }
 0x306   :  { %v1501_v63 = vadd.f32 %v2183_v42, %v1366_v53 }
 0x307   :  { %v952_v12 = vpop.f32.mrf.mxu3 }
 0x308   :  { %1533 = vst [vmem:[%s2440_s6 + $0x40] sm:$0xff] %v1501_v63  ;;  %v953_v6 = vadd.f32 %v952_v12, %v840_v61  ;;  %v1077_v18 = vpop.f32.mrf.mxu1  ;;  %v392_v61 = vcvt.s32.f32 %v264_v44  ;;  %v255_v12 = vunpack.c.1.s8 %v135_v15 }
 0x30a   :  { %v1066_v2 = vadd.f32 %v2255_v13, %v953_v6  ;;  %v1251_v13 = vpop.permute.xlu1 %1250  ;;  %v857_v57 = vpop.f32.mrf.mxu2 }
 0x30b   :  { %1124 = vmatmul.f32.gmra.mxu1 %v384_v50 }
 0x30c   :  { %v1367_v58 = vmul.f32 %v1246_v40, %v1066_v2  ;;  %1002 = vmatmul.f32.gmra.mxu3 %v371_v4  ;;  %v383_v40 = vcvt.s32.f32 %v255_v12 }
 0x30e   :  { %v1502_v54 = vadd.f32 %v2183_v42, %v1367_v58  ;;  %v259_v58 = vunpack.c.2.s8 %v135_v15  ;;  %v858_v15 = vadd.f32 %v857_v57, %v2143_v55 }
 0x30f   :  { %v955_v34 = vpop.f32.mrf.mxu3 }
 0x310   :  { %1534 = vst [vmem:[%s2440_s6 + $0x48] sm:$0xff] %v1502_v54  ;;  %v956_v29 = vadd.f32 %v955_v34, %v843_v28  ;;  %v1080_v33 = vpop.f32.mrf.mxu1  ;;  %v387_v34 = vcvt.s32.f32 %v259_v58 }
 0x312   :  { %v1069_v5 = vadd.f32 %v2272_v59, %v956_v29  ;;  %v1256_v59 = vpop.permute.xlu2 %1255  ;;  %v860_v6 = vpop.f32.mrf.mxu2 }
 0x313   :  { %1127 = vmatmul.f32.gmra.mxu1 %v388_v49  ;;  %v1266_v29 = vpop.permute.xlu1 %1265 }
 0x314   :  { %v1368_v24 = vmul.f32 %v1251_v13, %v1069_v5  ;;  %1005 = vmatmul.f32.gmra.mxu3 %v375_v21  ;;  %v855_v5 = vadd.f32 %v2306_v10, %v2138_v39 }
 0x316   :  { %v1503_v46 = vadd.f32 %v2183_v42, %v1368_v24  ;;  %v391_v24 = vcvt.s32.f32 %v263_v45 }
 0x317   :  { %v958_v30 = vpop.f32.mrf.mxu3 }
 0x318   :  { %1535 = vst [vmem:[%s2440_s6 + $0x50] sm:$0xff] %v1503_v46  ;;  %v959_v52 = vadd.f32 %v958_v30, %v846_v48  ;;  %v1083_v56 = vpop.f32.mrf.mxu1 }
 0x31a   :  { %v1072_v53 = vadd.f32 %v2284_v31, %v959_v52  ;;  %v1261_v31 = vpop.permute.xlu0 %1260  ;;  %v863_v11 = vpop.f32.mrf.mxu2 }
 0x31b   :  { %1130 = vmatmul.f32.gmra.mxu1 %v392_v61  ;;  %v1271_v48 = vpop.permute.xlu2 %1270  ;;  %v861_v61 = vadd.f32 %v860_v6, %v2007_v0  ;;  %v1281_v57 = vpop.permute.xlu1 %1280 }
 0x31c   :  { %v1369_v63 = vmul.f32 %v1256_v59, %v1072_v53  ;;  %1008 = vmatmul.f32.gmra.mxu3 %v379_v51 }
 0x31e   :  { %v1504_v8 = vadd.f32 %v2183_v42, %v1369_v63 }
 0x31f   :  { %v961_v4 = vpop.f32.mrf.mxu3 }
 0x320   :  { %1536 = vst [vmem:[%s2440_s6 + $0x58] sm:$0xff] %v1504_v8  ;;  %v962_v35 = vadd.f32 %v961_v4, %v849_v1  ;;  %v1086_v2 = vpop.f32.mrf.mxu1 }
 0x322   :  { %v1075_v37 = vadd.f32 %v1074_v23, %v962_v35  ;;  %v866_v3 = vpop.f32.mrf.mxu2  ;;  %v1276_v51 = vpop.permute.xlu0 %1275  ;;  %v864_v35 = vadd.f32 %v863_v11, %v2014_v9 }
 0x323   :  { %v1286_v6 = vpop.permute.xlu2 %1285  ;;  %v867_v58 = vadd.f32 %v866_v3, %v2039_v20 }
 0x324   :  { %v1370_v50 = vmul.f32 %v1261_v31, %v1075_v37  ;;  %1011 = vmatmul.f32.gmra.mxu3 %v383_v40 }
 0x326   :  { %v1505_v16 = vadd.f32 %v2183_v42, %v1370_v50 }
 0x327   :  { %v964_v28 = vpop.f32.mrf.mxu3 }
 0x328   :  { %1537 = vst [vmem:[%s2440_s6 + $0x60] sm:$0xff] %v1505_v16  ;;  %v965_v54 = vadd.f32 %v964_v28, %v852_v25  ;;  %v1089_v23 = vpop.f32.mrf.mxu1 }
 0x32a   :  { %v1078_v21 = vadd.f32 %v1077_v18, %v965_v54  ;;  %v869_v44 = vpop.f32.mrf.mxu2  ;;  %v1291_v28 = vpop.permute.xlu0 %1290 }
 0x32c   :  { %v1371_v13 = vmul.f32 %v1266_v29, %v1078_v21  ;;  %1014 = vmatmul.f32.gmra.mxu3 %v387_v34  ;;  %v870_v29 = vadd.f32 %v869_v44, %v2050_v32 }
 0x32e   :  { %v1506_v27 = vadd.f32 %v2183_v42, %v1371_v13 }
 0x32f   :  { %v967_v43 = vpop.f32.mrf.mxu3 }
 0x330   :  { %1538 = vst [vmem:[%s2440_s6 + $0x68] sm:$0xff] %v1506_v27  ;;  %v968_v49 = vadd.f32 %v967_v43, %v855_v5  ;;  %v1092_v30 = vpop.f32.mrf.mxu1  ;;  %v1296_v5 = vpop.permute.xlu1 %1295 }
 0x332   :  { %v1081_v46 = vadd.f32 %v1080_v33, %v968_v49  ;;  %v872_v4 = vpop.f32.mrf.mxu2 }
 0x333   :  { %v873_v49 = vadd.f32 %v872_v4, %v2060_v41 }
 0x334   :  { %v1372_v18 = vmul.f32 %v1271_v48, %v1081_v46  ;;  %1017 = vmatmul.f32.gmra.mxu3 %v391_v24 }
 0x336   :  { %v1507_v52 = vadd.f32 %v2183_v42, %v1372_v18  ;;  %v1301_v18 = vpop.permute.xlu2 %1300 }
 0x337   :  { %v970_v39 = vpop.f32.mrf.mxu3 }
 0x338   :  { %1539 = vst [vmem:[%s2440_s6 + $0x70] sm:$0xff] %v1507_v52  ;;  %v971_v10 = vadd.f32 %v970_v39, %v858_v15  ;;  %v1095_v12 = vpop.f32.mrf.mxu1 }
 0x33a   :  { %v1084_v59 = vadd.f32 %v1083_v56, %v971_v10  ;;  %v875_v25 = vpop.f32.mrf.mxu2 }
 0x33b   :  { %v876_v15 = vadd.f32 %v875_v25, %v2076_v60 }
 0x33c   :  { %v1373_v53 = vmul.f32 %v1276_v51, %v1084_v59  ;;  %v1306_v59 = vpop.permute.xlu0 %1305 }
 0x33e   :  { %v1508_v33 = vadd.f32 %v2183_v42, %v1373_v53 }
 0x33f   :  { %v973_v63 = vpop.f32.mrf.mxu3 }
 0x340   :  { %1540 = vst [vmem:[%s2440_s6 + $0x78] sm:$0xff] %v1508_v33  ;;  %v974_v55 = vadd.f32 %v973_v63, %v861_v61  ;;  %v1098_v31 = vpop.f32.mrf.mxu1 }
 0x342   :  { %v1087_v1 = vadd.f32 %v1086_v2, %v974_v55  ;;  %v878_v13 = vpop.f32.mrf.mxu2 }
 0x343   :  { %v879_v61 = vadd.f32 %v878_v13, %v2080_v14 }
 0x344   :  { %v1374_v8 = vmul.f32 %v1281_v57, %v1087_v1  ;;  %v1311_v57 = vpop.permute.xlu1 %1310 }
 0x346   :  { %v1509_v56 = vadd.f32 %v2183_v42, %v1374_v8 }
 0x347   :  { %v976_v40 = vpop.f32.mrf.mxu3 }
 0x348   :  { %1541 = vst [vmem:[%s2440_s6 + $0x80] sm:$0xff] %v1509_v56  ;;  %v977_v0 = vadd.f32 %v976_v40, %v864_v35  ;;  %v1101_v54 = vpop.f32.mrf.mxu1 }
 0x34a   :  { %v1090_v37 = vadd.f32 %v1089_v23, %v977_v0  ;;  %v881_v46 = vpop.f32.mrf.mxu2  ;;  %v1316_v0 = vpop.permute.xlu2 %1315 }
 0x34b   :  { %v882_v8 = vadd.f32 %v881_v46, %v2090_v36 }
 0x34c   :  { %v1375_v50 = vmul.f32 %v1286_v6, %v1090_v37 }
 0x34e   :  { %v1510_v2 = vadd.f32 %v2183_v42, %v1375_v50 }
 0x34f   :  { %v979_v16 = vpop.f32.mrf.mxu3 }
 0x350   :  { %1542 = vst [vmem:[%s2440_s6 + $0x88] sm:$0xff] %v1510_v2  ;;  %v980_v9 = vadd.f32 %v979_v16, %v867_v58  ;;  %v1104_v43 = vpop.f32.mrf.mxu1  ;;  %v1321_v16 = vpop.permute.xlu0 %1320 }
 0x352   :  { %v1093_v11 = vadd.f32 %v1092_v30, %v980_v9  ;;  %v884_v53 = vpop.f32.mrf.mxu2 }
 0x353   :  { %v885_v37 = vadd.f32 %v884_v53, %v2098_v38 }
 0x354   :  { %v1376_v34 = vmul.f32 %v1291_v28, %v1093_v11 }
 0x356   :  { %v1511_v21 = vadd.f32 %v2183_v42, %v1376_v34 }
 0x357   :  { %v982_v23 = vpop.f32.mrf.mxu3 }
 0x358   :  { %1543 = vst [vmem:[%s2440_s6 + $0x90] sm:$0xff] %v1511_v21  ;;  %v983_v20 = vadd.f32 %v982_v23, %v870_v29  ;;  %v1107_v10 = vpop.f32.mrf.mxu1  ;;  %v1326_v23 = vpop.permute.xlu1 %1325 }
 0x35a   :  { %v1096_v45 = vadd.f32 %v1095_v12, %v983_v20  ;;  %v887_v35 = vpop.f32.mrf.mxu2 }
 0x35b   :  { %v888_v28 = vadd.f32 %v887_v35, %v2114_v62 }
 0x35c   :  { %v1377_v27 = vmul.f32 %v1296_v5, %v1096_v45 }
 0x35e   :  { %v1512_v24 = vadd.f32 %v2183_v42, %v1377_v27 }
 0x35f   :  { %v985_v3 = vpop.f32.mrf.mxu3 }
 0x360   :  { %1544 = vst [vmem:[%s2440_s6 + $0x98] sm:$0xff] %v1512_v24  ;;  %v986_v32 = vadd.f32 %v985_v3, %v873_v49  ;;  %v1110_v12 = vpop.f32.mrf.mxu1  ;;  %v1331_v49 = vpop.permute.xlu2 %1330 }
 0x362   :  { %v1099_v48 = vadd.f32 %v1098_v31, %v986_v32  ;;  %v890_v2 = vpop.f32.mrf.mxu2 }
 0x363   :  { %v891_v13 = vadd.f32 %v890_v2, %v2124_v17 }
 0x364   :  { %v1378_v30 = vmul.f32 %v1301_v18, %v1099_v48 }
 0x366   :  { %v1513_v52 = vadd.f32 %v2183_v42, %v1378_v30 }
 0x367   :  { %v988_v39 = vpop.f32.mrf.mxu3 }
 0x368   :  { %1545 = vst [vmem:[%s2440_s6 + $0xa0] sm:$0xff] %v1513_v52  ;;  %v989_v41 = vadd.f32 %v988_v39, %v876_v15  ;;  %v1113_v6 = vpop.f32.mrf.mxu1  ;;  %v1336_v15 = vpop.permute.xlu0 %1335 }
 0x36a   :  { %v1102_v51 = vadd.f32 %v1101_v54, %v989_v41  ;;  %v893_v21 = vpop.f32.mrf.mxu2 }
 0x36b   :  { %v894_v32 = vadd.f32 %v893_v21, %v2129_v19 }
 0x36c   :  { %v1379_v44 = vmul.f32 %v1306_v59, %v1102_v51 }
 0x36e   :  { %v1514_v33 = vadd.f32 %v2183_v42, %v1379_v44  ;;  %v1341_v44 = vpop.permute.xlu1 %1340 }
 0x36f   :  { %v991_v63 = vpop.f32.mrf.mxu3 }
 0x370   :  { %1546 = vst [vmem:[%s2440_s6 + $0xa8] sm:$0xff] %v1514_v33  ;;  %v992_v60 = vadd.f32 %v991_v63, %v879_v61  ;;  %v1116_v11 = vpop.f32.mrf.mxu1 }
 0x372   :  { %v1105_v55 = vadd.f32 %v1104_v43, %v992_v60  ;;  %v896_v3 = vpop.f32.mrf.mxu2 }
 0x373   :  { %v897_v39 = vadd.f32 %v896_v3, %v2140_v47 }
 0x374   :  { %v1380_v1 = vmul.f32 %v1311_v57, %v1105_v55  ;;  %v1346_v57 = vpop.permute.xlu2 %1345 }
 0x376   :  { %v1515_v4 = vadd.f32 %v2183_v42, %v1380_v1  ;;  %v1356_v2 = vpop.permute.xlu1 %1355 }
 0x377   :  { %v994_v56 = vpop.f32.mrf.mxu3 }
 0x378   :  { %1547 = vst [vmem:[%s2440_s6 + $0xb0] sm:$0xff] %v1515_v4  ;;  %v995_v14 = vadd.f32 %v994_v56, %v882_v8  ;;  %v1119_v27 = vpop.f32.mrf.mxu1 }
 0x37a   :  { %v1108_v40 = vadd.f32 %v1107_v10, %v995_v14  ;;  %v899_v41 = vpop.f32.mrf.mxu2 }
 0x37b   :  { %v900_v33 = vadd.f32 %v899_v41, %v2149_v7 }
 0x37c   :  { %v1381_v31 = vmul.f32 %v1316_v0, %v1108_v40  ;;  %v1351_v0 = vpop.permute.xlu0 %1350 }
 0x37e   :  { %v1516_v50 = vadd.f32 %v2183_v42, %v1381_v31 }
 0x37f   :  { %v997_v58 = vpop.f32.mrf.mxu3 }
 0x380   :  { %1548 = vst [vmem:[%s2440_s6 + $0xb8] sm:$0xff] %v1516_v50  ;;  %v998_v36 = vadd.f32 %v997_v58, %v885_v37  ;;  %v1122_v18 = vpop.f32.mrf.mxu1 }
 0x382   :  { %v1111_v25 = vadd.f32 %v1110_v12, %v998_v36  ;;  %v902_v12 = vpop.f32.mrf.mxu2 }
 0x383   :  { %v903_v4 = vadd.f32 %v902_v12, %v2152_v26 }
 0x384   :  { %v1382_v9 = vmul.f32 %v1321_v16, %v1111_v25 }
 0x386   :  { %v1517_v54 = vadd.f32 %v2183_v42, %v1382_v9 }
 0x387   :  { %v1000_v34 = vpop.f32.mrf.mxu3 }
 0x388   :  { %1549 = vst [vmem:[%s2440_s6 + $0xc0] sm:$0xff] %v1517_v54  ;;  %v1001_v38 = vadd.f32 %v1000_v34, %v888_v28  ;;  %v1125_v53 = vpop.f32.mrf.mxu1 }
 0x38a   :  { %v1114_v29 = vadd.f32 %v1113_v6, %v1001_v38  ;;  %v905_v40 = vpop.f32.mrf.mxu2 }
 0x38b   :  { %v906_v31 = vadd.f32 %v905_v40, %v2163_v22 }
 0x38c   :  { %v1383_v20 = vmul.f32 %v1326_v23, %v1114_v29 }
 0x38e   :  { %v1518_v45 = vadd.f32 %v2183_v42, %v1383_v20 }
 0x38f   :  { %v1003_v5 = vpop.f32.mrf.mxu3 }
 0x390   :  { %1550 = vst [vmem:[%s2440_s6 + $0xc8] sm:$0xff] %v1518_v45  ;;  %v1004_v62 = vadd.f32 %v1003_v5, %v891_v13  ;;  %v1128_v8 = vpop.f32.mrf.mxu1 }
 0x392   :  { %v1117_v43 = vadd.f32 %v1116_v11, %v1004_v62 }
 0x394   :  { %v1384_v24 = vmul.f32 %v1331_v49, %v1117_v43 }
 0x396   :  { %v1519_v48 = vadd.f32 %v2183_v42, %v1384_v24 }
 0x397   :  { %v1006_v46 = vpop.f32.mrf.mxu3 }
 0x398   :  { %1551 = vst [vmem:[%s2440_s6 + $0xd0] sm:$0xff] %v1519_v48  ;;  %v1007_v17 = vadd.f32 %v1006_v46, %v894_v32  ;;  %v1131_v58 = vpop.f32.mrf.mxu1 }
 0x39a   :  { %v1120_v30 = vadd.f32 %v1119_v27, %v1007_v17 }
 0x39c   :  { %v1385_v52 = vmul.f32 %v1336_v15, %v1120_v30 }
 0x39e   :  { %v1520_v10 = vadd.f32 %v2183_v42, %v1385_v52 }
 0x39f   :  { %v1009_v51 = vpop.f32.mrf.mxu3 }
 0x3a0   :  { %1552 = vst [vmem:[%s2440_s6 + $0xd8] sm:$0xff] %v1520_v10  ;;  %v1010_v19 = vadd.f32 %v1009_v51, %v897_v39 }
 0x3a2   :  { %v1123_v59 = vadd.f32 %v1122_v18, %v1010_v19 }
 0x3a4   :  { %v1386_v61 = vmul.f32 %v1341_v44, %v1123_v59 }
 0x3a6   :  { %v1521_v63 = vadd.f32 %v2183_v42, %v1386_v61 }
 0x3a7   :  { %v1012_v60 = vpop.f32.mrf.mxu3 }
 0x3a8   :  { %1553 = vst [vmem:[%s2440_s6 + $0xe0] sm:$0xff] %v1521_v63  ;;  %v1013_v47 = vadd.f32 %v1012_v60, %v900_v33 }
 0x3aa   :  { %v1126_v55 = vadd.f32 %v1125_v53, %v1013_v47 }
 0x3ac   :  { %v1387_v1 = vmul.f32 %v1346_v57, %v1126_v55 }
 0x3ae   :  { %v1522_v35 = vadd.f32 %v2183_v42, %v1387_v1 }
 0x3af   :  { %v1015_v56 = vpop.f32.mrf.mxu3 }
 0x3b0   :  { %1554 = vst [vmem:[%s2440_s6 + $0xe8] sm:$0xff] %v1522_v35  ;;  %v1016_v7 = vadd.f32 %v1015_v56, %v903_v4 }
 0x3b2   :  { %v1129_v14 = vadd.f32 %v1128_v8, %v1016_v7 }
 0x3b4   :  { %v1388_v6 = vmul.f32 %v1351_v0, %v1129_v14 }
 0x3b6   :  { %v1523_v37 = vadd.f32 %v2183_v42, %v1388_v6 }
 0x3b7   :  { %v1018_v50 = vpop.f32.mrf.mxu3 }
 0x3b8   :  { %1555 = vst [vmem:[%s2440_s6 + $0xf0] sm:$0xff] %v1523_v37  ;;  %v1019_v26 = vadd.f32 %v1018_v50, %v906_v31 }
 0x3ba   :  { %v1132_v36 = vadd.f32 %v1131_v58, %v1019_v26 }
 0x3bc   :  { %v1389_v25 = vmul.f32 %v1356_v2, %v1132_v36 }
 0x3be   :  { %v1524_v16 = vadd.f32 %v2183_v42, %v1389_v25 }
 0x3c0   :  { %1556 = vst [vmem:[%s2440_s6 + $0xf8] sm:$0xff] %v1524_v16 }

// kernel: _lambda_.6
= control target key start
LH: loop header
LB: loop body
LE: loop exit
PB: predicated region body
PF: predicated region fallthrough
CT: control target
= control target key end

     0   :  { %s2204_s24 = smov [#allocation4]   ;;  %s2959_s0 = inlined_call_operand.vmem [shape: s32[2], index: 0, kind: input, shape index: {}]   ;;  %s2960_s1 = inlined_call_operand.vmem [shape: s8[256,1024], index: 1, kind: input, shape index: {}]   ;;  %s2961_s2 = inlined_call_operand.vmem [shape: f32[1024,128], index: 2, kind: input, shape index: {}]   ;;  %s2962_s3 = inlined_call_operand.vmem [shape: f32[2,128,128], index: 3, kind: input, shape index: {}]   ;;  %s2963_s4 = inlined_call_operand.vmem [shape: f32[512,1], index: 4, kind: input, shape index: {}]   ;;  %s2964_s5 = inlined_call_operand.vmem [shape: f32[1,128], index: 5, kind: input, shape index: {}]   ;;  %s2965_s6 = inlined_call_operand.vmem [shape: f32[256,128], index: 6, kind: output, shape index: {}]  }
   0x1   :  { %s12_s23 = sshll.u32 %s2959_s0, 4  ;;  %s13_s23 = int_to_ptr.vmem [resolvable:$true] %s12_s23 }
   0x2   :  { %15 = dma.vmem_to_smem %s13_s23, 16, %s2204_s24, [#allocation3] }
   0x3   :  { %2182 = dma.done.wait [#allocation3], 16 }
   0x4   :  { %2183 = vsyncadd [#allocation3], 4294967280 }
   0x5   :  { %18 = sfence }
   0x6   :  { %s2245_s25 = smov 0   ;;  %s2247_s26 = smov 0  }
   0x7   :  { %s2249_s27 = smov 0   ;;  %s2251_s28 = smov 0  }
   0x8   :  { %s2253_s29 = smov 0  }
   0x9 LB: > { %s33_s0 = sadd.s32 1, %s2198_s28  ;;  %p52_p1 = scmp.ne.s32.totalorder %s2190_s26, %s2186_s25  ;;  %s2202_s29 = sphi %s2253_s29, %s24_s29   ;;  %s2198_s28 = sphi %s2251_s28, %s2969_s28   ;;  %s2194_s27 = sphi %s2249_s27, %s2968_s27   ;;  %s2190_s26 = sphi %s2247_s26, %s2967_s26   ;;  %s2186_s25 = sphi %s2245_s25, %s2966_s25  }
   0xa   : > { %p34_p0 = scmp.ge.s32.totalorder %s33_s0, 2  ;;  %p53_p2 = scmp.eq.s32.totalorder %s2202_s29, 0 }
   0xb   : > { %s45_s7 = sadd.s32 1, %s2190_s26  ;;  %p2051_p5 = scmp.ge.s32.totalorder %s2202_s29, 2 }
   0xc   : > { %s2971_s0 = smov (%p34_p0, %s33_s0), 0  ;;  %p54_p3 = por %p53_p2, %p52_p1 }
   0xd   : > { %s41_s30 = ssub.s32 %s2198_s28, %s2971_s0  ;;  %212 = sbr.rel (%p2051_p5) target bundleno = 54 (0x36), region = 20 }
   0xe   : > { %p43_p4 = scmp.eq.s32.totalorder %s41_s30, 0 }
  0x10   : > { %s2280_s8 = scalar_select %p43_p4, %s2190_s26, %s45_s7  }
  0x12   : > { %215 = sbr.rel (!%p54_p3) target bundleno = 54 (0x36), region = 24  ;;  %s217_s9 = sand.u32 (%p54_p3), 1, %s2190_s26  }
  0x13   : > { %s2069_s10 = sshll.u32 (%p54_p3), %s2198_s28, 5  ;;  %s2052_s11 = sshll.u32 (%p54_p3), %s217_s9, 8 }
  0x14   : > { %s2288_s14 = scalar_lea.vmem (%p54_p3), %s2960_s1, %s2069_s10  ;;  %s2293_s15 = scalar_lea.vmem (%p54_p3), [#allocation5], %s2052_s11 }
  0x15   : > { %v238_v0 = vld [vmem:[%s2288_s14] sm:$0xff] (%p54_p3)  ;;  %v240_v1 = vld [vmem:[%s2288_s14 + $0x8] sm:$0xff] (%p54_p3)  ;;  %v242_v2 = vld [vmem:[%s2288_s14 + $0x10] sm:$0xff] (%p54_p3) }
  0x16   : > { %239 = vst [vmem:[%s2293_s15] sm:$0xff] (%p54_p3), %v238_v0  ;;  %v244_v3 = vld [vmem:[%s2288_s14 + $0x18] sm:$0xff] (%p54_p3)  ;;  %v246_v4 = vld [vmem:[%s2288_s14 + $0x40] sm:$0xff] (%p54_p3)  ;;  %v248_v5 = vld [vmem:[%s2288_s14 + $0x48] sm:$0xff] (%p54_p3) }
  0x17   : > { %241 = vst [vmem:[%s2293_s15 + $0x8] sm:$0xff] %v240_v1  ;;  %v250_v6 = vld [vmem:[%s2288_s14 + $0x50] sm:$0xff]  ;;  %v252_v7 = vld [vmem:[%s2288_s14 + $0x58] sm:$0xff]  ;;  %v254_v8 = vld [vmem:[%s2288_s14 + $0x80] sm:$0xff] }
  0x18   : > { %243 = vst [vmem:[%s2293_s15 + $0x10] sm:$0xff] %v242_v2  ;;  %v256_v9 = vld [vmem:[%s2288_s14 + $0x88] sm:$0xff]  ;;  %v258_v10 = vld [vmem:[%s2288_s14 + $0x90] sm:$0xff]  ;;  %v260_v11 = vld [vmem:[%s2288_s14 + $0x98] sm:$0xff] }
  0x19   : > { %245 = vst [vmem:[%s2293_s15 + $0x18] sm:$0xff] %v244_v3  ;;  %v262_v12 = vld [vmem:[%s2288_s14 + $0xc0] sm:$0xff]  ;;  %v264_v13 = vld [vmem:[%s2288_s14 + $0xc8] sm:$0xff]  ;;  %v266_v14 = vld [vmem:[%s2288_s14 + $0xd0] sm:$0xff] }
  0x1a   : > { %247 = vst [vmem:[%s2293_s15 + $0x20] sm:$0xff] %v246_v4  ;;  %v268_v15 = vld [vmem:[%s2288_s14 + $0xd8] sm:$0xff]  ;;  %v270_v16 = vld [vmem:[%s2288_s14 + $0x100] sm:$0xff]  ;;  %v272_v17 = vld [vmem:[%s2288_s14 + $0x108] sm:$0xff] }
  0x1b   : > { %249 = vst [vmem:[%s2293_s15 + $0x28] sm:$0xff] %v248_v5  ;;  %v274_v18 = vld [vmem:[%s2288_s14 + $0x110] sm:$0xff]  ;;  %v276_v19 = vld [vmem:[%s2288_s14 + $0x118] sm:$0xff]  ;;  %v278_v20 = vld [vmem:[%s2288_s14 + $0x140] sm:$0xff] }
  0x1c   : > { %251 = vst [vmem:[%s2293_s15 + $0x30] sm:$0xff] %v250_v6  ;;  %v280_v21 = vld [vmem:[%s2288_s14 + $0x148] sm:$0xff]  ;;  %v282_v22 = vld [vmem:[%s2288_s14 + $0x150] sm:$0xff]  ;;  %v284_v23 = vld [vmem:[%s2288_s14 + $0x158] sm:$0xff] }
  0x1d   : > { %253 = vst [vmem:[%s2293_s15 + $0x38] sm:$0xff] %v252_v7  ;;  %v286_v24 = vld [vmem:[%s2288_s14 + $0x180] sm:$0xff]  ;;  %v288_v25 = vld [vmem:[%s2288_s14 + $0x188] sm:$0xff]  ;;  %v290_v26 = vld [vmem:[%s2288_s14 + $0x190] sm:$0xff] }
  0x1e   : > { %255 = vst [vmem:[%s2293_s15 + $0x40] sm:$0xff] %v254_v8  ;;  %v292_v27 = vld [vmem:[%s2288_s14 + $0x198] sm:$0xff]  ;;  %v294_v28 = vld [vmem:[%s2288_s14 + $0x1c0] sm:$0xff]  ;;  %v296_v29 = vld [vmem:[%s2288_s14 + $0x1c8] sm:$0xff] }
  0x1f   : > { %257 = vst [vmem:[%s2293_s15 + $0x48] sm:$0xff] %v256_v9  ;;  %v298_v30 = vld [vmem:[%s2288_s14 + $0x1d0] sm:$0xff]  ;;  %v300_v31 = vld [vmem:[%s2288_s14 + $0x1d8] sm:$0xff] }
  0x20   : > { %259 = vst [vmem:[%s2293_s15 + $0x50] sm:$0xff] %v258_v10 }
  0x21   : > { %261 = vst [vmem:[%s2293_s15 + $0x58] sm:$0xff] %v260_v11 }
  0x22   : > { %263 = vst [vmem:[%s2293_s15 + $0x60] sm:$0xff] %v262_v12 }
  0x23   : > { %265 = vst [vmem:[%s2293_s15 + $0x68] sm:$0xff] %v264_v13 }
  0x24   : > { %267 = vst [vmem:[%s2293_s15 + $0x70] sm:$0xff] %v266_v14 }
  0x25   : > { %269 = vst [vmem:[%s2293_s15 + $0x78] sm:$0xff] %v268_v15 }
  0x26   : > { %271 = vst [vmem:[%s2293_s15 + $0x80] sm:$0xff] %v270_v16 }
  0x27   : > { %273 = vst [vmem:[%s2293_s15 + $0x88] sm:$0xff] %v272_v17 }
  0x28   : > { %275 = vst [vmem:[%s2293_s15 + $0x90] sm:$0xff] %v274_v18 }
  0x29   : > { %277 = vst [vmem:[%s2293_s15 + $0x98] sm:$0xff] %v276_v19 }
  0x2a   : > { %279 = vst [vmem:[%s2293_s15 + $0xa0] sm:$0xff] %v278_v20 }
  0x2b   : > { %281 = vst [vmem:[%s2293_s15 + $0xa8] sm:$0xff] %v280_v21 }
  0x2c   : > { %283 = vst [vmem:[%s2293_s15 + $0xb0] sm:$0xff] %v282_v22 }
  0x2d   : > { %285 = vst [vmem:[%s2293_s15 + $0xb8] sm:$0xff] %v284_v23 }
  0x2e   : > { %287 = vst [vmem:[%s2293_s15 + $0xc0] sm:$0xff] %v286_v24 }
  0x2f   : > { %289 = vst [vmem:[%s2293_s15 + $0xc8] sm:$0xff] %v288_v25 }
  0x30   : > { %291 = vst [vmem:[%s2293_s15 + $0xd0] sm:$0xff] %v290_v26 }
  0x31   : > { %293 = vst [vmem:[%s2293_s15 + $0xd8] sm:$0xff] %v292_v27 }
  0x32   : > { %295 = vst [vmem:[%s2293_s15 + $0xe0] sm:$0xff] %v294_v28 }
  0x33   : > { %297 = vst [vmem:[%s2293_s15 + $0xe8] sm:$0xff] %v296_v29 }
  0x34   : > { %299 = vst [vmem:[%s2293_s15 + $0xf0] sm:$0xff] %v298_v30 }
  0x35   : > { %301 = vst [vmem:[%s2293_s15 + $0xf8] sm:$0xff] %v300_v31 }
  0x36 PF: > { %p2055_p6 = scmp.ge.s32.totalorder %s2202_s29, 1  ;;  %p338_p7 = scmp.lt.s32.totalorder %s2202_s29, 3 }
  0x38   : > { %p339_p8 = pnand %p2055_p6, %p338_p7 }
  0x39   : > { %s345_s16 = sand.u32 (!%p339_p8), 1, %s2186_s25   ;;  %s2057_s17 = sshll.u32 (!%p339_p8), %s2194_s27, 6 }
  0x3a   : > { %342 = sbr.rel (%p339_p8) target bundleno = 1097 (0x449), region = 59  ;;  %s2056_s18 = sshll.u32 (!%p339_p8), %s345_s16, 8 }
  0x3b   : > { %p393_p9 = scmp.lt.s32.totalorder (!%p339_p8), %s2057_s17, 127  ;;  %s398_s19 = sld [smem:[#allocation4 + %s2194_s27]] (!%p339_p8) }
  0x3c   : > { %s405_s20 = sld [smem:[#allocation4 + %s2194_s27]] (!%p339_p8)  ;;  %s2377_s15 = scalar_lea.vmem (!%p339_p8), [#allocation5], %s2056_s18 }
  0x3d   : > { %p2063_p12 = scmp.ne.s32.totalorder (!%p339_p8), %s2194_s27, 0 }
  0x3f   : > { %s2973_s17 = smov (!%p393_p9, %s2057_s17), 127 }
  0x40   : > { %s2058_s21 = sshll.u32 %s2973_s17, 3 }
  0x41   : > { %s2365_s24 = scalar_lea.vmem %s2961_s2, %s2058_s21  ;;  %p399_p10 = scmp.lt.s32.totalorder %s398_s19, 1 }
  0x42   : > { %s2061_s30 = sshll.u32 %s405_s20, 5 }
  0x43   : > { %s2975_s19 = smov (!%p399_p10, %s398_s19), 1  ;;  %p408_p11 = scmp.lt.s32.totalorder %s2061_s30, 63 }
  0x44   : > { %s2070_s7 = sshll.u32 %s2975_s19, 7  ;;  %424 = sbr.rel (%p2063_p12) target bundleno = 106 (0x6a), region = 67 }
  0x45   : > { %s2370_s25 = scalar_lea.vmem %s2962_s3, %s2070_s7  ;;  %s2977_s30 = smov (!%p408_p11, %s2061_s30), 63 }
  0x46   : > { %s2062_s11 = sshll.u32 %s2977_s30, 3 }
  0x47   : > { %s2375_s14 = scalar_lea.vmem %s2963_s4, %s2062_s11 }
  0x49   : > { %v2205_v32 = vmov 0.0  }
  0x4a   : > { %425 = vst [vmem:[#allocation2 + $0xb0] sm:$0xff] %v2205_v32 }
  0x4b   : > { %426 = vst [vmem:[#allocation2] sm:$0xff] %v2205_v32 }
  0x4c   : > { %427 = vst [vmem:[#allocation2 + $0xd8] sm:$0xff] %v2205_v32 }
  0x4d   : > { %428 = vst [vmem:[#allocation2 + $0x18] sm:$0xff] %v2205_v32 }
  0x4e   : > { %429 = vst [vmem:[#allocation2 + $0x50] sm:$0xff] %v2205_v32 }
  0x4f   : > { %430 = vst [vmem:[#allocation2 + $0x68] sm:$0xff] %v2205_v32 }
  0x50   : > { %431 = vst [vmem:[#allocation2 + $0x30] sm:$0xff] %v2205_v32 }
  0x51   : > { %432 = vst [vmem:[#allocation2 + $0x48] sm:$0xff] %v2205_v32 }
  0x52   : > { %433 = vst [vmem:[#allocation2 + $0x80] sm:$0xff] %v2205_v32 }
  0x53   : > { %434 = vst [vmem:[#allocation2 + $0x88] sm:$0xff] %v2205_v32 }
  0x54   : > { %435 = vst [vmem:[#allocation2 + $0xe8] sm:$0xff] %v2205_v32 }
  0x55   : > { %436 = vst [vmem:[#allocation2 + $0xb8] sm:$0xff] %v2205_v32 }
  0x56   : > { %437 = vst [vmem:[#allocation2 + $0x60] sm:$0xff] %v2205_v32 }
  0x57   : > { %438 = vst [vmem:[#allocation2 + $0xf0] sm:$0xff] %v2205_v32 }
  0x58   : > { %439 = vst [vmem:[#allocation2 + $0x8] sm:$0xff] %v2205_v32 }
  0x59   : > { %440 = vst [vmem:[#allocation2 + $0x78] sm:$0xff] %v2205_v32 }
  0x5a   : > { %441 = vst [vmem:[#allocation2 + $0x38] sm:$0xff] %v2205_v32 }
  0x5b   : > { %442 = vst [vmem:[#allocation2 + $0x58] sm:$0xff] %v2205_v32 }
  0x5c   : > { %443 = vst [vmem:[#allocation2 + $0x40] sm:$0xff] %v2205_v32 }
  0x5d   : > { %444 = vst [vmem:[#allocation2 + $0xc8] sm:$0xff] %v2205_v32 }
  0x5e   : > { %445 = vst [vmem:[#allocation2 + $0xe0] sm:$0xff] %v2205_v32 }
  0x5f   : > { %446 = vst [vmem:[#allocation2 + $0x90] sm:$0xff] %v2205_v32 }
  0x60   : > { %447 = vst [vmem:[#allocation2 + $0x70] sm:$0xff] %v2205_v32 }
  0x61   : > { %448 = vst [vmem:[#allocation2 + $0xc0] sm:$0xff] %v2205_v32 }
  0x62   : > { %449 = vst [vmem:[#allocation2 + $0xa8] sm:$0xff] %v2205_v32 }
  0x63   : > { %450 = vst [vmem:[#allocation2 + $0xd0] sm:$0xff] %v2205_v32 }
  0x64   : > { %451 = vst [vmem:[#allocation2 + $0x10] sm:$0xff] %v2205_v32 }
  0x65   : > { %452 = vst [vmem:[#allocation2 + $0x28] sm:$0xff] %v2205_v32 }
  0x66   : > { %453 = vst [vmem:[#allocation2 + $0xa0] sm:$0xff] %v2205_v32 }
  0x67   : > { %454 = vst [vmem:[#allocation2 + $0xf8] sm:$0xff] %v2205_v32 }
  0x68   : > { %455 = vst [vmem:[#allocation2 + $0x20] sm:$0xff] %v2205_v32 }
  0x69   : > { %456 = vst [vmem:[#allocation2 + $0x98] sm:$0xff] %v2205_v32 }
  0x6a PF: > { %v824_v33 = vld [vmem:[%s2370_s25 + $0x78] sm:$0xff]  ;;  %v823_v34 = vld [vmem:[%s2370_s25 + $0x70] sm:$0xff]  ;;  %v822_v35 = vld [vmem:[%s2370_s25 + $0x68] sm:$0xff]  ;;  %p2064_p13 = scmp.ne.s32.totalorder %s2194_s27, 1 }
  0x6b   : > { %825 = vmatpush.msra.mxu0 %v824_v33  ;;  %2071 = vmatpush.msra.mxu2 %v824_v33  ;;  %v821_v36 = vld [vmem:[%s2370_s25 + $0x60] sm:$0xff]  ;;  %v820_v37 = vld [vmem:[%s2370_s25 + $0x58] sm:$0xff]  ;;  %v819_v38 = vld [vmem:[%s2370_s25 + $0x50] sm:$0xff] }
  0x6c   : > { %v818_v39 = vld [vmem:[%s2370_s25 + $0x48] sm:$0xff]  ;;  %v817_v40 = vld [vmem:[%s2370_s25 + $0x40] sm:$0xff]  ;;  %v816_v41 = vld [vmem:[%s2370_s25 + $0x38] sm:$0xff] }
  0x6d   : > { %826 = vmatpush.msra.mxu0 %v823_v34  ;;  %2072 = vmatpush.msra.mxu2 %v823_v34  ;;  %v815_v42 = vld [vmem:[%s2370_s25 + $0x30] sm:$0xff]  ;;  %v814_v43 = vld [vmem:[%s2370_s25 + $0x28] sm:$0xff]  ;;  %v813_v44 = vld [vmem:[%s2370_s25 + $0x20] sm:$0xff] }
  0x6e   : > { %v812_v45 = vld [vmem:[%s2370_s25 + $0x18] sm:$0xff]  ;;  %v811_v46 = vld [vmem:[%s2370_s25 + $0x10] sm:$0xff]  ;;  %v810_v47 = vld [vmem:[%s2370_s25 + $0x8] sm:$0xff] }
  0x6f   : > { %827 = vmatpush.msra.mxu0 %v822_v35  ;;  %2073 = vmatpush.msra.mxu2 %v822_v35  ;;  %v809_v48 = vld [vmem:[%s2370_s25] sm:$0xff]  ;;  %v746_v50 = vld [vmem:[%s2365_s24 + $0x8] sm:$0xff]  ;;  %v747_v51 = vld [vmem:[%s2365_s24 + $0x10] sm:$0xff] }
  0x70   : > { %v745_v49 = vld [vmem:[%s2365_s24] sm:$0xff]  ;;  %v748_v52 = vld [vmem:[%s2365_s24 + $0x18] sm:$0xff]  ;;  %v750_v54 = vld [vmem:[%s2365_s24 + $0x28] sm:$0xff] }
  0x71   : > { %828 = vmatpush.msra.mxu0 %v821_v36  ;;  %2074 = vmatpush.msra.mxu2 %v821_v36  ;;  %v749_v53 = vld [vmem:[%s2365_s24 + $0x20] sm:$0xff]  ;;  %v751_v55 = vld [vmem:[%s2365_s24 + $0x30] sm:$0xff]  ;;  %v752_v56 = vld [vmem:[%s2365_s24 + $0x38] sm:$0xff] }
  0x72   : > { %v753_v57 = vld [vmem:[%s2365_s24 + $0x40] sm:$0xff]  ;;  %v754_v58 = vld [vmem:[%s2365_s24 + $0x48] sm:$0xff]  ;;  %v755_v60 = vld [vmem:[%s2365_s24 + $0x50] sm:$0xff] }
  0x73   : > { %829 = vmatpush.msra.mxu0 %v820_v37  ;;  %2075 = vmatpush.msra.mxu2 %v820_v37  ;;  %v793_v59 = vld [vmem:[%s2365_s24 + $0x180] sm:$0xff]  ;;  %v794_v61 = vld [vmem:[%s2365_s24 + $0x188] sm:$0xff]  ;;  %v756_v62 = vld [vmem:[%s2365_s24 + $0x58] sm:$0xff] }
  0x74   : > { %v795_v63 = vld [vmem:[%s2365_s24 + $0x190] sm:$0xff]  ;;  %v757_v0 = vld [vmem:[%s2365_s24 + $0x60] sm:$0xff]  ;;  %v796_v1 = vld [vmem:[%s2365_s24 + $0x198] sm:$0xff] }
  0x75   : > { %830 = vmatpush.msra.mxu0 %v819_v38  ;;  %2076 = vmatpush.msra.mxu2 %v819_v38  ;;  %v758_v2 = vld [vmem:[%s2365_s24 + $0x68] sm:$0xff]  ;;  %v797_v3 = vld [vmem:[%s2365_s24 + $0x1a0] sm:$0xff]  ;;  %v759_v4 = vld [vmem:[%s2365_s24 + $0x70] sm:$0xff] }
  0x76   : > { %v798_v5 = vld [vmem:[%s2365_s24 + $0x1a8] sm:$0xff]  ;;  %v760_v6 = vld [vmem:[%s2365_s24 + $0x78] sm:$0xff]  ;;  %v799_v7 = vld [vmem:[%s2365_s24 + $0x1b0] sm:$0xff] }
  0x77   : > { %831 = vmatpush.msra.mxu0 %v818_v39  ;;  %2077 = vmatpush.msra.mxu2 %v818_v39  ;;  %v761_v9 = vld [vmem:[%s2365_s24 + $0x80] sm:$0xff]  ;;  %v800_v10 = vld [vmem:[%s2365_s24 + $0x1b8] sm:$0xff]  ;;  %v762_v12 = vld [vmem:[%s2365_s24 + $0x88] sm:$0xff] }
  0x78   : > { %v801_v13 = vld [vmem:[%s2365_s24 + $0x1c0] sm:$0xff]  ;;  %v763_v15 = vld [vmem:[%s2365_s24 + $0x90] sm:$0xff]  ;;  %v802_v16 = vld [vmem:[%s2365_s24 + $0x1c8] sm:$0xff] }
  0x79   : > { %832 = vmatpush.msra.mxu0 %v817_v40  ;;  %2078 = vmatpush.msra.mxu2 %v817_v40  ;;  %v764_v18 = vld [vmem:[%s2365_s24 + $0x98] sm:$0xff]  ;;  %v803_v19 = vld [vmem:[%s2365_s24 + $0x1d0] sm:$0xff]  ;;  %v765_v21 = vld [vmem:[%s2365_s24 + $0xa0] sm:$0xff] }
  0x7a   : > { %v804_v22 = vld [vmem:[%s2365_s24 + $0x1d8] sm:$0xff]  ;;  %v766_v24 = vld [vmem:[%s2365_s24 + $0xa8] sm:$0xff]  ;;  %v805_v25 = vld [vmem:[%s2365_s24 + $0x1e0] sm:$0xff] }
  0x7b   : > { %833 = vmatpush.msra.mxu0 %v816_v41  ;;  %2079 = vmatpush.msra.mxu2 %v816_v41  ;;  %v767_v27 = vld [vmem:[%s2365_s24 + $0xb0] sm:$0xff]  ;;  %v806_v28 = vld [vmem:[%s2365_s24 + $0x1e8] sm:$0xff]  ;;  %v768_v30 = vld [vmem:[%s2365_s24 + $0xb8] sm:$0xff] }
  0x7c   : > { %v807_v31 = vld [vmem:[%s2365_s24 + $0x1f0] sm:$0xff]  ;;  %v769_v33 = vld [vmem:[%s2365_s24 + $0xc0] sm:$0xff]  ;;  %v808_v34 = vld [vmem:[%s2365_s24 + $0x1f8] sm:$0xff] }
  0x7d   : > { %834 = vmatpush.msra.mxu0 %v815_v42  ;;  %2080 = vmatpush.msra.mxu2 %v815_v42  ;;  %v770_v36 = vld [vmem:[%s2365_s24 + $0xc8] sm:$0xff]  ;;  %v771_v38 = vld [vmem:[%s2365_s24 + $0xd0] sm:$0xff]  ;;  %v772_v41 = vld [vmem:[%s2365_s24 + $0xd8] sm:$0xff] }
  0x7f   : > { %835 = vmatpush.msra.mxu0 %v814_v43  ;;  %2081 = vmatpush.msra.mxu2 %v814_v43 }
  0x81   : > { %836 = vmatpush.msra.mxu0 %v813_v44  ;;  %2082 = vmatpush.msra.mxu2 %v813_v44  ;;  %v773_v44 = vld [vmem:[%s2365_s24 + $0xe0] sm:$0xff] }
  0x83   : > { %837 = vmatpush.msra.mxu0 %v812_v45  ;;  %2083 = vmatpush.msra.mxu2 %v812_v45 }
  0x85   : > { %838 = vmatpush.msra.mxu0 %v811_v46  ;;  %2084 = vmatpush.msra.mxu2 %v811_v46 }
  0x87   : > { %839 = vmatpush.msra.mxu0 %v810_v47  ;;  %2085 = vmatpush.msra.mxu2 %v810_v47  ;;  %v774_v47 = vld [vmem:[%s2365_s24 + $0xe8] sm:$0xff] }
  0x89   : > { %840 = vmatpush.msra.mxu0 %v809_v48  ;;  %2086 = vmatpush.msra.mxu2 %v809_v48 }
  0x8a   : > { %841 = vmatmul.f32.vlgmr.msra.gmra.mxu0 %v745_v49  ;;  %985 = vmatmul.f32.vlgmr.msra.gmra.mxu2 %v793_v59  ;;  %v778_v59 = vld [vmem:[%s2365_s24 + $0x108] sm:$0xff] }
  0x92   : > { %844 = vmatmul.f32.gmra.mxu0 %v746_v50  ;;  %988 = vmatmul.f32.gmra.mxu2 %v794_v61  ;;  %v775_v50 = vld [vmem:[%s2365_s24 + $0xf0] sm:$0xff] }
  0x9a   : > { %847 = vmatmul.f32.gmra.mxu0 %v747_v51  ;;  %991 = vmatmul.f32.gmra.mxu2 %v795_v63 }
  0xa2   : > { %850 = vmatmul.f32.gmra.mxu0 %v748_v52  ;;  %994 = vmatmul.f32.gmra.mxu2 %v796_v1  ;;  %v780_v1 = vld [vmem:[%s2365_s24 + $0x118] sm:$0xff] }
  0xaa   : > { %853 = vmatmul.f32.gmra.mxu0 %v749_v53  ;;  %997 = vmatmul.f32.gmra.mxu2 %v797_v3  ;;  %v776_v53 = vld [vmem:[%s2365_s24 + $0xf8] sm:$0xff] }
  0xb2   : > { %856 = vmatmul.f32.gmra.mxu0 %v750_v54  ;;  %1000 = vmatmul.f32.gmra.mxu2 %v798_v5 }
  0xba   : > { %859 = vmatmul.f32.gmra.mxu0 %v751_v55  ;;  %1003 = vmatmul.f32.gmra.mxu2 %v799_v7  ;;  %v782_v7 = vld [vmem:[%s2365_s24 + $0x128] sm:$0xff] }
  0xc2   : > { %862 = vmatmul.f32.gmra.mxu0 %v752_v56  ;;  %1006 = vmatmul.f32.gmra.mxu2 %v800_v10  ;;  %v777_v56 = vld [vmem:[%s2365_s24 + $0x100] sm:$0xff] }
  0xca   : > { %865 = vmatmul.f32.gmra.mxu0 %v753_v57  ;;  %1009 = vmatmul.f32.gmra.mxu2 %v801_v13  ;;  %v784_v13 = vld [vmem:[%s2365_s24 + $0x138] sm:$0xff] }
  0xd2   : > { %868 = vmatmul.f32.gmra.mxu0 %v754_v58  ;;  %1012 = vmatmul.f32.gmra.mxu2 %v802_v16  ;;  %v785_v16 = vld [vmem:[%s2365_s24 + $0x140] sm:$0xff] }
  0xda   : > { %871 = vmatmul.f32.gmra.mxu0 %v755_v60  ;;  %1015 = vmatmul.f32.gmra.mxu2 %v803_v19  ;;  %v786_v19 = vld [vmem:[%s2365_s24 + $0x148] sm:$0xff] }
  0xe2   : > { %874 = vmatmul.f32.gmra.mxu0 %v756_v62  ;;  %1018 = vmatmul.f32.gmra.mxu2 %v804_v22  ;;  %v779_v62 = vld [vmem:[%s2365_s24 + $0x110] sm:$0xff] }
  0xe3   : > { %v787_v22 = vld [vmem:[%s2365_s24 + $0x150] sm:$0xff] }
  0xea   : > { %877 = vmatmul.f32.gmra.mxu0 %v757_v0  ;;  %1021 = vmatmul.f32.gmra.mxu2 %v805_v25 }
  0xf2   : > { %880 = vmatmul.f32.gmra.mxu0 %v758_v2  ;;  %1024 = vmatmul.f32.gmra.mxu2 %v806_v28  ;;  %v790_v28 = vld [vmem:[%s2365_s24 + $0x168] sm:$0xff] }
  0xfa   : > { %883 = vmatmul.f32.gmra.mxu0 %v759_v4  ;;  %1027 = vmatmul.f32.gmra.mxu2 %v807_v31  ;;  %v781_v4 = vld [vmem:[%s2365_s24 + $0x120] sm:$0xff] }
  0xfb   : > { %v473_v31 = vld [vmem:[%s2377_s15 + $0x80] sm:$0xff] }
 0x102   : > { %886 = vmatmul.f32.gmra.mxu0 %v760_v6  ;;  %1030 = vmatmul.f32.gmra.mxu2 %v808_v34 }
 0x107   : > { %v2419_v8 = vpop.f32.mrf.mxu0 }
 0x10a   : > { %889 = vmatmul.f32.gmra.mxu0 %v761_v9 }
 0x10d   : > { %v2453_v39 = vpop.f32.mrf.mxu2 }
 0x10f   : > { %v2423_v11 = vpop.f32.mrf.mxu0 }
 0x112   : > { %892 = vmatmul.f32.gmra.mxu0 %v762_v12 }
 0x115   : > { %v2456_v42 = vpop.f32.mrf.mxu2 }
 0x117   : > { %v2427_v14 = vpop.f32.mrf.mxu0 }
 0x11a   : > { %895 = vmatmul.f32.gmra.mxu0 %v763_v15 }
 0x11d   : > { %v2459_v45 = vpop.f32.mrf.mxu2 }
 0x11f   : > { %v2431_v17 = vpop.f32.mrf.mxu0 }
 0x122   : > { %898 = vmatmul.f32.gmra.mxu0 %v764_v18 }
 0x125   : > { %v2462_v48 = vpop.f32.mrf.mxu2 }
 0x127   : > { %v2435_v20 = vpop.f32.mrf.mxu0 }
 0x12a   : > { %901 = vmatmul.f32.gmra.mxu0 %v765_v21 }
 0x12d   : > { %v2465_v51 = vpop.f32.mrf.mxu2 }
 0x12f   : > { %v2439_v23 = vpop.f32.mrf.mxu0 }
 0x132   : > { %904 = vmatmul.f32.gmra.mxu0 %v766_v24  ;;  %v788_v24 = vld [vmem:[%s2365_s24 + $0x158] sm:$0xff] }
 0x135   : > { %v2468_v54 = vpop.f32.mrf.mxu2 }
 0x137   : > { %v2443_v26 = vpop.f32.mrf.mxu0 }
 0x13a   : > { %907 = vmatmul.f32.gmra.mxu0 %v767_v27 }
 0x13d   : > { %v2473_v57 = vpop.f32.mrf.mxu2 }
 0x13f   : > { %v863_v29 = vpop.f32.mrf.mxu0 }
 0x142   : > { %910 = vmatmul.f32.gmra.mxu0 %v768_v30  ;;  %v791_v30 = vld [vmem:[%s2365_s24 + $0x170] sm:$0xff] }
 0x145   : > { %v1007_v60 = vpop.f32.mrf.mxu2 }
 0x147   : > { %v866_v32 = vpop.f32.mrf.mxu0 }
 0x14a   : > { %913 = vmatmul.f32.gmra.mxu0 %v769_v33 }
 0x14d   : > { %v1010_v63 = vpop.f32.mrf.mxu2 }
 0x14f   : > { %v869_v35 = vpop.f32.mrf.mxu0 }
 0x152   : > { %916 = vmatmul.f32.gmra.mxu0 %v770_v36  ;;  %v457_v36 = vld [vmem:[%s2377_s15] sm:$0xff] }
 0x155   : > { %v1013_v2 = vpop.f32.mrf.mxu2 }
 0x157   : > { %v872_v37 = vpop.f32.mrf.mxu0 }
 0x15a   : > { %919 = vmatmul.f32.gmra.mxu0 %v771_v38  ;;  %v557_v38 = vunpack.c.1.s8 %v473_v31 }
 0x15d   : > { %v1016_v5 = vpop.f32.mrf.mxu2 }
 0x15f   : > { %v875_v40 = vpop.f32.mrf.mxu0 }
 0x162   : > { %922 = vmatmul.f32.gmra.mxu0 %v772_v41 }
 0x165   : > { %v1019_v9 = vpop.f32.mrf.mxu2 }
 0x167   : > { %v878_v43 = vpop.f32.mrf.mxu0 }
 0x16a   : > { %925 = vmatmul.f32.gmra.mxu0 %v773_v44 }
 0x16f   : > { %v881_v46 = vpop.f32.mrf.mxu0 }
 0x172   : > { %928 = vmatmul.f32.gmra.mxu0 %v774_v47  ;;  %v458_v47 = vld [vmem:[%s2377_s15 + $0x8] sm:$0xff] }
 0x177   : > { %v884_v49 = vpop.f32.mrf.mxu0 }
 0x17a   : > { %931 = vmatmul.f32.gmra.mxu0 %v775_v50 }
 0x17f   : > { %v887_v52 = vpop.f32.mrf.mxu0 }
 0x180   : > { %1034 = vmatpush.msra.mxu1 %v887_v52  ;;  %2087 = vmatpush.msra.mxu3 %v887_v52 }
 0x182   : > { %934 = vmatmul.f32.gmra.mxu0 %v776_v53  ;;  %1035 = vmatpush.msra.mxu1 %v884_v49  ;;  %v490_v53 = vunpack.c.0.s8 %v458_v47 }
 0x183   : > { %2088 = vmatpush.msra.mxu3 %v884_v49  ;;  %v565_v49 = vunpack.c.3.s8 %v473_v31 }
 0x184   : > { %1036 = vmatpush.msra.mxu1 %v881_v46 }
 0x185   : > { %2089 = vmatpush.msra.mxu3 %v881_v46 }
 0x186   : > { %1037 = vmatpush.msra.mxu1 %v878_v43 }
 0x187   : > { %2090 = vmatpush.msra.mxu3 %v878_v43  ;;  %v2470_v55 = vpop.f32.mrf.mxu0  ;;  %v561_v43 = vunpack.c.2.s8 %v473_v31 }
 0x188   : > { %1038 = vmatpush.msra.mxu1 %v875_v40 }
 0x189   : > { %2091 = vmatpush.msra.mxu3 %v875_v40 }
 0x18a   : > { %937 = vmatmul.f32.gmra.mxu0 %v777_v56  ;;  %1039 = vmatpush.msra.mxu1 %v872_v37  ;;  %v477_v56 = vld [vmem:[%s2377_s15 + $0xa0] sm:$0xff] }
 0x18b   : > { %2092 = vmatpush.msra.mxu3 %v872_v37  ;;  %v489_v37 = vunpack.c.0.s8 %v457_v36 }
 0x18c   : > { %1040 = vmatpush.msra.mxu1 %v869_v35 }
 0x18d   : > { %2093 = vmatpush.msra.mxu3 %v869_v35  ;;  %v792_v35 = vld [vmem:[%s2365_s24 + $0x178] sm:$0xff]  ;;  %v617_v40 = vcvt.s32.f32 %v489_v37 }
 0x18e   : > { %1041 = vmatpush.msra.mxu1 %v866_v32 }
 0x18f   : > { %2094 = vmatpush.msra.mxu3 %v866_v32  ;;  %v2475_v58 = vpop.f32.mrf.mxu0  ;;  %v553_v32 = vunpack.c.0.s8 %v473_v31 }
 0x190   : > { %1042 = vmatpush.msra.mxu1 %v863_v29 }
 0x191   : > { %2095 = vmatpush.msra.mxu3 %v863_v29  ;;  %v681_v33 = vcvt.s32.f32 %v553_v32 }
 0x192   : > { %940 = vmatmul.f32.gmra.mxu0 %v778_v59  ;;  %1043 = vmatpush.msra.mxu1 %v2443_v26  ;;  %v569_v59 = vunpack.c.0.s8 %v477_v56 }
 0x193   : > { %2096 = vmatpush.msra.mxu3 %v2443_v26  ;;  %v789_v26 = vld [vmem:[%s2365_s24 + $0x160] sm:$0xff] }
 0x194   : > { %1044 = vmatpush.msra.mxu1 %v2439_v23 }
 0x195   : > { %2097 = vmatpush.msra.mxu3 %v2439_v23 }
 0x196   : > { %1045 = vmatpush.msra.mxu1 %v2435_v20 }
 0x197   : > { %2098 = vmatpush.msra.mxu3 %v2435_v20  ;;  %v2484_v61 = vpop.f32.mrf.mxu0 }
 0x198   : > { %1046 = vmatpush.msra.mxu1 %v2431_v17 }
 0x199   : > { %2099 = vmatpush.msra.mxu3 %v2431_v17 }
 0x19a   : > { %943 = vmatmul.f32.gmra.mxu0 %v779_v62  ;;  %1047 = vmatpush.msra.mxu1 %v2427_v14  ;;  %v697_v62 = vcvt.s32.f32 %v569_v59 }
 0x19b   : > { %2100 = vmatpush.msra.mxu3 %v2427_v14 }
 0x19c   : > { %1048 = vmatpush.msra.mxu1 %v2423_v11 }
 0x19d   : > { %2101 = vmatpush.msra.mxu3 %v2423_v11  ;;  %v1022_v11 = vpop.f32.mrf.mxu2 }
 0x19e   : > { %1049 = vmatpush.msra.mxu1 %v2419_v8 }
 0x19f   : > { %2102 = vmatpush.msra.mxu3 %v2419_v8  ;;  %v2495_v0 = vpop.f32.mrf.mxu0  ;;  %v783_v8 = vld [vmem:[%s2365_s24 + $0x130] sm:$0xff]  ;;  %1050 = vmatmul.f32.vlgmr.msra.gmra.mxu1 %v617_v40 }
 0x1a0   : > { %1098 = vmatmul.f32.vlgmr.msra.gmra.mxu3 %v681_v33 }
 0x1a2   : > { %946 = vmatmul.f32.gmra.mxu0 %v780_v1  ;;  %v494_v1 = vunpack.c.1.s8 %v458_v47 }
 0x1a5   : > { %v1025_v14 = vpop.f32.mrf.mxu2 }
 0x1a7   : > { %v2498_v3 = vpop.f32.mrf.mxu0 }
 0x1aa   : > { %949 = vmatmul.f32.gmra.mxu0 %v781_v4 }
 0x1ad   : > { %v1028_v17 = vpop.f32.mrf.mxu2 }
 0x1af   : > { %v2501_v6 = vpop.f32.mrf.mxu0 }
 0x1b2   : > { %952 = vmatmul.f32.gmra.mxu0 %v782_v7 }
 0x1b5   : > { %v1031_v20 = vpop.f32.mrf.mxu2 }
 0x1b6   : > { %1373 = vmatpush.msrb.mxu1 %v1031_v20 }
 0x1b7   : > { %v2504_v10 = vpop.f32.mrf.mxu0 }
 0x1b8   : > { %1374 = vmatpush.msrb.mxu1 %v1028_v17 }
 0x1ba   : > { %955 = vmatmul.f32.gmra.mxu0 %v783_v8  ;;  %1375 = vmatpush.msrb.mxu1 %v1025_v14  ;;  %v462_v14 = vld [vmem:[%s2377_s15 + $0x28] sm:$0xff] }
 0x1bb   : > { %v506_v20 = vunpack.c.0.s8 %v462_v14 }
 0x1bc   : > { %1376 = vmatpush.msrb.mxu1 %v1022_v11 }
 0x1be   : > { %1377 = vmatpush.msrb.mxu1 %v1019_v9  ;;  %v577_v9 = vunpack.c.2.s8 %v477_v56 }
 0x1bf   : > { %v2507_v12 = vpop.f32.mrf.mxu0 }
 0x1c0   : > { %1378 = vmatpush.msrb.mxu1 %v1016_v5  ;;  %v705_v8 = vcvt.s32.f32 %v577_v9 }
 0x1c2   : > { %958 = vmatmul.f32.gmra.mxu0 %v784_v13  ;;  %1379 = vmatpush.msrb.mxu1 %v1013_v2  ;;  %v461_v2 = vld [vmem:[%s2377_s15 + $0x20] sm:$0xff] }
 0x1c3   : > { %v509_v7 = vunpack.c.1.s8 %v461_v2 }
 0x1c4   : > { %1380 = vmatpush.msrb.mxu1 %v1010_v63 }
 0x1c6   : > { %1381 = vmatpush.msrb.mxu1 %v1007_v60 }
 0x1c7   : > { %v914_v15 = vpop.f32.mrf.mxu0 }
 0x1c8   : > { %1382 = vmatpush.msrb.mxu1 %v2473_v57  ;;  %v501_v57 = vunpack.c.3.s8 %v457_v36 }
 0x1ca   : > { %961 = vmatmul.f32.gmra.mxu0 %v785_v16  ;;  %1383 = vmatpush.msrb.mxu1 %v2468_v54  ;;  %v618_v54 = vcvt.s32.f32 %v490_v53  ;;  %v629_v60 = vcvt.s32.f32 %v501_v57  ;;  %v581_v16 = vunpack.c.3.s8 %v477_v56  ;;  %v485_v57 = vld [vmem:[%s2377_s15 + $0xe0] sm:$0xff] }
 0x1cc   : > { %1384 = vmatpush.msrb.mxu1 %v2465_v51  ;;  %v693_v51 = vcvt.s32.f32 %v565_v49 }
 0x1ce   : > { %1385 = vmatpush.msrb.mxu1 %v2462_v48  ;;  %v497_v48 = vunpack.c.2.s8 %v457_v36 }
 0x1cf   : > { %v917_v18 = vpop.f32.mrf.mxu0 }
 0x1d0   : > { %1386 = vmatpush.msrb.mxu1 %v2459_v45  ;;  %v689_v45 = vcvt.s32.f32 %v561_v43  ;;  %v625_v50 = vcvt.s32.f32 %v497_v48 }
 0x1d2   : > { %964 = vmatmul.f32.gmra.mxu0 %v786_v19  ;;  %1387 = vmatpush.msrb.mxu1 %v2456_v42  ;;  %v493_v42 = vunpack.c.1.s8 %v457_v36  ;;  %v514_v36 = vunpack.c.2.s8 %v462_v14 }
 0x1d4   : > { %1388 = vmatpush.msrb.mxu1 %v2453_v39  ;;  %v685_v39 = vcvt.s32.f32 %v557_v38  ;;  %v621_v44 = vcvt.s32.f32 %v493_v42  ;;  %v642_v37 = vcvt.s32.f32 %v514_v36 }
 0x1d6   : > { %1101 = vmatmul.f32.gmra.mxu3 %v685_v39  ;;  %1053 = vmatmul.f32.gmra.mxu1 %v621_v44  ;;  %v518_v44 = vunpack.c.3.s8 %v462_v14 }
 0x1d7   : > { %v920_v21 = vpop.f32.mrf.mxu0 }
 0x1da   : > { %967 = vmatmul.f32.gmra.mxu0 %v787_v22  ;;  %v481_v22 = vld [vmem:[%s2377_s15 + $0xc0] sm:$0xff] }
 0x1db   : > { %v589_v32 = vunpack.c.1.s8 %v481_v22  ;;  %v593_v40 = vunpack.c.2.s8 %v481_v22  ;;  %v597_v49 = vunpack.c.3.s8 %v481_v22 }
 0x1dd   : > { %v721_v42 = vcvt.s32.f32 %v593_v40 }
 0x1de   : > { %1104 = vmatmul.f32.gmra.mxu3 %v689_v45  ;;  %1056 = vmatmul.f32.gmra.mxu1 %v625_v50  ;;  %v646_v45 = vcvt.s32.f32 %v518_v44 }
 0x1df   : > { %v923_v23 = vpop.f32.mrf.mxu0 }
 0x1e2   : > { %970 = vmatmul.f32.gmra.mxu0 %v788_v24  ;;  %v585_v24 = vunpack.c.0.s8 %v481_v22 }
 0x1e6   : > { %1107 = vmatmul.f32.gmra.mxu3 %v693_v51  ;;  %1059 = vmatmul.f32.gmra.mxu1 %v629_v60  ;;  %v725_v51 = vcvt.s32.f32 %v597_v49  ;;  %v601_v60 = vunpack.c.0.s8 %v485_v57  ;;  %v1518_v49 = vld [vmem:[%s2375_s14] sm:$0xff] }
 0x1e7   : > { %v926_v25 = vpop.f32.mrf.mxu0 }
 0x1ea   : > { %973 = vmatmul.f32.gmra.mxu0 %v789_v26  ;;  %v713_v26 = vcvt.s32.f32 %v585_v24 }
 0x1ee   : > { %1110 = vmatmul.f32.gmra.mxu3 %v697_v62 }
 0x1ef   : > { %v929_v27 = vpop.f32.mrf.mxu0 }
 0x1f2   : > { %976 = vmatmul.f32.gmra.mxu0 %v790_v28  ;;  %v510_v28 = vunpack.c.1.s8 %v462_v14 }
 0x1f7   : > { %v932_v29 = vpop.f32.mrf.mxu0 }
 0x1fa   : > { %979 = vmatmul.f32.gmra.mxu0 %v791_v30  ;;  %v465_v30 = vld [vmem:[%s2377_s15 + $0x40] sm:$0xff] }
 0x1fb   : > { %v521_v31 = vunpack.c.0.s8 %v465_v30  ;;  %v525_v38 = vunpack.c.1.s8 %v465_v30  ;;  %v529_v48 = vunpack.c.2.s8 %v465_v30  ;;  %v533_v59 = vunpack.c.3.s8 %v465_v30 }
 0x1fd   : > { %v649_v33 = vcvt.s32.f32 %v521_v31  ;;  %v653_v39 = vcvt.s32.f32 %v525_v38  ;;  %v657_v50 = vcvt.s32.f32 %v529_v48  ;;  %v661_v62 = vcvt.s32.f32 %v533_v59 }
 0x1ff   : > { %v935_v34 = vpop.f32.mrf.mxu0 }
 0x200   : > { %1147 = vmatpush.msrb.mxu2 %v935_v34  ;;  %v717_v34 = vcvt.s32.f32 %v589_v32 }
 0x202   : > { %982 = vmatmul.f32.gmra.mxu0 %v792_v35  ;;  %1148 = vmatpush.msrb.mxu2 %v932_v29  ;;  %v638_v29 = vcvt.s32.f32 %v510_v28 }
 0x204   : > { %1149 = vmatpush.msrb.mxu2 %v929_v27 }
 0x206   : > { %1150 = vmatpush.msrb.mxu2 %v926_v25 }
 0x207   : > { %v2527_v41 = vpop.f32.mrf.mxu0 }
 0x208   : > { %1151 = vmatpush.msrb.mxu2 %v923_v23  ;;  %v517_v23 = vunpack.c.3.s8 %v461_v2 }
 0x20a   : > { %1152 = vmatpush.msrb.mxu2 %v920_v21  ;;  %v634_v21 = vcvt.s32.f32 %v506_v20  ;;  %v645_v25 = vcvt.s32.f32 %v517_v23 }
 0x20c   : > { %1153 = vmatpush.msrb.mxu2 %v917_v18  ;;  %v709_v18 = vcvt.s32.f32 %v581_v16 }
 0x20e   : > { %1154 = vmatpush.msrb.mxu2 %v914_v15  ;;  %v513_v15 = vunpack.c.2.s8 %v461_v2 }
 0x20f   : > { %v2529_v46 = vpop.f32.mrf.mxu0 }
 0x210   : > { %1155 = vmatpush.msrb.mxu2 %v2507_v12  ;;  %v502_v12 = vunpack.c.3.s8 %v458_v47  ;;  %v641_v17 = vcvt.s32.f32 %v513_v15 }
 0x212   : > { %1156 = vmatpush.msrb.mxu2 %v2504_v10  ;;  %v637_v10 = vcvt.s32.f32 %v509_v7  ;;  %v630_v13 = vcvt.s32.f32 %v502_v12  ;;  %v609_v12 = vunpack.c.2.s8 %v485_v57 }
 0x214   : > { %1157 = vmatpush.msrb.mxu2 %v2501_v6  ;;  %v737_v14 = vcvt.s32.f32 %v609_v12  ;;  %v1521_v12 = vld [vmem:[%s2375_s14 + $0x18] sm:$0xff] }
 0x216   : > { %1158 = vmatpush.msrb.mxu2 %v2498_v3  ;;  %v505_v3 = vunpack.c.0.s8 %v461_v2 }
 0x217   : > { %v2536_v52 = vpop.f32.mrf.mxu0 }
 0x218   : > { %1159 = vmatpush.msrb.mxu2 %v2495_v0  ;;  %v622_v0 = vcvt.s32.f32 %v494_v1  ;;  %v633_v4 = vcvt.s32.f32 %v505_v3  ;;  %v729_v1 = vcvt.s32.f32 %v601_v60 }
 0x21a   : > { %1160 = vmatpush.msrb.mxu2 %v2484_v61  ;;  %v573_v61 = vunpack.c.1.s8 %v477_v56  ;;  %1062 = vmatmul.f32.gmra.mxu1 %v633_v4 }
 0x21c   : > { %1161 = vmatpush.msrb.mxu2 %v2475_v58  ;;  %v701_v5 = vcvt.s32.f32 %v573_v61  ;;  %v498_v58 = vunpack.c.2.s8 %v458_v47  ;;  %v466_v47 = vld [vmem:[%s2377_s15 + $0x48] sm:$0xff]  ;;  %v469_v61 = vld [vmem:[%s2377_s15 + $0x60] sm:$0xff] }
 0x21d   : > { %v526_v2 = vunpack.c.1.s8 %v466_v47  ;;  %v537_v4 = vunpack.c.0.s8 %v469_v61  ;;  %v530_v9 = vunpack.c.2.s8 %v466_v47  ;;  %v534_v16 = vunpack.c.3.s8 %v466_v47 }
 0x21e   : > { %1162 = vmatpush.msrb.mxu2 %v2470_v55  ;;  %1113 = vmatmul.f32.gmra.mxu3 %v701_v5  ;;  %v626_v55 = vcvt.s32.f32 %v498_v58  ;;  %v605_v5 = vunpack.c.1.s8 %v485_v57  ;;  %v545_v20 = vunpack.c.2.s8 %v469_v61  ;;  %v549_v28 = vunpack.c.3.s8 %v469_v61 }
 0x21f   : > { %v2543_v63 = vpop.f32.mrf.mxu0  ;;  %1163 = vmatmul.f32.vlgmr.msrb.gmra.mxu2 %v618_v54  ;;  %v522_v54 = vunpack.c.0.s8 %v466_v47  ;;  %v654_v3 = vcvt.s32.f32 %v526_v2  ;;  %v665_v58 = vcvt.s32.f32 %v537_v4 }
 0x220   : > { %v673_v22 = vcvt.s32.f32 %v545_v20 }
 0x221   : > { %v650_v56 = vcvt.s32.f32 %v522_v54 }
 0x222   : > { %1065 = vmatmul.f32.gmra.mxu1 %v637_v10  ;;  %v658_v10 = vcvt.s32.f32 %v530_v9 }
 0x226   : > { %1116 = vmatmul.f32.gmra.mxu3 %v705_v8  ;;  %v541_v8 = vunpack.c.1.s8 %v469_v61 }
 0x227   : > { %v2546_v6 = vpop.f32.mrf.mxu0  ;;  %1166 = vmatmul.f32.gmra.mxu2 %v622_v0 }
 0x22a   : > { %1068 = vmatmul.f32.gmra.mxu1 %v641_v17  ;;  %v662_v17 = vcvt.s32.f32 %v534_v16 }
 0x22e   : > { %1119 = vmatmul.f32.gmra.mxu3 %v709_v18  ;;  %v470_v18 = vld [vmem:[%s2377_s15 + $0x68] sm:$0xff] }
 0x22f   : > { %v2548_v11 = vpop.f32.mrf.mxu0  ;;  %1169 = vmatmul.f32.gmra.mxu2 %v626_v55  ;;  %v733_v55 = vcvt.s32.f32 %v605_v5  ;;  %v542_v31 = vunpack.c.1.s8 %v470_v18  ;;  %v546_v40 = vunpack.c.2.s8 %v470_v18  ;;  %v550_v48 = vunpack.c.3.s8 %v470_v18  ;;  %v464_v5 = vld [vmem:[%s2377_s15 + $0x38] sm:$0xff] }
 0x230   : > { %v512_v16 = vunpack.c.1.s8 %v464_v5 }
 0x231   : > { %v670_v32 = vcvt.s32.f32 %v542_v31 }
 0x232   : > { %1071 = vmatmul.f32.gmra.mxu1 %v645_v25  ;;  %v538_v25 = vunpack.c.0.s8 %v470_v18  ;;  %v640_v18 = vcvt.s32.f32 %v512_v16  ;;  %v467_v16 = vld [vmem:[%s2377_s15 + $0x50] sm:$0xff] }
 0x236   : > { %1122 = vmatmul.f32.gmra.mxu3 %v713_v26  ;;  %v666_v26 = vcvt.s32.f32 %v538_v25 }
 0x237   : > { %v2551_v19 = vpop.f32.mrf.mxu0  ;;  %1172 = vmatmul.f32.gmra.mxu2 %v630_v13  ;;  %v669_v13 = vcvt.s32.f32 %v541_v8 }
 0x23a   : > { %1074 = vmatmul.f32.gmra.mxu1 %v649_v33  ;;  %v2567_v33 = vpop.f32.mrf.mxu3 }
 0x23e   : > { %1125 = vmatmul.f32.gmra.mxu3 %v717_v34  ;;  %v460_v34 = vld [vmem:[%s2377_s15 + $0x18] sm:$0xff] }
 0x23f   : > { %v2554_v27 = vpop.f32.mrf.mxu0  ;;  %1175 = vmatmul.f32.gmra.mxu2 %v634_v21  ;;  %v613_v21 = vunpack.c.3.s8 %v485_v57  ;;  %v492_v36 = vunpack.c.0.s8 %v460_v34  ;;  %v496_v44 = vunpack.c.1.s8 %v460_v34 }
 0x241   : > { %v741_v23 = vcvt.s32.f32 %v613_v21  ;;  %v620_v38 = vcvt.s32.f32 %v492_v36  ;;  %v624_v47 = vcvt.s32.f32 %v496_v44  ;;  %v520_v44 = vunpack.c.3.s8 %v464_v5 }
 0x242   : > { %1077 = vmatmul.f32.gmra.mxu1 %v653_v39  ;;  %v674_v39 = vcvt.s32.f32 %v546_v40 }
 0x246   : > { %1128 = vmatmul.f32.gmra.mxu3 %v721_v42 }
 0x247   : > { %v2557_v35 = vpop.f32.mrf.mxu0  ;;  %1178 = vmatmul.f32.gmra.mxu2 %v638_v29  ;;  %v677_v29 = vcvt.s32.f32 %v549_v28  ;;  %v463_v28 = vld [vmem:[%s2377_s15 + $0x30] sm:$0xff] }
 0x248   : > { %v507_v36 = vunpack.c.0.s8 %v463_v28 }
 0x24a   : > { %1080 = vmatmul.f32.gmra.mxu1 %v657_v50  ;;  %v678_v50 = vcvt.s32.f32 %v550_v48  ;;  %v648_v48 = vcvt.s32.f32 %v520_v44 }
 0x24e   : > { %1131 = vmatmul.f32.gmra.mxu3 %v725_v51  ;;  %v2206_v51 = vmov 0  }
 0x24f   : > { %v2559_v43 = vpop.f32.mrf.mxu0  ;;  %1181 = vmatmul.f32.gmra.mxu2 %v642_v37  ;;  %v1051_v37 = vpop.f32.mrf.mxu1  ;;  %2146 = vset.pattern.permute.xlu0 %v2206_v51 }
 0x250   : > { %2147 = vset.pattern.permute.xlu1 %v2206_v51  ;;  %1552 = vperm.xlu0 %2146, %v1518_v49  }
 0x251   : > { %2148 = vset.pattern.permute.xlu2 %v2206_v51 }
 0x252   : > { %1083 = vmatmul.f32.gmra.mxu1 %v661_v62  ;;  %v504_v62 = vunpack.c.3.s8 %v460_v34 }
 0x256   : > { %1134 = vmatmul.f32.gmra.mxu3 %v729_v1  ;;  %v632_v1 = vcvt.s32.f32 %v504_v62 }
 0x257   : > { %v2562_v53 = vpop.f32.mrf.mxu0  ;;  %1184 = vmatmul.f32.gmra.mxu2 %v646_v45  ;;  %v1054_v45 = vpop.f32.mrf.mxu1 }
 0x259   : > { %v2572_v42 = vpop.f32.mrf.mxu3 }
 0x25a   : > { %1086 = vmatmul.f32.gmra.mxu1 %v665_v58  ;;  %v508_v58 = vunpack.c.0.s8 %v464_v5 }
 0x25e   : > { %1137 = vmatmul.f32.gmra.mxu3 %v733_v55 }
 0x25f   : > { %v971_v0 = vpop.f32.mrf.mxu0  ;;  %1187 = vmatmul.f32.gmra.mxu2 %v650_v56  ;;  %v1057_v54 = vpop.f32.mrf.mxu1 }
 0x262   : > { %1089 = vmatmul.f32.gmra.mxu1 %v669_v13 }
 0x266   : > { %1140 = vmatmul.f32.gmra.mxu3 %v737_v14 }
 0x267   : > { %v974_v7 = vpop.f32.mrf.mxu0  ;;  %1190 = vmatmul.f32.gmra.mxu2 %v654_v3  ;;  %v1520_v3 = vld [vmem:[%s2375_s14 + $0x10] sm:$0xff] }
 0x268   : > { %1562 = vperm.xlu1 %2147, %v1520_v3  }
 0x26a   : > { %1092 = vmatmul.f32.gmra.mxu1 %v673_v22 }
 0x26e   : > { %1143 = vmatmul.f32.gmra.mxu3 %v741_v23 }
 0x26f   : > { %v977_v15 = vpop.f32.mrf.mxu0  ;;  %1193 = vmatmul.f32.gmra.mxu2 %v658_v10 }
 0x270   : > { %1567 = vperm.xlu1 %2147, %v1521_v12  }
 0x272   : > { %1095 = vmatmul.f32.gmra.mxu1 %v677_v29 }
 0x277   : > { %v980_v24 = vpop.f32.mrf.mxu0  ;;  %1196 = vmatmul.f32.gmra.mxu2 %v662_v17 }
 0x27a   : > { %1389 = vmatmul.f32.vlgmr.msrb.gmra.mxu1 %v620_v38 }
 0x27f   : > { %v983_v30 = vpop.f32.mrf.mxu0  ;;  %1199 = vmatmul.f32.gmra.mxu2 %v666_v26  ;;  %v478_v26 = vld [vmem:[%s2377_s15 + $0xa8] sm:$0xff] }
 0x280   : > { %1260 = vmatpush.msrb.mxu3 %v983_v30  ;;  %v516_v30 = vunpack.c.2.s8 %v464_v5  ;;  %v574_v49 = vunpack.c.1.s8 %v478_v26 }
 0x282   : > { %1261 = vmatpush.msrb.mxu3 %v980_v24  ;;  %1392 = vmatmul.f32.gmra.mxu1 %v624_v47 }
 0x284   : > { %1262 = vmatpush.msrb.mxu3 %v977_v15 }
 0x286   : > { %1263 = vmatpush.msrb.mxu3 %v974_v7 }
 0x287   : > { %1202 = vmatmul.f32.gmra.mxu2 %v670_v32  ;;  %v644_v32 = vcvt.s32.f32 %v516_v30 }
 0x288   : > { %1264 = vmatpush.msrb.mxu3 %v971_v0 }
 0x28a   : > { %1265 = vmatpush.msrb.mxu3 %v2562_v53  ;;  %v459_v53 = vld [vmem:[%s2377_s15 + $0x10] sm:$0xff] }
 0x28b   : > { %v491_v57 = vunpack.c.0.s8 %v459_v53  ;;  %v499_v9 = vunpack.c.2.s8 %v459_v53  ;;  %v503_v21 = vunpack.c.3.s8 %v459_v53 }
 0x28c   : > { %1266 = vmatpush.msrb.mxu3 %v2559_v43  ;;  %v474_v43 = vld [vmem:[%s2377_s15 + $0x88] sm:$0xff] }
 0x28d   : > { %v619_v60 = vcvt.s32.f32 %v491_v57  ;;  %v558_v0 = vunpack.c.1.s8 %v474_v43  ;;  %v562_v7 = vunpack.c.2.s8 %v474_v43  ;;  %v627_v15 = vcvt.s32.f32 %v499_v9  ;;  %v1523_v9 = vld [vmem:[%s2375_s14 + $0x28] sm:$0xff] }
 0x28e   : > { %1267 = vmatpush.msrb.mxu3 %v2557_v35  ;;  %v500_v35 = vunpack.c.2.s8 %v460_v34  ;;  %v566_v20 = vunpack.c.3.s8 %v474_v43  ;;  %v631_v25 = vcvt.s32.f32 %v503_v21  ;;  %v570_v34 = vunpack.c.0.s8 %v478_v26 }
 0x28f   : > { %1205 = vmatmul.f32.gmra.mxu2 %v674_v39  ;;  %v690_v14 = vcvt.s32.f32 %v562_v7  ;;  %v635_v39 = vcvt.s32.f32 %v507_v36 }
 0x290   : > { %1268 = vmatpush.msrb.mxu3 %v2554_v27  ;;  %v2582_v27 = vpop.f32.mrf.mxu3  ;;  %v628_v56 = vcvt.s32.f32 %v500_v35  ;;  %v694_v24 = vcvt.s32.f32 %v566_v20  ;;  %v698_v40 = vcvt.s32.f32 %v570_v34  ;;  %v702_v35 = vcvt.s32.f32 %v574_v49 }
 0x292   : > { %1269 = vmatpush.msrb.mxu3 %v2551_v19  ;;  %v554_v19 = vunpack.c.0.s8 %v474_v43  ;;  %1395 = vmatmul.f32.gmra.mxu1 %v628_v56  ;;  %v1524_v43 = vld [vmem:[%s2375_s14 + $0x30] sm:$0xff]  ;;  %v468_v56 = vld [vmem:[%s2377_s15 + $0x58] sm:$0xff] }
 0x294   : > { %1270 = vmatpush.msrb.mxu3 %v2548_v11  ;;  %v1519_v11 = vld [vmem:[%s2375_s14 + $0x8] sm:$0xff]  ;;  %v682_v59 = vcvt.s32.f32 %v554_v19  ;;  %v524_v19 = vunpack.c.0.s8 %v468_v56 }
 0x295   : > { %1557 = vperm.xlu0 %2146, %v1519_v11  }
 0x296   : > { %1271 = vmatpush.msrb.mxu3 %v2546_v6  ;;  %v1060_v6 = vpop.f32.mrf.mxu1  ;;  %v652_v11 = vcvt.s32.f32 %v524_v19 }
 0x297   : > { %1208 = vmatmul.f32.gmra.mxu2 %v678_v50  ;;  %v511_v50 = vunpack.c.1.s8 %v463_v28 }
 0x298   : > { %1272 = vmatpush.msrb.mxu3 %v2543_v63  ;;  %v495_v63 = vunpack.c.1.s8 %v459_v53  ;;  %v2589_v2 = vpop.f32.mrf.mxu3 }
 0x29a   : > { %1273 = vmatpush.msrb.mxu3 %v2536_v52  ;;  %1398 = vmatmul.f32.gmra.mxu1 %v632_v1  ;;  %v623_v4 = vcvt.s32.f32 %v495_v63  ;;  %v1522_v1 = vld [vmem:[%s2375_s14 + $0x20] sm:$0xff] }
 0x29b   : > { %1572 = vperm.xlu2 %2148, %v1522_v1  }
 0x29c   : > { %1274 = vmatpush.msrb.mxu3 %v2529_v46  ;;  %v686_v46 = vcvt.s32.f32 %v558_v0  ;;  %v1525_v0 = vld [vmem:[%s2375_s14 + $0x38] sm:$0xff] }
 0x29d   : > { %1582 = vperm.xlu0 %2146, %v1524_v43   ;;  %1587 = vperm.xlu1 %2147, %v1525_v0   ;;  %v535_v0 = vunpack.c.3.s8 %v467_v16 }
 0x29e   : > { %1275 = vmatpush.msrb.mxu3 %v2527_v41  ;;  %v1063_v55 = vpop.f32.mrf.mxu1  ;;  %v636_v41 = vcvt.s32.f32 %v508_v58  ;;  %v582_v58 = vunpack.c.3.s8 %v478_v26 }
 0x29f   : > { %1211 = vmatmul.f32.gmra.mxu2 %v682_v59  ;;  %1276 = vmatmul.f32.vlgmr.msrb.gmra.mxu3 %v619_v60  ;;  %v578_v59 = vunpack.c.2.s8 %v478_v26  ;;  %v515_v60 = vunpack.c.2.s8 %v463_v28 }
 0x2a0   : > { %v2595_v8 = vpop.f32.mrf.mxu3  ;;  %v710_v12 = vcvt.s32.f32 %v582_v58  ;;  %v486_v58 = vld [vmem:[%s2377_s15 + $0xe8] sm:$0xff] }
 0x2a1   : > { %v643_v3 = vcvt.s32.f32 %v515_v60 }
 0x2a2   : > { %v1164_v52 = vpop.f32.mrf.mxu2  ;;  %1401 = vmatmul.f32.gmra.mxu1 %v636_v41 }
 0x2a3   : > { %v2592_v61 = vadd.f32 %v1164_v52, %v1051_v37  ;;  %v706_v52 = vcvt.s32.f32 %v578_v59  ;;  %1577 = vperm.xlu2 %2148, %v1523_v9  }
 0x2a6   : > { %v1066_v17 = vpop.f32.mrf.mxu1 }
 0x2a7   : > { %1214 = vmatmul.f32.gmra.mxu2 %v686_v46  ;;  %1279 = vmatmul.f32.gmra.mxu3 %v623_v4  ;;  %v528_v46 = vunpack.c.1.s8 %v468_v56 }
 0x2a8   : > { %v2604_v29 = vpop.f32.mrf.mxu3 }
 0x2a9   : > { %v656_v5 = vcvt.s32.f32 %v528_v46 }
 0x2aa   : > { %v1167_v10 = vpop.f32.mrf.mxu2  ;;  %1404 = vmatmul.f32.gmra.mxu1 %v640_v18 }
 0x2ab   : > { %v2598_v13 = vadd.f32 %v1167_v10, %v1054_v45 }
 0x2ae   : > { %v1069_v31 = vpop.f32.mrf.mxu1 }
 0x2af   : > { %1217 = vmatmul.f32.gmra.mxu2 %v690_v14  ;;  %1282 = vmatmul.f32.gmra.mxu3 %v627_v15  ;;  %v482_v15 = vld [vmem:[%s2377_s15 + $0xc8] sm:$0xff] }
 0x2b0   : > { %v2608_v47 = vpop.f32.mrf.mxu3  ;;  %v586_v21 = vunpack.c.0.s8 %v482_v15  ;;  %v598_v1 = vunpack.c.3.s8 %v482_v15 }
 0x2b2   : > { %v1170_v22 = vpop.f32.mrf.mxu2  ;;  %1407 = vmatmul.f32.gmra.mxu1 %v644_v32  ;;  %v536_v32 = vunpack.c.3.s8 %v468_v56  ;;  %v726_v46 = vcvt.s32.f32 %v598_v1  ;;  %v614_v1 = vunpack.c.3.s8 %v486_v58 }
 0x2b3   : > { %v2600_v23 = vadd.f32 %v1170_v22, %v1057_v54  ;;  %v639_v54 = vcvt.s32.f32 %v511_v50  ;;  %v523_v22 = vunpack.c.0.s8 %v467_v16 }
 0x2b4   : > { %v664_v36 = vcvt.s32.f32 %v536_v32 }
 0x2b5   : > { %v651_v30 = vcvt.s32.f32 %v523_v22 }
 0x2b6   : > { %v1072_v45 = vpop.f32.mrf.mxu1 }
 0x2b7   : > { %1220 = vmatmul.f32.gmra.mxu2 %v694_v24  ;;  %1285 = vmatmul.f32.gmra.mxu3 %v631_v25  ;;  %v1527_v25 = vld [vmem:[%s2375_s14 + $0x48] sm:$0xff] }
 0x2b8   : > { %v2616_v62 = vpop.f32.mrf.mxu3  ;;  %1597 = vperm.xlu0 %2146, %v1527_v25  }
 0x2ba   : > { %v1173_v37 = vpop.f32.mrf.mxu2  ;;  %1410 = vmatmul.f32.gmra.mxu1 %v648_v48  ;;  %v472_v48 = vld [vmem:[%s2377_s15 + $0x78] sm:$0xff] }
 0x2bb   : > { %v2606_v38 = vadd.f32 %v1173_v37, %v1060_v6  ;;  %v590_v37 = vunpack.c.1.s8 %v482_v15  ;;  %v540_v49 = vunpack.c.0.s8 %v472_v48  ;;  %v544_v59 = vunpack.c.1.s8 %v472_v48 }
 0x2bc   : > { %v552_v22 = vunpack.c.3.s8 %v472_v48 }
 0x2bd   : > { %v718_v44 = vcvt.s32.f32 %v590_v37  ;;  %v668_v43 = vcvt.s32.f32 %v540_v49  ;;  %v1529_v37 = vld [vmem:[%s2375_s14 + $0x58] sm:$0xff] }
 0x2be   : > { %v2614_v57 = vpop.f32.mrf.mxu1  ;;  %v680_v25 = vcvt.s32.f32 %v552_v22  ;;  %v1536_v22 = vld [vmem:[%s2375_s14 + $0x90] sm:$0xff] }
 0x2bf   : > { %1223 = vmatmul.f32.gmra.mxu2 %v698_v40  ;;  %1288 = vmatmul.f32.gmra.mxu3 %v635_v39  ;;  %v527_v40 = vunpack.c.1.s8 %v467_v16  ;;  %v1528_v39 = vld [vmem:[%s2375_s14 + $0x50] sm:$0xff] }
 0x2c0   : > { %v2624_v7 = vpop.f32.mrf.mxu3  ;;  %1602 = vperm.xlu1 %2147, %v1528_v39  }
 0x2c2   : > { %v1176_v51 = vpop.f32.mrf.mxu2  ;;  %1413 = vmatmul.f32.gmra.mxu1 %v652_v11 }
 0x2c3   : > { %v2611_v53 = vadd.f32 %v1176_v51, %v1063_v55  ;;  %v519_v55 = vunpack.c.3.s8 %v463_v28  ;;  %v714_v28 = vcvt.s32.f32 %v586_v21 }
 0x2c5   : > { %v647_v14 = vcvt.s32.f32 %v519_v55  ;;  %v471_v55 = vld [vmem:[%s2377_s15 + $0x70] sm:$0xff] }
 0x2c6   : > { %v2622_v4 = vpop.f32.mrf.mxu1 }
 0x2c7   : > { %1226 = vmatmul.f32.gmra.mxu2 %v702_v35  ;;  %1291 = vmatmul.f32.gmra.mxu3 %v639_v54  ;;  %v594_v35 = vunpack.c.2.s8 %v482_v15  ;;  %v531_v54 = vunpack.c.2.s8 %v467_v16  ;;  %v1531_v16 = vld [vmem:[%s2375_s14 + $0x68] sm:$0xff] }
 0x2c8   : > { %1617 = vperm.xlu1 %2147, %v1531_v16  }
 0x2c9   : > { %v722_v19 = vcvt.s32.f32 %v594_v35  ;;  %v659_v11 = vcvt.s32.f32 %v531_v54 }
 0x2ca   : > { %v1179_v6 = vpop.f32.mrf.mxu2  ;;  %1416 = vmatmul.f32.gmra.mxu1 %v656_v5  ;;  %v663_v5 = vcvt.s32.f32 %v535_v0  ;;  %v551_v0 = vunpack.c.3.s8 %v471_v55 }
 0x2cb   : > { %v2620_v63 = vadd.f32 %v1179_v6, %v1066_v17  ;;  %v532_v17 = vunpack.c.2.s8 %v468_v56  ;;  %v1526_v56 = vld [vmem:[%s2375_s14 + $0x40] sm:$0xff]  ;;  %v672_v6 = vcvt.s32.f32 %v544_v59 }
 0x2cc   : > { %1592 = vperm.xlu2 %2148, %v1526_v56   ;;  %v1533_v56 = vld [vmem:[%s2375_s14 + $0x78] sm:$0xff] }
 0x2cd   : > { %v660_v20 = vcvt.s32.f32 %v532_v17  ;;  %v539_v17 = vunpack.c.0.s8 %v471_v55 }
 0x2ce   : > { %v2631_v18 = vpop.f32.mrf.mxu1 }
 0x2cf   : > { %1229 = vmatmul.f32.gmra.mxu2 %v706_v52  ;;  %1294 = vmatmul.f32.gmra.mxu3 %v643_v3  ;;  %v1530_v3 = vld [vmem:[%s2375_s14 + $0x60] sm:$0xff]  ;;  %v667_v21 = vcvt.s32.f32 %v539_v17 }
 0x2d0   : > { %1612 = vperm.xlu0 %2146, %v1530_v3   ;;  %v742_v3 = vcvt.s32.f32 %v614_v1 }
 0x2d2   : > { %v1182_v41 = vpop.f32.mrf.mxu2  ;;  %1419 = vmatmul.f32.gmra.mxu1 %v660_v20 }
 0x2d3   : > { %v2627_v10 = vadd.f32 %v1182_v41, %v1069_v31  ;;  %v2636_v31 = vpop.f32.mrf.mxu3  ;;  %v548_v41 = vunpack.c.2.s8 %v472_v48  ;;  %v610_v48 = vunpack.c.2.s8 %v486_v58 }
 0x2d4   : > { %1607 = vperm.xlu2 %2148, %v1529_v37   ;;  %v1553_v37 = vpop.permute.xlu0 %1552 }
 0x2d5   : > { %v738_v35 = vcvt.s32.f32 %v610_v48  ;;  %v2685_v48 = vld [vmem:[%s2377_s15 + $0xb8] sm:$0xff] }
 0x2d6   : > { %v2638_v34 = vpop.f32.mrf.mxu1 }
 0x2d7   : > { %1232 = vmatmul.f32.gmra.mxu2 %v710_v12  ;;  %1297 = vmatmul.f32.gmra.mxu3 %v647_v14  ;;  %v676_v12 = vcvt.s32.f32 %v548_v41  ;;  %v602_v14 = vunpack.c.0.s8 %v486_v58  ;;  %v2670_v41 = vld [vmem:[%s2377_s15 + $0x90] sm:$0xff] }
 0x2d8   : > { %1627 = vperm.xlu0 %2146, %v1533_v56   ;;  %v555_v16 = vunpack.c.0.s8 %v2670_v41 }
 0x2d9   : > { %v730_v20 = vcvt.s32.f32 %v602_v14 }
 0x2da   : > { %v1185_v24 = vpop.f32.mrf.mxu2  ;;  %1422 = vmatmul.f32.gmra.mxu1 %v664_v36 }
 0x2db   : > { %v2634_v26 = vadd.f32 %v1185_v24, %v1072_v45  ;;  %v655_v45 = vcvt.s32.f32 %v527_v40  ;;  %v2644_v51 = vpop.f32.mrf.mxu3  ;;  %v476_v40 = vld [vmem:[%s2377_s15 + $0x98] sm:$0xff] }
 0x2de   : > { %v2642_v50 = vpop.f32.mrf.mxu1 }
 0x2df   : > { %1235 = vmatmul.f32.gmra.mxu2 %v714_v28  ;;  %1300 = vmatmul.f32.gmra.mxu3 %v651_v30  ;;  %v606_v28 = vunpack.c.1.s8 %v486_v58  ;;  %v543_v30 = vunpack.c.1.s8 %v471_v55 }
 0x2e0   : > { %1642 = vperm.xlu0 %2146, %v1536_v22  }
 0x2e1   : > { %v734_v32 = vcvt.s32.f32 %v606_v28  ;;  %v671_v36 = vcvt.s32.f32 %v543_v30 }
 0x2e2   : > { %1425 = vmatmul.f32.gmra.mxu1 %v668_v43  ;;  %v547_v43 = vunpack.c.2.s8 %v471_v55  ;;  %v683_v55 = vcvt.s32.f32 %v555_v16  ;;  %v1543_v16 = vld [vmem:[%s2375_s14 + $0xc8] sm:$0xff] }
 0x2e3   : > { %v2649_v52 = vpop.f32.mrf.mxu3 }
 0x2e4   : > { %v675_v54 = vcvt.s32.f32 %v547_v43  ;;  %v1539_v43 = vld [vmem:[%s2375_s14 + $0xa8] sm:$0xff] }
 0x2e6   : > { %v2647_v60 = vpop.f32.mrf.mxu1 }
 0x2e7   : > { %1238 = vmatmul.f32.gmra.mxu2 %v718_v44  ;;  %1303 = vmatmul.f32.gmra.mxu3 %v655_v45  ;;  %v556_v44 = vunpack.c.0.s8 %v476_v40 }
 0x2e8   : > { %1657 = vperm.xlu0 %2146, %v1539_v43   ;;  %v580_v43 = vunpack.c.2.s8 %v2685_v48 }
 0x2e9   : > { %v684_v49 = vcvt.s32.f32 %v556_v44 }
 0x2ea   : > { %1428 = vmatmul.f32.gmra.mxu1 %v672_v6 }
 0x2eb   : > { %v2656_v15 = vpop.f32.mrf.mxu3 }
 0x2ee   : > { %v2654_v9 = vpop.f32.mrf.mxu1 }
 0x2ef   : > { %1241 = vmatmul.f32.gmra.mxu2 %v722_v19  ;;  %1306 = vmatmul.f32.gmra.mxu3 %v659_v11  ;;  %v560_v19 = vunpack.c.1.s8 %v476_v40 }
 0x2f1   : > { %v688_v6 = vcvt.s32.f32 %v560_v19  ;;  %v1486_v19 = vld [vmem:[#allocation2 + $0xb0] sm:$0xff] }
 0x2f2   : > { %1431 = vmatmul.f32.gmra.mxu1 %v676_v12  ;;  %v564_v12 = vunpack.c.2.s8 %v476_v40 }
 0x2f3   : > { %v2663_v39 = vpop.f32.mrf.mxu3 }
 0x2f4   : > { %v692_v17 = vcvt.s32.f32 %v564_v12  ;;  %v576_v12 = vunpack.c.1.s8 %v2685_v48 }
 0x2f6   : > { %v2659_v24 = vpop.f32.mrf.mxu1  ;;  %v704_v22 = vcvt.s32.f32 %v576_v12  ;;  %v584_v12 = vunpack.c.3.s8 %v2685_v48 }
 0x2f7   : > { %1244 = vmatmul.f32.gmra.mxu2 %v726_v46  ;;  %1309 = vmatmul.f32.gmra.mxu3 %v663_v5  ;;  %v679_v46 = vcvt.s32.f32 %v551_v0  ;;  %v1534_v5 = vld [vmem:[%s2375_s14 + $0x80] sm:$0xff] }
 0x2f8   : > { %1632 = vperm.xlu1 %2147, %v1534_v5  }
 0x2fa   : > { %1434 = vmatmul.f32.gmra.mxu1 %v680_v25  ;;  %v1537_v25 = vld [vmem:[%s2375_s14 + $0x98] sm:$0xff] }
 0x2fb   : > { %v2666_v59 = vpop.f32.mrf.mxu3 }
 0x2fe   : > { %v1390_v45 = vpop.f32.mrf.mxu1 }
 0x2ff   : > { %1247 = vmatmul.f32.gmra.mxu2 %v730_v20  ;;  %1312 = vmatmul.f32.gmra.mxu3 %v667_v21  ;;  %v1532_v20 = vld [vmem:[%s2375_s14 + $0x70] sm:$0xff]  ;;  %v568_v21 = vunpack.c.3.s8 %v476_v40  ;;  %v572_v40 = vunpack.c.0.s8 %v2685_v48  ;;  %v1573_v48 = vpop.permute.xlu2 %1572 }
 0x300   : > { %1622 = vperm.xlu2 %2148, %v1532_v20   ;;  %1647 = vperm.xlu1 %2147, %v1537_v25  }
 0x301   : > { %v696_v30 = vcvt.s32.f32 %v568_v21  ;;  %v1487_v21 = vld [vmem:[#allocation2] sm:$0xff] }
 0x302   : > { %1437 = vmatmul.f32.gmra.mxu1 %v684_v49 }
 0x303   : > { %v2675_v58 = vpop.f32.mrf.mxu3 }
 0x306   : > { %v1393_v11 = vpop.f32.mrf.mxu1 }
 0x307   : > { %1250 = vmatmul.f32.gmra.mxu2 %v734_v32  ;;  %1315 = vmatmul.f32.gmra.mxu3 %v671_v36  ;;  %v559_v32 = vunpack.c.1.s8 %v2670_v41 }
 0x309   : > { %v687_v49 = vcvt.s32.f32 %v559_v32 }
 0x30a   : > { %1440 = vmatmul.f32.gmra.mxu1 %v688_v6  ;;  %v700_v6 = vcvt.s32.f32 %v572_v40  ;;  %v2705_v40 = vld [vmem:[%s2377_s15 + $0xb0] sm:$0xff] }
 0x30f   : > { %1253 = vmatmul.f32.gmra.mxu2 %v738_v35  ;;  %1318 = vmatmul.f32.gmra.mxu3 %v675_v54  ;;  %v2672_v14 = vpop.f32.mrf.mxu1  ;;  %v1540_v35 = vld [vmem:[%s2375_s14 + $0xb0] sm:$0xff] }
 0x310   : > { %1662 = vperm.xlu1 %2147, %v1540_v35   ;;  %v1545_v35 = vld [vmem:[%s2375_s14 + $0xd8] sm:$0xff] }
 0x312   : > { %1443 = vmatmul.f32.gmra.mxu1 %v692_v17  ;;  %v1542_v17 = vld [vmem:[%s2375_s14 + $0xc0] sm:$0xff] }
 0x313   : > { %1672 = vperm.xlu0 %2146, %v1542_v17   ;;  %v1548_v17 = vld [vmem:[%s2375_s14 + $0xf0] sm:$0xff] }
 0x317   : > { %1256 = vmatmul.f32.gmra.mxu2 %v742_v3  ;;  %1321 = vmatmul.f32.gmra.mxu3 %v679_v46  ;;  %v2680_v28 = vpop.f32.mrf.mxu1 }
 0x318   : > { %1677 = vperm.xlu1 %2147, %v1543_v16   ;;  %v1549_v16 = vld [vmem:[%s2375_s14 + $0xf8] sm:$0xff] }
 0x31a   : > { %1446 = vmatmul.f32.gmra.mxu1 %v696_v30  ;;  %v2700_v30 = vpop.f32.mrf.mxu2 }
 0x31b   : > { %1687 = vperm.xlu0 %2146, %v1545_v35  }
 0x31f   : > { %1324 = vmatmul.f32.gmra.mxu3 %v683_v55  ;;  %v2690_v56 = vpop.f32.mrf.mxu1 }
 0x322   : > { %v1277_v36 = vpop.f32.mrf.mxu3  ;;  %1449 = vmatmul.f32.gmra.mxu1 %v700_v6  ;;  %v1488_v6 = vld [vmem:[#allocation2 + $0xd8] sm:$0xff] }
 0x323   : > { %v1278_v44 = vadd.f32 %v1277_v36, %v2592_v61  ;;  %v563_v61 = vunpack.c.2.s8 %v2670_v41  ;;  %1702 = vperm.xlu0 %2146, %v1548_v17  }
 0x325   : > { %v1391_v54 = vadd.f32 %v1390_v45, %v1278_v44  ;;  %v691_v5 = vcvt.s32.f32 %v563_v61  ;;  %v1558_v45 = vpop.permute.xlu0 %1557  ;;  %v571_v61 = vunpack.c.0.s8 %v2705_v40 }
 0x327   : > { %v1710_v1 = vmul.f32 %v1553_v37, %v1391_v54  ;;  %1327 = vmatmul.f32.gmra.mxu3 %v687_v49  ;;  %v2697_v20 = vpop.f32.mrf.mxu1  ;;  %v1535_v49 = vld [vmem:[%s2375_s14 + $0x88] sm:$0xff]  ;;  %v1546_v54 = vld [vmem:[%s2375_s14 + $0xe0] sm:$0xff] }
 0x328   : > { %1637 = vperm.xlu2 %2148, %v1535_v49   ;;  %1692 = vperm.xlu1 %2147, %v1546_v54  }
 0x329   : > { %v1742_v0 = vadd.f32 %v1710_v1, %v1486_v19  ;;  %v708_v1 = vcvt.s32.f32 %v580_v43  ;;  %v1538_v43 = vld [vmem:[%s2375_s14 + $0xa0] sm:$0xff] }
 0x32a   : > { %v1280_v3 = vpop.f32.mrf.mxu3  ;;  %1452 = vmatmul.f32.gmra.mxu1 %v704_v22  ;;  %v1489_v22 = vld [vmem:[#allocation2 + $0x18] sm:$0xff] }
 0x32b   : > { %1774 = vst [vmem:[#allocation2 + $0xb0] sm:$0xff] %v1742_v0  ;;  %v1281_v46 = vadd.f32 %v1280_v3, %v2598_v13  ;;  %v567_v13 = vunpack.c.3.s8 %v2670_v41  ;;  %v2714_v3 = vpop.f32.mrf.mxu2 }
 0x32d   : > { %v1394_v55 = vadd.f32 %v1393_v11, %v1281_v46  ;;  %v1563_v11 = vpop.permute.xlu1 %1562  ;;  %v695_v44 = vcvt.s32.f32 %v567_v13 }
 0x32f   : > { %v1711_v25 = vmul.f32 %v1558_v45, %v1394_v55  ;;  %1330 = vmatmul.f32.gmra.mxu3 %v691_v5  ;;  %v2711_v19 = vpop.f32.mrf.mxu1  ;;  %v699_v5 = vcvt.s32.f32 %v571_v61 }
 0x330   : > { %1707 = vperm.xlu1 %2147, %v1549_v16   ;;  %1652 = vperm.xlu2 %2148, %v1538_v43   ;;  %v1491_v16 = vld [vmem:[#allocation2 + $0x68] sm:$0xff]  ;;  %v1492_v43 = vld [vmem:[#allocation2 + $0x30] sm:$0xff] }
 0x331   : > { %v1743_v32 = vadd.f32 %v1711_v25, %v1487_v21  ;;  %v712_v25 = vcvt.s32.f32 %v584_v12 }
 0x332   : > { %v1283_v36 = vpop.f32.mrf.mxu3  ;;  %1455 = vmatmul.f32.gmra.mxu1 %v708_v1 }
 0x333   : > { %1775 = vst [vmem:[#allocation2] sm:$0xff] %v1743_v32  ;;  %v1284_v37 = vadd.f32 %v1283_v36, %v2600_v23 }
 0x335   : > { %v1397_v41 = vadd.f32 %v2672_v14, %v1284_v37  ;;  %v1568_v45 = vpop.permute.xlu1 %1567  ;;  %v484_v37 = vld [vmem:[%s2377_s15 + $0xd8] sm:$0xff] }
 0x336   : > { %v588_v49 = vunpack.c.0.s8 %v484_v37 }
 0x337   : > { %v1712_v23 = vmul.f32 %v1563_v11, %v1397_v41  ;;  %1333 = vmatmul.f32.gmra.mxu3 %v695_v44  ;;  %v2721_v21 = vpop.f32.mrf.mxu1  ;;  %v2726_v44 = vpop.f32.mrf.mxu2  ;;  %v1490_v41 = vld [vmem:[#allocation2 + $0x50] sm:$0xff] }
 0x339   : > { %v1744_v0 = vadd.f32 %v1712_v23, %v1488_v6  ;;  %v716_v6 = vcvt.s32.f32 %v588_v49  ;;  %v579_v23 = vunpack.c.2.s8 %v2705_v40 }
 0x33a   : > { %v1286_v46 = vpop.f32.mrf.mxu3  ;;  %1458 = vmatmul.f32.gmra.mxu1 %v712_v25  ;;  %v583_v25 = vunpack.c.3.s8 %v2705_v40 }
 0x33b   : > { %1776 = vst [vmem:[#allocation2 + $0xd8] sm:$0xff] %v1744_v0  ;;  %v1287_v14 = vadd.f32 %v1286_v46, %v2606_v38  ;;  %v575_v38 = vunpack.c.1.s8 %v2705_v40  ;;  %v707_v46 = vcvt.s32.f32 %v579_v23 }
 0x33d   : > { %v1400_v55 = vadd.f32 %v2680_v28, %v1287_v14  ;;  %v703_v28 = vcvt.s32.f32 %v575_v38  ;;  %v1578_v14 = vpop.permute.xlu2 %1577 }
 0x33f   : > { %v1713_v13 = vmul.f32 %v1568_v45, %v1400_v55  ;;  %1336 = vmatmul.f32.gmra.mxu3 %v699_v5  ;;  %v2730_v54 = vpop.f32.mrf.mxu1  ;;  %v592_v5 = vunpack.c.1.s8 %v484_v37  ;;  %v2738_v17 = vpop.f32.mrf.mxu2 }
 0x341   : > { %v1745_v32 = vadd.f32 %v1713_v13, %v1489_v22  ;;  %v720_v55 = vcvt.s32.f32 %v592_v5  ;;  %v1493_v5 = vld [vmem:[#allocation2 + $0x48] sm:$0xff] }
 0x342   : > { %v1289_v36 = vpop.f32.mrf.mxu3  ;;  %1461 = vmatmul.f32.gmra.mxu1 %v716_v6 }
 0x343   : > { %1777 = vst [vmem:[#allocation2 + $0x18] sm:$0xff] %v1745_v32  ;;  %v1290_v11 = vadd.f32 %v1289_v36, %v2611_v53  ;;  %v1583_v32 = vpop.permute.xlu0 %1582  ;;  %v2743_v36 = vld [vmem:[%s2377_s15 + $0xd0] sm:$0xff] }
 0x345   : > { %v1403_v35 = vadd.f32 %v2690_v56, %v1290_v11  ;;  %v1541_v56 = vld [vmem:[%s2375_s14 + $0xb8] sm:$0xff]  ;;  %v1544_v11 = vld [vmem:[%s2375_s14 + $0xd0] sm:$0xff] }
 0x346   : > { %1667 = vperm.xlu2 %2148, %v1541_v56  }
 0x347   : > { %v1714_v1 = vmul.f32 %v1573_v48, %v1403_v35  ;;  %1339 = vmatmul.f32.gmra.mxu3 %v703_v28  ;;  %v2736_v12 = vpop.f32.mrf.mxu1  ;;  %v596_v48 = vunpack.c.2.s8 %v484_v37  ;;  %v2750_v6 = vpop.f32.mrf.mxu2 }
 0x349   : > { %v1746_v53 = vadd.f32 %v1714_v1, %v1490_v41  ;;  %v724_v40 = vcvt.s32.f32 %v596_v48  ;;  %v587_v41 = vunpack.c.0.s8 %v2743_v36  ;;  %v1494_v48 = vld [vmem:[#allocation2 + $0x80] sm:$0xff] }
 0x34a   : > { %v1292_v61 = vpop.f32.mrf.mxu3  ;;  %1464 = vmatmul.f32.gmra.mxu1 %v720_v55 }
 0x34b   : > { %1778 = vst [vmem:[#allocation2 + $0x50] sm:$0xff] %v1746_v53  ;;  %v1293_v0 = vadd.f32 %v1292_v61, %v2620_v63  ;;  %v715_v53 = vcvt.s32.f32 %v587_v41  ;;  %v600_v61 = vunpack.c.3.s8 %v484_v37 }
 0x34d   : > { %v1406_v45 = vadd.f32 %v2697_v20, %v1293_v0  ;;  %v711_v20 = vcvt.s32.f32 %v583_v25  ;;  %v1547_v0 = vld [vmem:[%s2375_s14 + $0xe8] sm:$0xff]  ;;  %v728_v56 = vcvt.s32.f32 %v600_v61 }
 0x34e   : > { %1682 = vperm.xlu2 %2148, %v1544_v11  }
 0x34f   : > { %v1715_v22 = vmul.f32 %v1578_v14, %v1406_v45  ;;  %1342 = vmatmul.f32.gmra.mxu3 %v707_v46  ;;  %v2747_v49 = vpop.f32.mrf.mxu1 }
 0x351   : > { %v1747_v63 = vadd.f32 %v1715_v22, %v1491_v16  ;;  %v591_v16 = vunpack.c.1.s8 %v2743_v36  ;;  %v2760_v22 = vpop.f32.mrf.mxu2 }
 0x352   : > { %v1295_v13 = vpop.f32.mrf.mxu3  ;;  %1467 = vmatmul.f32.gmra.mxu1 %v724_v40 }
 0x353   : > { %1779 = vst [vmem:[#allocation2 + $0x68] sm:$0xff] %v1747_v63  ;;  %v1296_v38 = vadd.f32 %v1295_v13, %v2627_v10  ;;  %v719_v25 = vcvt.s32.f32 %v591_v16  ;;  %v488_v63 = vld [vmem:[%s2377_s15 + $0xf8] sm:$0xff]  ;;  %v1593_v13 = vpop.permute.xlu2 %1592 }
 0x355   : > { %v1409_v28 = vadd.f32 %v2711_v19, %v1296_v38  ;;  %v1588_v19 = vpop.permute.xlu1 %1587  ;;  %v604_v38 = vunpack.c.0.s8 %v488_v63 }
 0x356   : > { %1697 = vperm.xlu2 %2148, %v1547_v0  }
 0x357   : > { %v1716_v35 = vmul.f32 %v1583_v32, %v1409_v28  ;;  %1345 = vmatmul.f32.gmra.mxu3 %v711_v20  ;;  %v2755_v14 = vpop.f32.mrf.mxu1  ;;  %v732_v11 = vcvt.s32.f32 %v604_v38 }
 0x359   : > { %v1748_v10 = vadd.f32 %v1716_v35, %v1492_v43 }
 0x35a   : > { %v1298_v1 = vpop.f32.mrf.mxu3  ;;  %1470 = vmatmul.f32.gmra.mxu1 %v728_v56 }
 0x35b   : > { %1780 = vst [vmem:[#allocation2 + $0x30] sm:$0xff] %v1748_v10  ;;  %v1299_v23 = vadd.f32 %v1298_v1, %v2634_v26  ;;  %v1189_v26 = vadd.f32 %v2700_v30, %v2614_v57  ;;  %v595_v57 = vunpack.c.2.s8 %v2743_v36  ;;  %v1192_v30 = vadd.f32 %v2714_v3, %v2622_v4  ;;  %v2769_v10 = vpop.f32.mrf.mxu2 }
 0x35c   : > { %v608_v1 = vunpack.c.1.s8 %v488_v63  ;;  %v599_v4 = vunpack.c.3.s8 %v2743_v36  ;;  %v1195_v3 = vadd.f32 %v2726_v44, %v2631_v18  ;;  %v1198_v18 = vadd.f32 %v2738_v17, %v2638_v34 }
 0x35d   : > { %v1412_v46 = vadd.f32 %v2721_v21, %v1299_v23  ;;  %v723_v41 = vcvt.s32.f32 %v595_v57  ;;  %v1603_v16 = vpop.permute.xlu1 %1602  ;;  %v616_v57 = vunpack.c.3.s8 %v488_v63  ;;  %v1201_v34 = vadd.f32 %v2750_v6, %v2642_v50 }
 0x35e   : > { %v736_v61 = vcvt.s32.f32 %v608_v1 }
 0x35f   : > { %v1717_v45 = vmul.f32 %v1588_v19, %v1412_v46  ;;  %1348 = vmatmul.f32.gmra.mxu3 %v715_v53  ;;  %v2764_v32 = vpop.f32.mrf.mxu1  ;;  %v1495_v19 = vld [vmem:[#allocation2 + $0x88] sm:$0xff] }
 0x361   : > { %v1749_v55 = vadd.f32 %v1717_v45, %v1493_v5  ;;  %v727_v45 = vcvt.s32.f32 %v599_v4 }
 0x362   : > { %v1301_v37 = vpop.f32.mrf.mxu3  ;;  %1473 = vmatmul.f32.gmra.mxu1 %v732_v11 }
 0x363   : > { %1781 = vst [vmem:[#allocation2 + $0x48] sm:$0xff] %v1749_v55  ;;  %v1302_v21 = vadd.f32 %v1301_v37, %v1189_v26  ;;  %v487_v26 = vld [vmem:[%s2377_s15 + $0xf0] sm:$0xff] }
 0x364   : > { %v603_v38 = vunpack.c.0.s8 %v487_v26 }
 0x365   : > { %v1415_v20 = vadd.f32 %v2730_v54, %v1302_v21  ;;  %v1598_v54 = vpop.permute.xlu0 %1597  ;;  %v2779_v21 = vpop.f32.mrf.mxu2 }
 0x366   : > { %v731_v11 = vcvt.s32.f32 %v603_v38 }
 0x367   : > { %v1718_v28 = vmul.f32 %v1593_v13, %v1415_v20  ;;  %1351 = vmatmul.f32.gmra.mxu3 %v719_v25  ;;  %v2772_v53 = vpop.f32.mrf.mxu1  ;;  %v1496_v25 = vld [vmem:[#allocation2 + $0xe8] sm:$0xff] }
 0x369   : > { %v1750_v43 = vadd.f32 %v1718_v28, %v1494_v48  ;;  %v1608_v28 = vpop.permute.xlu2 %1607 }
 0x36a   : > { %v1304_v40 = vpop.f32.mrf.mxu3  ;;  %1476 = vmatmul.f32.gmra.mxu1 %v736_v61 }
 0x36b   : > { %1782 = vst [vmem:[#allocation2 + $0x80] sm:$0xff] %v1750_v43  ;;  %v1305_v35 = vadd.f32 %v1304_v40, %v1192_v30  ;;  %v1497_v43 = vld [vmem:[#allocation2 + $0xb8] sm:$0xff]  ;;  %v744_v40 = vcvt.s32.f32 %v616_v57  ;;  %v1210_v57 = vadd.f32 %v2779_v21, %v2659_v24 }
 0x36d   : > { %v1418_v23 = vadd.f32 %v2736_v12, %v1305_v35  ;;  %v612_v12 = vunpack.c.2.s8 %v488_v63  ;;  %v1613_v61 = vpop.permute.xlu0 %1612 }
 0x36f   : > { %v1719_v0 = vmul.f32 %v1598_v54, %v1418_v23  ;;  %1354 = vmatmul.f32.gmra.mxu3 %v723_v41  ;;  %v1432_v37 = vpop.f32.mrf.mxu1  ;;  %v740_v13 = vcvt.s32.f32 %v612_v12  ;;  %v607_v41 = vunpack.c.1.s8 %v487_v26  ;;  %v1212_v54 = vpop.f32.mrf.mxu2 }
 0x371   : > { %v1751_v46 = vadd.f32 %v1719_v0, %v1495_v19  ;;  %v735_v19 = vcvt.s32.f32 %v607_v41  ;;  %v1498_v0 = vld [vmem:[#allocation2 + $0x60] sm:$0xff] }
 0x372   : > { %v1307_v5 = vpop.f32.mrf.mxu3  ;;  %1479 = vmatmul.f32.gmra.mxu1 %v740_v13  ;;  %v615_v13 = vunpack.c.3.s8 %v487_v26 }
 0x373   : > { %1783 = vst [vmem:[#allocation2 + $0x88] sm:$0xff] %v1751_v46  ;;  %v1308_v56 = vadd.f32 %v1307_v5, %v1195_v3  ;;  %v611_v3 = vunpack.c.2.s8 %v487_v26  ;;  %v1204_v46 = vadd.f32 %v2760_v22, %v2647_v60 }
 0x374   : > { %v743_v22 = vcvt.s32.f32 %v615_v13  ;;  %v1504_v13 = vld [vmem:[#allocation2 + $0x40] sm:$0xff] }
 0x375   : > { %v1421_v55 = vadd.f32 %v2747_v49, %v1308_v56  ;;  %v739_v6 = vcvt.s32.f32 %v611_v3 }
 0x377   : > { %v1720_v36 = vmul.f32 %v1603_v16, %v1421_v55  ;;  %1357 = vmatmul.f32.gmra.mxu3 %v727_v45  ;;  %v1435_v30 = vpop.f32.mrf.mxu1  ;;  %v1215_v56 = vpop.f32.mrf.mxu2  ;;  %v1499_v55 = vld [vmem:[#allocation2 + $0xf0] sm:$0xff] }
 0x378   : > { %v1618_v16 = vpop.permute.xlu1 %1617 }
 0x379   : > { %v1752_v44 = vadd.f32 %v1720_v36, %v1496_v25  ;;  %v1207_v36 = vadd.f32 %v2769_v10, %v2654_v9  ;;  %v1628_v9 = vpop.permute.xlu0 %1627 }
 0x37a   : > { %v1310_v20 = vpop.f32.mrf.mxu3  ;;  %1482 = vmatmul.f32.gmra.mxu1 %v744_v40 }
 0x37b   : > { %1784 = vst [vmem:[#allocation2 + $0xe8] sm:$0xff] %v1752_v44  ;;  %v1311_v48 = vadd.f32 %v1310_v20, %v1198_v18  ;;  %v1623_v20 = vpop.permute.xlu2 %1622 }
 0x37d   : > { %v1424_v49 = vadd.f32 %v2755_v14, %v1311_v48 }
 0x37f   : > { %v1721_v35 = vmul.f32 %v1608_v28, %v1424_v49  ;;  %1360 = vmatmul.f32.gmra.mxu3 %v731_v11  ;;  %v1438_v14 = vpop.f32.mrf.mxu1  ;;  %v1218_v44 = vpop.f32.mrf.mxu2  ;;  %v1500_v11 = vld [vmem:[#allocation2 + $0x8] sm:$0xff] }
 0x381   : > { %v1753_v17 = vadd.f32 %v1721_v35, %v1497_v43  ;;  %v1501_v35 = vld [vmem:[#allocation2 + $0x78] sm:$0xff] }
 0x382   : > { %v1313_v1 = vpop.f32.mrf.mxu3 }
 0x383   : > { %1785 = vst [vmem:[#allocation2 + $0xb8] sm:$0xff] %v1753_v17  ;;  %v1314_v23 = vadd.f32 %v1313_v1, %v1201_v34  ;;  %v1213_v34 = vadd.f32 %v1212_v54, %v2567_v33  ;;  %v1503_v33 = vld [vmem:[#allocation2 + $0x58] sm:$0xff] }
 0x385   : > { %v1427_v63 = vadd.f32 %v2764_v32, %v1314_v23 }
 0x387   : > { %v1722_v4 = vmul.f32 %v1613_v61, %v1427_v63  ;;  %1363 = vmatmul.f32.gmra.mxu3 %v735_v19  ;;  %v1441_v25 = vpop.f32.mrf.mxu1  ;;  %v1221_v40 = vpop.f32.mrf.mxu2  ;;  %v1502_v63 = vld [vmem:[#allocation2 + $0x38] sm:$0xff] }
 0x388   : > { %v1633_v19 = vpop.permute.xlu1 %1632 }
 0x389   : > { %v1754_v5 = vadd.f32 %v1722_v4, %v1498_v0  ;;  %v1216_v0 = vadd.f32 %v1215_v56, %v2572_v42 }
 0x38a   : > { %v1316_v45 = vpop.f32.mrf.mxu3 }
 0x38b   : > { %1786 = vst [vmem:[#allocation2 + $0x60] sm:$0xff] %v1754_v5  ;;  %v1317_v50 = vadd.f32 %v1316_v45, %v1204_v46  ;;  %v1638_v46 = vpop.permute.xlu2 %1637 }
 0x38d   : > { %v1430_v12 = vadd.f32 %v2772_v53, %v1317_v50  ;;  %v1219_v50 = vadd.f32 %v1218_v44, %v2582_v27  ;;  %v1505_v27 = vld [vmem:[#allocation2 + $0xc8] sm:$0xff] }
 0x38f   : > { %v1723_v32 = vmul.f32 %v1618_v16, %v1430_v12  ;;  %1366 = vmatmul.f32.gmra.mxu3 %v739_v6  ;;  %v1444_v53 = vpop.f32.mrf.mxu1  ;;  %v1224_v21 = vpop.f32.mrf.mxu2 }
 0x391   : > { %v1755_v38 = vadd.f32 %v1723_v32, %v1499_v55  ;;  %v1643_v32 = vpop.permute.xlu0 %1642 }
 0x392   : > { %v1319_v18 = vpop.f32.mrf.mxu3 }
 0x393   : > { %1787 = vst [vmem:[#allocation2 + $0xf0] sm:$0xff] %v1755_v38  ;;  %v1320_v60 = vadd.f32 %v1319_v18, %v1207_v36  ;;  %v1222_v36 = vadd.f32 %v1221_v40, %v2589_v2  ;;  %v1506_v2 = vld [vmem:[#allocation2 + $0xe0] sm:$0xff] }
 0x395   : > { %v1433_v48 = vadd.f32 %v1432_v37, %v1320_v60 }
 0x397   : > { %v1724_v28 = vmul.f32 %v1623_v20, %v1433_v48  ;;  %1369 = vmatmul.f32.gmra.mxu3 %v743_v22  ;;  %v1447_v1 = vpop.f32.mrf.mxu1  ;;  %v1227_v16 = vpop.f32.mrf.mxu2 }
 0x398   : > { %v1648_v20 = vpop.permute.xlu1 %1647 }
 0x399   : > { %v1756_v49 = vadd.f32 %v1724_v28, %v1500_v11  ;;  %v1225_v11 = vadd.f32 %v1224_v21, %v2595_v8 }
 0x39a   : > { %v1322_v26 = vpop.f32.mrf.mxu3 }
 0x39b   : > { %1788 = vst [vmem:[#allocation2 + $0x8] sm:$0xff] %v1756_v49  ;;  %v1323_v43 = vadd.f32 %v1322_v26, %v1210_v57 }
 0x39d   : > { %v1436_v10 = vadd.f32 %v1435_v30, %v1323_v43  ;;  %v1653_v43 = vpop.permute.xlu2 %1652 }
 0x39f   : > { %v1725_v41 = vmul.f32 %v1628_v9, %v1436_v10  ;;  %v1450_v5 = vpop.f32.mrf.mxu1  ;;  %v1230_v60 = vpop.f32.mrf.mxu2  ;;  %v1228_v10 = vadd.f32 %v1227_v16, %v2604_v29  ;;  %v1508_v29 = vld [vmem:[#allocation2 + $0x70] sm:$0xff] }
 0x3a1   : > { %v1757_v17 = vadd.f32 %v1725_v41, %v1501_v35 }
 0x3a2   : > { %v1325_v37 = vpop.f32.mrf.mxu3 }
 0x3a3   : > { %1789 = vst [vmem:[#allocation2 + $0x78] sm:$0xff] %v1757_v17  ;;  %v1326_v23 = vadd.f32 %v1325_v37, %v1213_v34  ;;  %v1658_v37 = vpop.permute.xlu0 %1657 }
 0x3a5   : > { %v1439_v61 = vadd.f32 %v1438_v14, %v1326_v23 }
 0x3a7   : > { %v1726_v24 = vmul.f32 %v1633_v19, %v1439_v61  ;;  %v1453_v42 = vpop.f32.mrf.mxu1  ;;  %v1233_v26 = vpop.f32.mrf.mxu2  ;;  %v1231_v19 = vadd.f32 %v1230_v60, %v2608_v47 }
 0x3a9   : > { %v1758_v4 = vadd.f32 %v1726_v24, %v1502_v63 }
 0x3aa   : > { %v1328_v3 = vpop.f32.mrf.mxu3 }
 0x3ab   : > { %1790 = vst [vmem:[#allocation2 + $0x38] sm:$0xff] %v1758_v4  ;;  %v1329_v30 = vadd.f32 %v1328_v3, %v1216_v0  ;;  %v1663_v4 = vpop.permute.xlu1 %1662 }
 0x3ad   : > { %v1442_v45 = vadd.f32 %v1441_v25, %v1329_v30  ;;  %v1234_v30 = vadd.f32 %v1233_v26, %v2616_v62  ;;  %v1510_v62 = vld [vmem:[#allocation2 + $0xa8] sm:$0xff] }
 0x3af   : > { %v1727_v54 = vmul.f32 %v1638_v46, %v1442_v45  ;;  %v1456_v48 = vpop.f32.mrf.mxu1  ;;  %v1236_v23 = vpop.f32.mrf.mxu2 }
 0x3b1   : > { %v1759_v6 = vadd.f32 %v1727_v54, %v1503_v33 }
 0x3b2   : > { %v1331_v12 = vpop.f32.mrf.mxu3 }
 0x3b3   : > { %1791 = vst [vmem:[#allocation2 + $0x58] sm:$0xff] %v1759_v6  ;;  %v1332_v14 = vadd.f32 %v1331_v12, %v1219_v50  ;;  %v1668_v50 = vpop.permute.xlu2 %1667  ;;  %v1509_v6 = vld [vmem:[#allocation2 + $0xc0] sm:$0xff]  ;;  %v1237_v12 = vadd.f32 %v1236_v23, %v2624_v7  ;;  %v1511_v7 = vld [vmem:[#allocation2 + $0xd0] sm:$0xff] }
 0x3b5   : > { %v1445_v55 = vadd.f32 %v1444_v53, %v1332_v14 }
 0x3b7   : > { %v1728_v56 = vmul.f32 %v1643_v32, %v1445_v55  ;;  %v1459_v41 = vpop.f32.mrf.mxu1 }
 0x3b9   : > { %v1760_v38 = vadd.f32 %v1728_v56, %v1504_v13  ;;  %v1673_v56 = vpop.permute.xlu0 %1672 }
 0x3ba   : > { %v1334_v18 = vpop.f32.mrf.mxu3 }
 0x3bb   : > { %1792 = vst [vmem:[#allocation2 + $0x40] sm:$0xff] %v1760_v38  ;;  %v1335_v25 = vadd.f32 %v1334_v18, %v1222_v36 }
 0x3bd   : > { %v1448_v22 = vadd.f32 %v1447_v1, %v1335_v25  ;;  %v1507_v1 = vld [vmem:[#allocation2 + $0x90] sm:$0xff] }
 0x3bf   : > { %v1729_v44 = vmul.f32 %v1648_v20, %v1448_v22  ;;  %v1462_v21 = vpop.f32.mrf.mxu1 }
 0x3c1   : > { %v1761_v28 = vadd.f32 %v1729_v44, %v1505_v27  ;;  %v1678_v44 = vpop.permute.xlu1 %1677 }
 0x3c2   : > { %v1337_v53 = vpop.f32.mrf.mxu3 }
 0x3c3   : > { %1793 = vst [vmem:[#allocation2 + $0xc8] sm:$0xff] %v1761_v28  ;;  %v1338_v57 = vadd.f32 %v1337_v53, %v1225_v11 }
 0x3c5   : > { %v1451_v49 = vadd.f32 %v1450_v5, %v1338_v57  ;;  %v1239_v5 = vpop.f32.mrf.mxu2 }
 0x3c6   : > { %v1240_v18 = vadd.f32 %v1239_v5, %v2636_v31 }
 0x3c7   : > { %v1730_v9 = vmul.f32 %v1653_v43, %v1451_v49  ;;  %v1465_v47 = vpop.f32.mrf.mxu1  ;;  %v1683_v43 = vpop.permute.xlu2 %1682 }
 0x3c9   : > { %v1762_v40 = vadd.f32 %v1730_v9, %v1506_v2  ;;  %v1512_v2 = vld [vmem:[#allocation2 + $0x10] sm:$0xff] }
 0x3ca   : > { %v1340_v35 = vpop.f32.mrf.mxu3 }
 0x3cb   : > { %1794 = vst [vmem:[#allocation2 + $0xe0] sm:$0xff] %v1762_v40  ;;  %v1341_v34 = vadd.f32 %v1340_v35, %v1228_v10 }
 0x3cd   : > { %v1454_v17 = vadd.f32 %v1453_v42, %v1341_v34  ;;  %v1242_v13 = vpop.f32.mrf.mxu2 }
 0x3ce   : > { %v1243_v11 = vadd.f32 %v1242_v13, %v2644_v51  ;;  %v1513_v51 = vld [vmem:[#allocation2 + $0x28] sm:$0xff] }
 0x3cf   : > { %v1731_v8 = vmul.f32 %v1658_v37, %v1454_v17  ;;  %v1468_v38 = vpop.f32.mrf.mxu1  ;;  %v1688_v37 = vpop.permute.xlu0 %1687 }
 0x3d1   : > { %v1763_v61 = vadd.f32 %v1731_v8, %v1507_v1 }
 0x3d2   : > { %v1343_v63 = vpop.f32.mrf.mxu3 }
 0x3d3   : > { %1795 = vst [vmem:[#allocation2 + $0x90] sm:$0xff] %v1763_v61  ;;  %v1344_v24 = vadd.f32 %v1343_v63, %v1231_v19 }
 0x3d5   : > { %v1457_v0 = vadd.f32 %v1456_v48, %v1344_v24  ;;  %v1245_v27 = vpop.f32.mrf.mxu2 }
 0x3d6   : > { %v1246_v10 = vadd.f32 %v1245_v27, %v2649_v52 }
 0x3d7   : > { %v1732_v3 = vmul.f32 %v1663_v4, %v1457_v0  ;;  %v1471_v57 = vpop.f32.mrf.mxu1  ;;  %v1514_v0 = vld [vmem:[#allocation2 + $0xa0] sm:$0xff] }
 0x3d9   : > { %v1764_v46 = vadd.f32 %v1732_v3, %v1508_v29 }
 0x3da   : > { %v1346_v45 = vpop.f32.mrf.mxu3 }
 0x3db   : > { %1796 = vst [vmem:[#allocation2 + $0x70] sm:$0xff] %v1764_v46  ;;  %v1347_v33 = vadd.f32 %v1346_v45, %v1234_v30 }
 0x3dd   : > { %v1460_v54 = vadd.f32 %v1459_v41, %v1347_v33  ;;  %v1248_v9 = vpop.f32.mrf.mxu2  ;;  %v1698_v33 = vpop.permute.xlu2 %1697 }
 0x3de   : > { %v1249_v8 = vadd.f32 %v1248_v9, %v2656_v15  ;;  %v1515_v15 = vld [vmem:[#allocation2 + $0xf8] sm:$0xff] }
 0x3df   : > { %v1733_v16 = vmul.f32 %v1668_v50, %v1460_v54  ;;  %v1474_v34 = vpop.f32.mrf.mxu1 }
 0x3e1   : > { %v1765_v14 = vadd.f32 %v1733_v16, %v1509_v6 }
 0x3e2   : > { %v1349_v55 = vpop.f32.mrf.mxu3 }
 0x3e3   : > { %1797 = vst [vmem:[#allocation2 + $0xc0] sm:$0xff] %v1765_v14  ;;  %v1350_v32 = vadd.f32 %v1349_v55, %v1237_v12 }
 0x3e5   : > { %v1463_v42 = vadd.f32 %v1462_v21, %v1350_v32  ;;  %v1251_v19 = vpop.f32.mrf.mxu2  ;;  %v1693_v21 = vpop.permute.xlu1 %1692 }
 0x3e6   : > { %v1252_v29 = vadd.f32 %v1251_v19, %v2663_v39  ;;  %v1703_v32 = vpop.permute.xlu0 %1702  ;;  %v1516_v39 = vld [vmem:[#allocation2 + $0x20] sm:$0xff] }
 0x3e7   : > { %v1734_v36 = vmul.f32 %v1673_v56, %v1463_v42  ;;  %v1477_v52 = vpop.f32.mrf.mxu1 }
 0x3e9   : > { %v1766_v25 = vadd.f32 %v1734_v36, %v1510_v62 }
 0x3ea   : > { %v1352_v60 = vpop.f32.mrf.mxu3 }
 0x3eb   : > { %1798 = vst [vmem:[#allocation2 + $0xa8] sm:$0xff] %v1766_v25  ;;  %v1353_v22 = vadd.f32 %v1352_v60, %v1240_v18  ;;  %v1517_v60 = vld [vmem:[#allocation2 + $0x98] sm:$0xff] }
 0x3ed   : > { %v1466_v20 = vadd.f32 %v1465_v47, %v1353_v22  ;;  %v1254_v5 = vpop.f32.mrf.mxu2  ;;  %v1708_v25 = vpop.permute.xlu1 %1707 }
 0x3ee   : > { %v1255_v6 = vadd.f32 %v1254_v5, %v2666_v59 }
 0x3ef   : > { %v1735_v48 = vmul.f32 %v1678_v44, %v1466_v20  ;;  %v1480_v50 = vpop.f32.mrf.mxu1 }
 0x3f1   : > { %v1767_v28 = vadd.f32 %v1735_v48, %v1511_v7 }
 0x3f2   : > { %v1355_v53 = vpop.f32.mrf.mxu3 }
 0x3f3   : > { %1799 = vst [vmem:[#allocation2 + $0xd0] sm:$0xff] %v1767_v28  ;;  %v1356_v49 = vadd.f32 %v1355_v53, %v1243_v11 }
 0x3f5   : > { %v1469_v26 = vadd.f32 %v1468_v38, %v1356_v49  ;;  %v1257_v55 = vpop.f32.mrf.mxu2 }
 0x3f6   : > { %v1258_v42 = vadd.f32 %v1257_v55, %v2675_v58 }
 0x3f7   : > { %v1736_v31 = vmul.f32 %v1683_v43, %v1469_v26  ;;  %v1483_v36 = vpop.f32.mrf.mxu1 }
 0x3f9   : > { %v1768_v40 = vadd.f32 %v1736_v31, %v1512_v2 }
 0x3fa   : > { %v1358_v35 = vpop.f32.mrf.mxu3 }
 0x3fb   : > { %1800 = vst [vmem:[#allocation2 + $0x10] sm:$0xff] %v1768_v40  ;;  %v1359_v41 = vadd.f32 %v1358_v35, %v1246_v10 }
 0x3fd   : > { %v1472_v17 = vadd.f32 %v1471_v57, %v1359_v41 }
 0x3ff   : > { %v1737_v1 = vmul.f32 %v1688_v37, %v1472_v17 }
 0x401   : > { %v1769_v23 = vadd.f32 %v1737_v1, %v1513_v51 }
 0x402   : > { %v1361_v61 = vpop.f32.mrf.mxu3 }
 0x403   : > { %1801 = vst [vmem:[#allocation2 + $0x28] sm:$0xff] %v1769_v23  ;;  %v1362_v63 = vadd.f32 %v1361_v61, %v1249_v8 }
 0x405   : > { %v1475_v24 = vadd.f32 %v1474_v34, %v1362_v63 }
 0x407   : > { %v1738_v4 = vmul.f32 %v1693_v21, %v1475_v24 }
 0x409   : > { %v1770_v3 = vadd.f32 %v1738_v4, %v1514_v0 }
 0x40a   : > { %v1364_v30 = vpop.f32.mrf.mxu3 }
 0x40b   : > { %1802 = vst [vmem:[#allocation2 + $0xa0] sm:$0xff] %v1770_v3  ;;  %v1365_v46 = vadd.f32 %v1364_v30, %v1252_v29 }
 0x40d   : > { %v1478_v45 = vadd.f32 %v1477_v52, %v1365_v46 }
 0x40f   : > { %v1739_v54 = vmul.f32 %v1698_v33, %v1478_v45 }
 0x411   : > { %v1771_v47 = vadd.f32 %v1739_v54, %v1515_v15 }
 0x412   : > { %v1367_v16 = vpop.f32.mrf.mxu3 }
 0x413   : > { %1803 = vst [vmem:[#allocation2 + $0xf8] sm:$0xff] %v1771_v47  ;;  %v1368_v12 = vadd.f32 %v1367_v16, %v1255_v6 }
 0x415   : > { %v1481_v14 = vadd.f32 %v1480_v50, %v1368_v12 }
 0x417   : > { %v1740_v13 = vmul.f32 %v1703_v32, %v1481_v14 }
 0x419   : > { %v1772_v56 = vadd.f32 %v1740_v13, %v1516_v39 }
 0x41a   : > { %v1370_v62 = vpop.f32.mrf.mxu3 }
 0x41b   : > { %1804 = vst [vmem:[#allocation2 + $0x20] sm:$0xff] %v1772_v56  ;;  %v1371_v38 = vadd.f32 %v1370_v62, %v1258_v42 }
 0x41d   : > { %v1484_v18 = vadd.f32 %v1483_v36, %v1371_v38 }
 0x41f   : > { %v1741_v59 = vmul.f32 %v1708_v25, %v1484_v18  ;;  %1809 = sbr.rel (%p2064_p13) target bundleno = 1097 (0x449), region = 71 }
 0x421   : > { %v1773_v22 = vadd.f32 %v1741_v59, %v1517_v60 }
 0x423   : > { %1805 = vst [vmem:[#allocation2 + $0x98] sm:$0xff] %v1773_v22 }
 0x424   : > { %v1810_v20 = vld [vmem:[#allocation2 + $0xb0] sm:$0xff]  ;;  %v2814_v27 = vld [vmem:[%s2964_s5] ss:$0 sm:$0xff]  ;;  %v1812_v44 = vld [vmem:[#allocation2 + $0xd8] sm:$0xff] }
 0x425   : > { %v1811_v58 = vld [vmem:[#allocation2] sm:$0xff]  ;;  %v1813_v7 = vld [vmem:[#allocation2 + $0x18] sm:$0xff]  ;;  %v1846_v48 = vadd.f32 %v2814_v27, %v1810_v20  ;;  %v1848_v28 = vadd.f32 %v2814_v27, %v1812_v44  ;;  %v1814_v57 = vld [vmem:[#allocation2 + $0x50] sm:$0xff] }
 0x426   : > { %v1847_v11 = vadd.f32 %v2814_v27, %v1811_v58  ;;  %v1849_v53 = vadd.f32 %v2814_v27, %v1813_v7  ;;  %v1815_v49 = vld [vmem:[#allocation2 + $0x68] sm:$0xff]  ;;  %v1816_v26 = vld [vmem:[#allocation2 + $0x30] sm:$0xff]  ;;  %v1850_v43 = vadd.f32 %v2814_v27, %v1814_v57  ;;  %v1818_v9 = vld [vmem:[#allocation2 + $0x80] sm:$0xff] }
 0x427   : > { %v1851_v2 = vadd.f32 %v2814_v27, %v1815_v49  ;;  %v1817_v31 = vld [vmem:[#allocation2 + $0x48] sm:$0xff]  ;;  %v1878_v10 = vmax.f32 %v1846_v48, 0.0  ;;  %v1880_v35 = vmax.f32 %v1848_v28, 0.0  ;;  %v1852_v41 = vadd.f32 %v2814_v27, %v1816_v26  ;;  %v1821_v23 = vld [vmem:[#allocation2 + $0xb8] sm:$0xff]  ;;  %v1822_v63 = vld [vmem:[#allocation2 + $0x60] sm:$0xff] }
 0x428   : > { %v1879_v40 = vmax.f32 %v1847_v11, 0.0  ;;  %v1819_v34 = vld [vmem:[#allocation2 + $0x88] sm:$0xff]  ;;  %v1881_v17 = vmax.f32 %v1849_v53, 0.0  ;;  %v1853_v37 = vadd.f32 %v2814_v27, %v1817_v31  ;;  %v1882_v1 = vmax.f32 %v1850_v43, 0.0  ;;  %v1823_v0 = vld [vmem:[#allocation2 + $0xf0] sm:$0xff]  ;;  %v1825_v46 = vld [vmem:[#allocation2 + $0x78] sm:$0xff] }
 0x429   : > { %v1820_v51 = vld [vmem:[#allocation2 + $0xe8] sm:$0xff]  ;;  %1910 = vst [vmem:[%s2965_s6] sm:$0xff] %v1878_v10  ;;  %v1854_v8 = vadd.f32 %v2814_v27, %v1818_v9  ;;  %v1883_v19 = vmax.f32 %v1851_v2, 0.0  ;;  %v1855_v61 = vadd.f32 %v2814_v27, %v1819_v34  ;;  %v1884_v24 = vmax.f32 %v1852_v41, 0.0  ;;  %v1826_v33 = vld [vmem:[#allocation2 + $0x38] sm:$0xff]  ;;  %v1828_v16 = vld [vmem:[#allocation2 + $0x40] sm:$0xff] }
 0x42a   : > { %1911 = vst [vmem:[%s2965_s6 + $0x8] sm:$0xff] %v1879_v40  ;;  %v1856_v21 = vadd.f32 %v2814_v27, %v1820_v51  ;;  %v1885_v52 = vmax.f32 %v1853_v37, 0.0  ;;  %v1857_v4 = vadd.f32 %v2814_v27, %v1821_v23  ;;  %v1824_v29 = vld [vmem:[#allocation2 + $0x8] sm:$0xff]  ;;  %v1858_v30 = vadd.f32 %v2814_v27, %v1822_v63  ;;  %v1827_v50 = vld [vmem:[#allocation2 + $0x58] sm:$0xff]  ;;  %v1830_v13 = vld [vmem:[#allocation2 + $0xe0] sm:$0xff] }
 0x42b   : > { %1912 = vst [vmem:[%s2965_s6 + $0x10] sm:$0xff] %v1880_v35  ;;  %v1886_v3 = vmax.f32 %v1854_v8, 0.0  ;;  %v1887_v5 = vmax.f32 %v1855_v61, 0.0  ;;  %v1859_v45 = vadd.f32 %v2814_v27, %v1823_v0  ;;  %v1860_v54 = vadd.f32 %v2814_v27, %v1824_v29  ;;  %v1829_v55 = vld [vmem:[#allocation2 + $0xc8] sm:$0xff]  ;;  %v1831_v62 = vld [vmem:[#allocation2 + $0x90] sm:$0xff]  ;;  %v1833_v59 = vld [vmem:[#allocation2 + $0xc0] sm:$0xff] }
 0x42c   : > { %1913 = vst [vmem:[%s2965_s6 + $0x18] sm:$0xff] %v1881_v17  ;;  %v1888_v15 = vmax.f32 %v1856_v21, 0.0  ;;  %v1889_v6 = vmax.f32 %v1857_v4, 0.0  ;;  %v1861_v47 = vadd.f32 %v2814_v27, %v1825_v46  ;;  %v1890_v12 = vmax.f32 %v1858_v30, 0.0  ;;  %v1832_v18 = vld [vmem:[#allocation2 + $0x70] sm:$0xff]  ;;  %v1834_v58 = vld [vmem:[#allocation2 + $0xa8] sm:$0xff] }
 0x42d   : > { %1914 = vst [vmem:[%s2965_s6 + $0x20] sm:$0xff] %v1882_v1  ;;  %v1862_v14 = vadd.f32 %v2814_v27, %v1826_v33  ;;  %v1891_v32 = vmax.f32 %v1859_v45, 0.0  ;;  %v1863_v39 = vadd.f32 %v2814_v27, %v1827_v50  ;;  %v1892_v42 = vmax.f32 %v1860_v54, 0.0  ;;  %v1835_v48 = vld [vmem:[#allocation2 + $0xd0] sm:$0xff]  ;;  %v1837_v26 = vld [vmem:[#allocation2 + $0x28] sm:$0xff]  ;;  %v1838_v31 = vld [vmem:[#allocation2 + $0xa0] sm:$0xff] }
 0x42e   : > { %1915 = vst [vmem:[%s2965_s6 + $0x28] sm:$0xff] %v1883_v19  ;;  %v1864_v56 = vadd.f32 %v2814_v27, %v1828_v16  ;;  %v1893_v36 = vmax.f32 %v1861_v47, 0.0  ;;  %v1865_v38 = vadd.f32 %v2814_v27, %v1829_v55  ;;  %v1866_v60 = vadd.f32 %v2814_v27, %v1830_v13  ;;  %v1836_v53 = vld [vmem:[#allocation2 + $0x10] sm:$0xff]  ;;  %v1839_v40 = vld [vmem:[#allocation2 + $0xf8] sm:$0xff]  ;;  %v1840_v34 = vld [vmem:[#allocation2 + $0x20] sm:$0xff] }
 0x42f   : > { %1916 = vst [vmem:[%s2965_s6 + $0x30] sm:$0xff] %v1884_v24  ;;  %v1894_v25 = vmax.f32 %v1862_v14, 0.0  ;;  %v1895_v22 = vmax.f32 %v1863_v39, 0.0  ;;  %v1867_v20 = vadd.f32 %v2814_v27, %v1831_v62  ;;  %v1868_v7 = vadd.f32 %v2814_v27, %v1832_v18  ;;  %v1841_v51 = vld [vmem:[#allocation2 + $0x98] sm:$0xff] }
 0x430   : > { %1917 = vst [vmem:[%s2965_s6 + $0x38] sm:$0xff] %v1885_v52  ;;  %v1896_v44 = vmax.f32 %v1864_v56, 0.0  ;;  %v1897_v11 = vmax.f32 %v1865_v38, 0.0  ;;  %v1869_v28 = vadd.f32 %v2814_v27, %v1833_v59  ;;  %v1898_v57 = vmax.f32 %v1866_v60, 0.0 }
 0x431   : > { %1918 = vst [vmem:[%s2965_s6 + $0x40] sm:$0xff] %v1886_v3  ;;  %v1870_v49 = vadd.f32 %v2814_v27, %v1834_v58  ;;  %v1899_v43 = vmax.f32 %v1867_v20, 0.0  ;;  %v1871_v2 = vadd.f32 %v2814_v27, %v1835_v48  ;;  %v1900_v9 = vmax.f32 %v1868_v7, 0.0 }
 0x432   : > { %1919 = vst [vmem:[%s2965_s6 + $0x48] sm:$0xff] %v1887_v5  ;;  %v1872_v10 = vadd.f32 %v2814_v27, %v1836_v53  ;;  %v1901_v35 = vmax.f32 %v1869_v28, 0.0  ;;  %v1873_v41 = vadd.f32 %v2814_v27, %v1837_v26  ;;  %v1874_v37 = vadd.f32 %v2814_v27, %v1838_v31 }
 0x433   : > { %1920 = vst [vmem:[%s2965_s6 + $0x50] sm:$0xff] %v1888_v15  ;;  %v1902_v17 = vmax.f32 %v1870_v49, 0.0  ;;  %v1903_v1 = vmax.f32 %v1871_v2, 0.0  ;;  %v1875_v8 = vadd.f32 %v2814_v27, %v1839_v40  ;;  %v1876_v19 = vadd.f32 %v2814_v27, %v1840_v34 }
 0x434   : > { %1921 = vst [vmem:[%s2965_s6 + $0x58] sm:$0xff] %v1889_v6  ;;  %v1904_v23 = vmax.f32 %v1872_v10, 0.0  ;;  %v1905_v61 = vmax.f32 %v1873_v41, 0.0  ;;  %v1877_v63 = vadd.f32 %v2814_v27, %v1841_v51  ;;  %v1906_v24 = vmax.f32 %v1874_v37, 0.0 }
 0x435   : > { %1922 = vst [vmem:[%s2965_s6 + $0x60] sm:$0xff] %v1890_v12  ;;  %v1907_v21 = vmax.f32 %v1875_v8, 0.0  ;;  %v1908_v0 = vmax.f32 %v1876_v19, 0.0 }
 0x436   : > { %1923 = vst [vmem:[%s2965_s6 + $0x68] sm:$0xff] %v1891_v32  ;;  %v1909_v27 = vmax.f32 %v1877_v63, 0.0 }
 0x437   : > { %1924 = vst [vmem:[%s2965_s6 + $0x70] sm:$0xff] %v1892_v42 }
 0x438   : > { %1925 = vst [vmem:[%s2965_s6 + $0x78] sm:$0xff] %v1893_v36 }
 0x439   : > { %1926 = vst [vmem:[%s2965_s6 + $0x80] sm:$0xff] %v1894_v25 }
 0x43a   : > { %1927 = vst [vmem:[%s2965_s6 + $0x88] sm:$0xff] %v1895_v22 }
 0x43b   : > { %1928 = vst [vmem:[%s2965_s6 + $0x90] sm:$0xff] %v1896_v44 }
 0x43c   : > { %1929 = vst [vmem:[%s2965_s6 + $0x98] sm:$0xff] %v1897_v11 }
 0x43d   : > { %1930 = vst [vmem:[%s2965_s6 + $0xa0] sm:$0xff] %v1898_v57 }
 0x43e   : > { %1931 = vst [vmem:[%s2965_s6 + $0xa8] sm:$0xff] %v1899_v43 }
 0x43f   : > { %1932 = vst [vmem:[%s2965_s6 + $0xb0] sm:$0xff] %v1900_v9 }
 0x440   : > { %1933 = vst [vmem:[%s2965_s6 + $0xb8] sm:$0xff] %v1901_v35 }
 0x441   : > { %1934 = vst [vmem:[%s2965_s6 + $0xc0] sm:$0xff] %v1902_v17 }
 0x442   : > { %1935 = vst [vmem:[%s2965_s6 + $0xc8] sm:$0xff] %v1903_v1 }
 0x443   : > { %1936 = vst [vmem:[%s2965_s6 + $0xd0] sm:$0xff] %v1904_v23 }
 0x444   : > { %1937 = vst [vmem:[%s2965_s6 + $0xd8] sm:$0xff] %v1905_v61 }
 0x445   : > { %1938 = vst [vmem:[%s2965_s6 + $0xe0] sm:$0xff] %v1906_v24 }
 0x446   : > { %1939 = vst [vmem:[%s2965_s6 + $0xe8] sm:$0xff] %v1907_v21 }
 0x447   : > { %1940 = vst [vmem:[%s2965_s6 + $0xf0] sm:$0xff] %v1908_v0 }
 0x448   : > { %1941 = vst [vmem:[%s2965_s6 + $0xf8] sm:$0xff] %v1909_v27 }
 0x449 PF: > { %s24_s29 = sadd.s32 1, %s2202_s29   ;;  %s2966_s25 = smov %s2190_s26 }
 0x44a   : > { %p21_p0 = scmp.ge.s32.totalorder %s24_s29, 4   ;;  %s2967_s26 = smov %s2280_s8 }
 0x44b   : > { %s2968_s27 = smov %s2198_s28  ;;  %s2969_s28 = smov %s2971_s0 }
 0x44c   :  { %23 = sbr.rel (!%p21_p0) target bundleno = 9 (0x9), region = 115 }

// kernel: _lambda_.9
= control target key start
LH: loop header
LB: loop body
LE: loop exit
PB: predicated region body
PF: predicated region fallthrough
CT: control target
= control target key end

     0   :  { %s2172_s24 = smov [#allocation4]   ;;  %s2927_s0 = inlined_call_operand.vmem [shape: s32[2], index: 0, kind: input, shape index: {}]   ;;  %s2928_s1 = inlined_call_operand.vmem [shape: s8[256,1024], index: 1, kind: input, shape index: {}]   ;;  %s2929_s2 = inlined_call_operand.vmem [shape: f32[1024,128], index: 2, kind: input, shape index: {}]   ;;  %s2930_s3 = inlined_call_operand.vmem [shape: f32[2,128,128], index: 3, kind: input, shape index: {}]   ;;  %s2931_s4 = inlined_call_operand.vmem [shape: f32[512,1], index: 4, kind: input, shape index: {}]   ;;  %s2932_s5 = inlined_call_operand.vmem [shape: f32[1,128], index: 5, kind: input, shape index: {}]   ;;  %s2933_s6 = inlined_call_operand.vmem [shape: f32[256,128], index: 6, kind: output, shape index: {}]  }
   0x1   :  { %s12_s23 = sshll.u32 %s2927_s0, 4  ;;  %s13_s23 = int_to_ptr.vmem [resolvable:$true] %s12_s23 }
   0x2   :  { %15 = dma.vmem_to_smem %s13_s23, 16, %s2172_s24, [#allocation3] }
   0x3   :  { %2150 = dma.done.wait [#allocation3], 16 }
   0x4   :  { %2151 = vsyncadd [#allocation3], 4294967280 }
   0x5   :  { %18 = sfence }
   0x6   :  { %s2213_s25 = smov 0   ;;  %s2215_s26 = smov 0  }
   0x7   :  { %s2217_s27 = smov 0   ;;  %s2219_s28 = smov 0  }
   0x8   :  { %s2221_s29 = smov 0  }
   0x9 LB: > { %s33_s0 = sadd.s32 1, %s2166_s28  ;;  %p52_p1 = scmp.ne.s32.totalorder %s2158_s26, %s2154_s25  ;;  %s2170_s29 = sphi %s2221_s29, %s24_s29   ;;  %s2166_s28 = sphi %s2219_s28, %s2937_s28   ;;  %s2162_s27 = sphi %s2217_s27, %s2936_s27   ;;  %s2158_s26 = sphi %s2215_s26, %s2935_s26   ;;  %s2154_s25 = sphi %s2213_s25, %s2934_s25  }
   0xa   : > { %p34_p0 = scmp.ge.s32.totalorder %s33_s0, 2  ;;  %p53_p2 = scmp.eq.s32.totalorder %s2170_s29, 0 }
   0xb   : > { %s45_s7 = sadd.s32 1, %s2158_s26  ;;  %p2019_p5 = scmp.ge.s32.totalorder %s2170_s29, 2 }
   0xc   : > { %s2939_s0 = smov (%p34_p0, %s33_s0), 0  ;;  %p54_p3 = por %p53_p2, %p52_p1 }
   0xd   : > { %s41_s30 = ssub.s32 %s2166_s28, %s2939_s0  ;;  %212 = sbr.rel (%p2019_p5) target bundleno = 54 (0x36), region = 20 }
   0xe   : > { %p43_p4 = scmp.eq.s32.totalorder %s41_s30, 0 }
  0x10   : > { %s2248_s8 = scalar_select %p43_p4, %s2158_s26, %s45_s7  }
  0x12   : > { %215 = sbr.rel (!%p54_p3) target bundleno = 54 (0x36), region = 24  ;;  %s217_s9 = sand.u32 (%p54_p3), 1, %s2158_s26  }
  0x13   : > { %s2037_s10 = sshll.u32 (%p54_p3), %s2166_s28, 5  ;;  %s2020_s11 = sshll.u32 (%p54_p3), %s217_s9, 8 }
  0x14   : > { %s2256_s14 = scalar_lea.vmem (%p54_p3), %s2928_s1, %s2037_s10  ;;  %s2261_s15 = scalar_lea.vmem (%p54_p3), [#allocation5], %s2020_s11 }
  0x15   : > { %v238_v0 = vld [vmem:[%s2256_s14] sm:$0xff] (%p54_p3)  ;;  %v240_v1 = vld [vmem:[%s2256_s14 + $0x8] sm:$0xff] (%p54_p3)  ;;  %v242_v2 = vld [vmem:[%s2256_s14 + $0x10] sm:$0xff] (%p54_p3) }
  0x16   : > { %239 = vst [vmem:[%s2261_s15] sm:$0xff] (%p54_p3), %v238_v0  ;;  %v244_v3 = vld [vmem:[%s2256_s14 + $0x18] sm:$0xff] (%p54_p3)  ;;  %v246_v4 = vld [vmem:[%s2256_s14 + $0x40] sm:$0xff] (%p54_p3)  ;;  %v248_v5 = vld [vmem:[%s2256_s14 + $0x48] sm:$0xff] (%p54_p3) }
  0x17   : > { %241 = vst [vmem:[%s2261_s15 + $0x8] sm:$0xff] %v240_v1  ;;  %v250_v6 = vld [vmem:[%s2256_s14 + $0x50] sm:$0xff]  ;;  %v252_v7 = vld [vmem:[%s2256_s14 + $0x58] sm:$0xff]  ;;  %v254_v8 = vld [vmem:[%s2256_s14 + $0x80] sm:$0xff] }
  0x18   : > { %243 = vst [vmem:[%s2261_s15 + $0x10] sm:$0xff] %v242_v2  ;;  %v256_v9 = vld [vmem:[%s2256_s14 + $0x88] sm:$0xff]  ;;  %v258_v10 = vld [vmem:[%s2256_s14 + $0x90] sm:$0xff]  ;;  %v260_v11 = vld [vmem:[%s2256_s14 + $0x98] sm:$0xff] }
  0x19   : > { %245 = vst [vmem:[%s2261_s15 + $0x18] sm:$0xff] %v244_v3  ;;  %v262_v12 = vld [vmem:[%s2256_s14 + $0xc0] sm:$0xff]  ;;  %v264_v13 = vld [vmem:[%s2256_s14 + $0xc8] sm:$0xff]  ;;  %v266_v14 = vld [vmem:[%s2256_s14 + $0xd0] sm:$0xff] }
  0x1a   : > { %247 = vst [vmem:[%s2261_s15 + $0x20] sm:$0xff] %v246_v4  ;;  %v268_v15 = vld [vmem:[%s2256_s14 + $0xd8] sm:$0xff]  ;;  %v270_v16 = vld [vmem:[%s2256_s14 + $0x100] sm:$0xff]  ;;  %v272_v17 = vld [vmem:[%s2256_s14 + $0x108] sm:$0xff] }
  0x1b   : > { %249 = vst [vmem:[%s2261_s15 + $0x28] sm:$0xff] %v248_v5  ;;  %v274_v18 = vld [vmem:[%s2256_s14 + $0x110] sm:$0xff]  ;;  %v276_v19 = vld [vmem:[%s2256_s14 + $0x118] sm:$0xff]  ;;  %v278_v20 = vld [vmem:[%s2256_s14 + $0x140] sm:$0xff] }
  0x1c   : > { %251 = vst [vmem:[%s2261_s15 + $0x30] sm:$0xff] %v250_v6  ;;  %v280_v21 = vld [vmem:[%s2256_s14 + $0x148] sm:$0xff]  ;;  %v282_v22 = vld [vmem:[%s2256_s14 + $0x150] sm:$0xff]  ;;  %v284_v23 = vld [vmem:[%s2256_s14 + $0x158] sm:$0xff] }
  0x1d   : > { %253 = vst [vmem:[%s2261_s15 + $0x38] sm:$0xff] %v252_v7  ;;  %v286_v24 = vld [vmem:[%s2256_s14 + $0x180] sm:$0xff]  ;;  %v288_v25 = vld [vmem:[%s2256_s14 + $0x188] sm:$0xff]  ;;  %v290_v26 = vld [vmem:[%s2256_s14 + $0x190] sm:$0xff] }
  0x1e   : > { %255 = vst [vmem:[%s2261_s15 + $0x40] sm:$0xff] %v254_v8  ;;  %v292_v27 = vld [vmem:[%s2256_s14 + $0x198] sm:$0xff]  ;;  %v294_v28 = vld [vmem:[%s2256_s14 + $0x1c0] sm:$0xff]  ;;  %v296_v29 = vld [vmem:[%s2256_s14 + $0x1c8] sm:$0xff] }
  0x1f   : > { %257 = vst [vmem:[%s2261_s15 + $0x48] sm:$0xff] %v256_v9  ;;  %v298_v30 = vld [vmem:[%s2256_s14 + $0x1d0] sm:$0xff]  ;;  %v300_v31 = vld [vmem:[%s2256_s14 + $0x1d8] sm:$0xff] }
  0x20   : > { %259 = vst [vmem:[%s2261_s15 + $0x50] sm:$0xff] %v258_v10 }
  0x21   : > { %261 = vst [vmem:[%s2261_s15 + $0x58] sm:$0xff] %v260_v11 }
  0x22   : > { %263 = vst [vmem:[%s2261_s15 + $0x60] sm:$0xff] %v262_v12 }
  0x23   : > { %265 = vst [vmem:[%s2261_s15 + $0x68] sm:$0xff] %v264_v13 }
  0x24   : > { %267 = vst [vmem:[%s2261_s15 + $0x70] sm:$0xff] %v266_v14 }
  0x25   : > { %269 = vst [vmem:[%s2261_s15 + $0x78] sm:$0xff] %v268_v15 }
  0x26   : > { %271 = vst [vmem:[%s2261_s15 + $0x80] sm:$0xff] %v270_v16 }
  0x27   : > { %273 = vst [vmem:[%s2261_s15 + $0x88] sm:$0xff] %v272_v17 }
  0x28   : > { %275 = vst [vmem:[%s2261_s15 + $0x90] sm:$0xff] %v274_v18 }
  0x29   : > { %277 = vst [vmem:[%s2261_s15 + $0x98] sm:$0xff] %v276_v19 }
  0x2a   : > { %279 = vst [vmem:[%s2261_s15 + $0xa0] sm:$0xff] %v278_v20 }
  0x2b   : > { %281 = vst [vmem:[%s2261_s15 + $0xa8] sm:$0xff] %v280_v21 }
  0x2c   : > { %283 = vst [vmem:[%s2261_s15 + $0xb0] sm:$0xff] %v282_v22 }
  0x2d   : > { %285 = vst [vmem:[%s2261_s15 + $0xb8] sm:$0xff] %v284_v23 }
  0x2e   : > { %287 = vst [vmem:[%s2261_s15 + $0xc0] sm:$0xff] %v286_v24 }
  0x2f   : > { %289 = vst [vmem:[%s2261_s15 + $0xc8] sm:$0xff] %v288_v25 }
  0x30   : > { %291 = vst [vmem:[%s2261_s15 + $0xd0] sm:$0xff] %v290_v26 }
  0x31   : > { %293 = vst [vmem:[%s2261_s15 + $0xd8] sm:$0xff] %v292_v27 }
  0x32   : > { %295 = vst [vmem:[%s2261_s15 + $0xe0] sm:$0xff] %v294_v28 }
  0x33   : > { %297 = vst [vmem:[%s2261_s15 + $0xe8] sm:$0xff] %v296_v29 }
  0x34   : > { %299 = vst [vmem:[%s2261_s15 + $0xf0] sm:$0xff] %v298_v30 }
  0x35   : > { %301 = vst [vmem:[%s2261_s15 + $0xf8] sm:$0xff] %v300_v31 }
  0x36 PF: > { %p2023_p6 = scmp.ge.s32.totalorder %s2170_s29, 1  ;;  %p338_p7 = scmp.lt.s32.totalorder %s2170_s29, 3 }
  0x38   : > { %p339_p8 = pnand %p2023_p6, %p338_p7 }
  0x39   : > { %s345_s16 = sand.u32 (!%p339_p8), 1, %s2154_s25   ;;  %s2025_s17 = sshll.u32 (!%p339_p8), %s2162_s27, 6 }
  0x3a   : > { %342 = sbr.rel (%p339_p8) target bundleno = 1095 (0x447), region = 59  ;;  %s2024_s18 = sshll.u32 (!%p339_p8), %s345_s16, 8 }
  0x3b   : > { %p393_p9 = scmp.lt.s32.totalorder (!%p339_p8), %s2025_s17, 127  ;;  %s398_s19 = sld [smem:[#allocation4 + %s2162_s27]] (!%p339_p8) }
  0x3c   : > { %s405_s20 = sld [smem:[#allocation4 + %s2162_s27]] (!%p339_p8)  ;;  %s2345_s15 = scalar_lea.vmem (!%p339_p8), [#allocation5], %s2024_s18 }
  0x3d   : > { %p2031_p12 = scmp.ne.s32.totalorder (!%p339_p8), %s2162_s27, 0 }
  0x3f   : > { %s2941_s17 = smov (!%p393_p9, %s2025_s17), 127 }
  0x40   : > { %s2026_s21 = sshll.u32 %s2941_s17, 3 }
  0x41   : > { %s2333_s24 = scalar_lea.vmem %s2929_s2, %s2026_s21  ;;  %p399_p10 = scmp.lt.s32.totalorder %s398_s19, 1 }
  0x42   : > { %s2029_s30 = sshll.u32 %s405_s20, 5 }
  0x43   : > { %s2943_s19 = smov (!%p399_p10, %s398_s19), 1  ;;  %p408_p11 = scmp.lt.s32.totalorder %s2029_s30, 63 }
  0x44   : > { %s2038_s7 = sshll.u32 %s2943_s19, 7  ;;  %424 = sbr.rel (%p2031_p12) target bundleno = 106 (0x6a), region = 67 }
  0x45   : > { %s2338_s25 = scalar_lea.vmem %s2930_s3, %s2038_s7  ;;  %s2945_s30 = smov (!%p408_p11, %s2029_s30), 63 }
  0x46   : > { %s2030_s11 = sshll.u32 %s2945_s30, 3 }
  0x47   : > { %s2343_s14 = scalar_lea.vmem %s2931_s4, %s2030_s11 }
  0x49   : > { %v2173_v32 = vmov 0.0  }
  0x4a   : > { %425 = vst [vmem:[#allocation2 + $0xb0] sm:$0xff] %v2173_v32 }
  0x4b   : > { %426 = vst [vmem:[#allocation2] sm:$0xff] %v2173_v32 }
  0x4c   : > { %427 = vst [vmem:[#allocation2 + $0xd8] sm:$0xff] %v2173_v32 }
  0x4d   : > { %428 = vst [vmem:[#allocation2 + $0x18] sm:$0xff] %v2173_v32 }
  0x4e   : > { %429 = vst [vmem:[#allocation2 + $0x50] sm:$0xff] %v2173_v32 }
  0x4f   : > { %430 = vst [vmem:[#allocation2 + $0x68] sm:$0xff] %v2173_v32 }
  0x50   : > { %431 = vst [vmem:[#allocation2 + $0x30] sm:$0xff] %v2173_v32 }
  0x51   : > { %432 = vst [vmem:[#allocation2 + $0x48] sm:$0xff] %v2173_v32 }
  0x52   : > { %433 = vst [vmem:[#allocation2 + $0x80] sm:$0xff] %v2173_v32 }
  0x53   : > { %434 = vst [vmem:[#allocation2 + $0x88] sm:$0xff] %v2173_v32 }
  0x54   : > { %435 = vst [vmem:[#allocation2 + $0xe8] sm:$0xff] %v2173_v32 }
  0x55   : > { %436 = vst [vmem:[#allocation2 + $0xb8] sm:$0xff] %v2173_v32 }
  0x56   : > { %437 = vst [vmem:[#allocation2 + $0x60] sm:$0xff] %v2173_v32 }
  0x57   : > { %438 = vst [vmem:[#allocation2 + $0xf0] sm:$0xff] %v2173_v32 }
  0x58   : > { %439 = vst [vmem:[#allocation2 + $0x8] sm:$0xff] %v2173_v32 }
  0x59   : > { %440 = vst [vmem:[#allocation2 + $0x78] sm:$0xff] %v2173_v32 }
  0x5a   : > { %441 = vst [vmem:[#allocation2 + $0x38] sm:$0xff] %v2173_v32 }
  0x5b   : > { %442 = vst [vmem:[#allocation2 + $0x58] sm:$0xff] %v2173_v32 }
  0x5c   : > { %443 = vst [vmem:[#allocation2 + $0x40] sm:$0xff] %v2173_v32 }
  0x5d   : > { %444 = vst [vmem:[#allocation2 + $0xc8] sm:$0xff] %v2173_v32 }
  0x5e   : > { %445 = vst [vmem:[#allocation2 + $0xe0] sm:$0xff] %v2173_v32 }
  0x5f   : > { %446 = vst [vmem:[#allocation2 + $0x90] sm:$0xff] %v2173_v32 }
  0x60   : > { %447 = vst [vmem:[#allocation2 + $0x70] sm:$0xff] %v2173_v32 }
  0x61   : > { %448 = vst [vmem:[#allocation2 + $0xc0] sm:$0xff] %v2173_v32 }
  0x62   : > { %449 = vst [vmem:[#allocation2 + $0xa8] sm:$0xff] %v2173_v32 }
  0x63   : > { %450 = vst [vmem:[#allocation2 + $0xd0] sm:$0xff] %v2173_v32 }
  0x64   : > { %451 = vst [vmem:[#allocation2 + $0x10] sm:$0xff] %v2173_v32 }
  0x65   : > { %452 = vst [vmem:[#allocation2 + $0x28] sm:$0xff] %v2173_v32 }
  0x66   : > { %453 = vst [vmem:[#allocation2 + $0xa0] sm:$0xff] %v2173_v32 }
  0x67   : > { %454 = vst [vmem:[#allocation2 + $0xf8] sm:$0xff] %v2173_v32 }
  0x68   : > { %455 = vst [vmem:[#allocation2 + $0x20] sm:$0xff] %v2173_v32 }
  0x69   : > { %456 = vst [vmem:[#allocation2 + $0x98] sm:$0xff] %v2173_v32 }
  0x6a PF: > { %v824_v33 = vld [vmem:[%s2338_s25 + $0x78] sm:$0xff]  ;;  %v823_v34 = vld [vmem:[%s2338_s25 + $0x70] sm:$0xff]  ;;  %v822_v35 = vld [vmem:[%s2338_s25 + $0x68] sm:$0xff]  ;;  %p2032_p13 = scmp.ne.s32.totalorder %s2162_s27, 1 }
  0x6b   : > { %825 = vmatpush.msra.mxu0 %v824_v33  ;;  %2039 = vmatpush.msra.mxu2 %v824_v33  ;;  %v821_v36 = vld [vmem:[%s2338_s25 + $0x60] sm:$0xff]  ;;  %v820_v37 = vld [vmem:[%s2338_s25 + $0x58] sm:$0xff]  ;;  %v819_v38 = vld [vmem:[%s2338_s25 + $0x50] sm:$0xff] }
  0x6c   : > { %v818_v39 = vld [vmem:[%s2338_s25 + $0x48] sm:$0xff]  ;;  %v817_v40 = vld [vmem:[%s2338_s25 + $0x40] sm:$0xff]  ;;  %v816_v41 = vld [vmem:[%s2338_s25 + $0x38] sm:$0xff] }
  0x6d   : > { %826 = vmatpush.msra.mxu0 %v823_v34  ;;  %2040 = vmatpush.msra.mxu2 %v823_v34  ;;  %v815_v42 = vld [vmem:[%s2338_s25 + $0x30] sm:$0xff]  ;;  %v814_v43 = vld [vmem:[%s2338_s25 + $0x28] sm:$0xff]  ;;  %v813_v44 = vld [vmem:[%s2338_s25 + $0x20] sm:$0xff] }
  0x6e   : > { %v812_v45 = vld [vmem:[%s2338_s25 + $0x18] sm:$0xff]  ;;  %v811_v46 = vld [vmem:[%s2338_s25 + $0x10] sm:$0xff]  ;;  %v810_v47 = vld [vmem:[%s2338_s25 + $0x8] sm:$0xff] }
  0x6f   : > { %827 = vmatpush.msra.mxu0 %v822_v35  ;;  %2041 = vmatpush.msra.mxu2 %v822_v35  ;;  %v809_v48 = vld [vmem:[%s2338_s25] sm:$0xff]  ;;  %v746_v50 = vld [vmem:[%s2333_s24 + $0x8] sm:$0xff]  ;;  %v747_v51 = vld [vmem:[%s2333_s24 + $0x10] sm:$0xff] }
  0x70   : > { %v745_v49 = vld [vmem:[%s2333_s24] sm:$0xff]  ;;  %v748_v52 = vld [vmem:[%s2333_s24 + $0x18] sm:$0xff]  ;;  %v750_v54 = vld [vmem:[%s2333_s24 + $0x28] sm:$0xff] }
  0x71   : > { %828 = vmatpush.msra.mxu0 %v821_v36  ;;  %2042 = vmatpush.msra.mxu2 %v821_v36  ;;  %v749_v53 = vld [vmem:[%s2333_s24 + $0x20] sm:$0xff]  ;;  %v751_v55 = vld [vmem:[%s2333_s24 + $0x30] sm:$0xff]  ;;  %v752_v56 = vld [vmem:[%s2333_s24 + $0x38] sm:$0xff] }
  0x72   : > { %v753_v57 = vld [vmem:[%s2333_s24 + $0x40] sm:$0xff]  ;;  %v754_v58 = vld [vmem:[%s2333_s24 + $0x48] sm:$0xff]  ;;  %v755_v60 = vld [vmem:[%s2333_s24 + $0x50] sm:$0xff] }
  0x73   : > { %829 = vmatpush.msra.mxu0 %v820_v37  ;;  %2043 = vmatpush.msra.mxu2 %v820_v37  ;;  %v793_v59 = vld [vmem:[%s2333_s24 + $0x180] sm:$0xff]  ;;  %v794_v61 = vld [vmem:[%s2333_s24 + $0x188] sm:$0xff]  ;;  %v756_v62 = vld [vmem:[%s2333_s24 + $0x58] sm:$0xff] }
  0x74   : > { %v795_v63 = vld [vmem:[%s2333_s24 + $0x190] sm:$0xff]  ;;  %v757_v0 = vld [vmem:[%s2333_s24 + $0x60] sm:$0xff]  ;;  %v796_v1 = vld [vmem:[%s2333_s24 + $0x198] sm:$0xff] }
  0x75   : > { %830 = vmatpush.msra.mxu0 %v819_v38  ;;  %2044 = vmatpush.msra.mxu2 %v819_v38  ;;  %v758_v2 = vld [vmem:[%s2333_s24 + $0x68] sm:$0xff]  ;;  %v797_v3 = vld [vmem:[%s2333_s24 + $0x1a0] sm:$0xff]  ;;  %v759_v4 = vld [vmem:[%s2333_s24 + $0x70] sm:$0xff] }
  0x76   : > { %v798_v5 = vld [vmem:[%s2333_s24 + $0x1a8] sm:$0xff]  ;;  %v760_v6 = vld [vmem:[%s2333_s24 + $0x78] sm:$0xff]  ;;  %v799_v7 = vld [vmem:[%s2333_s24 + $0x1b0] sm:$0xff] }
  0x77   : > { %831 = vmatpush.msra.mxu0 %v818_v39  ;;  %2045 = vmatpush.msra.mxu2 %v818_v39  ;;  %v761_v9 = vld [vmem:[%s2333_s24 + $0x80] sm:$0xff]  ;;  %v800_v10 = vld [vmem:[%s2333_s24 + $0x1b8] sm:$0xff]  ;;  %v762_v12 = vld [vmem:[%s2333_s24 + $0x88] sm:$0xff] }
  0x78   : > { %v801_v13 = vld [vmem:[%s2333_s24 + $0x1c0] sm:$0xff]  ;;  %v763_v15 = vld [vmem:[%s2333_s24 + $0x90] sm:$0xff]  ;;  %v802_v16 = vld [vmem:[%s2333_s24 + $0x1c8] sm:$0xff] }
  0x79   : > { %832 = vmatpush.msra.mxu0 %v817_v40  ;;  %2046 = vmatpush.msra.mxu2 %v817_v40  ;;  %v764_v18 = vld [vmem:[%s2333_s24 + $0x98] sm:$0xff]  ;;  %v803_v19 = vld [vmem:[%s2333_s24 + $0x1d0] sm:$0xff]  ;;  %v765_v21 = vld [vmem:[%s2333_s24 + $0xa0] sm:$0xff] }
  0x7a   : > { %v804_v22 = vld [vmem:[%s2333_s24 + $0x1d8] sm:$0xff]  ;;  %v766_v24 = vld [vmem:[%s2333_s24 + $0xa8] sm:$0xff]  ;;  %v805_v25 = vld [vmem:[%s2333_s24 + $0x1e0] sm:$0xff] }
  0x7b   : > { %833 = vmatpush.msra.mxu0 %v816_v41  ;;  %2047 = vmatpush.msra.mxu2 %v816_v41  ;;  %v767_v27 = vld [vmem:[%s2333_s24 + $0xb0] sm:$0xff]  ;;  %v806_v28 = vld [vmem:[%s2333_s24 + $0x1e8] sm:$0xff]  ;;  %v768_v30 = vld [vmem:[%s2333_s24 + $0xb8] sm:$0xff] }
  0x7c   : > { %v807_v31 = vld [vmem:[%s2333_s24 + $0x1f0] sm:$0xff]  ;;  %v769_v33 = vld [vmem:[%s2333_s24 + $0xc0] sm:$0xff]  ;;  %v808_v34 = vld [vmem:[%s2333_s24 + $0x1f8] sm:$0xff] }
  0x7d   : > { %834 = vmatpush.msra.mxu0 %v815_v42  ;;  %2048 = vmatpush.msra.mxu2 %v815_v42  ;;  %v770_v36 = vld [vmem:[%s2333_s24 + $0xc8] sm:$0xff]  ;;  %v771_v38 = vld [vmem:[%s2333_s24 + $0xd0] sm:$0xff]  ;;  %v772_v41 = vld [vmem:[%s2333_s24 + $0xd8] sm:$0xff] }
  0x7f   : > { %835 = vmatpush.msra.mxu0 %v814_v43  ;;  %2049 = vmatpush.msra.mxu2 %v814_v43 }
  0x81   : > { %836 = vmatpush.msra.mxu0 %v813_v44  ;;  %2050 = vmatpush.msra.mxu2 %v813_v44  ;;  %v773_v44 = vld [vmem:[%s2333_s24 + $0xe0] sm:$0xff] }
  0x83   : > { %837 = vmatpush.msra.mxu0 %v812_v45  ;;  %2051 = vmatpush.msra.mxu2 %v812_v45 }
  0x85   : > { %838 = vmatpush.msra.mxu0 %v811_v46  ;;  %2052 = vmatpush.msra.mxu2 %v811_v46 }
  0x87   : > { %839 = vmatpush.msra.mxu0 %v810_v47  ;;  %2053 = vmatpush.msra.mxu2 %v810_v47  ;;  %v774_v47 = vld [vmem:[%s2333_s24 + $0xe8] sm:$0xff] }
  0x89   : > { %840 = vmatpush.msra.mxu0 %v809_v48  ;;  %2054 = vmatpush.msra.mxu2 %v809_v48 }
  0x8a   : > { %841 = vmatmul.f32.vlgmr.msra.gmra.mxu0 %v745_v49  ;;  %985 = vmatmul.f32.vlgmr.msra.gmra.mxu2 %v793_v59  ;;  %v778_v59 = vld [vmem:[%s2333_s24 + $0x108] sm:$0xff] }
  0x92   : > { %844 = vmatmul.f32.gmra.mxu0 %v746_v50  ;;  %988 = vmatmul.f32.gmra.mxu2 %v794_v61  ;;  %v775_v50 = vld [vmem:[%s2333_s24 + $0xf0] sm:$0xff] }
  0x9a   : > { %847 = vmatmul.f32.gmra.mxu0 %v747_v51  ;;  %991 = vmatmul.f32.gmra.mxu2 %v795_v63 }
  0xa2   : > { %850 = vmatmul.f32.gmra.mxu0 %v748_v52  ;;  %994 = vmatmul.f32.gmra.mxu2 %v796_v1  ;;  %v780_v1 = vld [vmem:[%s2333_s24 + $0x118] sm:$0xff] }
  0xaa   : > { %853 = vmatmul.f32.gmra.mxu0 %v749_v53  ;;  %997 = vmatmul.f32.gmra.mxu2 %v797_v3  ;;  %v776_v53 = vld [vmem:[%s2333_s24 + $0xf8] sm:$0xff] }
  0xb2   : > { %856 = vmatmul.f32.gmra.mxu0 %v750_v54  ;;  %1000 = vmatmul.f32.gmra.mxu2 %v798_v5 }
  0xba   : > { %859 = vmatmul.f32.gmra.mxu0 %v751_v55  ;;  %1003 = vmatmul.f32.gmra.mxu2 %v799_v7  ;;  %v782_v7 = vld [vmem:[%s2333_s24 + $0x128] sm:$0xff] }
  0xc2   : > { %862 = vmatmul.f32.gmra.mxu0 %v752_v56  ;;  %1006 = vmatmul.f32.gmra.mxu2 %v800_v10  ;;  %v777_v56 = vld [vmem:[%s2333_s24 + $0x100] sm:$0xff] }
  0xca   : > { %865 = vmatmul.f32.gmra.mxu0 %v753_v57  ;;  %1009 = vmatmul.f32.gmra.mxu2 %v801_v13  ;;  %v784_v13 = vld [vmem:[%s2333_s24 + $0x138] sm:$0xff] }
  0xd2   : > { %868 = vmatmul.f32.gmra.mxu0 %v754_v58  ;;  %1012 = vmatmul.f32.gmra.mxu2 %v802_v16  ;;  %v785_v16 = vld [vmem:[%s2333_s24 + $0x140] sm:$0xff] }
  0xda   : > { %871 = vmatmul.f32.gmra.mxu0 %v755_v60  ;;  %1015 = vmatmul.f32.gmra.mxu2 %v803_v19  ;;  %v786_v19 = vld [vmem:[%s2333_s24 + $0x148] sm:$0xff] }
  0xe2   : > { %874 = vmatmul.f32.gmra.mxu0 %v756_v62  ;;  %1018 = vmatmul.f32.gmra.mxu2 %v804_v22  ;;  %v779_v62 = vld [vmem:[%s2333_s24 + $0x110] sm:$0xff] }
  0xe3   : > { %v787_v22 = vld [vmem:[%s2333_s24 + $0x150] sm:$0xff] }
  0xea   : > { %877 = vmatmul.f32.gmra.mxu0 %v757_v0  ;;  %1021 = vmatmul.f32.gmra.mxu2 %v805_v25 }
  0xf2   : > { %880 = vmatmul.f32.gmra.mxu0 %v758_v2  ;;  %1024 = vmatmul.f32.gmra.mxu2 %v806_v28  ;;  %v790_v28 = vld [vmem:[%s2333_s24 + $0x168] sm:$0xff] }
  0xfa   : > { %883 = vmatmul.f32.gmra.mxu0 %v759_v4  ;;  %1027 = vmatmul.f32.gmra.mxu2 %v807_v31  ;;  %v781_v4 = vld [vmem:[%s2333_s24 + $0x120] sm:$0xff] }
  0xfb   : > { %v473_v31 = vld [vmem:[%s2345_s15 + $0x80] sm:$0xff] }
 0x102   : > { %886 = vmatmul.f32.gmra.mxu0 %v760_v6  ;;  %1030 = vmatmul.f32.gmra.mxu2 %v808_v34 }
 0x107   : > { %v2387_v8 = vpop.f32.mrf.mxu0 }
 0x10a   : > { %889 = vmatmul.f32.gmra.mxu0 %v761_v9 }
 0x10d   : > { %v2421_v39 = vpop.f32.mrf.mxu2 }
 0x10f   : > { %v2391_v11 = vpop.f32.mrf.mxu0 }
 0x112   : > { %892 = vmatmul.f32.gmra.mxu0 %v762_v12 }
 0x115   : > { %v2424_v42 = vpop.f32.mrf.mxu2 }
 0x117   : > { %v2395_v14 = vpop.f32.mrf.mxu0 }
 0x11a   : > { %895 = vmatmul.f32.gmra.mxu0 %v763_v15 }
 0x11d   : > { %v2427_v45 = vpop.f32.mrf.mxu2 }
 0x11f   : > { %v2399_v17 = vpop.f32.mrf.mxu0 }
 0x122   : > { %898 = vmatmul.f32.gmra.mxu0 %v764_v18 }
 0x125   : > { %v2430_v48 = vpop.f32.mrf.mxu2 }
 0x127   : > { %v2403_v20 = vpop.f32.mrf.mxu0 }
 0x12a   : > { %901 = vmatmul.f32.gmra.mxu0 %v765_v21 }
 0x12d   : > { %v2433_v51 = vpop.f32.mrf.mxu2 }
 0x12f   : > { %v2407_v23 = vpop.f32.mrf.mxu0 }
 0x132   : > { %904 = vmatmul.f32.gmra.mxu0 %v766_v24  ;;  %v788_v24 = vld [vmem:[%s2333_s24 + $0x158] sm:$0xff] }
 0x135   : > { %v2436_v54 = vpop.f32.mrf.mxu2 }
 0x137   : > { %v2411_v26 = vpop.f32.mrf.mxu0 }
 0x13a   : > { %907 = vmatmul.f32.gmra.mxu0 %v767_v27 }
 0x13d   : > { %v2441_v57 = vpop.f32.mrf.mxu2 }
 0x13f   : > { %v863_v29 = vpop.f32.mrf.mxu0 }
 0x142   : > { %910 = vmatmul.f32.gmra.mxu0 %v768_v30  ;;  %v791_v30 = vld [vmem:[%s2333_s24 + $0x170] sm:$0xff] }
 0x145   : > { %v1007_v60 = vpop.f32.mrf.mxu2 }
 0x147   : > { %v866_v32 = vpop.f32.mrf.mxu0 }
 0x14a   : > { %913 = vmatmul.f32.gmra.mxu0 %v769_v33 }
 0x14d   : > { %v1010_v63 = vpop.f32.mrf.mxu2 }
 0x14f   : > { %v869_v35 = vpop.f32.mrf.mxu0 }
 0x152   : > { %916 = vmatmul.f32.gmra.mxu0 %v770_v36  ;;  %v457_v36 = vld [vmem:[%s2345_s15] sm:$0xff] }
 0x155   : > { %v1013_v2 = vpop.f32.mrf.mxu2 }
 0x157   : > { %v872_v37 = vpop.f32.mrf.mxu0 }
 0x15a   : > { %919 = vmatmul.f32.gmra.mxu0 %v771_v38  ;;  %v557_v38 = vunpack.c.1.s8 %v473_v31 }
 0x15d   : > { %v1016_v5 = vpop.f32.mrf.mxu2 }
 0x15f   : > { %v875_v40 = vpop.f32.mrf.mxu0 }
 0x162   : > { %922 = vmatmul.f32.gmra.mxu0 %v772_v41 }
 0x165   : > { %v1019_v9 = vpop.f32.mrf.mxu2 }
 0x167   : > { %v878_v43 = vpop.f32.mrf.mxu0 }
 0x16a   : > { %925 = vmatmul.f32.gmra.mxu0 %v773_v44 }
 0x16f   : > { %v881_v46 = vpop.f32.mrf.mxu0 }
 0x172   : > { %928 = vmatmul.f32.gmra.mxu0 %v774_v47  ;;  %v458_v47 = vld [vmem:[%s2345_s15 + $0x8] sm:$0xff] }
 0x177   : > { %v884_v49 = vpop.f32.mrf.mxu0 }
 0x17a   : > { %931 = vmatmul.f32.gmra.mxu0 %v775_v50 }
 0x17f   : > { %v887_v52 = vpop.f32.mrf.mxu0 }
 0x180   : > { %1034 = vmatpush.msra.mxu1 %v887_v52  ;;  %2055 = vmatpush.msra.mxu3 %v887_v52 }
 0x182   : > { %934 = vmatmul.f32.gmra.mxu0 %v776_v53  ;;  %1035 = vmatpush.msra.mxu1 %v884_v49  ;;  %v490_v53 = vunpack.c.0.s8 %v458_v47 }
 0x183   : > { %2056 = vmatpush.msra.mxu3 %v884_v49  ;;  %v565_v49 = vunpack.c.3.s8 %v473_v31 }
 0x184   : > { %1036 = vmatpush.msra.mxu1 %v881_v46 }
 0x185   : > { %2057 = vmatpush.msra.mxu3 %v881_v46 }
 0x186   : > { %1037 = vmatpush.msra.mxu1 %v878_v43 }
 0x187   : > { %2058 = vmatpush.msra.mxu3 %v878_v43  ;;  %v2438_v55 = vpop.f32.mrf.mxu0  ;;  %v561_v43 = vunpack.c.2.s8 %v473_v31 }
 0x188   : > { %1038 = vmatpush.msra.mxu1 %v875_v40 }
 0x189   : > { %2059 = vmatpush.msra.mxu3 %v875_v40 }
 0x18a   : > { %937 = vmatmul.f32.gmra.mxu0 %v777_v56  ;;  %1039 = vmatpush.msra.mxu1 %v872_v37  ;;  %v477_v56 = vld [vmem:[%s2345_s15 + $0xa0] sm:$0xff] }
 0x18b   : > { %2060 = vmatpush.msra.mxu3 %v872_v37  ;;  %v489_v37 = vunpack.c.0.s8 %v457_v36 }
 0x18c   : > { %1040 = vmatpush.msra.mxu1 %v869_v35 }
 0x18d   : > { %2061 = vmatpush.msra.mxu3 %v869_v35  ;;  %v792_v35 = vld [vmem:[%s2333_s24 + $0x178] sm:$0xff]  ;;  %v617_v40 = vcvt.s32.f32 %v489_v37 }
 0x18e   : > { %1041 = vmatpush.msra.mxu1 %v866_v32 }
 0x18f   : > { %2062 = vmatpush.msra.mxu3 %v866_v32  ;;  %v2443_v58 = vpop.f32.mrf.mxu0  ;;  %v553_v32 = vunpack.c.0.s8 %v473_v31 }
 0x190   : > { %1042 = vmatpush.msra.mxu1 %v863_v29 }
 0x191   : > { %2063 = vmatpush.msra.mxu3 %v863_v29  ;;  %v681_v33 = vcvt.s32.f32 %v553_v32 }
 0x192   : > { %940 = vmatmul.f32.gmra.mxu0 %v778_v59  ;;  %1043 = vmatpush.msra.mxu1 %v2411_v26  ;;  %v569_v59 = vunpack.c.0.s8 %v477_v56 }
 0x193   : > { %2064 = vmatpush.msra.mxu3 %v2411_v26  ;;  %v789_v26 = vld [vmem:[%s2333_s24 + $0x160] sm:$0xff] }
 0x194   : > { %1044 = vmatpush.msra.mxu1 %v2407_v23 }
 0x195   : > { %2065 = vmatpush.msra.mxu3 %v2407_v23 }
 0x196   : > { %1045 = vmatpush.msra.mxu1 %v2403_v20 }
 0x197   : > { %2066 = vmatpush.msra.mxu3 %v2403_v20  ;;  %v2452_v61 = vpop.f32.mrf.mxu0 }
 0x198   : > { %1046 = vmatpush.msra.mxu1 %v2399_v17 }
 0x199   : > { %2067 = vmatpush.msra.mxu3 %v2399_v17 }
 0x19a   : > { %943 = vmatmul.f32.gmra.mxu0 %v779_v62  ;;  %1047 = vmatpush.msra.mxu1 %v2395_v14  ;;  %v697_v62 = vcvt.s32.f32 %v569_v59 }
 0x19b   : > { %2068 = vmatpush.msra.mxu3 %v2395_v14 }
 0x19c   : > { %1048 = vmatpush.msra.mxu1 %v2391_v11 }
 0x19d   : > { %2069 = vmatpush.msra.mxu3 %v2391_v11  ;;  %v1022_v11 = vpop.f32.mrf.mxu2 }
 0x19e   : > { %1049 = vmatpush.msra.mxu1 %v2387_v8 }
 0x19f   : > { %2070 = vmatpush.msra.mxu3 %v2387_v8  ;;  %v2463_v0 = vpop.f32.mrf.mxu0  ;;  %v783_v8 = vld [vmem:[%s2333_s24 + $0x130] sm:$0xff]  ;;  %1050 = vmatmul.f32.vlgmr.msra.gmra.mxu1 %v617_v40 }
 0x1a0   : > { %1098 = vmatmul.f32.vlgmr.msra.gmra.mxu3 %v681_v33 }
 0x1a2   : > { %946 = vmatmul.f32.gmra.mxu0 %v780_v1  ;;  %v494_v1 = vunpack.c.1.s8 %v458_v47 }
 0x1a5   : > { %v1025_v14 = vpop.f32.mrf.mxu2 }
 0x1a7   : > { %v2466_v3 = vpop.f32.mrf.mxu0 }
 0x1aa   : > { %949 = vmatmul.f32.gmra.mxu0 %v781_v4 }
 0x1ad   : > { %v1028_v17 = vpop.f32.mrf.mxu2 }
 0x1af   : > { %v2469_v6 = vpop.f32.mrf.mxu0 }
 0x1b2   : > { %952 = vmatmul.f32.gmra.mxu0 %v782_v7 }
 0x1b5   : > { %v1031_v20 = vpop.f32.mrf.mxu2 }
 0x1b6   : > { %1373 = vmatpush.msrb.mxu1 %v1031_v20 }
 0x1b7   : > { %v2472_v10 = vpop.f32.mrf.mxu0 }
 0x1b8   : > { %1374 = vmatpush.msrb.mxu1 %v1028_v17 }
 0x1ba   : > { %955 = vmatmul.f32.gmra.mxu0 %v783_v8  ;;  %1375 = vmatpush.msrb.mxu1 %v1025_v14  ;;  %v462_v14 = vld [vmem:[%s2345_s15 + $0x28] sm:$0xff] }
 0x1bb   : > { %v506_v20 = vunpack.c.0.s8 %v462_v14 }
 0x1bc   : > { %1376 = vmatpush.msrb.mxu1 %v1022_v11 }
 0x1be   : > { %1377 = vmatpush.msrb.mxu1 %v1019_v9  ;;  %v577_v9 = vunpack.c.2.s8 %v477_v56 }
 0x1bf   : > { %v2475_v12 = vpop.f32.mrf.mxu0 }
 0x1c0   : > { %1378 = vmatpush.msrb.mxu1 %v1016_v5  ;;  %v705_v8 = vcvt.s32.f32 %v577_v9 }
 0x1c2   : > { %958 = vmatmul.f32.gmra.mxu0 %v784_v13  ;;  %1379 = vmatpush.msrb.mxu1 %v1013_v2  ;;  %v461_v2 = vld [vmem:[%s2345_s15 + $0x20] sm:$0xff] }
 0x1c3   : > { %v509_v7 = vunpack.c.1.s8 %v461_v2 }
 0x1c4   : > { %1380 = vmatpush.msrb.mxu1 %v1010_v63 }
 0x1c6   : > { %1381 = vmatpush.msrb.mxu1 %v1007_v60 }
 0x1c7   : > { %v914_v15 = vpop.f32.mrf.mxu0 }
 0x1c8   : > { %1382 = vmatpush.msrb.mxu1 %v2441_v57  ;;  %v501_v57 = vunpack.c.3.s8 %v457_v36 }
 0x1ca   : > { %961 = vmatmul.f32.gmra.mxu0 %v785_v16  ;;  %1383 = vmatpush.msrb.mxu1 %v2436_v54  ;;  %v618_v54 = vcvt.s32.f32 %v490_v53  ;;  %v629_v60 = vcvt.s32.f32 %v501_v57  ;;  %v581_v16 = vunpack.c.3.s8 %v477_v56  ;;  %v485_v57 = vld [vmem:[%s2345_s15 + $0xe0] sm:$0xff] }
 0x1cc   : > { %1384 = vmatpush.msrb.mxu1 %v2433_v51  ;;  %v693_v51 = vcvt.s32.f32 %v565_v49 }
 0x1ce   : > { %1385 = vmatpush.msrb.mxu1 %v2430_v48  ;;  %v497_v48 = vunpack.c.2.s8 %v457_v36 }
 0x1cf   : > { %v917_v18 = vpop.f32.mrf.mxu0 }
 0x1d0   : > { %1386 = vmatpush.msrb.mxu1 %v2427_v45  ;;  %v689_v45 = vcvt.s32.f32 %v561_v43  ;;  %v625_v50 = vcvt.s32.f32 %v497_v48 }
 0x1d2   : > { %964 = vmatmul.f32.gmra.mxu0 %v786_v19  ;;  %1387 = vmatpush.msrb.mxu1 %v2424_v42  ;;  %v493_v42 = vunpack.c.1.s8 %v457_v36  ;;  %v514_v36 = vunpack.c.2.s8 %v462_v14 }
 0x1d4   : > { %1388 = vmatpush.msrb.mxu1 %v2421_v39  ;;  %v685_v39 = vcvt.s32.f32 %v557_v38  ;;  %v621_v44 = vcvt.s32.f32 %v493_v42  ;;  %v642_v37 = vcvt.s32.f32 %v514_v36 }
 0x1d6   : > { %1101 = vmatmul.f32.gmra.mxu3 %v685_v39  ;;  %1053 = vmatmul.f32.gmra.mxu1 %v621_v44  ;;  %v518_v44 = vunpack.c.3.s8 %v462_v14 }
 0x1d7   : > { %v920_v21 = vpop.f32.mrf.mxu0 }
 0x1da   : > { %967 = vmatmul.f32.gmra.mxu0 %v787_v22  ;;  %v481_v22 = vld [vmem:[%s2345_s15 + $0xc0] sm:$0xff] }
 0x1db   : > { %v589_v32 = vunpack.c.1.s8 %v481_v22  ;;  %v593_v40 = vunpack.c.2.s8 %v481_v22  ;;  %v597_v49 = vunpack.c.3.s8 %v481_v22 }
 0x1dd   : > { %v721_v42 = vcvt.s32.f32 %v593_v40 }
 0x1de   : > { %1104 = vmatmul.f32.gmra.mxu3 %v689_v45  ;;  %1056 = vmatmul.f32.gmra.mxu1 %v625_v50  ;;  %v646_v45 = vcvt.s32.f32 %v518_v44 }
 0x1df   : > { %v923_v23 = vpop.f32.mrf.mxu0 }
 0x1e2   : > { %970 = vmatmul.f32.gmra.mxu0 %v788_v24  ;;  %v585_v24 = vunpack.c.0.s8 %v481_v22 }
 0x1e6   : > { %1107 = vmatmul.f32.gmra.mxu3 %v693_v51  ;;  %1059 = vmatmul.f32.gmra.mxu1 %v629_v60  ;;  %v725_v51 = vcvt.s32.f32 %v597_v49  ;;  %v601_v60 = vunpack.c.0.s8 %v485_v57  ;;  %v1518_v49 = vld [vmem:[%s2343_s14] sm:$0xff] }
 0x1e7   : > { %v926_v25 = vpop.f32.mrf.mxu0 }
 0x1ea   : > { %973 = vmatmul.f32.gmra.mxu0 %v789_v26  ;;  %v713_v26 = vcvt.s32.f32 %v585_v24 }
 0x1ee   : > { %1110 = vmatmul.f32.gmra.mxu3 %v697_v62 }
 0x1ef   : > { %v929_v27 = vpop.f32.mrf.mxu0 }
 0x1f2   : > { %976 = vmatmul.f32.gmra.mxu0 %v790_v28  ;;  %v510_v28 = vunpack.c.1.s8 %v462_v14 }
 0x1f7   : > { %v932_v29 = vpop.f32.mrf.mxu0 }
 0x1fa   : > { %979 = vmatmul.f32.gmra.mxu0 %v791_v30  ;;  %v465_v30 = vld [vmem:[%s2345_s15 + $0x40] sm:$0xff] }
 0x1fb   : > { %v521_v31 = vunpack.c.0.s8 %v465_v30  ;;  %v525_v38 = vunpack.c.1.s8 %v465_v30  ;;  %v529_v48 = vunpack.c.2.s8 %v465_v30  ;;  %v533_v59 = vunpack.c.3.s8 %v465_v30 }
 0x1fd   : > { %v649_v33 = vcvt.s32.f32 %v521_v31  ;;  %v653_v39 = vcvt.s32.f32 %v525_v38  ;;  %v657_v50 = vcvt.s32.f32 %v529_v48  ;;  %v661_v62 = vcvt.s32.f32 %v533_v59 }
 0x1ff   : > { %v935_v34 = vpop.f32.mrf.mxu0 }
 0x200   : > { %1147 = vmatpush.msrb.mxu2 %v935_v34  ;;  %v717_v34 = vcvt.s32.f32 %v589_v32 }
 0x202   : > { %982 = vmatmul.f32.gmra.mxu0 %v792_v35  ;;  %1148 = vmatpush.msrb.mxu2 %v932_v29  ;;  %v638_v29 = vcvt.s32.f32 %v510_v28 }
 0x204   : > { %1149 = vmatpush.msrb.mxu2 %v929_v27 }
 0x206   : > { %1150 = vmatpush.msrb.mxu2 %v926_v25 }
 0x207   : > { %v2495_v41 = vpop.f32.mrf.mxu0 }
 0x208   : > { %1151 = vmatpush.msrb.mxu2 %v923_v23  ;;  %v517_v23 = vunpack.c.3.s8 %v461_v2 }
 0x20a   : > { %1152 = vmatpush.msrb.mxu2 %v920_v21  ;;  %v634_v21 = vcvt.s32.f32 %v506_v20  ;;  %v645_v25 = vcvt.s32.f32 %v517_v23 }
 0x20c   : > { %1153 = vmatpush.msrb.mxu2 %v917_v18  ;;  %v709_v18 = vcvt.s32.f32 %v581_v16 }
 0x20e   : > { %1154 = vmatpush.msrb.mxu2 %v914_v15  ;;  %v513_v15 = vunpack.c.2.s8 %v461_v2 }
 0x20f   : > { %v2497_v46 = vpop.f32.mrf.mxu0 }
 0x210   : > { %1155 = vmatpush.msrb.mxu2 %v2475_v12  ;;  %v502_v12 = vunpack.c.3.s8 %v458_v47  ;;  %v641_v17 = vcvt.s32.f32 %v513_v15 }
 0x212   : > { %1156 = vmatpush.msrb.mxu2 %v2472_v10  ;;  %v637_v10 = vcvt.s32.f32 %v509_v7  ;;  %v630_v13 = vcvt.s32.f32 %v502_v12  ;;  %v609_v12 = vunpack.c.2.s8 %v485_v57 }
 0x214   : > { %1157 = vmatpush.msrb.mxu2 %v2469_v6  ;;  %v737_v14 = vcvt.s32.f32 %v609_v12  ;;  %v1521_v12 = vld [vmem:[%s2343_s14 + $0x18] sm:$0xff] }
 0x216   : > { %1158 = vmatpush.msrb.mxu2 %v2466_v3  ;;  %v505_v3 = vunpack.c.0.s8 %v461_v2 }
 0x217   : > { %v2504_v52 = vpop.f32.mrf.mxu0 }
 0x218   : > { %1159 = vmatpush.msrb.mxu2 %v2463_v0  ;;  %v622_v0 = vcvt.s32.f32 %v494_v1  ;;  %v633_v4 = vcvt.s32.f32 %v505_v3  ;;  %v729_v1 = vcvt.s32.f32 %v601_v60 }
 0x21a   : > { %1160 = vmatpush.msrb.mxu2 %v2452_v61  ;;  %v573_v61 = vunpack.c.1.s8 %v477_v56  ;;  %1062 = vmatmul.f32.gmra.mxu1 %v633_v4 }
 0x21c   : > { %1161 = vmatpush.msrb.mxu2 %v2443_v58  ;;  %v701_v5 = vcvt.s32.f32 %v573_v61  ;;  %v498_v58 = vunpack.c.2.s8 %v458_v47  ;;  %v466_v47 = vld [vmem:[%s2345_s15 + $0x48] sm:$0xff]  ;;  %v469_v61 = vld [vmem:[%s2345_s15 + $0x60] sm:$0xff] }
 0x21d   : > { %v526_v2 = vunpack.c.1.s8 %v466_v47  ;;  %v537_v4 = vunpack.c.0.s8 %v469_v61  ;;  %v530_v9 = vunpack.c.2.s8 %v466_v47  ;;  %v534_v16 = vunpack.c.3.s8 %v466_v47 }
 0x21e   : > { %1162 = vmatpush.msrb.mxu2 %v2438_v55  ;;  %1113 = vmatmul.f32.gmra.mxu3 %v701_v5  ;;  %v626_v55 = vcvt.s32.f32 %v498_v58  ;;  %v605_v5 = vunpack.c.1.s8 %v485_v57  ;;  %v545_v20 = vunpack.c.2.s8 %v469_v61  ;;  %v549_v28 = vunpack.c.3.s8 %v469_v61 }
 0x21f   : > { %v2511_v63 = vpop.f32.mrf.mxu0  ;;  %1163 = vmatmul.f32.vlgmr.msrb.gmra.mxu2 %v618_v54  ;;  %v522_v54 = vunpack.c.0.s8 %v466_v47  ;;  %v654_v3 = vcvt.s32.f32 %v526_v2  ;;  %v665_v58 = vcvt.s32.f32 %v537_v4 }
 0x220   : > { %v673_v22 = vcvt.s32.f32 %v545_v20 }
 0x221   : > { %v650_v56 = vcvt.s32.f32 %v522_v54 }
 0x222   : > { %1065 = vmatmul.f32.gmra.mxu1 %v637_v10  ;;  %v658_v10 = vcvt.s32.f32 %v530_v9 }
 0x226   : > { %1116 = vmatmul.f32.gmra.mxu3 %v705_v8  ;;  %v541_v8 = vunpack.c.1.s8 %v469_v61 }
 0x227   : > { %v2514_v6 = vpop.f32.mrf.mxu0  ;;  %1166 = vmatmul.f32.gmra.mxu2 %v622_v0 }
 0x22a   : > { %1068 = vmatmul.f32.gmra.mxu1 %v641_v17  ;;  %v662_v17 = vcvt.s32.f32 %v534_v16 }
 0x22e   : > { %1119 = vmatmul.f32.gmra.mxu3 %v709_v18  ;;  %v470_v18 = vld [vmem:[%s2345_s15 + $0x68] sm:$0xff] }
 0x22f   : > { %v2516_v11 = vpop.f32.mrf.mxu0  ;;  %1169 = vmatmul.f32.gmra.mxu2 %v626_v55  ;;  %v733_v55 = vcvt.s32.f32 %v605_v5  ;;  %v542_v31 = vunpack.c.1.s8 %v470_v18  ;;  %v546_v40 = vunpack.c.2.s8 %v470_v18  ;;  %v550_v48 = vunpack.c.3.s8 %v470_v18  ;;  %v464_v5 = vld [vmem:[%s2345_s15 + $0x38] sm:$0xff] }
 0x230   : > { %v512_v16 = vunpack.c.1.s8 %v464_v5 }
 0x231   : > { %v670_v32 = vcvt.s32.f32 %v542_v31 }
 0x232   : > { %1071 = vmatmul.f32.gmra.mxu1 %v645_v25  ;;  %v538_v25 = vunpack.c.0.s8 %v470_v18  ;;  %v640_v18 = vcvt.s32.f32 %v512_v16  ;;  %v467_v16 = vld [vmem:[%s2345_s15 + $0x50] sm:$0xff] }
 0x236   : > { %1122 = vmatmul.f32.gmra.mxu3 %v713_v26  ;;  %v666_v26 = vcvt.s32.f32 %v538_v25 }
 0x237   : > { %v2519_v19 = vpop.f32.mrf.mxu0  ;;  %1172 = vmatmul.f32.gmra.mxu2 %v630_v13  ;;  %v669_v13 = vcvt.s32.f32 %v541_v8 }
 0x23a   : > { %1074 = vmatmul.f32.gmra.mxu1 %v649_v33  ;;  %v2535_v33 = vpop.f32.mrf.mxu3 }
 0x23e   : > { %1125 = vmatmul.f32.gmra.mxu3 %v717_v34  ;;  %v460_v34 = vld [vmem:[%s2345_s15 + $0x18] sm:$0xff] }
 0x23f   : > { %v2522_v27 = vpop.f32.mrf.mxu0  ;;  %1175 = vmatmul.f32.gmra.mxu2 %v634_v21  ;;  %v613_v21 = vunpack.c.3.s8 %v485_v57  ;;  %v492_v36 = vunpack.c.0.s8 %v460_v34  ;;  %v496_v44 = vunpack.c.1.s8 %v460_v34 }
 0x241   : > { %v741_v23 = vcvt.s32.f32 %v613_v21  ;;  %v620_v38 = vcvt.s32.f32 %v492_v36  ;;  %v624_v47 = vcvt.s32.f32 %v496_v44  ;;  %v520_v44 = vunpack.c.3.s8 %v464_v5 }
 0x242   : > { %1077 = vmatmul.f32.gmra.mxu1 %v653_v39  ;;  %v674_v39 = vcvt.s32.f32 %v546_v40 }
 0x246   : > { %1128 = vmatmul.f32.gmra.mxu3 %v721_v42 }
 0x247   : > { %v2525_v35 = vpop.f32.mrf.mxu0  ;;  %1178 = vmatmul.f32.gmra.mxu2 %v638_v29  ;;  %v677_v29 = vcvt.s32.f32 %v549_v28  ;;  %v463_v28 = vld [vmem:[%s2345_s15 + $0x30] sm:$0xff] }
 0x248   : > { %v507_v36 = vunpack.c.0.s8 %v463_v28 }
 0x24a   : > { %1080 = vmatmul.f32.gmra.mxu1 %v657_v50  ;;  %v678_v50 = vcvt.s32.f32 %v550_v48  ;;  %v648_v48 = vcvt.s32.f32 %v520_v44 }
 0x24e   : > { %1131 = vmatmul.f32.gmra.mxu3 %v725_v51  ;;  %v2174_v51 = vmov 0  }
 0x24f   : > { %v2527_v43 = vpop.f32.mrf.mxu0  ;;  %1181 = vmatmul.f32.gmra.mxu2 %v642_v37  ;;  %v1051_v37 = vpop.f32.mrf.mxu1  ;;  %2114 = vset.pattern.permute.xlu0 %v2174_v51 }
 0x250   : > { %2115 = vset.pattern.permute.xlu1 %v2174_v51  ;;  %1552 = vperm.xlu0 %2114, %v1518_v49  }
 0x251   : > { %2116 = vset.pattern.permute.xlu2 %v2174_v51 }
 0x252   : > { %1083 = vmatmul.f32.gmra.mxu1 %v661_v62  ;;  %v504_v62 = vunpack.c.3.s8 %v460_v34 }
 0x256   : > { %1134 = vmatmul.f32.gmra.mxu3 %v729_v1  ;;  %v632_v1 = vcvt.s32.f32 %v504_v62 }
 0x257   : > { %v2530_v53 = vpop.f32.mrf.mxu0  ;;  %1184 = vmatmul.f32.gmra.mxu2 %v646_v45  ;;  %v1054_v45 = vpop.f32.mrf.mxu1 }
 0x259   : > { %v2540_v42 = vpop.f32.mrf.mxu3 }
 0x25a   : > { %1086 = vmatmul.f32.gmra.mxu1 %v665_v58  ;;  %v508_v58 = vunpack.c.0.s8 %v464_v5 }
 0x25e   : > { %1137 = vmatmul.f32.gmra.mxu3 %v733_v55 }
 0x25f   : > { %v971_v0 = vpop.f32.mrf.mxu0  ;;  %1187 = vmatmul.f32.gmra.mxu2 %v650_v56  ;;  %v1057_v54 = vpop.f32.mrf.mxu1 }
 0x262   : > { %1089 = vmatmul.f32.gmra.mxu1 %v669_v13 }
 0x266   : > { %1140 = vmatmul.f32.gmra.mxu3 %v737_v14 }
 0x267   : > { %v974_v7 = vpop.f32.mrf.mxu0  ;;  %1190 = vmatmul.f32.gmra.mxu2 %v654_v3  ;;  %v1520_v3 = vld [vmem:[%s2343_s14 + $0x10] sm:$0xff] }
 0x268   : > { %1562 = vperm.xlu1 %2115, %v1520_v3  }
 0x26a   : > { %1092 = vmatmul.f32.gmra.mxu1 %v673_v22 }
 0x26e   : > { %1143 = vmatmul.f32.gmra.mxu3 %v741_v23 }
 0x26f   : > { %v977_v15 = vpop.f32.mrf.mxu0  ;;  %1193 = vmatmul.f32.gmra.mxu2 %v658_v10 }
 0x270   : > { %1567 = vperm.xlu1 %2115, %v1521_v12  }
 0x272   : > { %1095 = vmatmul.f32.gmra.mxu1 %v677_v29 }
 0x277   : > { %v980_v24 = vpop.f32.mrf.mxu0  ;;  %1196 = vmatmul.f32.gmra.mxu2 %v662_v17 }
 0x27a   : > { %1389 = vmatmul.f32.vlgmr.msrb.gmra.mxu1 %v620_v38 }
 0x27f   : > { %v983_v30 = vpop.f32.mrf.mxu0  ;;  %1199 = vmatmul.f32.gmra.mxu2 %v666_v26  ;;  %v478_v26 = vld [vmem:[%s2345_s15 + $0xa8] sm:$0xff] }
 0x280   : > { %1260 = vmatpush.msrb.mxu3 %v983_v30  ;;  %v516_v30 = vunpack.c.2.s8 %v464_v5  ;;  %v574_v49 = vunpack.c.1.s8 %v478_v26 }
 0x282   : > { %1261 = vmatpush.msrb.mxu3 %v980_v24  ;;  %1392 = vmatmul.f32.gmra.mxu1 %v624_v47 }
 0x284   : > { %1262 = vmatpush.msrb.mxu3 %v977_v15 }
 0x286   : > { %1263 = vmatpush.msrb.mxu3 %v974_v7 }
 0x287   : > { %1202 = vmatmul.f32.gmra.mxu2 %v670_v32  ;;  %v644_v32 = vcvt.s32.f32 %v516_v30 }
 0x288   : > { %1264 = vmatpush.msrb.mxu3 %v971_v0 }
 0x28a   : > { %1265 = vmatpush.msrb.mxu3 %v2530_v53  ;;  %v459_v53 = vld [vmem:[%s2345_s15 + $0x10] sm:$0xff] }
 0x28b   : > { %v491_v57 = vunpack.c.0.s8 %v459_v53  ;;  %v499_v9 = vunpack.c.2.s8 %v459_v53  ;;  %v503_v21 = vunpack.c.3.s8 %v459_v53 }
 0x28c   : > { %1266 = vmatpush.msrb.mxu3 %v2527_v43  ;;  %v474_v43 = vld [vmem:[%s2345_s15 + $0x88] sm:$0xff] }
 0x28d   : > { %v619_v60 = vcvt.s32.f32 %v491_v57  ;;  %v558_v0 = vunpack.c.1.s8 %v474_v43  ;;  %v562_v7 = vunpack.c.2.s8 %v474_v43  ;;  %v627_v15 = vcvt.s32.f32 %v499_v9  ;;  %v1523_v9 = vld [vmem:[%s2343_s14 + $0x28] sm:$0xff] }
 0x28e   : > { %1267 = vmatpush.msrb.mxu3 %v2525_v35  ;;  %v500_v35 = vunpack.c.2.s8 %v460_v34  ;;  %v566_v20 = vunpack.c.3.s8 %v474_v43  ;;  %v631_v25 = vcvt.s32.f32 %v503_v21  ;;  %v570_v34 = vunpack.c.0.s8 %v478_v26 }
 0x28f   : > { %1205 = vmatmul.f32.gmra.mxu2 %v674_v39  ;;  %v690_v14 = vcvt.s32.f32 %v562_v7  ;;  %v635_v39 = vcvt.s32.f32 %v507_v36 }
 0x290   : > { %1268 = vmatpush.msrb.mxu3 %v2522_v27  ;;  %v2550_v27 = vpop.f32.mrf.mxu3  ;;  %v628_v56 = vcvt.s32.f32 %v500_v35  ;;  %v694_v24 = vcvt.s32.f32 %v566_v20  ;;  %v698_v40 = vcvt.s32.f32 %v570_v34  ;;  %v702_v35 = vcvt.s32.f32 %v574_v49 }
 0x292   : > { %1269 = vmatpush.msrb.mxu3 %v2519_v19  ;;  %v554_v19 = vunpack.c.0.s8 %v474_v43  ;;  %1395 = vmatmul.f32.gmra.mxu1 %v628_v56  ;;  %v1524_v43 = vld [vmem:[%s2343_s14 + $0x30] sm:$0xff]  ;;  %v468_v56 = vld [vmem:[%s2345_s15 + $0x58] sm:$0xff] }
 0x294   : > { %1270 = vmatpush.msrb.mxu3 %v2516_v11  ;;  %v1519_v11 = vld [vmem:[%s2343_s14 + $0x8] sm:$0xff]  ;;  %v682_v59 = vcvt.s32.f32 %v554_v19  ;;  %v524_v19 = vunpack.c.0.s8 %v468_v56 }
 0x295   : > { %1557 = vperm.xlu0 %2114, %v1519_v11  }
 0x296   : > { %1271 = vmatpush.msrb.mxu3 %v2514_v6  ;;  %v1060_v6 = vpop.f32.mrf.mxu1  ;;  %v652_v11 = vcvt.s32.f32 %v524_v19 }
 0x297   : > { %1208 = vmatmul.f32.gmra.mxu2 %v678_v50  ;;  %v511_v50 = vunpack.c.1.s8 %v463_v28 }
 0x298   : > { %1272 = vmatpush.msrb.mxu3 %v2511_v63  ;;  %v495_v63 = vunpack.c.1.s8 %v459_v53  ;;  %v2557_v2 = vpop.f32.mrf.mxu3 }
 0x29a   : > { %1273 = vmatpush.msrb.mxu3 %v2504_v52  ;;  %1398 = vmatmul.f32.gmra.mxu1 %v632_v1  ;;  %v623_v4 = vcvt.s32.f32 %v495_v63  ;;  %v1522_v1 = vld [vmem:[%s2343_s14 + $0x20] sm:$0xff] }
 0x29b   : > { %1572 = vperm.xlu2 %2116, %v1522_v1  }
 0x29c   : > { %1274 = vmatpush.msrb.mxu3 %v2497_v46  ;;  %v686_v46 = vcvt.s32.f32 %v558_v0  ;;  %v1525_v0 = vld [vmem:[%s2343_s14 + $0x38] sm:$0xff] }
 0x29d   : > { %1582 = vperm.xlu0 %2114, %v1524_v43   ;;  %1587 = vperm.xlu1 %2115, %v1525_v0   ;;  %v535_v0 = vunpack.c.3.s8 %v467_v16 }
 0x29e   : > { %1275 = vmatpush.msrb.mxu3 %v2495_v41  ;;  %v1063_v55 = vpop.f32.mrf.mxu1  ;;  %v636_v41 = vcvt.s32.f32 %v508_v58  ;;  %v582_v58 = vunpack.c.3.s8 %v478_v26 }
 0x29f   : > { %1211 = vmatmul.f32.gmra.mxu2 %v682_v59  ;;  %1276 = vmatmul.f32.vlgmr.msrb.gmra.mxu3 %v619_v60  ;;  %v578_v59 = vunpack.c.2.s8 %v478_v26  ;;  %v515_v60 = vunpack.c.2.s8 %v463_v28 }
 0x2a0   : > { %v2563_v8 = vpop.f32.mrf.mxu3  ;;  %v710_v12 = vcvt.s32.f32 %v582_v58  ;;  %v486_v58 = vld [vmem:[%s2345_s15 + $0xe8] sm:$0xff] }
 0x2a1   : > { %v643_v3 = vcvt.s32.f32 %v515_v60 }
 0x2a2   : > { %v1164_v52 = vpop.f32.mrf.mxu2  ;;  %1401 = vmatmul.f32.gmra.mxu1 %v636_v41 }
 0x2a3   : > { %v2560_v61 = vadd.f32 %v1164_v52, %v1051_v37  ;;  %v706_v52 = vcvt.s32.f32 %v578_v59  ;;  %1577 = vperm.xlu2 %2116, %v1523_v9  }
 0x2a6   : > { %v1066_v17 = vpop.f32.mrf.mxu1 }
 0x2a7   : > { %1214 = vmatmul.f32.gmra.mxu2 %v686_v46  ;;  %1279 = vmatmul.f32.gmra.mxu3 %v623_v4  ;;  %v528_v46 = vunpack.c.1.s8 %v468_v56 }
 0x2a8   : > { %v2572_v29 = vpop.f32.mrf.mxu3 }
 0x2a9   : > { %v656_v5 = vcvt.s32.f32 %v528_v46 }
 0x2aa   : > { %v1167_v10 = vpop.f32.mrf.mxu2  ;;  %1404 = vmatmul.f32.gmra.mxu1 %v640_v18 }
 0x2ab   : > { %v2566_v13 = vadd.f32 %v1167_v10, %v1054_v45 }
 0x2ae   : > { %v1069_v31 = vpop.f32.mrf.mxu1 }
 0x2af   : > { %1217 = vmatmul.f32.gmra.mxu2 %v690_v14  ;;  %1282 = vmatmul.f32.gmra.mxu3 %v627_v15  ;;  %v482_v15 = vld [vmem:[%s2345_s15 + $0xc8] sm:$0xff] }
 0x2b0   : > { %v2576_v47 = vpop.f32.mrf.mxu3  ;;  %v586_v21 = vunpack.c.0.s8 %v482_v15  ;;  %v598_v1 = vunpack.c.3.s8 %v482_v15 }
 0x2b2   : > { %v1170_v22 = vpop.f32.mrf.mxu2  ;;  %1407 = vmatmul.f32.gmra.mxu1 %v644_v32  ;;  %v536_v32 = vunpack.c.3.s8 %v468_v56  ;;  %v726_v46 = vcvt.s32.f32 %v598_v1  ;;  %v614_v1 = vunpack.c.3.s8 %v486_v58 }
 0x2b3   : > { %v2568_v23 = vadd.f32 %v1170_v22, %v1057_v54  ;;  %v639_v54 = vcvt.s32.f32 %v511_v50  ;;  %v523_v22 = vunpack.c.0.s8 %v467_v16 }
 0x2b4   : > { %v664_v36 = vcvt.s32.f32 %v536_v32 }
 0x2b5   : > { %v651_v30 = vcvt.s32.f32 %v523_v22 }
 0x2b6   : > { %v1072_v45 = vpop.f32.mrf.mxu1 }
 0x2b7   : > { %1220 = vmatmul.f32.gmra.mxu2 %v694_v24  ;;  %1285 = vmatmul.f32.gmra.mxu3 %v631_v25  ;;  %v1527_v25 = vld [vmem:[%s2343_s14 + $0x48] sm:$0xff] }
 0x2b8   : > { %v2584_v62 = vpop.f32.mrf.mxu3  ;;  %1597 = vperm.xlu0 %2114, %v1527_v25  }
 0x2ba   : > { %v1173_v37 = vpop.f32.mrf.mxu2  ;;  %1410 = vmatmul.f32.gmra.mxu1 %v648_v48  ;;  %v472_v48 = vld [vmem:[%s2345_s15 + $0x78] sm:$0xff] }
 0x2bb   : > { %v2574_v38 = vadd.f32 %v1173_v37, %v1060_v6  ;;  %v590_v37 = vunpack.c.1.s8 %v482_v15  ;;  %v540_v49 = vunpack.c.0.s8 %v472_v48  ;;  %v544_v59 = vunpack.c.1.s8 %v472_v48 }
 0x2bc   : > { %v552_v22 = vunpack.c.3.s8 %v472_v48 }
 0x2bd   : > { %v718_v44 = vcvt.s32.f32 %v590_v37  ;;  %v668_v43 = vcvt.s32.f32 %v540_v49  ;;  %v1529_v37 = vld [vmem:[%s2343_s14 + $0x58] sm:$0xff] }
 0x2be   : > { %v2582_v57 = vpop.f32.mrf.mxu1  ;;  %v680_v25 = vcvt.s32.f32 %v552_v22  ;;  %v1536_v22 = vld [vmem:[%s2343_s14 + $0x90] sm:$0xff] }
 0x2bf   : > { %1223 = vmatmul.f32.gmra.mxu2 %v698_v40  ;;  %1288 = vmatmul.f32.gmra.mxu3 %v635_v39  ;;  %v527_v40 = vunpack.c.1.s8 %v467_v16  ;;  %v1528_v39 = vld [vmem:[%s2343_s14 + $0x50] sm:$0xff] }
 0x2c0   : > { %v2592_v7 = vpop.f32.mrf.mxu3  ;;  %1602 = vperm.xlu1 %2115, %v1528_v39  }
 0x2c2   : > { %v1176_v51 = vpop.f32.mrf.mxu2  ;;  %1413 = vmatmul.f32.gmra.mxu1 %v652_v11 }
 0x2c3   : > { %v2579_v53 = vadd.f32 %v1176_v51, %v1063_v55  ;;  %v519_v55 = vunpack.c.3.s8 %v463_v28  ;;  %v714_v28 = vcvt.s32.f32 %v586_v21 }
 0x2c5   : > { %v647_v14 = vcvt.s32.f32 %v519_v55  ;;  %v471_v55 = vld [vmem:[%s2345_s15 + $0x70] sm:$0xff] }
 0x2c6   : > { %v2590_v4 = vpop.f32.mrf.mxu1 }
 0x2c7   : > { %1226 = vmatmul.f32.gmra.mxu2 %v702_v35  ;;  %1291 = vmatmul.f32.gmra.mxu3 %v639_v54  ;;  %v594_v35 = vunpack.c.2.s8 %v482_v15  ;;  %v531_v54 = vunpack.c.2.s8 %v467_v16  ;;  %v1531_v16 = vld [vmem:[%s2343_s14 + $0x68] sm:$0xff] }
 0x2c8   : > { %1617 = vperm.xlu1 %2115, %v1531_v16  }
 0x2c9   : > { %v722_v19 = vcvt.s32.f32 %v594_v35  ;;  %v659_v11 = vcvt.s32.f32 %v531_v54 }
 0x2ca   : > { %v1179_v6 = vpop.f32.mrf.mxu2  ;;  %1416 = vmatmul.f32.gmra.mxu1 %v656_v5  ;;  %v663_v5 = vcvt.s32.f32 %v535_v0  ;;  %v551_v0 = vunpack.c.3.s8 %v471_v55 }
 0x2cb   : > { %v2588_v63 = vadd.f32 %v1179_v6, %v1066_v17  ;;  %v532_v17 = vunpack.c.2.s8 %v468_v56  ;;  %v1526_v56 = vld [vmem:[%s2343_s14 + $0x40] sm:$0xff]  ;;  %v672_v6 = vcvt.s32.f32 %v544_v59 }
 0x2cc   : > { %1592 = vperm.xlu2 %2116, %v1526_v56   ;;  %v1533_v56 = vld [vmem:[%s2343_s14 + $0x78] sm:$0xff] }
 0x2cd   : > { %v660_v20 = vcvt.s32.f32 %v532_v17  ;;  %v539_v17 = vunpack.c.0.s8 %v471_v55 }
 0x2ce   : > { %v2599_v18 = vpop.f32.mrf.mxu1 }
 0x2cf   : > { %1229 = vmatmul.f32.gmra.mxu2 %v706_v52  ;;  %1294 = vmatmul.f32.gmra.mxu3 %v643_v3  ;;  %v1530_v3 = vld [vmem:[%s2343_s14 + $0x60] sm:$0xff]  ;;  %v667_v21 = vcvt.s32.f32 %v539_v17 }
 0x2d0   : > { %1612 = vperm.xlu0 %2114, %v1530_v3   ;;  %v742_v3 = vcvt.s32.f32 %v614_v1 }
 0x2d2   : > { %v1182_v41 = vpop.f32.mrf.mxu2  ;;  %1419 = vmatmul.f32.gmra.mxu1 %v660_v20 }
 0x2d3   : > { %v2595_v10 = vadd.f32 %v1182_v41, %v1069_v31  ;;  %v2604_v31 = vpop.f32.mrf.mxu3  ;;  %v548_v41 = vunpack.c.2.s8 %v472_v48  ;;  %v610_v48 = vunpack.c.2.s8 %v486_v58 }
 0x2d4   : > { %1607 = vperm.xlu2 %2116, %v1529_v37   ;;  %v1553_v37 = vpop.permute.xlu0 %1552 }
 0x2d5   : > { %v738_v35 = vcvt.s32.f32 %v610_v48  ;;  %v2653_v48 = vld [vmem:[%s2345_s15 + $0xb8] sm:$0xff] }
 0x2d6   : > { %v2606_v34 = vpop.f32.mrf.mxu1 }
 0x2d7   : > { %1232 = vmatmul.f32.gmra.mxu2 %v710_v12  ;;  %1297 = vmatmul.f32.gmra.mxu3 %v647_v14  ;;  %v676_v12 = vcvt.s32.f32 %v548_v41  ;;  %v602_v14 = vunpack.c.0.s8 %v486_v58  ;;  %v2638_v41 = vld [vmem:[%s2345_s15 + $0x90] sm:$0xff] }
 0x2d8   : > { %1627 = vperm.xlu0 %2114, %v1533_v56   ;;  %v555_v16 = vunpack.c.0.s8 %v2638_v41 }
 0x2d9   : > { %v730_v20 = vcvt.s32.f32 %v602_v14 }
 0x2da   : > { %v1185_v24 = vpop.f32.mrf.mxu2  ;;  %1422 = vmatmul.f32.gmra.mxu1 %v664_v36 }
 0x2db   : > { %v2602_v26 = vadd.f32 %v1185_v24, %v1072_v45  ;;  %v655_v45 = vcvt.s32.f32 %v527_v40  ;;  %v2612_v51 = vpop.f32.mrf.mxu3  ;;  %v476_v40 = vld [vmem:[%s2345_s15 + $0x98] sm:$0xff] }
 0x2de   : > { %v2610_v50 = vpop.f32.mrf.mxu1 }
 0x2df   : > { %1235 = vmatmul.f32.gmra.mxu2 %v714_v28  ;;  %1300 = vmatmul.f32.gmra.mxu3 %v651_v30  ;;  %v606_v28 = vunpack.c.1.s8 %v486_v58  ;;  %v543_v30 = vunpack.c.1.s8 %v471_v55 }
 0x2e0   : > { %1642 = vperm.xlu0 %2114, %v1536_v22  }
 0x2e1   : > { %v734_v32 = vcvt.s32.f32 %v606_v28  ;;  %v671_v36 = vcvt.s32.f32 %v543_v30 }
 0x2e2   : > { %1425 = vmatmul.f32.gmra.mxu1 %v668_v43  ;;  %v547_v43 = vunpack.c.2.s8 %v471_v55  ;;  %v683_v55 = vcvt.s32.f32 %v555_v16  ;;  %v1543_v16 = vld [vmem:[%s2343_s14 + $0xc8] sm:$0xff] }
 0x2e3   : > { %v2617_v52 = vpop.f32.mrf.mxu3 }
 0x2e4   : > { %v675_v54 = vcvt.s32.f32 %v547_v43  ;;  %v1539_v43 = vld [vmem:[%s2343_s14 + $0xa8] sm:$0xff] }
 0x2e6   : > { %v2615_v60 = vpop.f32.mrf.mxu1 }
 0x2e7   : > { %1238 = vmatmul.f32.gmra.mxu2 %v718_v44  ;;  %1303 = vmatmul.f32.gmra.mxu3 %v655_v45  ;;  %v556_v44 = vunpack.c.0.s8 %v476_v40 }
 0x2e8   : > { %1657 = vperm.xlu0 %2114, %v1539_v43   ;;  %v580_v43 = vunpack.c.2.s8 %v2653_v48 }
 0x2e9   : > { %v684_v49 = vcvt.s32.f32 %v556_v44 }
 0x2ea   : > { %1428 = vmatmul.f32.gmra.mxu1 %v672_v6 }
 0x2eb   : > { %v2624_v15 = vpop.f32.mrf.mxu3 }
 0x2ee   : > { %v2622_v9 = vpop.f32.mrf.mxu1 }
 0x2ef   : > { %1241 = vmatmul.f32.gmra.mxu2 %v722_v19  ;;  %1306 = vmatmul.f32.gmra.mxu3 %v659_v11  ;;  %v560_v19 = vunpack.c.1.s8 %v476_v40 }
 0x2f1   : > { %v688_v6 = vcvt.s32.f32 %v560_v19  ;;  %v1486_v19 = vld [vmem:[#allocation2 + $0xb0] sm:$0xff] }
 0x2f2   : > { %1431 = vmatmul.f32.gmra.mxu1 %v676_v12  ;;  %v564_v12 = vunpack.c.2.s8 %v476_v40 }
 0x2f3   : > { %v2631_v39 = vpop.f32.mrf.mxu3 }
 0x2f4   : > { %v692_v17 = vcvt.s32.f32 %v564_v12  ;;  %v576_v12 = vunpack.c.1.s8 %v2653_v48 }
 0x2f6   : > { %v2627_v24 = vpop.f32.mrf.mxu1  ;;  %v704_v22 = vcvt.s32.f32 %v576_v12  ;;  %v584_v12 = vunpack.c.3.s8 %v2653_v48 }
 0x2f7   : > { %1244 = vmatmul.f32.gmra.mxu2 %v726_v46  ;;  %1309 = vmatmul.f32.gmra.mxu3 %v663_v5  ;;  %v679_v46 = vcvt.s32.f32 %v551_v0  ;;  %v1534_v5 = vld [vmem:[%s2343_s14 + $0x80] sm:$0xff] }
 0x2f8   : > { %1632 = vperm.xlu1 %2115, %v1534_v5  }
 0x2fa   : > { %1434 = vmatmul.f32.gmra.mxu1 %v680_v25  ;;  %v1537_v25 = vld [vmem:[%s2343_s14 + $0x98] sm:$0xff] }
 0x2fb   : > { %v2634_v59 = vpop.f32.mrf.mxu3 }
 0x2fe   : > { %v1390_v45 = vpop.f32.mrf.mxu1 }
 0x2ff   : > { %1247 = vmatmul.f32.gmra.mxu2 %v730_v20  ;;  %1312 = vmatmul.f32.gmra.mxu3 %v667_v21  ;;  %v1532_v20 = vld [vmem:[%s2343_s14 + $0x70] sm:$0xff]  ;;  %v568_v21 = vunpack.c.3.s8 %v476_v40  ;;  %v572_v40 = vunpack.c.0.s8 %v2653_v48  ;;  %v1573_v48 = vpop.permute.xlu2 %1572 }
 0x300   : > { %1622 = vperm.xlu2 %2116, %v1532_v20   ;;  %1647 = vperm.xlu1 %2115, %v1537_v25  }
 0x301   : > { %v696_v30 = vcvt.s32.f32 %v568_v21  ;;  %v1487_v21 = vld [vmem:[#allocation2] sm:$0xff] }
 0x302   : > { %1437 = vmatmul.f32.gmra.mxu1 %v684_v49 }
 0x303   : > { %v2643_v58 = vpop.f32.mrf.mxu3 }
 0x306   : > { %v1393_v11 = vpop.f32.mrf.mxu1 }
 0x307   : > { %1250 = vmatmul.f32.gmra.mxu2 %v734_v32  ;;  %1315 = vmatmul.f32.gmra.mxu3 %v671_v36  ;;  %v559_v32 = vunpack.c.1.s8 %v2638_v41 }
 0x309   : > { %v687_v49 = vcvt.s32.f32 %v559_v32 }
 0x30a   : > { %1440 = vmatmul.f32.gmra.mxu1 %v688_v6  ;;  %v700_v6 = vcvt.s32.f32 %v572_v40  ;;  %v2673_v40 = vld [vmem:[%s2345_s15 + $0xb0] sm:$0xff] }
 0x30f   : > { %1253 = vmatmul.f32.gmra.mxu2 %v738_v35  ;;  %1318 = vmatmul.f32.gmra.mxu3 %v675_v54  ;;  %v2640_v14 = vpop.f32.mrf.mxu1  ;;  %v1540_v35 = vld [vmem:[%s2343_s14 + $0xb0] sm:$0xff] }
 0x310   : > { %1662 = vperm.xlu1 %2115, %v1540_v35   ;;  %v1545_v35 = vld [vmem:[%s2343_s14 + $0xd8] sm:$0xff] }
 0x312   : > { %1443 = vmatmul.f32.gmra.mxu1 %v692_v17  ;;  %v1542_v17 = vld [vmem:[%s2343_s14 + $0xc0] sm:$0xff] }
 0x313   : > { %1672 = vperm.xlu0 %2114, %v1542_v17   ;;  %v1548_v17 = vld [vmem:[%s2343_s14 + $0xf0] sm:$0xff] }
 0x317   : > { %1256 = vmatmul.f32.gmra.mxu2 %v742_v3  ;;  %1321 = vmatmul.f32.gmra.mxu3 %v679_v46  ;;  %v2648_v28 = vpop.f32.mrf.mxu1 }
 0x318   : > { %1677 = vperm.xlu1 %2115, %v1543_v16   ;;  %v1549_v16 = vld [vmem:[%s2343_s14 + $0xf8] sm:$0xff] }
 0x31a   : > { %1446 = vmatmul.f32.gmra.mxu1 %v696_v30  ;;  %v2668_v30 = vpop.f32.mrf.mxu2 }
 0x31b   : > { %1687 = vperm.xlu0 %2114, %v1545_v35  }
 0x31f   : > { %1324 = vmatmul.f32.gmra.mxu3 %v683_v55  ;;  %v2658_v56 = vpop.f32.mrf.mxu1 }
 0x322   : > { %v1277_v36 = vpop.f32.mrf.mxu3  ;;  %1449 = vmatmul.f32.gmra.mxu1 %v700_v6  ;;  %v1488_v6 = vld [vmem:[#allocation2 + $0xd8] sm:$0xff] }
 0x323   : > { %v1278_v44 = vadd.f32 %v1277_v36, %v2560_v61  ;;  %v563_v61 = vunpack.c.2.s8 %v2638_v41  ;;  %1702 = vperm.xlu0 %2114, %v1548_v17  }
 0x325   : > { %v1391_v54 = vadd.f32 %v1390_v45, %v1278_v44  ;;  %v691_v5 = vcvt.s32.f32 %v563_v61  ;;  %v1558_v45 = vpop.permute.xlu0 %1557  ;;  %v571_v61 = vunpack.c.0.s8 %v2673_v40 }
 0x327   : > { %v1710_v1 = vmul.f32 %v1553_v37, %v1391_v54  ;;  %1327 = vmatmul.f32.gmra.mxu3 %v687_v49  ;;  %v2665_v20 = vpop.f32.mrf.mxu1  ;;  %v1535_v49 = vld [vmem:[%s2343_s14 + $0x88] sm:$0xff]  ;;  %v1546_v54 = vld [vmem:[%s2343_s14 + $0xe0] sm:$0xff] }
 0x328   : > { %1637 = vperm.xlu2 %2116, %v1535_v49   ;;  %1692 = vperm.xlu1 %2115, %v1546_v54  }
 0x329   : > { %v1742_v0 = vadd.f32 %v1710_v1, %v1486_v19  ;;  %v708_v1 = vcvt.s32.f32 %v580_v43  ;;  %v1538_v43 = vld [vmem:[%s2343_s14 + $0xa0] sm:$0xff] }
 0x32a   : > { %v1280_v3 = vpop.f32.mrf.mxu3  ;;  %1452 = vmatmul.f32.gmra.mxu1 %v704_v22  ;;  %v1489_v22 = vld [vmem:[#allocation2 + $0x18] sm:$0xff] }
 0x32b   : > { %1774 = vst [vmem:[#allocation2 + $0xb0] sm:$0xff] %v1742_v0  ;;  %v1281_v46 = vadd.f32 %v1280_v3, %v2566_v13  ;;  %v567_v13 = vunpack.c.3.s8 %v2638_v41  ;;  %v2682_v3 = vpop.f32.mrf.mxu2 }
 0x32d   : > { %v1394_v55 = vadd.f32 %v1393_v11, %v1281_v46  ;;  %v1563_v11 = vpop.permute.xlu1 %1562  ;;  %v695_v44 = vcvt.s32.f32 %v567_v13 }
 0x32f   : > { %v1711_v25 = vmul.f32 %v1558_v45, %v1394_v55  ;;  %1330 = vmatmul.f32.gmra.mxu3 %v691_v5  ;;  %v2679_v19 = vpop.f32.mrf.mxu1  ;;  %v699_v5 = vcvt.s32.f32 %v571_v61 }
 0x330   : > { %1707 = vperm.xlu1 %2115, %v1549_v16   ;;  %1652 = vperm.xlu2 %2116, %v1538_v43   ;;  %v1491_v16 = vld [vmem:[#allocation2 + $0x68] sm:$0xff]  ;;  %v1492_v43 = vld [vmem:[#allocation2 + $0x30] sm:$0xff] }
 0x331   : > { %v1743_v32 = vadd.f32 %v1711_v25, %v1487_v21  ;;  %v712_v25 = vcvt.s32.f32 %v584_v12 }
 0x332   : > { %v1283_v36 = vpop.f32.mrf.mxu3  ;;  %1455 = vmatmul.f32.gmra.mxu1 %v708_v1 }
 0x333   : > { %1775 = vst [vmem:[#allocation2] sm:$0xff] %v1743_v32  ;;  %v1284_v37 = vadd.f32 %v1283_v36, %v2568_v23 }
 0x335   : > { %v1397_v41 = vadd.f32 %v2640_v14, %v1284_v37  ;;  %v1568_v45 = vpop.permute.xlu1 %1567  ;;  %v484_v37 = vld [vmem:[%s2345_s15 + $0xd8] sm:$0xff] }
 0x336   : > { %v588_v49 = vunpack.c.0.s8 %v484_v37 }
 0x337   : > { %v1712_v23 = vmul.f32 %v1563_v11, %v1397_v41  ;;  %1333 = vmatmul.f32.gmra.mxu3 %v695_v44  ;;  %v2689_v21 = vpop.f32.mrf.mxu1  ;;  %v2694_v44 = vpop.f32.mrf.mxu2  ;;  %v1490_v41 = vld [vmem:[#allocation2 + $0x50] sm:$0xff] }
 0x339   : > { %v1744_v0 = vadd.f32 %v1712_v23, %v1488_v6  ;;  %v716_v6 = vcvt.s32.f32 %v588_v49  ;;  %v579_v23 = vunpack.c.2.s8 %v2673_v40 }
 0x33a   : > { %v1286_v46 = vpop.f32.mrf.mxu3  ;;  %1458 = vmatmul.f32.gmra.mxu1 %v712_v25  ;;  %v583_v25 = vunpack.c.3.s8 %v2673_v40 }
 0x33b   : > { %1776 = vst [vmem:[#allocation2 + $0xd8] sm:$0xff] %v1744_v0  ;;  %v1287_v14 = vadd.f32 %v1286_v46, %v2574_v38  ;;  %v575_v38 = vunpack.c.1.s8 %v2673_v40  ;;  %v707_v46 = vcvt.s32.f32 %v579_v23 }
 0x33d   : > { %v1400_v55 = vadd.f32 %v2648_v28, %v1287_v14  ;;  %v703_v28 = vcvt.s32.f32 %v575_v38  ;;  %v1578_v14 = vpop.permute.xlu2 %1577 }
 0x33f   : > { %v1713_v13 = vmul.f32 %v1568_v45, %v1400_v55  ;;  %1336 = vmatmul.f32.gmra.mxu3 %v699_v5  ;;  %v2698_v54 = vpop.f32.mrf.mxu1  ;;  %v592_v5 = vunpack.c.1.s8 %v484_v37  ;;  %v2706_v17 = vpop.f32.mrf.mxu2 }
 0x341   : > { %v1745_v32 = vadd.f32 %v1713_v13, %v1489_v22  ;;  %v720_v55 = vcvt.s32.f32 %v592_v5  ;;  %v1493_v5 = vld [vmem:[#allocation2 + $0x48] sm:$0xff] }
 0x342   : > { %v1289_v36 = vpop.f32.mrf.mxu3  ;;  %1461 = vmatmul.f32.gmra.mxu1 %v716_v6 }
 0x343   : > { %1777 = vst [vmem:[#allocation2 + $0x18] sm:$0xff] %v1745_v32  ;;  %v1290_v11 = vadd.f32 %v1289_v36, %v2579_v53  ;;  %v1583_v32 = vpop.permute.xlu0 %1582  ;;  %v2711_v36 = vld [vmem:[%s2345_s15 + $0xd0] sm:$0xff] }
 0x345   : > { %v1403_v35 = vadd.f32 %v2658_v56, %v1290_v11  ;;  %v1541_v56 = vld [vmem:[%s2343_s14 + $0xb8] sm:$0xff]  ;;  %v1544_v11 = vld [vmem:[%s2343_s14 + $0xd0] sm:$0xff] }
 0x346   : > { %1667 = vperm.xlu2 %2116, %v1541_v56  }
 0x347   : > { %v1714_v1 = vmul.f32 %v1573_v48, %v1403_v35  ;;  %1339 = vmatmul.f32.gmra.mxu3 %v703_v28  ;;  %v2704_v12 = vpop.f32.mrf.mxu1  ;;  %v596_v48 = vunpack.c.2.s8 %v484_v37  ;;  %v2718_v6 = vpop.f32.mrf.mxu2 }
 0x349   : > { %v1746_v53 = vadd.f32 %v1714_v1, %v1490_v41  ;;  %v724_v40 = vcvt.s32.f32 %v596_v48  ;;  %v587_v41 = vunpack.c.0.s8 %v2711_v36  ;;  %v1494_v48 = vld [vmem:[#allocation2 + $0x80] sm:$0xff] }
 0x34a   : > { %v1292_v61 = vpop.f32.mrf.mxu3  ;;  %1464 = vmatmul.f32.gmra.mxu1 %v720_v55 }
 0x34b   : > { %1778 = vst [vmem:[#allocation2 + $0x50] sm:$0xff] %v1746_v53  ;;  %v1293_v0 = vadd.f32 %v1292_v61, %v2588_v63  ;;  %v715_v53 = vcvt.s32.f32 %v587_v41  ;;  %v600_v61 = vunpack.c.3.s8 %v484_v37 }
 0x34d   : > { %v1406_v45 = vadd.f32 %v2665_v20, %v1293_v0  ;;  %v711_v20 = vcvt.s32.f32 %v583_v25  ;;  %v1547_v0 = vld [vmem:[%s2343_s14 + $0xe8] sm:$0xff]  ;;  %v728_v56 = vcvt.s32.f32 %v600_v61 }
 0x34e   : > { %1682 = vperm.xlu2 %2116, %v1544_v11  }
 0x34f   : > { %v1715_v22 = vmul.f32 %v1578_v14, %v1406_v45  ;;  %1342 = vmatmul.f32.gmra.mxu3 %v707_v46  ;;  %v2715_v49 = vpop.f32.mrf.mxu1 }
 0x351   : > { %v1747_v63 = vadd.f32 %v1715_v22, %v1491_v16  ;;  %v591_v16 = vunpack.c.1.s8 %v2711_v36  ;;  %v2728_v22 = vpop.f32.mrf.mxu2 }
 0x352   : > { %v1295_v13 = vpop.f32.mrf.mxu3  ;;  %1467 = vmatmul.f32.gmra.mxu1 %v724_v40 }
 0x353   : > { %1779 = vst [vmem:[#allocation2 + $0x68] sm:$0xff] %v1747_v63  ;;  %v1296_v38 = vadd.f32 %v1295_v13, %v2595_v10  ;;  %v719_v25 = vcvt.s32.f32 %v591_v16  ;;  %v488_v63 = vld [vmem:[%s2345_s15 + $0xf8] sm:$0xff]  ;;  %v1593_v13 = vpop.permute.xlu2 %1592 }
 0x355   : > { %v1409_v28 = vadd.f32 %v2679_v19, %v1296_v38  ;;  %v1588_v19 = vpop.permute.xlu1 %1587  ;;  %v604_v38 = vunpack.c.0.s8 %v488_v63 }
 0x356   : > { %1697 = vperm.xlu2 %2116, %v1547_v0  }
 0x357   : > { %v1716_v35 = vmul.f32 %v1583_v32, %v1409_v28  ;;  %1345 = vmatmul.f32.gmra.mxu3 %v711_v20  ;;  %v2723_v14 = vpop.f32.mrf.mxu1  ;;  %v732_v11 = vcvt.s32.f32 %v604_v38 }
 0x359   : > { %v1748_v10 = vadd.f32 %v1716_v35, %v1492_v43 }
 0x35a   : > { %v1298_v1 = vpop.f32.mrf.mxu3  ;;  %1470 = vmatmul.f32.gmra.mxu1 %v728_v56 }
 0x35b   : > { %1780 = vst [vmem:[#allocation2 + $0x30] sm:$0xff] %v1748_v10  ;;  %v1299_v23 = vadd.f32 %v1298_v1, %v2602_v26  ;;  %v1189_v26 = vadd.f32 %v2668_v30, %v2582_v57  ;;  %v595_v57 = vunpack.c.2.s8 %v2711_v36  ;;  %v1192_v30 = vadd.f32 %v2682_v3, %v2590_v4  ;;  %v2737_v10 = vpop.f32.mrf.mxu2 }
 0x35c   : > { %v608_v1 = vunpack.c.1.s8 %v488_v63  ;;  %v599_v4 = vunpack.c.3.s8 %v2711_v36  ;;  %v1195_v3 = vadd.f32 %v2694_v44, %v2599_v18  ;;  %v1198_v18 = vadd.f32 %v2706_v17, %v2606_v34 }
 0x35d   : > { %v1412_v46 = vadd.f32 %v2689_v21, %v1299_v23  ;;  %v723_v41 = vcvt.s32.f32 %v595_v57  ;;  %v1603_v16 = vpop.permute.xlu1 %1602  ;;  %v616_v57 = vunpack.c.3.s8 %v488_v63  ;;  %v1201_v34 = vadd.f32 %v2718_v6, %v2610_v50 }
 0x35e   : > { %v736_v61 = vcvt.s32.f32 %v608_v1 }
 0x35f   : > { %v1717_v45 = vmul.f32 %v1588_v19, %v1412_v46  ;;  %1348 = vmatmul.f32.gmra.mxu3 %v715_v53  ;;  %v2732_v32 = vpop.f32.mrf.mxu1  ;;  %v1495_v19 = vld [vmem:[#allocation2 + $0x88] sm:$0xff] }
 0x361   : > { %v1749_v55 = vadd.f32 %v1717_v45, %v1493_v5  ;;  %v727_v45 = vcvt.s32.f32 %v599_v4 }
 0x362   : > { %v1301_v37 = vpop.f32.mrf.mxu3  ;;  %1473 = vmatmul.f32.gmra.mxu1 %v732_v11 }
 0x363   : > { %1781 = vst [vmem:[#allocation2 + $0x48] sm:$0xff] %v1749_v55  ;;  %v1302_v21 = vadd.f32 %v1301_v37, %v1189_v26  ;;  %v487_v26 = vld [vmem:[%s2345_s15 + $0xf0] sm:$0xff] }
 0x364   : > { %v603_v38 = vunpack.c.0.s8 %v487_v26 }
 0x365   : > { %v1415_v20 = vadd.f32 %v2698_v54, %v1302_v21  ;;  %v1598_v54 = vpop.permute.xlu0 %1597  ;;  %v2747_v21 = vpop.f32.mrf.mxu2 }
 0x366   : > { %v731_v11 = vcvt.s32.f32 %v603_v38 }
 0x367   : > { %v1718_v28 = vmul.f32 %v1593_v13, %v1415_v20  ;;  %1351 = vmatmul.f32.gmra.mxu3 %v719_v25  ;;  %v2740_v53 = vpop.f32.mrf.mxu1  ;;  %v1496_v25 = vld [vmem:[#allocation2 + $0xe8] sm:$0xff] }
 0x369   : > { %v1750_v43 = vadd.f32 %v1718_v28, %v1494_v48  ;;  %v1608_v28 = vpop.permute.xlu2 %1607 }
 0x36a   : > { %v1304_v40 = vpop.f32.mrf.mxu3  ;;  %1476 = vmatmul.f32.gmra.mxu1 %v736_v61 }
 0x36b   : > { %1782 = vst [vmem:[#allocation2 + $0x80] sm:$0xff] %v1750_v43  ;;  %v1305_v35 = vadd.f32 %v1304_v40, %v1192_v30  ;;  %v1497_v43 = vld [vmem:[#allocation2 + $0xb8] sm:$0xff]  ;;  %v744_v40 = vcvt.s32.f32 %v616_v57  ;;  %v1210_v57 = vadd.f32 %v2747_v21, %v2627_v24 }
 0x36d   : > { %v1418_v23 = vadd.f32 %v2704_v12, %v1305_v35  ;;  %v612_v12 = vunpack.c.2.s8 %v488_v63  ;;  %v1613_v61 = vpop.permute.xlu0 %1612 }
 0x36f   : > { %v1719_v0 = vmul.f32 %v1598_v54, %v1418_v23  ;;  %1354 = vmatmul.f32.gmra.mxu3 %v723_v41  ;;  %v1432_v37 = vpop.f32.mrf.mxu1  ;;  %v740_v13 = vcvt.s32.f32 %v612_v12  ;;  %v607_v41 = vunpack.c.1.s8 %v487_v26  ;;  %v1212_v54 = vpop.f32.mrf.mxu2 }
 0x371   : > { %v1751_v46 = vadd.f32 %v1719_v0, %v1495_v19  ;;  %v735_v19 = vcvt.s32.f32 %v607_v41  ;;  %v1498_v0 = vld [vmem:[#allocation2 + $0x60] sm:$0xff] }
 0x372   : > { %v1307_v5 = vpop.f32.mrf.mxu3  ;;  %1479 = vmatmul.f32.gmra.mxu1 %v740_v13  ;;  %v615_v13 = vunpack.c.3.s8 %v487_v26 }
 0x373   : > { %1783 = vst [vmem:[#allocation2 + $0x88] sm:$0xff] %v1751_v46  ;;  %v1308_v56 = vadd.f32 %v1307_v5, %v1195_v3  ;;  %v611_v3 = vunpack.c.2.s8 %v487_v26  ;;  %v1204_v46 = vadd.f32 %v2728_v22, %v2615_v60 }
 0x374   : > { %v743_v22 = vcvt.s32.f32 %v615_v13  ;;  %v1504_v13 = vld [vmem:[#allocation2 + $0x40] sm:$0xff] }
 0x375   : > { %v1421_v55 = vadd.f32 %v2715_v49, %v1308_v56  ;;  %v739_v6 = vcvt.s32.f32 %v611_v3 }
 0x377   : > { %v1720_v36 = vmul.f32 %v1603_v16, %v1421_v55  ;;  %1357 = vmatmul.f32.gmra.mxu3 %v727_v45  ;;  %v1435_v30 = vpop.f32.mrf.mxu1  ;;  %v1215_v56 = vpop.f32.mrf.mxu2  ;;  %v1499_v55 = vld [vmem:[#allocation2 + $0xf0] sm:$0xff] }
 0x378   : > { %v1618_v16 = vpop.permute.xlu1 %1617 }
 0x379   : > { %v1752_v44 = vadd.f32 %v1720_v36, %v1496_v25  ;;  %v1207_v36 = vadd.f32 %v2737_v10, %v2622_v9  ;;  %v1628_v9 = vpop.permute.xlu0 %1627 }
 0x37a   : > { %v1310_v20 = vpop.f32.mrf.mxu3  ;;  %1482 = vmatmul.f32.gmra.mxu1 %v744_v40 }
 0x37b   : > { %1784 = vst [vmem:[#allocation2 + $0xe8] sm:$0xff] %v1752_v44  ;;  %v1311_v48 = vadd.f32 %v1310_v20, %v1198_v18  ;;  %v1623_v20 = vpop.permute.xlu2 %1622 }
 0x37d   : > { %v1424_v49 = vadd.f32 %v2723_v14, %v1311_v48 }
 0x37f   : > { %v1721_v35 = vmul.f32 %v1608_v28, %v1424_v49  ;;  %1360 = vmatmul.f32.gmra.mxu3 %v731_v11  ;;  %v1438_v14 = vpop.f32.mrf.mxu1  ;;  %v1218_v44 = vpop.f32.mrf.mxu2  ;;  %v1500_v11 = vld [vmem:[#allocation2 + $0x8] sm:$0xff] }
 0x381   : > { %v1753_v17 = vadd.f32 %v1721_v35, %v1497_v43  ;;  %v1501_v35 = vld [vmem:[#allocation2 + $0x78] sm:$0xff] }
 0x382   : > { %v1313_v1 = vpop.f32.mrf.mxu3 }
 0x383   : > { %1785 = vst [vmem:[#allocation2 + $0xb8] sm:$0xff] %v1753_v17  ;;  %v1314_v23 = vadd.f32 %v1313_v1, %v1201_v34  ;;  %v1213_v34 = vadd.f32 %v1212_v54, %v2535_v33  ;;  %v1503_v33 = vld [vmem:[#allocation2 + $0x58] sm:$0xff] }
 0x385   : > { %v1427_v63 = vadd.f32 %v2732_v32, %v1314_v23 }
 0x387   : > { %v1722_v4 = vmul.f32 %v1613_v61, %v1427_v63  ;;  %1363 = vmatmul.f32.gmra.mxu3 %v735_v19  ;;  %v1441_v25 = vpop.f32.mrf.mxu1  ;;  %v1221_v40 = vpop.f32.mrf.mxu2  ;;  %v1502_v63 = vld [vmem:[#allocation2 + $0x38] sm:$0xff] }
 0x388   : > { %v1633_v19 = vpop.permute.xlu1 %1632 }
 0x389   : > { %v1754_v5 = vadd.f32 %v1722_v4, %v1498_v0  ;;  %v1216_v0 = vadd.f32 %v1215_v56, %v2540_v42 }
 0x38a   : > { %v1316_v45 = vpop.f32.mrf.mxu3 }
 0x38b   : > { %1786 = vst [vmem:[#allocation2 + $0x60] sm:$0xff] %v1754_v5  ;;  %v1317_v50 = vadd.f32 %v1316_v45, %v1204_v46  ;;  %v1638_v46 = vpop.permute.xlu2 %1637 }
 0x38d   : > { %v1430_v12 = vadd.f32 %v2740_v53, %v1317_v50  ;;  %v1219_v50 = vadd.f32 %v1218_v44, %v2550_v27  ;;  %v1505_v27 = vld [vmem:[#allocation2 + $0xc8] sm:$0xff] }
 0x38f   : > { %v1723_v32 = vmul.f32 %v1618_v16, %v1430_v12  ;;  %1366 = vmatmul.f32.gmra.mxu3 %v739_v6  ;;  %v1444_v53 = vpop.f32.mrf.mxu1  ;;  %v1224_v21 = vpop.f32.mrf.mxu2 }
 0x391   : > { %v1755_v38 = vadd.f32 %v1723_v32, %v1499_v55  ;;  %v1643_v32 = vpop.permute.xlu0 %1642 }
 0x392   : > { %v1319_v18 = vpop.f32.mrf.mxu3 }
 0x393   : > { %1787 = vst [vmem:[#allocation2 + $0xf0] sm:$0xff] %v1755_v38  ;;  %v1320_v60 = vadd.f32 %v1319_v18, %v1207_v36  ;;  %v1222_v36 = vadd.f32 %v1221_v40, %v2557_v2  ;;  %v1506_v2 = vld [vmem:[#allocation2 + $0xe0] sm:$0xff] }
 0x395   : > { %v1433_v48 = vadd.f32 %v1432_v37, %v1320_v60 }
 0x397   : > { %v1724_v28 = vmul.f32 %v1623_v20, %v1433_v48  ;;  %1369 = vmatmul.f32.gmra.mxu3 %v743_v22  ;;  %v1447_v1 = vpop.f32.mrf.mxu1  ;;  %v1227_v16 = vpop.f32.mrf.mxu2 }
 0x398   : > { %v1648_v20 = vpop.permute.xlu1 %1647 }
 0x399   : > { %v1756_v49 = vadd.f32 %v1724_v28, %v1500_v11  ;;  %v1225_v11 = vadd.f32 %v1224_v21, %v2563_v8 }
 0x39a   : > { %v1322_v26 = vpop.f32.mrf.mxu3 }
 0x39b   : > { %1788 = vst [vmem:[#allocation2 + $0x8] sm:$0xff] %v1756_v49  ;;  %v1323_v43 = vadd.f32 %v1322_v26, %v1210_v57 }
 0x39d   : > { %v1436_v10 = vadd.f32 %v1435_v30, %v1323_v43  ;;  %v1653_v43 = vpop.permute.xlu2 %1652 }
 0x39f   : > { %v1725_v41 = vmul.f32 %v1628_v9, %v1436_v10  ;;  %v1450_v5 = vpop.f32.mrf.mxu1  ;;  %v1230_v60 = vpop.f32.mrf.mxu2  ;;  %v1228_v10 = vadd.f32 %v1227_v16, %v2572_v29  ;;  %v1508_v29 = vld [vmem:[#allocation2 + $0x70] sm:$0xff] }
 0x3a1   : > { %v1757_v17 = vadd.f32 %v1725_v41, %v1501_v35 }
 0x3a2   : > { %v1325_v37 = vpop.f32.mrf.mxu3 }
 0x3a3   : > { %1789 = vst [vmem:[#allocation2 + $0x78] sm:$0xff] %v1757_v17  ;;  %v1326_v23 = vadd.f32 %v1325_v37, %v1213_v34  ;;  %v1658_v37 = vpop.permute.xlu0 %1657 }
 0x3a5   : > { %v1439_v61 = vadd.f32 %v1438_v14, %v1326_v23 }
 0x3a7   : > { %v1726_v24 = vmul.f32 %v1633_v19, %v1439_v61  ;;  %v1453_v42 = vpop.f32.mrf.mxu1  ;;  %v1233_v26 = vpop.f32.mrf.mxu2  ;;  %v1231_v19 = vadd.f32 %v1230_v60, %v2576_v47 }
 0x3a9   : > { %v1758_v4 = vadd.f32 %v1726_v24, %v1502_v63 }
 0x3aa   : > { %v1328_v3 = vpop.f32.mrf.mxu3 }
 0x3ab   : > { %1790 = vst [vmem:[#allocation2 + $0x38] sm:$0xff] %v1758_v4  ;;  %v1329_v30 = vadd.f32 %v1328_v3, %v1216_v0  ;;  %v1663_v4 = vpop.permute.xlu1 %1662 }
 0x3ad   : > { %v1442_v45 = vadd.f32 %v1441_v25, %v1329_v30  ;;  %v1234_v30 = vadd.f32 %v1233_v26, %v2584_v62  ;;  %v1510_v62 = vld [vmem:[#allocation2 + $0xa8] sm:$0xff] }
 0x3af   : > { %v1727_v54 = vmul.f32 %v1638_v46, %v1442_v45  ;;  %v1456_v48 = vpop.f32.mrf.mxu1  ;;  %v1236_v23 = vpop.f32.mrf.mxu2 }
 0x3b1   : > { %v1759_v6 = vadd.f32 %v1727_v54, %v1503_v33 }
 0x3b2   : > { %v1331_v12 = vpop.f32.mrf.mxu3 }
 0x3b3   : > { %1791 = vst [vmem:[#allocation2 + $0x58] sm:$0xff] %v1759_v6  ;;  %v1332_v14 = vadd.f32 %v1331_v12, %v1219_v50  ;;  %v1668_v50 = vpop.permute.xlu2 %1667  ;;  %v1509_v6 = vld [vmem:[#allocation2 + $0xc0] sm:$0xff]  ;;  %v1237_v12 = vadd.f32 %v1236_v23, %v2592_v7  ;;  %v1511_v7 = vld [vmem:[#allocation2 + $0xd0] sm:$0xff] }
 0x3b5   : > { %v1445_v55 = vadd.f32 %v1444_v53, %v1332_v14 }
 0x3b7   : > { %v1728_v56 = vmul.f32 %v1643_v32, %v1445_v55  ;;  %v1459_v41 = vpop.f32.mrf.mxu1 }
 0x3b9   : > { %v1760_v38 = vadd.f32 %v1728_v56, %v1504_v13  ;;  %v1673_v56 = vpop.permute.xlu0 %1672 }
 0x3ba   : > { %v1334_v18 = vpop.f32.mrf.mxu3 }
 0x3bb   : > { %1792 = vst [vmem:[#allocation2 + $0x40] sm:$0xff] %v1760_v38  ;;  %v1335_v25 = vadd.f32 %v1334_v18, %v1222_v36 }
 0x3bd   : > { %v1448_v22 = vadd.f32 %v1447_v1, %v1335_v25  ;;  %v1507_v1 = vld [vmem:[#allocation2 + $0x90] sm:$0xff] }
 0x3bf   : > { %v1729_v44 = vmul.f32 %v1648_v20, %v1448_v22  ;;  %v1462_v21 = vpop.f32.mrf.mxu1 }
 0x3c1   : > { %v1761_v28 = vadd.f32 %v1729_v44, %v1505_v27  ;;  %v1678_v44 = vpop.permute.xlu1 %1677 }
 0x3c2   : > { %v1337_v53 = vpop.f32.mrf.mxu3 }
 0x3c3   : > { %1793 = vst [vmem:[#allocation2 + $0xc8] sm:$0xff] %v1761_v28  ;;  %v1338_v57 = vadd.f32 %v1337_v53, %v1225_v11 }
 0x3c5   : > { %v1451_v49 = vadd.f32 %v1450_v5, %v1338_v57  ;;  %v1239_v5 = vpop.f32.mrf.mxu2 }
 0x3c6   : > { %v1240_v18 = vadd.f32 %v1239_v5, %v2604_v31 }
 0x3c7   : > { %v1730_v9 = vmul.f32 %v1653_v43, %v1451_v49  ;;  %v1465_v47 = vpop.f32.mrf.mxu1  ;;  %v1683_v43 = vpop.permute.xlu2 %1682 }
 0x3c9   : > { %v1762_v40 = vadd.f32 %v1730_v9, %v1506_v2  ;;  %v1512_v2 = vld [vmem:[#allocation2 + $0x10] sm:$0xff] }
 0x3ca   : > { %v1340_v35 = vpop.f32.mrf.mxu3 }
 0x3cb   : > { %1794 = vst [vmem:[#allocation2 + $0xe0] sm:$0xff] %v1762_v40  ;;  %v1341_v34 = vadd.f32 %v1340_v35, %v1228_v10 }
 0x3cd   : > { %v1454_v17 = vadd.f32 %v1453_v42, %v1341_v34  ;;  %v1242_v13 = vpop.f32.mrf.mxu2 }
 0x3ce   : > { %v1243_v11 = vadd.f32 %v1242_v13, %v2612_v51  ;;  %v1513_v51 = vld [vmem:[#allocation2 + $0x28] sm:$0xff] }
 0x3cf   : > { %v1731_v8 = vmul.f32 %v1658_v37, %v1454_v17  ;;  %v1468_v38 = vpop.f32.mrf.mxu1  ;;  %v1688_v37 = vpop.permute.xlu0 %1687 }
 0x3d1   : > { %v1763_v61 = vadd.f32 %v1731_v8, %v1507_v1 }
 0x3d2   : > { %v1343_v63 = vpop.f32.mrf.mxu3 }
 0x3d3   : > { %1795 = vst [vmem:[#allocation2 + $0x90] sm:$0xff] %v1763_v61  ;;  %v1344_v24 = vadd.f32 %v1343_v63, %v1231_v19 }
 0x3d5   : > { %v1457_v0 = vadd.f32 %v1456_v48, %v1344_v24  ;;  %v1245_v27 = vpop.f32.mrf.mxu2 }
 0x3d6   : > { %v1246_v10 = vadd.f32 %v1245_v27, %v2617_v52 }
 0x3d7   : > { %v1732_v3 = vmul.f32 %v1663_v4, %v1457_v0  ;;  %v1471_v57 = vpop.f32.mrf.mxu1  ;;  %v1514_v0 = vld [vmem:[#allocation2 + $0xa0] sm:$0xff] }
 0x3d9   : > { %v1764_v46 = vadd.f32 %v1732_v3, %v1508_v29 }
 0x3da   : > { %v1346_v45 = vpop.f32.mrf.mxu3 }
 0x3db   : > { %1796 = vst [vmem:[#allocation2 + $0x70] sm:$0xff] %v1764_v46  ;;  %v1347_v33 = vadd.f32 %v1346_v45, %v1234_v30 }
 0x3dd   : > { %v1460_v54 = vadd.f32 %v1459_v41, %v1347_v33  ;;  %v1248_v9 = vpop.f32.mrf.mxu2  ;;  %v1698_v33 = vpop.permute.xlu2 %1697 }
 0x3de   : > { %v1249_v8 = vadd.f32 %v1248_v9, %v2624_v15  ;;  %v1515_v15 = vld [vmem:[#allocation2 + $0xf8] sm:$0xff] }
 0x3df   : > { %v1733_v16 = vmul.f32 %v1668_v50, %v1460_v54  ;;  %v1474_v34 = vpop.f32.mrf.mxu1 }
 0x3e1   : > { %v1765_v14 = vadd.f32 %v1733_v16, %v1509_v6 }
 0x3e2   : > { %v1349_v55 = vpop.f32.mrf.mxu3 }
 0x3e3   : > { %1797 = vst [vmem:[#allocation2 + $0xc0] sm:$0xff] %v1765_v14  ;;  %v1350_v32 = vadd.f32 %v1349_v55, %v1237_v12 }
 0x3e5   : > { %v1463_v42 = vadd.f32 %v1462_v21, %v1350_v32  ;;  %v1251_v19 = vpop.f32.mrf.mxu2  ;;  %v1693_v21 = vpop.permute.xlu1 %1692 }
 0x3e6   : > { %v1252_v29 = vadd.f32 %v1251_v19, %v2631_v39  ;;  %v1703_v32 = vpop.permute.xlu0 %1702  ;;  %v1516_v39 = vld [vmem:[#allocation2 + $0x20] sm:$0xff] }
 0x3e7   : > { %v1734_v36 = vmul.f32 %v1673_v56, %v1463_v42  ;;  %v1477_v52 = vpop.f32.mrf.mxu1 }
 0x3e9   : > { %v1766_v25 = vadd.f32 %v1734_v36, %v1510_v62 }
 0x3ea   : > { %v1352_v60 = vpop.f32.mrf.mxu3 }
 0x3eb   : > { %1798 = vst [vmem:[#allocation2 + $0xa8] sm:$0xff] %v1766_v25  ;;  %v1353_v22 = vadd.f32 %v1352_v60, %v1240_v18  ;;  %v1517_v60 = vld [vmem:[#allocation2 + $0x98] sm:$0xff] }
 0x3ed   : > { %v1466_v20 = vadd.f32 %v1465_v47, %v1353_v22  ;;  %v1254_v5 = vpop.f32.mrf.mxu2  ;;  %v1708_v25 = vpop.permute.xlu1 %1707 }
 0x3ee   : > { %v1255_v6 = vadd.f32 %v1254_v5, %v2634_v59 }
 0x3ef   : > { %v1735_v48 = vmul.f32 %v1678_v44, %v1466_v20  ;;  %v1480_v50 = vpop.f32.mrf.mxu1 }
 0x3f1   : > { %v1767_v28 = vadd.f32 %v1735_v48, %v1511_v7 }
 0x3f2   : > { %v1355_v53 = vpop.f32.mrf.mxu3 }
 0x3f3   : > { %1799 = vst [vmem:[#allocation2 + $0xd0] sm:$0xff] %v1767_v28  ;;  %v1356_v49 = vadd.f32 %v1355_v53, %v1243_v11 }
 0x3f5   : > { %v1469_v26 = vadd.f32 %v1468_v38, %v1356_v49  ;;  %v1257_v55 = vpop.f32.mrf.mxu2 }
 0x3f6   : > { %v1258_v42 = vadd.f32 %v1257_v55, %v2643_v58 }
 0x3f7   : > { %v1736_v31 = vmul.f32 %v1683_v43, %v1469_v26  ;;  %v1483_v36 = vpop.f32.mrf.mxu1 }
 0x3f9   : > { %v1768_v40 = vadd.f32 %v1736_v31, %v1512_v2 }
 0x3fa   : > { %v1358_v35 = vpop.f32.mrf.mxu3 }
 0x3fb   : > { %1800 = vst [vmem:[#allocation2 + $0x10] sm:$0xff] %v1768_v40  ;;  %v1359_v41 = vadd.f32 %v1358_v35, %v1246_v10 }
 0x3fd   : > { %v1472_v17 = vadd.f32 %v1471_v57, %v1359_v41 }
 0x3ff   : > { %v1737_v1 = vmul.f32 %v1688_v37, %v1472_v17 }
 0x401   : > { %v1769_v23 = vadd.f32 %v1737_v1, %v1513_v51 }
 0x402   : > { %v1361_v61 = vpop.f32.mrf.mxu3 }
 0x403   : > { %1801 = vst [vmem:[#allocation2 + $0x28] sm:$0xff] %v1769_v23  ;;  %v1362_v63 = vadd.f32 %v1361_v61, %v1249_v8 }
 0x405   : > { %v1475_v24 = vadd.f32 %v1474_v34, %v1362_v63 }
 0x407   : > { %v1738_v4 = vmul.f32 %v1693_v21, %v1475_v24 }
 0x409   : > { %v1770_v3 = vadd.f32 %v1738_v4, %v1514_v0 }
 0x40a   : > { %v1364_v30 = vpop.f32.mrf.mxu3 }
 0x40b   : > { %1802 = vst [vmem:[#allocation2 + $0xa0] sm:$0xff] %v1770_v3  ;;  %v1365_v46 = vadd.f32 %v1364_v30, %v1252_v29 }
 0x40d   : > { %v1478_v45 = vadd.f32 %v1477_v52, %v1365_v46 }
 0x40f   : > { %v1739_v54 = vmul.f32 %v1698_v33, %v1478_v45 }
 0x411   : > { %v1771_v47 = vadd.f32 %v1739_v54, %v1515_v15 }
 0x412   : > { %v1367_v16 = vpop.f32.mrf.mxu3 }
 0x413   : > { %1803 = vst [vmem:[#allocation2 + $0xf8] sm:$0xff] %v1771_v47  ;;  %v1368_v12 = vadd.f32 %v1367_v16, %v1255_v6 }
 0x415   : > { %v1481_v14 = vadd.f32 %v1480_v50, %v1368_v12 }
 0x417   : > { %v1740_v13 = vmul.f32 %v1703_v32, %v1481_v14 }
 0x419   : > { %v1772_v56 = vadd.f32 %v1740_v13, %v1516_v39 }
 0x41a   : > { %v1370_v62 = vpop.f32.mrf.mxu3 }
 0x41b   : > { %1804 = vst [vmem:[#allocation2 + $0x20] sm:$0xff] %v1772_v56  ;;  %v1371_v38 = vadd.f32 %v1370_v62, %v1258_v42 }
 0x41d   : > { %v1484_v18 = vadd.f32 %v1483_v36, %v1371_v38 }
 0x41f   : > { %v1741_v59 = vmul.f32 %v1708_v25, %v1484_v18  ;;  %1809 = sbr.rel (%p2032_p13) target bundleno = 1095 (0x447), region = 71 }
 0x421   : > { %v1773_v22 = vadd.f32 %v1741_v59, %v1517_v60 }
 0x423   : > { %1805 = vst [vmem:[#allocation2 + $0x98] sm:$0xff] %v1773_v22 }
 0x424   : > { %v1810_v20 = vld [vmem:[#allocation2 + $0xb0] sm:$0xff]  ;;  %v2782_v27 = vld [vmem:[%s2932_s5] ss:$0 sm:$0xff]  ;;  %v1812_v44 = vld [vmem:[#allocation2 + $0xd8] sm:$0xff] }
 0x425   : > { %v1811_v58 = vld [vmem:[#allocation2] sm:$0xff]  ;;  %v1813_v7 = vld [vmem:[#allocation2 + $0x18] sm:$0xff]  ;;  %v1846_v48 = vadd.f32 %v2782_v27, %v1810_v20  ;;  %v1848_v28 = vadd.f32 %v2782_v27, %v1812_v44  ;;  %v1814_v53 = vld [vmem:[#allocation2 + $0x50] sm:$0xff] }
 0x426   : > { %v1847_v11 = vadd.f32 %v2782_v27, %v1811_v58  ;;  %v1815_v57 = vld [vmem:[#allocation2 + $0x68] sm:$0xff]  ;;  %v1849_v49 = vadd.f32 %v2782_v27, %v1813_v7  ;;  %v1816_v26 = vld [vmem:[#allocation2 + $0x30] sm:$0xff]  ;;  %v1850_v43 = vadd.f32 %v2782_v27, %v1814_v53  ;;  %v1818_v9 = vld [vmem:[#allocation2 + $0x80] sm:$0xff] }
 0x427   : > { %1878 = vst [vmem:[%s2933_s6] sm:$0xff] %v1846_v48  ;;  %v1817_v2 = vld [vmem:[#allocation2 + $0x48] sm:$0xff]  ;;  %v1851_v31 = vadd.f32 %v2782_v27, %v1815_v57  ;;  %v1852_v10 = vadd.f32 %v2782_v27, %v1816_v26  ;;  %v1854_v34 = vadd.f32 %v2782_v27, %v1818_v9  ;;  %v1821_v17 = vld [vmem:[#allocation2 + $0xb8] sm:$0xff]  ;;  %v1822_v51 = vld [vmem:[#allocation2 + $0x60] sm:$0xff] }
 0x428   : > { %1879 = vst [vmem:[%s2933_s6 + $0x8] sm:$0xff] %v1847_v11  ;;  %v1819_v40 = vld [vmem:[#allocation2 + $0x88] sm:$0xff]  ;;  %v1853_v35 = vadd.f32 %v2782_v27, %v1817_v2  ;;  %v1823_v8 = vld [vmem:[#allocation2 + $0xf0] sm:$0xff]  ;;  %v1857_v23 = vadd.f32 %v2782_v27, %v1821_v17  ;;  %v1858_v61 = vadd.f32 %v2782_v27, %v1822_v51  ;;  %v1825_v63 = vld [vmem:[#allocation2 + $0x78] sm:$0xff] }
 0x429   : > { %1880 = vst [vmem:[%s2933_s6 + $0x10] sm:$0xff] %v1848_v28  ;;  %v1820_v41 = vld [vmem:[#allocation2 + $0xe8] sm:$0xff]  ;;  %v1855_v37 = vadd.f32 %v2782_v27, %v1819_v40  ;;  %v1859_v24 = vadd.f32 %v2782_v27, %v1823_v8  ;;  %v1826_v21 = vld [vmem:[#allocation2 + $0x38] sm:$0xff]  ;;  %v1861_v4 = vadd.f32 %v2782_v27, %v1825_v63  ;;  %v1828_v29 = vld [vmem:[#allocation2 + $0x40] sm:$0xff] }
 0x42a   : > { %1881 = vst [vmem:[%s2933_s6 + $0x18] sm:$0xff] %v1849_v49  ;;  %v1856_v1 = vadd.f32 %v2782_v27, %v1820_v41  ;;  %v1824_v19 = vld [vmem:[#allocation2 + $0x8] sm:$0xff]  ;;  %v1827_v52 = vld [vmem:[#allocation2 + $0x58] sm:$0xff]  ;;  %v1862_v3 = vadd.f32 %v2782_v27, %v1826_v21  ;;  %v1830_v5 = vld [vmem:[#allocation2 + $0xe0] sm:$0xff]  ;;  %v1864_v45 = vadd.f32 %v2782_v27, %v1828_v29 }
 0x42b   : > { %1882 = vst [vmem:[%s2933_s6 + $0x20] sm:$0xff] %v1850_v43  ;;  %v1860_v0 = vadd.f32 %v2782_v27, %v1824_v19  ;;  %v1829_v30 = vld [vmem:[#allocation2 + $0xc8] sm:$0xff]  ;;  %v1863_v46 = vadd.f32 %v2782_v27, %v1827_v52  ;;  %v1831_v33 = vld [vmem:[#allocation2 + $0x90] sm:$0xff]  ;;  %v1866_v50 = vadd.f32 %v2782_v27, %v1830_v5  ;;  %v1833_v6 = vld [vmem:[#allocation2 + $0xc0] sm:$0xff] }
 0x42c   : > { %1883 = vst [vmem:[%s2933_s6 + $0x28] sm:$0xff] %v1851_v31  ;;  %v1865_v15 = vadd.f32 %v2782_v27, %v1829_v30  ;;  %v1832_v54 = vld [vmem:[#allocation2 + $0x70] sm:$0xff]  ;;  %v1867_v47 = vadd.f32 %v2782_v27, %v1831_v33  ;;  %v1834_v16 = vld [vmem:[#allocation2 + $0xa8] sm:$0xff]  ;;  %v1869_v55 = vadd.f32 %v2782_v27, %v1833_v6  ;;  %v1838_v56 = vld [vmem:[#allocation2 + $0xa0] sm:$0xff] }
 0x42d   : > { %1884 = vst [vmem:[%s2933_s6 + $0x30] sm:$0xff] %v1852_v10  ;;  %v1868_v12 = vadd.f32 %v2782_v27, %v1832_v54  ;;  %v1835_v14 = vld [vmem:[#allocation2 + $0xd0] sm:$0xff]  ;;  %v1870_v39 = vadd.f32 %v2782_v27, %v1834_v16  ;;  %v1837_v13 = vld [vmem:[#allocation2 + $0x28] sm:$0xff]  ;;  %v1839_v36 = vld [vmem:[#allocation2 + $0xf8] sm:$0xff]  ;;  %v1874_v25 = vadd.f32 %v2782_v27, %v1838_v56 }
 0x42e   : > { %1885 = vst [vmem:[%s2933_s6 + $0x38] sm:$0xff] %v1853_v35  ;;  %v1836_v32 = vld [vmem:[#allocation2 + $0x10] sm:$0xff]  ;;  %v1871_v42 = vadd.f32 %v2782_v27, %v1835_v14  ;;  %v1873_v38 = vadd.f32 %v2782_v27, %v1837_v13  ;;  %v1840_v18 = vld [vmem:[#allocation2 + $0x20] sm:$0xff]  ;;  %v1841_v60 = vld [vmem:[#allocation2 + $0x98] sm:$0xff]  ;;  %v1875_v59 = vadd.f32 %v2782_v27, %v1839_v36 }
 0x42f   : > { %1886 = vst [vmem:[%s2933_s6 + $0x40] sm:$0xff] %v1854_v34  ;;  %v1872_v62 = vadd.f32 %v2782_v27, %v1836_v32  ;;  %v1876_v22 = vadd.f32 %v2782_v27, %v1840_v18  ;;  %v1877_v20 = vadd.f32 %v2782_v27, %v1841_v60 }
 0x430   : > { %1887 = vst [vmem:[%s2933_s6 + $0x48] sm:$0xff] %v1855_v37 }
 0x431   : > { %1888 = vst [vmem:[%s2933_s6 + $0x50] sm:$0xff] %v1856_v1 }
 0x432   : > { %1889 = vst [vmem:[%s2933_s6 + $0x58] sm:$0xff] %v1857_v23 }
 0x433   : > { %1890 = vst [vmem:[%s2933_s6 + $0x60] sm:$0xff] %v1858_v61 }
 0x434   : > { %1891 = vst [vmem:[%s2933_s6 + $0x68] sm:$0xff] %v1859_v24 }
 0x435   : > { %1892 = vst [vmem:[%s2933_s6 + $0x70] sm:$0xff] %v1860_v0 }
 0x436   : > { %1893 = vst [vmem:[%s2933_s6 + $0x78] sm:$0xff] %v1861_v4 }
 0x437   : > { %1894 = vst [vmem:[%s2933_s6 + $0x80] sm:$0xff] %v1862_v3 }
 0x438   : > { %1895 = vst [vmem:[%s2933_s6 + $0x88] sm:$0xff] %v1863_v46 }
 0x439   : > { %1896 = vst [vmem:[%s2933_s6 + $0x90] sm:$0xff] %v1864_v45 }
 0x43a   : > { %1897 = vst [vmem:[%s2933_s6 + $0x98] sm:$0xff] %v1865_v15 }
 0x43b   : > { %1898 = vst [vmem:[%s2933_s6 + $0xa0] sm:$0xff] %v1866_v50 }
 0x43c   : > { %1899 = vst [vmem:[%s2933_s6 + $0xa8] sm:$0xff] %v1867_v47 }
 0x43d   : > { %1900 = vst [vmem:[%s2933_s6 + $0xb0] sm:$0xff] %v1868_v12 }
 0x43e   : > { %1901 = vst [vmem:[%s2933_s6 + $0xb8] sm:$0xff] %v1869_v55 }
 0x43f   : > { %1902 = vst [vmem:[%s2933_s6 + $0xc0] sm:$0xff] %v1870_v39 }
 0x440   : > { %1903 = vst [vmem:[%s2933_s6 + $0xc8] sm:$0xff] %v1871_v42 }
 0x441   : > { %1904 = vst [vmem:[%s2933_s6 + $0xd0] sm:$0xff] %v1872_v62 }
 0x442   : > { %1905 = vst [vmem:[%s2933_s6 + $0xd8] sm:$0xff] %v1873_v38 }
 0x443   : > { %1906 = vst [vmem:[%s2933_s6 + $0xe0] sm:$0xff] %v1874_v25 }
 0x444   : > { %1907 = vst [vmem:[%s2933_s6 + $0xe8] sm:$0xff] %v1875_v59 }
 0x445   : > { %1908 = vst [vmem:[%s2933_s6 + $0xf0] sm:$0xff] %v1876_v22 }
 0x446   : > { %1909 = vst [vmem:[%s2933_s6 + $0xf8] sm:$0xff] %v1877_v20 }
 0x447 PF: > { %s24_s29 = sadd.s32 1, %s2170_s29   ;;  %s2934_s25 = smov %s2158_s26 }
 0x448   : > { %p21_p0 = scmp.ge.s32.totalorder %s24_s29, 4   ;;  %s2935_s26 = smov %s2248_s8 }
 0x449   : > { %s2936_s27 = smov %s2166_s28  ;;  %s2937_s28 = smov %s2939_s0 }
 0x44a   :  { %23 = sbr.rel (!%p21_p0) target bundleno = 9 (0x9), region = 115 }

</bundles_post_ra>
